<compile_context>
chip_gen: v7x
topology: tpu7x:2x2x1
jax: 0.10.0
libtpu: 0.0.40
codegen_flags: <defaults>
</compile_context>

<pallas_src>
import functools

import jax
import jax.numpy as jnp
from jax.experimental import pallas as pl
from jax.experimental.pallas import tpu as pltpu


def _const_block_spec(shape, index_map):
    # Single-buffer constant operands (their block index never changes).
    # Fall back gracefully on JAX builds whose BlockSpec lacks pipeline_mode.
    if hasattr(pl, "Buffered"):
        try:
            return pl.BlockSpec(shape, index_map, pipeline_mode=pl.Buffered(1))
        except TypeError:
            pass
    return pl.BlockSpec(shape, index_map)


# ----------------------------------------------------------------------------
# Pallas kernel 1: per-frame calibrated depthwise 7x7 conv, W folded into lanes
#   out[h,w,c] = alpha_w[c] * sum_{ki,kj} w[ki,kj,c] * xpad[h+ki, w+kj, c]
#                + alpha_b[c] * bias[c]
# ----------------------------------------------------------------------------
def _dwconv_kernel(x_ref, aw_ref, ab_ref, w_ref, b_ref, o_ref, xpad_ref,
                   *, KH, KW, C, row0):
    # x_ref : (1, 1, H, W*C)      one frame, W folded into the lane axis
    # aw_ref: (1, 1, 1, W*C)      weight calibration (tiled over W)
    # ab_ref: (1, 1, 1, W*C)      bias calibration (tiled over W)
    # w_ref : (KH*KW, W*C)        depthwise taps (tiled over W)
    # b_ref : (1, W*C)            conv bias (tiled over W)
    # o_ref : (1, 1, H, W*C)
    # xpad  : (Hscr, (W+KW-1)*C)  zero-padded frame scratch; data sits at
    #         sublane row `row0` (multiple of 8) and lane offset (KW//2)*C.
    H, WC = o_ref.shape[2], o_ref.shape[3]
    W = WC // C
    ph, pw = KH // 2, KW // 2

    # Zero the scratch (halo) only once per video.  The T axis is "arbitrary"
    # (never megacore-sharded), so t == 0 runs first on whichever core owns
    # this b; the interior is fully overwritten every step below.
    @pl.when(pl.program_id(1) == 0)
    def _clear():
        xpad_ref[...] = jnp.zeros(xpad_ref.shape, xpad_ref.dtype)

    # In-kernel padding: sublane-aligned row offset, lane-aligned col offset.
    xpad_ref[row0:row0 + H, pw * C:(pw + W) * C] = x_ref[0, 0]

    aw = aw_ref[0, 0]                            # (1, WC), broadcasts over rows
    bias_term = b_ref[...] * ab_ref[0, 0]        # (1, WC)

    # Sublane-banded accumulator: an 8-row band (~8 vregs at C=128) stays
    # register resident across all 49 taps and is stored exactly once, so the
    # accumulator never spills to VMEM (store-slot contention removed).
    for h0 in range(0, H, 8):
        bs = min(8, H - h0)
        acc = jnp.zeros((bs, WC), jnp.float32)
        for ki in range(KH):
            r = row0 + h0 - ph + ki
            rows = xpad_ref[r:r + bs, :]         # (bs, (W+KW-1)*C), one load
            for kj in range(KW):                 # lane-aligned tap slices
                tap = w_ref[ki * KW + kj:ki * KW + kj + 1, :]      # (1, WC)
                acc = acc + rows[:, kj * C:kj * C + WC] * tap
        o_ref[0, 0, h0:h0 + bs, :] = acc * aw + bias_term


def tada_dwconv(x_fold, alpha_w, alpha_b, dw_w, dw_b, C, KH=7, KW=7):
    # x_fold : (B, T, H, W*C) channels-last with W folded into lanes
    # alpha_*: (B, T, C); dw_w: (KH*KW, C); dw_b: (C,)
    B, T, H, WC = x_fold.shape
    W = WC // C
    ph, pw = KH // 2, KW // 2

    # Tile per-channel quantities across the folded W axis (tiny tensors).
    aw = jnp.tile(alpha_w[:, :, None, :], (1, 1, W, 1)).reshape(B, T, 1, WC)
    ab = jnp.tile(alpha_b[:, :, None, :], (1, 1, W, 1)).reshape(B, T, 1, WC)
    w_f = jnp.tile(dw_w[:, None, :], (1, W, 1)).reshape(KH * KW, WC)
    b_f = jnp.tile(dw_b[None, :], (W, 1)).reshape(1, WC)

    row0 = ((ph + 7) // 8) * 8                    # sublane-aligned data row
    Hscr = ((row0 + H + ph + 7) // 8) * 8         # scratch rows needed
    WpC = (W + KW - 1) * C

    kernel = functools.partial(_dwconv_kernel, KH=KH, KW=KW, C=C, row0=row0)
    frame = lambda b, t: (b, t, 0, 0)
    const = lambda b, t: (0, 0)
    return pl.pallas_call(
        kernel,
        out_shape=jax.ShapeDtypeStruct((B, T, H, WC), jnp.float32),
        grid_spec=pltpu.PrefetchScalarGridSpec(
            num_scalar_prefetch=0,
            grid=(B, T),                          # one frame per step
            in_specs=[
                pl.BlockSpec((1, 1, H, WC), frame),
                pl.BlockSpec((1, 1, 1, WC), frame),
                pl.BlockSpec((1, 1, 1, WC), frame),
                _const_block_spec((KH * KW, WC), const),
                _const_block_spec((1, WC), const),
            ],
            out_specs=pl.BlockSpec((1, 1, H, WC), frame),
            scratch_shapes=[pltpu.VMEM((Hscr, WpC), jnp.float32)],
        ),
        # B parallel (megacore), T arbitrary (required by the once-per-video
        # scratch clear).  Default VMEM limit is plenty at these block sizes.
        compiler_params=pltpu.CompilerParams(
            dimension_semantics=("parallel", "arbitrary")),
    )(x_fold, aw, ab, w_f, b_f)


# ----------------------------------------------------------------------------
# Pallas kernel 2: fused temporal AvgPool3d + dual LayerNorm + pwconv1 +
# QuickGELU + pwconv2 + layer scale (gamma) + residual add.
# ----------------------------------------------------------------------------
def _fused_ln(v, w, b, eps=1e-6):
    # single-pass LayerNorm: var = E[x^2] - E[x]^2 (one cross-lane pass)
    mu = jnp.mean(v, axis=-1, keepdims=True)
    ms = jnp.mean(v * v, axis=-1, keepdims=True)
    var = ms - mu * mu
    return (v - mu) * jax.lax.rsqrt(var + eps) * w + b


def _mlp_kernel(yc_ref, yn_ref, res_ref,
                lnw_ref, lnb_ref, lnaw_ref, lnab_ref,
                w1_ref, b1_ref, w2_ref, b2_ref, gamma_ref,
                o_ref, yprev_ref):
    t = pl.program_id(2)
    nt = pl.num_programs(2)

    # y[t-1] comes from the rolling scratch filled by the previous t step on
    # this core (T is the innermost, "arbitrary" grid axis), so each y block
    # is DMA'd at most twice (y[t], clamped y[t+1]) instead of three times.
    @pl.when(t == 0)
    def _init_prev():
        yprev_ref[...] = jnp.zeros_like(yprev_ref)

    y = yc_ref[0, 0]                                       # (tile, C) f32
    # AvgPool3d((3,1,1), stride 1, pad (1,0,0)), count_include_pad=True:
    # always divide by 3, zero contribution outside [0, T).
    next_w = jnp.where(t < nt - 1, 1.0, 0.0)
    ap = (yprev_ref[...] + y + next_w * yn_ref[0, 0]) * (1.0 / 3.0)

    h = (_fused_ln(y, lnw_ref[...], lnb_ref[...])
         + _fused_ln(ap, lnaw_ref[...], lnab_ref[...]))

    # MXU-native bf16 matmuls with f32 accumulation.
    h1 = jnp.dot(h.astype(jnp.bfloat16), w1_ref[...],
                 preferred_element_type=jnp.float32) + b1_ref[...]
    a = h1 * jax.nn.sigmoid(1.702 * h1)                    # QuickGELU
    h2 = jnp.dot(a.astype(jnp.bfloat16), w2_ref[...],
                 preferred_element_type=jnp.float32) + b2_ref[...]

    # drop_path == 0.0 -> identity
    o_ref[0, 0] = res_ref[0, 0] + gamma_ref[...] * h2
    yprev_ref[...] = y                                     # carry for t+1


def _choose_hw_tile(hw, cap):
    # Largest divisor of hw that is a multiple of 8 and <= cap (no remainder
    # tokens dropped); fall back to the full extent.
    if hw <= cap:
        return hw
    for t in range(cap - cap % 8, 7, -8):
        if hw % t == 0:
            return t
    return hw


def fused_norm_mlp(y_tok, res_tok, p, tile_cap=256):
    # y_tok, res_tok: (B, T, HW, C) token-major, channels on the lane axis.
    # tile_cap=256 keeps the v7x (64 MiB VMEM) working set comfortable at
    # production C; on v5e/v6e it can be raised toward 512-1024.
    B, T, HW, C = y_tok.shape
    tile = _choose_hw_tile(HW, tile_cap)
    J = HW // tile
    w1 = p["w1"].astype(jnp.bfloat16)
    w2 = p["w2"].astype(jnp.bfloat16)
    C4 = w1.shape[1]

    tok = (1, 1, tile, C)
    cur = lambda b, j, t: (b, t, j, 0)
    nxt = lambda b, j, t: (b, jnp.minimum(t + 1, T - 1), j, 0)
    cst = lambda b, j, t: (0, 0)

    in_specs = [
        pl.BlockSpec(tok, cur),                               # y[t]
        pl.BlockSpec(tok, nxt),                               # y[t+1] (clamped)
        pl.BlockSpec(tok, cur),                               # residual input
        _const_block_spec((1, C), cst), _const_block_spec((1, C), cst),   # norm
        _const_block_spec((1, C), cst), _const_block_spec((1, C), cst),   # norm_avgpool
        _const_block_spec((C, C4), cst), _const_block_spec((1, C4), cst),  # pwconv1
        _const_block_spec((C4, C), cst), _const_block_spec((1, C), cst),   # pwconv2
        _const_block_spec((1, C), cst),                                    # gamma
    ]
    return pl.pallas_call(
        _mlp_kernel,
        out_shape=jax.ShapeDtypeStruct((B, T, HW, C), jnp.float32),
        grid_spec=pltpu.PrefetchScalarGridSpec(
            num_scalar_prefetch=0,
            grid=(B, J, T),                     # T innermost: rolling y[t-1]
            in_specs=in_specs,
            out_specs=pl.BlockSpec(tok, cur),
            scratch_shapes=[pltpu.VMEM((tile, C), jnp.float32)],
        ),
        compiler_params=pltpu.CompilerParams(
            dimension_semantics=("parallel", "parallel", "arbitrary")),
    )(y_tok, y_tok, res_tok,
      p["ln_w"], p["ln_b"], p["ln_ap_w"], p["ln_ap_b"],
      w1, p["b1"], w2, p["b2"], p["gamma"])


# ----------------------------------------------------------------------------
# RouteFuncwTransformer (routing function producing per-(b, t, c) calibration).
# Operates on spatially pooled (B, T, C) features -> tiny, kept in plain JAX.
# TODO(synk): the RouteFuncwTransformer / TAdaConv2dV2 source is not included
# in the prompt; its structure (global+spatial pooling, 1x1x1 conv, temporal
# conv -> BN -> ReLU -> pre-LN MHSA over time -> temporal conv calibrations +1)
# is reconstructed from the TAdaConv repo; BatchNorm uses init-time running
# stats (eval mode, mean=0 / var=1).
# ----------------------------------------------------------------------------
def _ln_host(v, w, b, eps=1e-5):
    mu = jnp.mean(v, axis=-1, keepdims=True)
    var = jnp.mean(jnp.square(v - mu), axis=-1, keepdims=True)
    return (v - mu) * jax.lax.rsqrt(var + eps) * w + b


def route_func_transformer(x, p):
    # x: (B, C, T, H, W)
    B, C, T, H, W = x.shape
    s = jnp.transpose(jnp.mean(x, axis=(3, 4)), (0, 2, 1))       # (B, T, C)
    g = jnp.mean(s, axis=1, keepdims=True)                        # (B, 1, C)
    g = g @ p["g_w"] + p["g_b"]                                    # 1x1x1 conv
    z = s + g

    # temporal conv a: C -> Cr, kernel k0, padding k0//2
    k0 = p["a_w"].shape[0]
    zp = jnp.pad(z, ((0, 0), (k0 // 2, k0 // 2), (0, 0)))
    a = sum(zp[:, dt:dt + T, :] @ p["a_w"][dt] for dt in range(k0)) + p["a_b"]

    # BatchNorm3d (eval mode; running stats at init: mean=0, var=1)
    a = a * jax.lax.rsqrt(jnp.float32(1.0 + 1e-5)) * p["bn_w"] + p["bn_b"]
    a = jax.nn.relu(a)

    # pre-LN multi-head self-attention over the temporal axis, residual add
    Cr = a.shape[-1]
    hd = p["head_dim"]
    nh = Cr // hd
    h = _ln_host(a, p["tf_ln_w"], p["tf_ln_b"])
    qkv = h @ p["qkv_w"] + p["qkv_b"]
    q, k_, v = jnp.split(qkv, 3, axis=-1)
    to_heads = lambda t_: jnp.transpose(t_.reshape(B, T, nh, hd), (0, 2, 1, 3))
    q, k_, v = to_heads(q), to_heads(k_), to_heads(v)
    att = jnp.einsum("bhqd,bhkd->bhqk", q, k_) / jnp.sqrt(jnp.float32(hd))
    att = jax.nn.softmax(att, axis=-1)
    o = jnp.einsum("bhqk,bhkd->bhqd", att, v)
    o = jnp.transpose(o, (0, 2, 1, 3)).reshape(B, T, Cr)
    a = a + o @ p["proj_w"] + p["proj_b"]

    # temporal convs b / b_bias: Cr -> C, kernel k1, no bias; alpha = conv + 1
    k1 = p["b_w"].shape[0]
    apad = jnp.pad(a, ((0, 0), (k1 // 2, k1 // 2), (0, 0)))
    alpha_w = sum(apad[:, dt:dt + T, :] @ p["b_w"][dt] for dt in range(k1)) + 1.0
    alpha_b = sum(apad[:, dt:dt + T, :] @ p["b_bias_w"][dt]
                  for dt in range(k1)) + 1.0
    return alpha_w, alpha_b                                        # (B, T, C)


# ----------------------------------------------------------------------------
# Full block forward
# ----------------------------------------------------------------------------
def tada_convnextv2_block(x, params):
    # x: (B, C, T, H, W) float32 (PyTorch NCTHW convention)
    B, C, T, H, W = x.shape
    alpha_w, alpha_b = route_func_transformer(x, params["rf"])

    # Single NCTHW -> channels-last relayout at the module boundary; the two
    # reshapes below are contiguous reinterpretations of the same buffer.
    x_cl = jnp.transpose(x, (0, 2, 3, 4, 1))                       # (B,T,H,W,C)
    x_fold = x_cl.reshape(B, T, H, W * C)                          # W into lanes
    res_tok = x_cl.reshape(B, T, H * W, C)                         # token-major

    y = tada_dwconv(x_fold, alpha_w, alpha_b,
                    params["dw_w"], params["dw_b"], C)             # (B,T,H,W*C)
    y_tok = y.reshape(B, T, H * W, C)                              # free

    # AvgPool3d is fused inside this call (y[t+1] via clamped index map,
    # y[t-1] via a rolling VMEM scratch).
    out_tok = fused_norm_mlp(y_tok, res_tok, params)               # (B,T,HW,C)

    out = out_tok.reshape(B, T, H, W, C)
    return jnp.transpose(out, (0, 4, 1, 2, 3))                     # (B,C,T,H,W)


# ----------------------------------------------------------------------------
# Deterministic parameter init (shapes follow the module __init__; values are
# synthetic random so every code path is exercised — not a checkpoint load;
# the PyTorch module zero-inits norm_avgpool and the calibration convs).
# ----------------------------------------------------------------------------
def init_params(key, C, ratio=4, kernels=(3, 3), head_dim=8):
    Cr = C // ratio
    ks = jax.random.split(key, 32)

    def rnd(i, shape, scale=0.05):
        return scale * jax.random.normal(ks[i], shape, jnp.float32)

    params = {
        # TAdaConv2dV2 depthwise weights (dim,1,1,7,7) -> (49, C) channels-last
        "dw_w": rnd(0, (49, C)),
        "dw_b": rnd(1, (C,)),
        # LayerNorm(dim)
        "ln_w": jnp.ones((1, C), jnp.float32),
        "ln_b": jnp.zeros((1, C), jnp.float32),
        # norm_avgpool (zero-init in torch; small random here to exercise path)
        "ln_ap_w": rnd(2, (1, C)),
        "ln_ap_b": rnd(3, (1, C)),
        # pwconv1 / pwconv2 (Linear: stored as (in, out))
        "w1": rnd(4, (C, 4 * C)),
        "b1": rnd(5, (1, 4 * C)),
        "w2": rnd(6, (4 * C, C)),
        "b2": rnd(7, (1, C)),
        # layer scale gamma = 1e-6 * ones
        "gamma": jnp.full((1, C), 1e-6, jnp.float32),
        "rf": {
            "g_w": rnd(8, (C, C)), "g_b": rnd(9, (C,)),
            "a_w": rnd(10, (kernels[0], C, Cr)), "a_b": rnd(11, (Cr,)),
            "bn_w": jnp.ones((Cr,), jnp.float32),
            "bn_b": jnp.zeros((Cr,), jnp.float32),
            "tf_ln_w": jnp.ones((Cr,), jnp.float32),
            "tf_ln_b": jnp.zeros((Cr,), jnp.float32),
            "qkv_w": rnd(12, (Cr, 3 * Cr)), "qkv_b": rnd(13, (3 * Cr,)),
            "proj_w": rnd(14, (Cr, Cr)), "proj_b": rnd(15, (Cr,)),
            # zero-init in torch (so alpha starts at 1); random here
            "b_w": rnd(16, (kernels[1], Cr, C)),
            "b_bias_w": rnd(17, (kernels[1], Cr, C)),
            "head_dim": head_dim,
        },
    }
    return params


if __name__ == "__main__":
    # Small but lane-dense demo shapes: C is a multiple of 128 so every VMEM
    # tile / store is full-lane.
    B, C, T, H, W = 2, 128, 4, 8, 8
    key = jax.random.PRNGKey(0)
    kx, kp = jax.random.split(key)
    x = jax.random.normal(kx, (B, C, T, H, W), jnp.float32)
    params = init_params(kp, C)

    fwd = jax.jit(lambda inp: tada_convnextv2_block(inp, params))
    out = fwd(x)
    jax.block_until_ready(out)
    assert out.shape == (B, C, T, H, W)
    assert out.dtype == jnp.float32
    assert bool(jnp.all(jnp.isfinite(out)))
    print("KERNEL_OK")
</pallas_src>

<mosaic_0001>
module attributes {stable_mosaic.version = 11 : i64} {
  func.func @_dwconv_kernel(%arg0: i32, %arg1: i32, %arg2: memref<1x1x8x1024xf32, #tpu.memory_space<vmem>>, %arg3: memref<1x1x1x1024xf32, #tpu.memory_space<vmem>>, %arg4: memref<1x1x1x1024xf32, #tpu.memory_space<vmem>>, %arg5: memref<49x1024xf32, #tpu.memory_space<vmem>>, %arg6: memref<1x1024xf32, #tpu.memory_space<vmem>>, %arg7: memref<1x1x8x1024xf32, #tpu.memory_space<vmem>>, %arg8: memref<24x1792xf32, #tpu.memory_space<vmem>>) attributes {dimension_semantics = [#tpu.dimension_semantics<parallel>, #tpu.dimension_semantics<arbitrary>], iteration_bounds = array<i64: 2, 4>, scalar_prefetch = 0 : i64, scratch_operands = 1 : i64, tpu.core_type = #tpu.core_type<tc>, window_params = [{transform_indices = @transform_0, window_bounds = array<i64: 1, 1, 8, 1024>}, {transform_indices = @transform_1, window_bounds = array<i64: 1, 1, 1, 1024>}, {transform_indices = @transform_2, window_bounds = array<i64: 1, 1, 1, 1024>}, {pipeline_mode = #tpu.pipeline_mode<synchronous>, transform_indices = @transform_3, window_bounds = array<i64: 49, 1024>}, {pipeline_mode = #tpu.pipeline_mode<synchronous>, transform_indices = @transform_4, window_bounds = array<i64: 1, 1024>}, {transform_indices = @transform_5, window_bounds = array<i64: 1, 1, 8, 1024>}]} {
    %c0_i32 = arith.constant 0 : i32
    %0 = arith.cmpi eq, %arg1, %c0_i32 : i32
    %1 = arith.extui %0 : i1 to i32
    %c0_i32_0 = arith.constant 0 : i32
    %2 = arith.cmpi ne, %1, %c0_i32_0 : i32
    scf.if %2 {
      %cst_83 = arith.constant 0.000000e+00 : f32
      %272 = vector.broadcast %cst_83 : f32 to vector<24x1792xf32>
      %c0_84 = arith.constant 0 : index
      %c0_85 = arith.constant 0 : index
      %273 = vector.load %arg8[%c0_84, %c0_85] : memref<24x1792xf32, #tpu.memory_space<vmem>>, vector<24x1792xf32>
      tpu.vector_store %arg8[%c0_84, %c0_85], %272 {strides = array<i32>} : memref<24x1792xf32, #tpu.memory_space<vmem>>, vector<24x1792xf32>,
    } else {
    }
    %c0 = arith.constant 0 : index
    %c0_1 = arith.constant 0 : index
    %c0_2 = arith.constant 0 : index
    %c0_3 = arith.constant 0 : index
    %3 = vector.load %arg2[%c0, %c0_1, %c0_2, %c0_3] : memref<1x1x8x1024xf32, #tpu.memory_space<vmem>>, vector<1x1x8x1024xf32>
    %4 = vector.shape_cast %3 : vector<1x1x8x1024xf32> to vector<8x1024xf32>
    %c8 = arith.constant 8 : index
    %c384 = arith.constant 384 : index
    %5 = vector.load %arg8[%c8, %c384] : memref<24x1792xf32, #tpu.memory_space<vmem>>, vector<8x1024xf32>
    tpu.vector_store %arg8[%c8, %c384], %4 {strides = array<i32>} : memref<24x1792xf32, #tpu.memory_space<vmem>>, vector<8x1024xf32>,
    %c0_4 = arith.constant 0 : index
    %c0_5 = arith.constant 0 : index
    %c0_6 = arith.constant 0 : index
    %c0_7 = arith.constant 0 : index
    %6 = vector.load %arg3[%c0_4, %c0_5, %c0_6, %c0_7] : memref<1x1x1x1024xf32, #tpu.memory_space<vmem>>, vector<1x1x1x1024xf32>
    %7 = vector.shape_cast %6 : vector<1x1x1x1024xf32> to vector<1x1024xf32>
    %c0_8 = arith.constant 0 : index
    %c0_9 = arith.constant 0 : index
    %8 = vector.load %arg6[%c0_8, %c0_9] : memref<1x1024xf32, #tpu.memory_space<vmem>>, vector<1x1024xf32>
    %c0_10 = arith.constant 0 : index
    %c0_11 = arith.constant 0 : index
    %c0_12 = arith.constant 0 : index
    %c0_13 = arith.constant 0 : index
    %9 = vector.load %arg4[%c0_10, %c0_11, %c0_12, %c0_13] : memref<1x1x1x1024xf32, #tpu.memory_space<vmem>>, vector<1x1x1x1024xf32>
    %10 = vector.shape_cast %9 : vector<1x1x1x1024xf32> to vector<1x1024xf32>
    %11 = arith.mulf %8, %10 : vector<1x1024xf32>
    %cst = arith.constant 0.000000e+00 : f32
    %12 = vector.broadcast %cst : f32 to vector<8x1024xf32>
    %c5 = arith.constant 5 : index
    %c0_14 = arith.constant 0 : index
    %13 = vector.load %arg8[%c5, %c0_14] : memref<24x1792xf32, #tpu.memory_space<vmem>>, vector<8x1792xf32>
    %c0_15 = arith.constant 0 : index
    %c0_16 = arith.constant 0 : index
    %14 = vector.load %arg5[%c0_15, %c0_16] : memref<49x1024xf32, #tpu.memory_space<vmem>>, vector<1x1024xf32>
    %15 = vector.extract_strided_slice %13 {offsets = [0, 0], sizes = [8, 1024], strides = [1, 1]} : vector<8x1792xf32> to vector<8x1024xf32>
    %16 = vector.broadcast %14 : vector<1x1024xf32> to vector<8x1024xf32>
    %17 = arith.mulf %15, %16 : vector<8x1024xf32>
    %18 = arith.addf %12, %17 : vector<8x1024xf32>
    %c1 = arith.constant 1 : index
    %c0_17 = arith.constant 0 : index
    %19 = vector.load %arg5[%c1, %c0_17] : memref<49x1024xf32, #tpu.memory_space<vmem>>, vector<1x1024xf32>
    %20 = vector.extract_strided_slice %13 {offsets = [0, 128], sizes = [8, 1024], strides = [1, 1]} : vector<8x1792xf32> to vector<8x1024xf32>
    %21 = vector.broadcast %19 : vector<1x1024xf32> to vector<8x1024xf32>
    %22 = arith.mulf %20, %21 : vector<8x1024xf32>
    %23 = arith.addf %18, %22 : vector<8x1024xf32>
    %c2 = arith.constant 2 : index
    %c0_18 = arith.constant 0 : index
    %24 = vector.load %arg5[%c2, %c0_18] : memref<49x1024xf32, #tpu.memory_space<vmem>>, vector<1x1024xf32>
    %25 = vector.extract_strided_slice %13 {offsets = [0, 256], sizes = [8, 1024], strides = [1, 1]} : vector<8x1792xf32> to vector<8x1024xf32>
    %26 = vector.broadcast %24 : vector<1x1024xf32> to vector<8x1024xf32>
    %27 = arith.mulf %25, %26 : vector<8x1024xf32>
    %28 = arith.addf %23, %27 : vector<8x1024xf32>
    %c3 = arith.constant 3 : index
    %c0_19 = arith.constant 0 : index
    %29 = vector.load %arg5[%c3, %c0_19] : memref<49x1024xf32, #tpu.memory_space<vmem>>, vector<1x1024xf32>
    %30 = vector.extract_strided_slice %13 {offsets = [0, 384], sizes = [8, 1024], strides = [1, 1]} : vector<8x1792xf32> to vector<8x1024xf32>
    %31 = vector.broadcast %29 : vector<1x1024xf32> to vector<8x1024xf32>
    %32 = arith.mulf %30, %31 : vector<8x1024xf32>
    %33 = arith.addf %28, %32 : vector<8x1024xf32>
    %c4 = arith.constant 4 : index
    %c0_20 = arith.constant 0 : index
    %34 = vector.load %arg5[%c4, %c0_20] : memref<49x1024xf32, #tpu.memory_space<vmem>>, vector<1x1024xf32>
    %35 = vector.extract_strided_slice %13 {offsets = [0, 512], sizes = [8, 1024], strides = [1, 1]} : vector<8x1792xf32> to vector<8x1024xf32>
    %36 = vector.broadcast %34 : vector<1x1024xf32> to vector<8x1024xf32>
    %37 = arith.mulf %35, %36 : vector<8x1024xf32>
    %38 = arith.addf %33, %37 : vector<8x1024xf32>
    %c5_21 = arith.constant 5 : index
    %c0_22 = arith.constant 0 : index
    %39 = vector.load %arg5[%c5_21, %c0_22] : memref<49x1024xf32, #tpu.memory_space<vmem>>, vector<1x1024xf32>
    %40 = vector.extract_strided_slice %13 {offsets = [0, 640], sizes = [8, 1024], strides = [1, 1]} : vector<8x1792xf32> to vector<8x1024xf32>
    %41 = vector.broadcast %39 : vector<1x1024xf32> to vector<8x1024xf32>
    %42 = arith.mulf %40, %41 : vector<8x1024xf32>
    %43 = arith.addf %38, %42 : vector<8x1024xf32>
    %c6 = arith.constant 6 : index
    %c0_23 = arith.constant 0 : index
    %44 = vector.load %arg5[%c6, %c0_23] : memref<49x1024xf32, #tpu.memory_space<vmem>>, vector<1x1024xf32>
    %45 = vector.extract_strided_slice %13 {offsets = [0, 768], sizes = [8, 1024], strides = [1, 1]} : vector<8x1792xf32> to vector<8x1024xf32>
    %46 = vector.broadcast %44 : vector<1x1024xf32> to vector<8x1024xf32>
    %47 = arith.mulf %45, %46 : vector<8x1024xf32>
    %48 = arith.addf %43, %47 : vector<8x1024xf32>
    %c6_24 = arith.constant 6 : index
    %c0_25 = arith.constant 0 : index
    %49 = vector.load %arg8[%c6_24, %c0_25] : memref<24x1792xf32, #tpu.memory_space<vmem>>, vector<8x1792xf32>
    %c7 = arith.constant 7 : index
    %c0_26 = arith.constant 0 : index
    %50 = vector.load %arg5[%c7, %c0_26] : memref<49x1024xf32, #tpu.memory_space<vmem>>, vector<1x1024xf32>
    %51 = vector.extract_strided_slice %49 {offsets = [0, 0], sizes = [8, 1024], strides = [1, 1]} : vector<8x1792xf32> to vector<8x1024xf32>
    %52 = vector.broadcast %50 : vector<1x1024xf32> to vector<8x1024xf32>
    %53 = arith.mulf %51, %52 : vector<8x1024xf32>
    %54 = arith.addf %48, %53 : vector<8x1024xf32>
    %c8_27 = arith.constant 8 : index
    %c0_28 = arith.constant 0 : index
    %55 = vector.load %arg5[%c8_27, %c0_28] : memref<49x1024xf32, #tpu.memory_space<vmem>>, vector<1x1024xf32>
    %56 = vector.extract_strided_slice %49 {offsets = [0, 128], sizes = [8, 1024], strides = [1, 1]} : vector<8x1792xf32> to vector<8x1024xf32>
    %57 = vector.broadcast %55 : vector<1x1024xf32> to vector<8x1024xf32>
    %58 = arith.mulf %56, %57 : vector<8x1024xf32>
    %59 = arith.addf %54, %58 : vector<8x1024xf32>
    %c9 = arith.constant 9 : index
    %c0_29 = arith.constant 0 : index
    %60 = vector.load %arg5[%c9, %c0_29] : memref<49x1024xf32, #tpu.memory_space<vmem>>, vector<1x1024xf32>
    %61 = vector.extract_strided_slice %49 {offsets = [0, 256], sizes = [8, 1024], strides = [1, 1]} : vector<8x1792xf32> to vector<8x1024xf32>
    %62 = vector.broadcast %60 : vector<1x1024xf32> to vector<8x1024xf32>
    %63 = arith.mulf %61, %62 : vector<8x1024xf32>
    %64 = arith.addf %59, %63 : vector<8x1024xf32>
    %c10 = arith.constant 10 : index
    %c0_30 = arith.constant 0 : index
    %65 = vector.load %arg5[%c10, %c0_30] : memref<49x1024xf32, #tpu.memory_space<vmem>>, vector<1x1024xf32>
    %66 = vector.extract_strided_slice %49 {offsets = [0, 384], sizes = [8, 1024], strides = [1, 1]} : vector<8x1792xf32> to vector<8x1024xf32>
    %67 = vector.broadcast %65 : vector<1x1024xf32> to vector<8x1024xf32>
    %68 = arith.mulf %66, %67 : vector<8x1024xf32>
    %69 = arith.addf %64, %68 : vector<8x1024xf32>
    %c11 = arith.constant 11 : index
    %c0_31 = arith.constant 0 : index
    %70 = vector.load %arg5[%c11, %c0_31] : memref<49x1024xf32, #tpu.memory_space<vmem>>, vector<1x1024xf32>
    %71 = vector.extract_strided_slice %49 {offsets = [0, 512], sizes = [8, 1024], strides = [1, 1]} : vector<8x1792xf32> to vector<8x1024xf32>
    %72 = vector.broadcast %70 : vector<1x1024xf32> to vector<8x1024xf32>
    %73 = arith.mulf %71, %72 : vector<8x1024xf32>
    %74 = arith.addf %69, %73 : vector<8x1024xf32>
    %c12 = arith.constant 12 : index
    %c0_32 = arith.constant 0 : index
    %75 = vector.load %arg5[%c12, %c0_32] : memref<49x1024xf32, #tpu.memory_space<vmem>>, vector<1x1024xf32>
    %76 = vector.extract_strided_slice %49 {offsets = [0, 640], sizes = [8, 1024], strides = [1, 1]} : vector<8x1792xf32> to vector<8x1024xf32>
    %77 = vector.broadcast %75 : vector<1x1024xf32> to vector<8x1024xf32>
    %78 = arith.mulf %76, %77 : vector<8x1024xf32>
    %79 = arith.addf %74, %78 : vector<8x1024xf32>
    %c13 = arith.constant 13 : index
    %c0_33 = arith.constant 0 : index
    %80 = vector.load %arg5[%c13, %c0_33] : memref<49x1024xf32, #tpu.memory_space<vmem>>, vector<1x1024xf32>
    %81 = vector.extract_strided_slice %49 {offsets = [0, 768], sizes = [8, 1024], strides = [1, 1]} : vector<8x1792xf32> to vector<8x1024xf32>
    %82 = vector.broadcast %80 : vector<1x1024xf32> to vector<8x1024xf32>
    %83 = arith.mulf %81, %82 : vector<8x1024xf32>
    %84 = arith.addf %79, %83 : vector<8x1024xf32>
    %c7_34 = arith.constant 7 : index
    %c0_35 = arith.constant 0 : index
    %85 = vector.load %arg8[%c7_34, %c0_35] : memref<24x1792xf32, #tpu.memory_space<vmem>>, vector<8x1792xf32>
    %c14 = arith.constant 14 : index
    %c0_36 = arith.constant 0 : index
    %86 = vector.load %arg5[%c14, %c0_36] : memref<49x1024xf32, #tpu.memory_space<vmem>>, vector<1x1024xf32>
    %87 = vector.extract_strided_slice %85 {offsets = [0, 0], sizes = [8, 1024], strides = [1, 1]} : vector<8x1792xf32> to vector<8x1024xf32>
    %88 = vector.broadcast %86 : vector<1x1024xf32> to vector<8x1024xf32>
    %89 = arith.mulf %87, %88 : vector<8x1024xf32>
    %90 = arith.addf %84, %89 : vector<8x1024xf32>
    %c15 = arith.constant 15 : index
    %c0_37 = arith.constant 0 : index
    %91 = vector.load %arg5[%c15, %c0_37] : memref<49x1024xf32, #tpu.memory_space<vmem>>, vector<1x1024xf32>
    %92 = vector.extract_strided_slice %85 {offsets = [0, 128], sizes = [8, 1024], strides = [1, 1]} : vector<8x1792xf32> to vector<8x1024xf32>
    %93 = vector.broadcast %91 : vector<1x1024xf32> to vector<8x1024xf32>
    %94 = arith.mulf %92, %93 : vector<8x1024xf32>
    %95 = arith.addf %90, %94 : vector<8x1024xf32>
    %c16 = arith.constant 16 : index
    %c0_38 = arith.constant 0 : index
    %96 = vector.load %arg5[%c16, %c0_38] : memref<49x1024xf32, #tpu.memory_space<vmem>>, vector<1x1024xf32>
    %97 = vector.extract_strided_slice %85 {offsets = [0, 256], sizes = [8, 1024], strides = [1, 1]} : vector<8x1792xf32> to vector<8x1024xf32>
    %98 = vector.broadcast %96 : vector<1x1024xf32> to vector<8x1024xf32>
    %99 = arith.mulf %97, %98 : vector<8x1024xf32>
    %100 = arith.addf %95, %99 : vector<8x1024xf32>
    %c17 = arith.constant 17 : index
    %c0_39 = arith.constant 0 : index
    %101 = vector.load %arg5[%c17, %c0_39] : memref<49x1024xf32, #tpu.memory_space<vmem>>, vector<1x1024xf32>
    %102 = vector.extract_strided_slice %85 {offsets = [0, 384], sizes = [8, 1024], strides = [1, 1]} : vector<8x1792xf32> to vector<8x1024xf32>
    %103 = vector.broadcast %101 : vector<1x1024xf32> to vector<8x1024xf32>
    %104 = arith.mulf %102, %103 : vector<8x1024xf32>
    %105 = arith.addf %100, %104 : vector<8x1024xf32>
    %c18 = arith.constant 18 : index
    %c0_40 = arith.constant 0 : index
    %106 = vector.load %arg5[%c18, %c0_40] : memref<49x1024xf32, #tpu.memory_space<vmem>>, vector<1x1024xf32>
    %107 = vector.extract_strided_slice %85 {offsets = [0, 512], sizes = [8, 1024], strides = [1, 1]} : vector<8x1792xf32> to vector<8x1024xf32>
    %108 = vector.broadcast %106 : vector<1x1024xf32> to vector<8x1024xf32>
    %109 = arith.mulf %107, %108 : vector<8x1024xf32>
    %110 = arith.addf %105, %109 : vector<8x1024xf32>
    %c19 = arith.constant 19 : index
    %c0_41 = arith.constant 0 : index
    %111 = vector.load %arg5[%c19, %c0_41] : memref<49x1024xf32, #tpu.memory_space<vmem>>, vector<1x1024xf32>
    %112 = vector.extract_strided_slice %85 {offsets = [0, 640], sizes = [8, 1024], strides = [1, 1]} : vector<8x1792xf32> to vector<8x1024xf32>
    %113 = vector.broadcast %111 : vector<1x1024xf32> to vector<8x1024xf32>
    %114 = arith.mulf %112, %113 : vector<8x1024xf32>
    %115 = arith.addf %110, %114 : vector<8x1024xf32>
    %c20 = arith.constant 20 : index
    %c0_42 = arith.constant 0 : index
    %116 = vector.load %arg5[%c20, %c0_42] : memref<49x1024xf32, #tpu.memory_space<vmem>>, vector<1x1024xf32>
    %117 = vector.extract_strided_slice %85 {offsets = [0, 768], sizes = [8, 1024], strides = [1, 1]} : vector<8x1792xf32> to vector<8x1024xf32>
    %118 = vector.broadcast %116 : vector<1x1024xf32> to vector<8x1024xf32>
    %119 = arith.mulf %117, %118 : vector<8x1024xf32>
    %120 = arith.addf %115, %119 : vector<8x1024xf32>
    %c8_43 = arith.constant 8 : index
    %c0_44 = arith.constant 0 : index
    %121 = vector.load %arg8[%c8_43, %c0_44] : memref<24x1792xf32, #tpu.memory_space<vmem>>, vector<8x1792xf32>
    %c21 = arith.constant 21 : index
    %c0_45 = arith.constant 0 : index
    %122 = vector.load %arg5[%c21, %c0_45] : memref<49x1024xf32, #tpu.memory_space<vmem>>, vector<1x1024xf32>
    %123 = vector.extract_strided_slice %121 {offsets = [0, 0], sizes = [8, 1024], strides = [1, 1]} : vector<8x1792xf32> to vector<8x1024xf32>
    %124 = vector.broadcast %122 : vector<1x1024xf32> to vector<8x1024xf32>
    %125 = arith.mulf %123, %124 : vector<8x1024xf32>
    %126 = arith.addf %120, %125 : vector<8x1024xf32>
    %c22 = arith.constant 22 : index
    %c0_46 = arith.constant 0 : index
    %127 = vector.load %arg5[%c22, %c0_46] : memref<49x1024xf32, #tpu.memory_space<vmem>>, vector<1x1024xf32>
    %128 = vector.extract_strided_slice %121 {offsets = [0, 128], sizes = [8, 1024], strides = [1, 1]} : vector<8x1792xf32> to vector<8x1024xf32>
    %129 = vector.broadcast %127 : vector<1x1024xf32> to vector<8x1024xf32>
    %130 = arith.mulf %128, %129 : vector<8x1024xf32>
    %131 = arith.addf %126, %130 : vector<8x1024xf32>
    %c23 = arith.constant 23 : index
    %c0_47 = arith.constant 0 : index
    %132 = vector.load %arg5[%c23, %c0_47] : memref<49x1024xf32, #tpu.memory_space<vmem>>, vector<1x1024xf32>
    %133 = vector.extract_strided_slice %121 {offsets = [0, 256], sizes = [8, 1024], strides = [1, 1]} : vector<8x1792xf32> to vector<8x1024xf32>
    %134 = vector.broadcast %132 : vector<1x1024xf32> to vector<8x1024xf32>
    %135 = arith.mulf %133, %134 : vector<8x1024xf32>
    %136 = arith.addf %131, %135 : vector<8x1024xf32>
    %c24 = arith.constant 24 : index
    %c0_48 = arith.constant 0 : index
    %137 = vector.load %arg5[%c24, %c0_48] : memref<49x1024xf32, #tpu.memory_space<vmem>>, vector<1x1024xf32>
    %138 = vector.extract_strided_slice %121 {offsets = [0, 384], sizes = [8, 1024], strides = [1, 1]} : vector<8x1792xf32> to vector<8x1024xf32>
    %139 = vector.broadcast %137 : vector<1x1024xf32> to vector<8x1024xf32>
    %140 = arith.mulf %138, %139 : vector<8x1024xf32>
    %141 = arith.addf %136, %140 : vector<8x1024xf32>
    %c25 = arith.constant 25 : index
    %c0_49 = arith.constant 0 : index
    %142 = vector.load %arg5[%c25, %c0_49] : memref<49x1024xf32, #tpu.memory_space<vmem>>, vector<1x1024xf32>
    %143 = vector.extract_strided_slice %121 {offsets = [0, 512], sizes = [8, 1024], strides = [1, 1]} : vector<8x1792xf32> to vector<8x1024xf32>
    %144 = vector.broadcast %142 : vector<1x1024xf32> to vector<8x1024xf32>
    %145 = arith.mulf %143, %144 : vector<8x1024xf32>
    %146 = arith.addf %141, %145 : vector<8x1024xf32>
    %c26 = arith.constant 26 : index
    %c0_50 = arith.constant 0 : index
    %147 = vector.load %arg5[%c26, %c0_50] : memref<49x1024xf32, #tpu.memory_space<vmem>>, vector<1x1024xf32>
    %148 = vector.extract_strided_slice %121 {offsets = [0, 640], sizes = [8, 1024], strides = [1, 1]} : vector<8x1792xf32> to vector<8x1024xf32>
    %149 = vector.broadcast %147 : vector<1x1024xf32> to vector<8x1024xf32>
    %150 = arith.mulf %148, %149 : vector<8x1024xf32>
    %151 = arith.addf %146, %150 : vector<8x1024xf32>
    %c27 = arith.constant 27 : index
    %c0_51 = arith.constant 0 : index
    %152 = vector.load %arg5[%c27, %c0_51] : memref<49x1024xf32, #tpu.memory_space<vmem>>, vector<1x1024xf32>
    %153 = vector.extract_strided_slice %121 {offsets = [0, 768], sizes = [8, 1024], strides = [1, 1]} : vector<8x1792xf32> to vector<8x1024xf32>
    %154 = vector.broadcast %152 : vector<1x1024xf32> to vector<8x1024xf32>
    %155 = arith.mulf %153, %154 : vector<8x1024xf32>
    %156 = arith.addf %151, %155 : vector<8x1024xf32>
    %c9_52 = arith.constant 9 : index
    %c0_53 = arith.constant 0 : index
    %157 = vector.load %arg8[%c9_52, %c0_53] : memref<24x1792xf32, #tpu.memory_space<vmem>>, vector<8x1792xf32>
    %c28 = arith.constant 28 : index
    %c0_54 = arith.constant 0 : index
    %158 = vector.load %arg5[%c28, %c0_54] : memref<49x1024xf32, #tpu.memory_space<vmem>>, vector<1x1024xf32>
    %159 = vector.extract_strided_slice %157 {offsets = [0, 0], sizes = [8, 1024], strides = [1, 1]} : vector<8x1792xf32> to vector<8x1024xf32>
    %160 = vector.broadcast %158 : vector<1x1024xf32> to vector<8x1024xf32>
    %161 = arith.mulf %159, %160 : vector<8x1024xf32>
    %162 = arith.addf %156, %161 : vector<8x1024xf32>
    %c29 = arith.constant 29 : index
    %c0_55 = arith.constant 0 : index
    %163 = vector.load %arg5[%c29, %c0_55] : memref<49x1024xf32, #tpu.memory_space<vmem>>, vector<1x1024xf32>
    %164 = vector.extract_strided_slice %157 {offsets = [0, 128], sizes = [8, 1024], strides = [1, 1]} : vector<8x1792xf32> to vector<8x1024xf32>
    %165 = vector.broadcast %163 : vector<1x1024xf32> to vector<8x1024xf32>
    %166 = arith.mulf %164, %165 : vector<8x1024xf32>
    %167 = arith.addf %162, %166 : vector<8x1024xf32>
    %c30 = arith.constant 30 : index
    %c0_56 = arith.constant 0 : index
    %168 = vector.load %arg5[%c30, %c0_56] : memref<49x1024xf32, #tpu.memory_space<vmem>>, vector<1x1024xf32>
    %169 = vector.extract_strided_slice %157 {offsets = [0, 256], sizes = [8, 1024], strides = [1, 1]} : vector<8x1792xf32> to vector<8x1024xf32>
    %170 = vector.broadcast %168 : vector<1x1024xf32> to vector<8x1024xf32>
    %171 = arith.mulf %169, %170 : vector<8x1024xf32>
    %172 = arith.addf %167, %171 : vector<8x1024xf32>
    %c31 = arith.constant 31 : index
    %c0_57 = arith.constant 0 : index
    %173 = vector.load %arg5[%c31, %c0_57] : memref<49x1024xf32, #tpu.memory_space<vmem>>, vector<1x1024xf32>
    %174 = vector.extract_strided_slice %157 {offsets = [0, 384], sizes = [8, 1024], strides = [1, 1]} : vector<8x1792xf32> to vector<8x1024xf32>
    %175 = vector.broadcast %173 : vector<1x1024xf32> to vector<8x1024xf32>
    %176 = arith.mulf %174, %175 : vector<8x1024xf32>
    %177 = arith.addf %172, %176 : vector<8x1024xf32>
    %c32 = arith.constant 32 : index
    %c0_58 = arith.constant 0 : index
    %178 = vector.load %arg5[%c32, %c0_58] : memref<49x1024xf32, #tpu.memory_space<vmem>>, vector<1x1024xf32>
    %179 = vector.extract_strided_slice %157 {offsets = [0, 512], sizes = [8, 1024], strides = [1, 1]} : vector<8x1792xf32> to vector<8x1024xf32>
    %180 = vector.broadcast %178 : vector<1x1024xf32> to vector<8x1024xf32>
    %181 = arith.mulf %179, %180 : vector<8x1024xf32>
    %182 = arith.addf %177, %181 : vector<8x1024xf32>
    %c33 = arith.constant 33 : index
    %c0_59 = arith.constant 0 : index
    %183 = vector.load %arg5[%c33, %c0_59] : memref<49x1024xf32, #tpu.memory_space<vmem>>, vector<1x1024xf32>
    %184 = vector.extract_strided_slice %157 {offsets = [0, 640], sizes = [8, 1024], strides = [1, 1]} : vector<8x1792xf32> to vector<8x1024xf32>
    %185 = vector.broadcast %183 : vector<1x1024xf32> to vector<8x1024xf32>
    %186 = arith.mulf %184, %185 : vector<8x1024xf32>
    %187 = arith.addf %182, %186 : vector<8x1024xf32>
    %c34 = arith.constant 34 : index
    %c0_60 = arith.constant 0 : index
    %188 = vector.load %arg5[%c34, %c0_60] : memref<49x1024xf32, #tpu.memory_space<vmem>>, vector<1x1024xf32>
    %189 = vector.extract_strided_slice %157 {offsets = [0, 768], sizes = [8, 1024], strides = [1, 1]} : vector<8x1792xf32> to vector<8x1024xf32>
    %190 = vector.broadcast %188 : vector<1x1024xf32> to vector<8x1024xf32>
    %191 = arith.mulf %189, %190 : vector<8x1024xf32>
    %192 = arith.addf %187, %191 : vector<8x1024xf32>
    %c10_61 = arith.constant 10 : index
    %c0_62 = arith.constant 0 : index
    %193 = vector.load %arg8[%c10_61, %c0_62] : memref<24x1792xf32, #tpu.memory_space<vmem>>, vector<8x1792xf32>
    %c35 = arith.constant 35 : index
    %c0_63 = arith.constant 0 : index
    %194 = vector.load %arg5[%c35, %c0_63] : memref<49x1024xf32, #tpu.memory_space<vmem>>, vector<1x1024xf32>
    %195 = vector.extract_strided_slice %193 {offsets = [0, 0], sizes = [8, 1024], strides = [1, 1]} : vector<8x1792xf32> to vector<8x1024xf32>
    %196 = vector.broadcast %194 : vector<1x1024xf32> to vector<8x1024xf32>
    %197 = arith.mulf %195, %196 : vector<8x1024xf32>
    %198 = arith.addf %192, %197 : vector<8x1024xf32>
    %c36 = arith.constant 36 : index
    %c0_64 = arith.constant 0 : index
    %199 = vector.load %arg5[%c36, %c0_64] : memref<49x1024xf32, #tpu.memory_space<vmem>>, vector<1x1024xf32>
    %200 = vector.extract_strided_slice %193 {offsets = [0, 128], sizes = [8, 1024], strides = [1, 1]} : vector<8x1792xf32> to vector<8x1024xf32>
    %201 = vector.broadcast %199 : vector<1x1024xf32> to vector<8x1024xf32>
    %202 = arith.mulf %200, %201 : vector<8x1024xf32>
    %203 = arith.addf %198, %202 : vector<8x1024xf32>
    %c37 = arith.constant 37 : index
    %c0_65 = arith.constant 0 : index
    %204 = vector.load %arg5[%c37, %c0_65] : memref<49x1024xf32, #tpu.memory_space<vmem>>, vector<1x1024xf32>
    %205 = vector.extract_strided_slice %193 {offsets = [0, 256], sizes = [8, 1024], strides = [1, 1]} : vector<8x1792xf32> to vector<8x1024xf32>
    %206 = vector.broadcast %204 : vector<1x1024xf32> to vector<8x1024xf32>
    %207 = arith.mulf %205, %206 : vector<8x1024xf32>
    %208 = arith.addf %203, %207 : vector<8x1024xf32>
    %c38 = arith.constant 38 : index
    %c0_66 = arith.constant 0 : index
    %209 = vector.load %arg5[%c38, %c0_66] : memref<49x1024xf32, #tpu.memory_space<vmem>>, vector<1x1024xf32>
    %210 = vector.extract_strided_slice %193 {offsets = [0, 384], sizes = [8, 1024], strides = [1, 1]} : vector<8x1792xf32> to vector<8x1024xf32>
    %211 = vector.broadcast %209 : vector<1x1024xf32> to vector<8x1024xf32>
    %212 = arith.mulf %210, %211 : vector<8x1024xf32>
    %213 = arith.addf %208, %212 : vector<8x1024xf32>
    %c39 = arith.constant 39 : index
    %c0_67 = arith.constant 0 : index
    %214 = vector.load %arg5[%c39, %c0_67] : memref<49x1024xf32, #tpu.memory_space<vmem>>, vector<1x1024xf32>
    %215 = vector.extract_strided_slice %193 {offsets = [0, 512], sizes = [8, 1024], strides = [1, 1]} : vector<8x1792xf32> to vector<8x1024xf32>
    %216 = vector.broadcast %214 : vector<1x1024xf32> to vector<8x1024xf32>
    %217 = arith.mulf %215, %216 : vector<8x1024xf32>
    %218 = arith.addf %213, %217 : vector<8x1024xf32>
    %c40 = arith.constant 40 : index
    %c0_68 = arith.constant 0 : index
    %219 = vector.load %arg5[%c40, %c0_68] : memref<49x1024xf32, #tpu.memory_space<vmem>>, vector<1x1024xf32>
    %220 = vector.extract_strided_slice %193 {offsets = [0, 640], sizes = [8, 1024], strides = [1, 1]} : vector<8x1792xf32> to vector<8x1024xf32>
    %221 = vector.broadcast %219 : vector<1x1024xf32> to vector<8x1024xf32>
    %222 = arith.mulf %220, %221 : vector<8x1024xf32>
    %223 = arith.addf %218, %222 : vector<8x1024xf32>
    %c41 = arith.constant 41 : index
    %c0_69 = arith.constant 0 : index
    %224 = vector.load %arg5[%c41, %c0_69] : memref<49x1024xf32, #tpu.memory_space<vmem>>, vector<1x1024xf32>
    %225 = vector.extract_strided_slice %193 {offsets = [0, 768], sizes = [8, 1024], strides = [1, 1]} : vector<8x1792xf32> to vector<8x1024xf32>
    %226 = vector.broadcast %224 : vector<1x1024xf32> to vector<8x1024xf32>
    %227 = arith.mulf %225, %226 : vector<8x1024xf32>
    %228 = arith.addf %223, %227 : vector<8x1024xf32>
    %c11_70 = arith.constant 11 : index
    %c0_71 = arith.constant 0 : index
    %229 = vector.load %arg8[%c11_70, %c0_71] : memref<24x1792xf32, #tpu.memory_space<vmem>>, vector<8x1792xf32>
    %c42 = arith.constant 42 : index
    %c0_72 = arith.constant 0 : index
    %230 = vector.load %arg5[%c42, %c0_72] : memref<49x1024xf32, #tpu.memory_space<vmem>>, vector<1x1024xf32>
    %231 = vector.extract_strided_slice %229 {offsets = [0, 0], sizes = [8, 1024], strides = [1, 1]} : vector<8x1792xf32> to vector<8x1024xf32>
    %232 = vector.broadcast %230 : vector<1x1024xf32> to vector<8x1024xf32>
    %233 = arith.mulf %231, %232 : vector<8x1024xf32>
    %234 = arith.addf %228, %233 : vector<8x1024xf32>
    %c43 = arith.constant 43 : index
    %c0_73 = arith.constant 0 : index
    %235 = vector.load %arg5[%c43, %c0_73] : memref<49x1024xf32, #tpu.memory_space<vmem>>, vector<1x1024xf32>
    %236 = vector.extract_strided_slice %229 {offsets = [0, 128], sizes = [8, 1024], strides = [1, 1]} : vector<8x1792xf32> to vector<8x1024xf32>
    %237 = vector.broadcast %235 : vector<1x1024xf32> to vector<8x1024xf32>
    %238 = arith.mulf %236, %237 : vector<8x1024xf32>
    %239 = arith.addf %234, %238 : vector<8x1024xf32>
    %c44 = arith.constant 44 : index
    %c0_74 = arith.constant 0 : index
    %240 = vector.load %arg5[%c44, %c0_74] : memref<49x1024xf32, #tpu.memory_space<vmem>>, vector<1x1024xf32>
    %241 = vector.extract_strided_slice %229 {offsets = [0, 256], sizes = [8, 1024], strides = [1, 1]} : vector<8x1792xf32> to vector<8x1024xf32>
    %242 = vector.broadcast %240 : vector<1x1024xf32> to vector<8x1024xf32>
    %243 = arith.mulf %241, %242 : vector<8x1024xf32>
    %244 = arith.addf %239, %243 : vector<8x1024xf32>
    %c45 = arith.constant 45 : index
    %c0_75 = arith.constant 0 : index
    %245 = vector.load %arg5[%c45, %c0_75] : memref<49x1024xf32, #tpu.memory_space<vmem>>, vector<1x1024xf32>
    %246 = vector.extract_strided_slice %229 {offsets = [0, 384], sizes = [8, 1024], strides = [1, 1]} : vector<8x1792xf32> to vector<8x1024xf32>
    %247 = vector.broadcast %245 : vector<1x1024xf32> to vector<8x1024xf32>
    %248 = arith.mulf %246, %247 : vector<8x1024xf32>
    %249 = arith.addf %244, %248 : vector<8x1024xf32>
    %c46 = arith.constant 46 : index
    %c0_76 = arith.constant 0 : index
    %250 = vector.load %arg5[%c46, %c0_76] : memref<49x1024xf32, #tpu.memory_space<vmem>>, vector<1x1024xf32>
    %251 = vector.extract_strided_slice %229 {offsets = [0, 512], sizes = [8, 1024], strides = [1, 1]} : vector<8x1792xf32> to vector<8x1024xf32>
    %252 = vector.broadcast %250 : vector<1x1024xf32> to vector<8x1024xf32>
    %253 = arith.mulf %251, %252 : vector<8x1024xf32>
    %254 = arith.addf %249, %253 : vector<8x1024xf32>
    %c47 = arith.constant 47 : index
    %c0_77 = arith.constant 0 : index
    %255 = vector.load %arg5[%c47, %c0_77] : memref<49x1024xf32, #tpu.memory_space<vmem>>, vector<1x1024xf32>
    %256 = vector.extract_strided_slice %229 {offsets = [0, 640], sizes = [8, 1024], strides = [1, 1]} : vector<8x1792xf32> to vector<8x1024xf32>
    %257 = vector.broadcast %255 : vector<1x1024xf32> to vector<8x1024xf32>
    %258 = arith.mulf %256, %257 : vector<8x1024xf32>
    %259 = arith.addf %254, %258 : vector<8x1024xf32>
    %c48 = arith.constant 48 : index
    %c0_78 = arith.constant 0 : index
    %260 = vector.load %arg5[%c48, %c0_78] : memref<49x1024xf32, #tpu.memory_space<vmem>>, vector<1x1024xf32>
    %261 = vector.extract_strided_slice %229 {offsets = [0, 768], sizes = [8, 1024], strides = [1, 1]} : vector<8x1792xf32> to vector<8x1024xf32>
    %262 = vector.broadcast %260 : vector<1x1024xf32> to vector<8x1024xf32>
    %263 = arith.mulf %261, %262 : vector<8x1024xf32>
    %264 = arith.addf %259, %263 : vector<8x1024xf32>
    %265 = vector.broadcast %7 : vector<1x1024xf32> to vector<8x1024xf32>
    %266 = arith.mulf %264, %265 : vector<8x1024xf32>
    %267 = vector.broadcast %11 : vector<1x1024xf32> to vector<8x1024xf32>
    %268 = arith.addf %266, %267 : vector<8x1024xf32>
    %c0_79 = arith.constant 0 : index
    %c0_80 = arith.constant 0 : index
    %c0_81 = arith.constant 0 : index
    %c0_82 = arith.constant 0 : index
    %269 = vector.load %arg7[%c0_79, %c0_80, %c0_81, %c0_82] : memref<1x1x8x1024xf32, #tpu.memory_space<vmem>>, vector<1x1x8x1024xf32>
    %270 = vector.shape_cast %269 : vector<1x1x8x1024xf32> to vector<8x1024xf32>
    %271 = vector.shape_cast %268 : vector<8x1024xf32> to vector<1x1x8x1024xf32>
    tpu.vector_store %arg7[%c0_79, %c0_80, %c0_81, %c0_82], %271 {strides = array<i32>} : memref<1x1x8x1024xf32, #tpu.memory_space<vmem>>, vector<1x1x8x1024xf32>,
    return
  }
  func.func @transform_0(%arg0: i32, %arg1: i32) -> (i32, i32, i32, i32) {
    %c0_i32 = arith.constant 0 : i32
    %c0_i32_0 = arith.constant 0 : i32
    %c0_i32_1 = arith.constant 0 : i32
    return %arg0, %arg1, %c0_i32, %c0_i32_0 : i32, i32, i32, i32
  }
  func.func @transform_1(%arg0: i32, %arg1: i32) -> (i32, i32, i32, i32) {
    %c0_i32 = arith.constant 0 : i32
    %c0_i32_0 = arith.constant 0 : i32
    %c0_i32_1 = arith.constant 0 : i32
    return %arg0, %arg1, %c0_i32, %c0_i32_0 : i32, i32, i32, i32
  }
  func.func @transform_2(%arg0: i32, %arg1: i32) -> (i32, i32, i32, i32) {
    %c0_i32 = arith.constant 0 : i32
    %c0_i32_0 = arith.constant 0 : i32
    %c0_i32_1 = arith.constant 0 : i32
    return %arg0, %arg1, %c0_i32, %c0_i32_0 : i32, i32, i32, i32
  }
  func.func @transform_3(%arg0: i32, %arg1: i32) -> (i32, i32) {
    %c0_i32 = arith.constant 0 : i32
    %c0_i32_0 = arith.constant 0 : i32
    %c0_i32_1 = arith.constant 0 : i32
    return %c0_i32, %c0_i32_0 : i32, i32
  }
  func.func @transform_4(%arg0: i32, %arg1: i32) -> (i32, i32) {
    %c0_i32 = arith.constant 0 : i32
    %c0_i32_0 = arith.constant 0 : i32
    %c0_i32_1 = arith.constant 0 : i32
    return %c0_i32, %c0_i32_0 : i32, i32
  }
  func.func @transform_5(%arg0: i32, %arg1: i32) -> (i32, i32, i32, i32) {
    %c0_i32 = arith.constant 0 : i32
    %c0_i32_0 = arith.constant 0 : i32
    %c0_i32_1 = arith.constant 0 : i32
    return %arg0, %arg1, %c0_i32, %c0_i32_0 : i32, i32, i32, i32
  }
}

module attributes {stable_mosaic.version = 11 : i64} {
  func.func @_mlp_kernel(%arg0: i32, %arg1: i32, %arg2: i32, %arg3: memref<1x1x64x128xf32, #tpu.memory_space<vmem>>, %arg4: memref<1x1x64x128xf32, #tpu.memory_space<vmem>>, %arg5: memref<1x1x64x128xf32, #tpu.memory_space<vmem>>, %arg6: memref<1x128xf32, #tpu.memory_space<vmem>>, %arg7: memref<1x128xf32, #tpu.memory_space<vmem>>, %arg8: memref<1x128xf32, #tpu.memory_space<vmem>>, %arg9: memref<1x128xf32, #tpu.memory_space<vmem>>, %arg10: memref<128x512xbf16, #tpu.memory_space<vmem>>, %arg11: memref<1x512xf32, #tpu.memory_space<vmem>>, %arg12: memref<512x128xbf16, #tpu.memory_space<vmem>>, %arg13: memref<1x128xf32, #tpu.memory_space<vmem>>, %arg14: memref<1x128xf32, #tpu.memory_space<vmem>>, %arg15: memref<1x1x64x128xf32, #tpu.memory_space<vmem>>, %arg16: memref<64x128xf32, #tpu.memory_space<vmem>>) attributes {dimension_semantics = [#tpu.dimension_semantics<parallel>, #tpu.dimension_semantics<parallel>, #tpu.dimension_semantics<arbitrary>], iteration_bounds = array<i64: 2, 1, 4>, scalar_prefetch = 0 : i64, scratch_operands = 1 : i64, tpu.core_type = #tpu.core_type<tc>, window_params = [{transform_indices = @transform_0, window_bounds = array<i64: 1, 1, 64, 128>}, {transform_indices = @transform_1, window_bounds = array<i64: 1, 1, 64, 128>}, {transform_indices = @transform_2, window_bounds = array<i64: 1, 1, 64, 128>}, {pipeline_mode = #tpu.pipeline_mode<synchronous>, transform_indices = @transform_3, window_bounds = array<i64: 1, 128>}, {pipeline_mode = #tpu.pipeline_mode<synchronous>, transform_indices = @transform_4, window_bounds = array<i64: 1, 128>}, {pipeline_mode = #tpu.pipeline_mode<synchronous>, transform_indices = @transform_5, window_bounds = array<i64: 1, 128>}, {pipeline_mode = #tpu.pipeline_mode<synchronous>, transform_indices = @transform_6, window_bounds = array<i64: 1, 128>}, {pipeline_mode = #tpu.pipeline_mode<synchronous>, transform_indices = @transform_7, window_bounds = array<i64: 128, 512>}, {pipeline_mode = #tpu.pipeline_mode<synchronous>, transform_indices = @transform_8, window_bounds = array<i64: 1, 512>}, {pipeline_mode = #tpu.pipeline_mode<synchronous>, transform_indices = @transform_9, window_bounds = array<i64: 512, 128>}, {pipeline_mode = #tpu.pipeline_mode<synchronous>, transform_indices = @transform_10, window_bounds = array<i64: 1, 128>}, {pipeline_mode = #tpu.pipeline_mode<synchronous>, transform_indices = @transform_11, window_bounds = array<i64: 1, 128>}, {transform_indices = @transform_12, window_bounds = array<i64: 1, 1, 64, 128>}]} {
    %c0_i32 = arith.constant 0 : i32
    %0 = arith.cmpi eq, %arg2, %c0_i32 : i32
    %1 = arith.extui %0 : i1 to i32
    %c0_i32_0 = arith.constant 0 : i32
    %2 = arith.cmpi ne, %1, %c0_i32_0 : i32
    scf.if %2 {
      %cst_54 = arith.constant 0.000000e+00 : f32
      %95 = vector.broadcast %cst_54 : f32 to vector<64x128xf32>
      %c0_55 = arith.constant 0 : index
      %c0_56 = arith.constant 0 : index
      %96 = vector.load %arg16[%c0_55, %c0_56] : memref<64x128xf32, #tpu.memory_space<vmem>>, vector<64x128xf32>
      tpu.vector_store %arg16[%c0_55, %c0_56], %95 {strides = array<i32>} : memref<64x128xf32, #tpu.memory_space<vmem>>, vector<64x128xf32>,
    } else {
    }
    %c0 = arith.constant 0 : index
    %c0_1 = arith.constant 0 : index
    %c0_2 = arith.constant 0 : index
    %c0_3 = arith.constant 0 : index
    %3 = vector.load %arg3[%c0, %c0_1, %c0_2, %c0_3] : memref<1x1x64x128xf32, #tpu.memory_space<vmem>>, vector<1x1x64x128xf32>
    %4 = vector.shape_cast %3 : vector<1x1x64x128xf32> to vector<64x128xf32>
    %c3_i32 = arith.constant 3 : i32
    %5 = arith.cmpi slt, %arg2, %c3_i32 : i32
    %cst = arith.constant 1.000000e+00 : f32
    %cst_4 = arith.constant 0.000000e+00 : f32
    %6 = arith.select %5, %cst, %cst_4 : f32
    %c0_5 = arith.constant 0 : index
    %c0_6 = arith.constant 0 : index
    %7 = vector.load %arg16[%c0_5, %c0_6] : memref<64x128xf32, #tpu.memory_space<vmem>>, vector<64x128xf32>
    %8 = arith.addf %7, %4 : vector<64x128xf32>
    %c0_7 = arith.constant 0 : index
    %c0_8 = arith.constant 0 : index
    %c0_9 = arith.constant 0 : index
    %c0_10 = arith.constant 0 : index
    %9 = vector.load %arg4[%c0_7, %c0_8, %c0_9, %c0_10] : memref<1x1x64x128xf32, #tpu.memory_space<vmem>>, vector<1x1x64x128xf32>
    %10 = vector.shape_cast %9 : vector<1x1x64x128xf32> to vector<64x128xf32>
    %11 = vector.broadcast %6 : f32 to vector<64x128xf32>
    %12 = arith.mulf %11, %10 : vector<64x128xf32>
    %13 = arith.addf %8, %12 : vector<64x128xf32>
    %cst_11 = arith.constant 0.333333343 : f32
    %14 = vector.broadcast %cst_11 : f32 to vector<64x128xf32>
    %15 = arith.mulf %13, %14 : vector<64x128xf32>
    %c0_12 = arith.constant 0 : index
    %c0_13 = arith.constant 0 : index
    %16 = vector.load %arg6[%c0_12, %c0_13] : memref<1x128xf32, #tpu.memory_space<vmem>>, vector<1x128xf32>
    %c0_14 = arith.constant 0 : index
    %c0_15 = arith.constant 0 : index
    %17 = vector.load %arg7[%c0_14, %c0_15] : memref<1x128xf32, #tpu.memory_space<vmem>>, vector<1x128xf32>
    %cst_16 = arith.constant dense<0.000000e+00> : vector<64xf32>
    %18 = vector.multi_reduction <add>, %4, %cst_16 [1] : vector<64x128xf32> to vector<64xf32>
    %19 = vector.shape_cast %18 : vector<64xf32> to vector<64x1xf32>
    %cst_17 = arith.constant 1.280000e+02 : f32
    %20 = vector.broadcast %cst_17 : f32 to vector<64x1xf32>
    %21 = arith.divf %19, %20 : vector<64x1xf32>
    %22 = arith.mulf %4, %4 : vector<64x128xf32>
    %cst_18 = arith.constant dense<0.000000e+00> : vector<64xf32>
    %23 = vector.multi_reduction <add>, %22, %cst_18 [1] : vector<64x128xf32> to vector<64xf32>
    %24 = vector.shape_cast %23 : vector<64xf32> to vector<64x1xf32>
    %cst_19 = arith.constant 1.280000e+02 : f32
    %25 = vector.broadcast %cst_19 : f32 to vector<64x1xf32>
    %26 = arith.divf %24, %25 : vector<64x1xf32>
    %27 = arith.mulf %21, %21 : vector<64x1xf32>
    %28 = arith.subf %26, %27 : vector<64x1xf32>
    %29 = vector.broadcast %21 : vector<64x1xf32> to vector<64x128xf32>
    %30 = arith.subf %4, %29 : vector<64x128xf32>
    %cst_20 = arith.constant 9.99999997E-7 : f32
    %31 = vector.broadcast %cst_20 : f32 to vector<64x1xf32>
    %32 = arith.addf %28, %31 : vector<64x1xf32>
    %33 = math.rsqrt %32 : vector<64x1xf32>
    %34 = vector.broadcast %33 : vector<64x1xf32> to vector<64x128xf32>
    %35 = arith.mulf %30, %34 : vector<64x128xf32>
    %36 = vector.broadcast %16 : vector<1x128xf32> to vector<64x128xf32>
    %37 = arith.mulf %35, %36 : vector<64x128xf32>
    %38 = vector.broadcast %17 : vector<1x128xf32> to vector<64x128xf32>
    %39 = arith.addf %37, %38 : vector<64x128xf32>
    %c0_21 = arith.constant 0 : index
    %c0_22 = arith.constant 0 : index
    %40 = vector.load %arg8[%c0_21, %c0_22] : memref<1x128xf32, #tpu.memory_space<vmem>>, vector<1x128xf32>
    %c0_23 = arith.constant 0 : index
    %c0_24 = arith.constant 0 : index
    %41 = vector.load %arg9[%c0_23, %c0_24] : memref<1x128xf32, #tpu.memory_space<vmem>>, vector<1x128xf32>
    %cst_25 = arith.constant dense<0.000000e+00> : vector<64xf32>
    %42 = vector.multi_reduction <add>, %15, %cst_25 [1] : vector<64x128xf32> to vector<64xf32>
    %43 = vector.shape_cast %42 : vector<64xf32> to vector<64x1xf32>
    %cst_26 = arith.constant 1.280000e+02 : f32
    %44 = vector.broadcast %cst_26 : f32 to vector<64x1xf32>
    %45 = arith.divf %43, %44 : vector<64x1xf32>
    %46 = arith.mulf %15, %15 : vector<64x128xf32>
    %cst_27 = arith.constant dense<0.000000e+00> : vector<64xf32>
    %47 = vector.multi_reduction <add>, %46, %cst_27 [1] : vector<64x128xf32> to vector<64xf32>
    %48 = vector.shape_cast %47 : vector<64xf32> to vector<64x1xf32>
    %cst_28 = arith.constant 1.280000e+02 : f32
    %49 = vector.broadcast %cst_28 : f32 to vector<64x1xf32>
    %50 = arith.divf %48, %49 : vector<64x1xf32>
    %51 = arith.mulf %45, %45 : vector<64x1xf32>
    %52 = arith.subf %50, %51 : vector<64x1xf32>
    %53 = vector.broadcast %45 : vector<64x1xf32> to vector<64x128xf32>
    %54 = arith.subf %15, %53 : vector<64x128xf32>
    %cst_29 = arith.constant 9.99999997E-7 : f32
    %55 = vector.broadcast %cst_29 : f32 to vector<64x1xf32>
    %56 = arith.addf %52, %55 : vector<64x1xf32>
    %57 = math.rsqrt %56 : vector<64x1xf32>
    %58 = vector.broadcast %57 : vector<64x1xf32> to vector<64x128xf32>
    %59 = arith.mulf %54, %58 : vector<64x128xf32>
    %60 = vector.broadcast %40 : vector<1x128xf32> to vector<64x128xf32>
    %61 = arith.mulf %59, %60 : vector<64x128xf32>
    %62 = vector.broadcast %41 : vector<1x128xf32> to vector<64x128xf32>
    %63 = arith.addf %61, %62 : vector<64x128xf32>
    %64 = arith.addf %39, %63 : vector<64x128xf32>
    %65 = arith.truncf %64 : vector<64x128xf32> to vector<64x128xbf16>
    %c0_30 = arith.constant 0 : index
    %c0_31 = arith.constant 0 : index
    %66 = vector.load %arg10[%c0_30, %c0_31] : memref<128x512xbf16, #tpu.memory_space<vmem>>, vector<128x512xbf16>
    %cst_32 = arith.constant dense<0.000000e+00> : vector<64x512xf32>
    %67 = tpu.matmul %65, %66, %cst_32 {dimension_numbers = #tpu.dot_dimension_numbers<[1], [0], [0], [1], [0, 0, 1, 1], [], []>} : vector<64x128xbf16>, vector<128x512xbf16>, vector<64x512xf32> -> vector<64x512xf32>
    %c0_33 = arith.constant 0 : index
    %c0_34 = arith.constant 0 : index
    %68 = vector.load %arg11[%c0_33, %c0_34] : memref<1x512xf32, #tpu.memory_space<vmem>>, vector<1x512xf32>
    %69 = vector.broadcast %68 : vector<1x512xf32> to vector<64x512xf32>
    %70 = arith.addf %67, %69 : vector<64x512xf32>
    %cst_35 = arith.constant 1.702000e+00 : f32
    %71 = vector.broadcast %cst_35 : f32 to vector<64x512xf32>
    %72 = arith.mulf %71, %70 : vector<64x512xf32>
    %73 = arith.negf %72 : vector<64x512xf32>
    %74 = math.exp %73 : vector<64x512xf32>
    %cst_36 = arith.constant 1.000000e+00 : f32
    %75 = vector.broadcast %cst_36 : f32 to vector<64x512xf32>
    %76 = arith.addf %75, %74 : vector<64x512xf32>
    %77 = arith.divf %75, %76 : vector<64x512xf32>
    %78 = arith.mulf %70, %77 : vector<64x512xf32>
    %79 = arith.truncf %78 : vector<64x512xf32> to vector<64x512xbf16>
    %c0_37 = arith.constant 0 : index
    %c0_38 = arith.constant 0 : index
    %80 = vector.load %arg12[%c0_37, %c0_38] : memref<512x128xbf16, #tpu.memory_space<vmem>>, vector<512x128xbf16>
    %cst_39 = arith.constant dense<0.000000e+00> : vector<64x128xf32>
    %81 = tpu.matmul %79, %80, %cst_39 {dimension_numbers = #tpu.dot_dimension_numbers<[1], [0], [0], [1], [0, 0, 1, 1], [], []>} : vector<64x512xbf16>, vector<512x128xbf16>, vector<64x128xf32> -> vector<64x128xf32>
    %c0_40 = arith.constant 0 : index
    %c0_41 = arith.constant 0 : index
    %82 = vector.load %arg13[%c0_40, %c0_41] : memref<1x128xf32, #tpu.memory_space<vmem>>, vector<1x128xf32>
    %83 = vector.broadcast %82 : vector<1x128xf32> to vector<64x128xf32>
    %84 = arith.addf %81, %83 : vector<64x128xf32>
    %c0_42 = arith.constant 0 : index
    %c0_43 = arith.constant 0 : index
    %c0_44 = arith.constant 0 : index
    %c0_45 = arith.constant 0 : index
    %85 = vector.load %arg5[%c0_42, %c0_43, %c0_44, %c0_45] : memref<1x1x64x128xf32, #tpu.memory_space<vmem>>, vector<1x1x64x128xf32>
    %86 = vector.shape_cast %85 : vector<1x1x64x128xf32> to vector<64x128xf32>
    %c0_46 = arith.constant 0 : index
    %c0_47 = arith.constant 0 : index
    %87 = vector.load %arg14[%c0_46, %c0_47] : memref<1x128xf32, #tpu.memory_space<vmem>>, vector<1x128xf32>
    %88 = vector.broadcast %87 : vector<1x128xf32> to vector<64x128xf32>
    %89 = arith.mulf %88, %84 : vector<64x128xf32>
    %90 = arith.addf %86, %89 : vector<64x128xf32>
    %c0_48 = arith.constant 0 : index
    %c0_49 = arith.constant 0 : index
    %c0_50 = arith.constant 0 : index
    %c0_51 = arith.constant 0 : index
    %91 = vector.load %arg15[%c0_48, %c0_49, %c0_50, %c0_51] : memref<1x1x64x128xf32, #tpu.memory_space<vmem>>, vector<1x1x64x128xf32>
    %92 = vector.shape_cast %91 : vector<1x1x64x128xf32> to vector<64x128xf32>
    %93 = vector.shape_cast %90 : vector<64x128xf32> to vector<1x1x64x128xf32>
    tpu.vector_store %arg15[%c0_48, %c0_49, %c0_50, %c0_51], %93 {strides = array<i32>} : memref<1x1x64x128xf32, #tpu.memory_space<vmem>>, vector<1x1x64x128xf32>,
    %c0_52 = arith.constant 0 : index
    %c0_53 = arith.constant 0 : index
    %94 = vector.load %arg16[%c0_52, %c0_53] : memref<64x128xf32, #tpu.memory_space<vmem>>, vector<64x128xf32>
    tpu.vector_store %arg16[%c0_52, %c0_53], %4 {strides = array<i32>} : memref<64x128xf32, #tpu.memory_space<vmem>>, vector<64x128xf32>,
    return
  }
  func.func @transform_0(%arg0: i32, %arg1: i32, %arg2: i32) -> (i32, i32, i32, i32) {
    %c0_i32 = arith.constant 0 : i32
    %c0_i32_0 = arith.constant 0 : i32
    return %arg0, %arg2, %arg1, %c0_i32 : i32, i32, i32, i32
  }
  func.func @transform_1(%arg0: i32, %arg1: i32, %arg2: i32) -> (i32, i32, i32, i32) {
    %c1_i32 = arith.constant 1 : i32
    %0 = arith.addi %arg2, %c1_i32 : i32
    %c3_i32 = arith.constant 3 : i32
    %1 = arith.minsi %0, %c3_i32 : i32
    %c0_i32 = arith.constant 0 : i32
    %c0_i32_0 = arith.constant 0 : i32
    return %arg0, %1, %arg1, %c0_i32 : i32, i32, i32, i32
  }
  func.func @transform_2(%arg0: i32, %arg1: i32, %arg2: i32) -> (i32, i32, i32, i32) {
    %c0_i32 = arith.constant 0 : i32
    %c0_i32_0 = arith.constant 0 : i32
    return %arg0, %arg2, %arg1, %c0_i32 : i32, i32, i32, i32
  }
  func.func @transform_3(%arg0: i32, %arg1: i32, %arg2: i32) -> (i32, i32) {
    %c0_i32 = arith.constant 0 : i32
    %c0_i32_0 = arith.constant 0 : i32
    %c0_i32_1 = arith.constant 0 : i32
    return %c0_i32, %c0_i32_0 : i32, i32
  }
  func.func @transform_4(%arg0: i32, %arg1: i32, %arg2: i32) -> (i32, i32) {
    %c0_i32 = arith.constant 0 : i32
    %c0_i32_0 = arith.constant 0 : i32
    %c0_i32_1 = arith.constant 0 : i32
    return %c0_i32, %c0_i32_0 : i32, i32
  }
  func.func @transform_5(%arg0: i32, %arg1: i32, %arg2: i32) -> (i32, i32) {
    %c0_i32 = arith.constant 0 : i32
    %c0_i32_0 = arith.constant 0 : i32
    %c0_i32_1 = arith.constant 0 : i32
    return %c0_i32, %c0_i32_0 : i32, i32
  }
  func.func @transform_6(%arg0: i32, %arg1: i32, %arg2: i32) -> (i32, i32) {
    %c0_i32 = arith.constant 0 : i32
    %c0_i32_0 = arith.constant 0 : i32
    %c0_i32_1 = arith.constant 0 : i32
    return %c0_i32, %c0_i32_0 : i32, i32
  }
  func.func @transform_7(%arg0: i32, %arg1: i32, %arg2: i32) -> (i32, i32) {
    %c0_i32 = arith.constant 0 : i32
    %c0_i32_0 = arith.constant 0 : i32
    %c0_i32_1 = arith.constant 0 : i32
    return %c0_i32, %c0_i32_0 : i32, i32
  }
  func.func @transform_8(%arg0: i32, %arg1: i32, %arg2: i32) -> (i32, i32) {
    %c0_i32 = arith.constant 0 : i32
    %c0_i32_0 = arith.constant 0 : i32
    %c0_i32_1 = arith.constant 0 : i32
    return %c0_i32, %c0_i32_0 : i32, i32
  }
  func.func @transform_9(%arg0: i32, %arg1: i32, %arg2: i32) -> (i32, i32) {
    %c0_i32 = arith.constant 0 : i32
    %c0_i32_0 = arith.constant 0 : i32
    %c0_i32_1 = arith.constant 0 : i32
    return %c0_i32, %c0_i32_0 : i32, i32
  }
  func.func @transform_10(%arg0: i32, %arg1: i32, %arg2: i32) -> (i32, i32) {
    %c0_i32 = arith.constant 0 : i32
    %c0_i32_0 = arith.constant 0 : i32
    %c0_i32_1 = arith.constant 0 : i32
    return %c0_i32, %c0_i32_0 : i32, i32
  }
  func.func @transform_11(%arg0: i32, %arg1: i32, %arg2: i32) -> (i32, i32) {
    %c0_i32 = arith.constant 0 : i32
    %c0_i32_0 = arith.constant 0 : i32
    %c0_i32_1 = arith.constant 0 : i32
    return %c0_i32, %c0_i32_0 : i32, i32
  }
  func.func @transform_12(%arg0: i32, %arg1: i32, %arg2: i32) -> (i32, i32, i32, i32) {
    %c0_i32 = arith.constant 0 : i32
    %c0_i32_0 = arith.constant 0 : i32
    return %arg0, %arg2, %arg1, %c0_i32 : i32, i32, i32, i32
  }
}

</mosaic_0001>

<bundles_post_ra>
// kernel: tile.30
= control target key start
LH: loop header
LB: loop body
LE: loop exit
PB: predicated region body
PF: predicated region fallthrough
CT: control target
= control target key end

     0   :  { %s22_s0 = inlined_call_operand.vmem [shape: f32[128], index: 0, kind: input, shape index: {}]   ;;  %s23_s1 = inlined_call_operand.vmem [shape: f32[8,1,1,128], index: 1, kind: output, shape index: {}]  }
   0x1   :  { %v4_v0 = vld [vmem:[%s22_s0] ss:$0 sm:$0xff] }
   0x2   :  { %5 = vst [vmem:[%s23_s1] sm:$0xff] %v4_v0 }

// kernel: _lambda_.3
= control target key start
LH: loop header
LB: loop body
LE: loop exit
PB: predicated region body
PF: predicated region fallthrough
CT: control target
= control target key end

     0   :  { %s3691_s0 = inlined_call_operand.vmem [shape: f32[2,4,64,128], index: 0, kind: input, shape index: {}, may-alias: {0,1}]   ;;  %s3692_s1 = inlined_call_operand.vmem [shape: f32[2,4,64,128], index: 1, kind: input, shape index: {}, may-alias: {0,1}]   ;;  %s3693_s2 = inlined_call_operand.vmem [shape: f32[2,4,64,128], index: 2, kind: input, shape index: {}]   ;;  %s3694_s3 = inlined_call_operand.vmem [shape: f32[1,128], index: 3, kind: input, shape index: {}]   ;;  %s3695_s4 = inlined_call_operand.vmem [shape: f32[1,128], index: 4, kind: input, shape index: {}]   ;;  %s3696_s5 = inlined_call_operand.vmem [shape: f32[1,128], index: 5, kind: input, shape index: {}]   ;;  %s3697_s6 = inlined_call_operand.vmem [shape: f32[1,128], index: 6, kind: input, shape index: {}]   ;;  %s3698_s7 = inlined_call_operand.vmem [shape: bf16[128,512], index: 7, kind: input, shape index: {}]   ;;  %s3699_s8 = inlined_call_operand.vmem [shape: f32[1,512], index: 8, kind: input, shape index: {}]   ;;  %s3700_s9 = inlined_call_operand.vmem [shape: bf16[512,128], index: 9, kind: input, shape index: {}]   ;;  %s3701_s10 = inlined_call_operand.vmem [shape: f32[1,128], index: 10, kind: input, shape index: {}]   ;;  %s3702_s11 = inlined_call_operand.vmem [shape: f32[1,128], index: 11, kind: input, shape index: {}]   ;;  %s3703_s12 = inlined_call_operand.hbm [shape: f32[2,4,64,128], index: 12, kind: output, shape index: {}]  }
   0x1   :  { %3718 = sst [smem:[#allocation17_spill]] %s3703_s12 }
   0x2   :  { %17 = vsyncpa [#allocation4], 0 }
   0x3   :  { %19 = vsyncpa [#allocation4 + $0x1], 0  ;;  %s2859_s21 = smov 0   ;;  %s2861_s22 = smov 0  }
   0x4   :  { %s2863_s23 = smov 0   ;;  %s2865_s24 = smov 0  }
   0x5   :  { %s2867_s25 = smov 0   ;;  %s2869_s26 = smov 0  }
   0x6   :  { %s2871_s27 = smov 0   ;;  %s2873_s28 = smov 0  }
   0x7 LB: > { %3719 = sst [smem:[#allocation6_spill]] %s2759_s21  ;;  %s2171_s29 = sadd.s32 4294967295, %s2787_s28   ;;  %s2787_s28 = sphi %s2873_s28, %s25_s28   ;;  %s2783_s27 = sphi %s2871_s27, %s3746_s27   ;;  %s2779_s26 = sphi %s2869_s26, %s3745_s26   ;;  %s2775_s25 = sphi %s2867_s25, %s3744_s25   ;;  %s2771_s24 = sphi %s2865_s24, %s3743_s24   ;;  %s2767_s23 = sphi %s2863_s23, %s3742_s23   ;;  %s2763_s22 = sphi %s2861_s22, %s3741_s22   ;;  %s2759_s21 = sphi %s2859_s21, %s3740_s21  }
   0x8   : > { %3720 = sst [smem:[#allocation7_spill]] %s2763_s22  ;;  %s2172_s30 = sadd.s32 4294967294, %s2787_s28  }
   0x9   : > { %3721 = sst [smem:[#allocation8_spill]] %s2767_s23  ;;  %s37_s13 = sadd.s32 1, %s2779_s26 }
   0xa   : > { %3722 = sst [smem:[#allocation9_spill]] %s2779_s26  ;;  %p38_p0 = scmp.ge.s32.totalorder %s37_s13, 4 }
   0xb   : > { %3723 = sst [smem:[#allocation10_spill]] %s2783_s27  ;;  %s44_s14 = sadd.s32 1, %s2783_s27 }
   0xc   : > { %3724 = sst [smem:[#allocation11_spill]] %s2787_s28  ;;  %p350_p1 = scmp.ne.s32.totalorder %s2767_s23, %s2763_s22 }
   0xd   : > { %p351_p2 = scmp.eq.s32.totalorder %s2171_s29, 7  ;;  %s3748_s13 = smov (%p38_p0, %s37_s13), 0 }
   0xe   : > { %3725 = sst [smem:[#allocation12_spill]] %s3748_s13  ;;  %s3750_s14 = smov (!%p38_p0, %s44_s14), %s2783_s27 }
   0xf   : > { %s334_s15 = ssub.s32 %s2779_s26, %s3748_s13  ;;  %p2910_p3 = por %p351_p2, %p350_p1 }
  0x10   : > { %p46_p4 = scmp.ge.s32.totalorder %s3750_s14, 2  ;;  %p356_p5 = scmp.ne.s32.totalorder %s2763_s22, %s2759_s21 }
  0x11   : > { %s3726_s16 = scalar_select %p2910_p3, 1, 0 }
  0x12   : > { %p357_p6 = scmp.eq.s32.totalorder %s2172_s30, 7  ;;  %p2175_p7 = scmp.ge.s32.totalorder %s2787_s28, 1 }
  0x13   : > { %3727 = sst [smem:[#allocation13_spill]] %s3726_s16  ;;  %s3752_s14 = smov (%p46_p4, %s3750_s14), 0 }
  0x14   : > { %3728 = sst [smem:[#allocation14_spill]] %s3752_s14  ;;  %p2919_p8 = por %p357_p6, %p356_p5 }
  0x15   : > { %p459_p9 = scmp.lt.s32.totalorder %s2787_s28, 9  ;;  %s333_s18 = ssub.s32 %s2783_s27, %s3752_s14 }
  0x16   : > { %s3729_s17 = scalar_select %p2919_p8, 1, 0 }
  0x17   : > { %s340_s19 = sadd.s32 1, %s2767_s23  ;;  %s335_s20 = sor.u32 %s334_s15, %s333_s18 }
  0x18   : > { %3730 = sst [smem:[#allocation15_spill]] %s3729_s17  ;;  %p460_p10 = pnand %p2175_p7, %p459_p9 }
  0x19   : > { %p338_p11 = scmp.eq.s32.totalorder %s335_s20, 0  ;;  %s3714_s30 = sand.u32 (!%p460_p10), 1, %s2763_s22  }
  0x1a   : > { %463 = sbr.rel (%p460_p10) target bundleno = 789 (0x315), region = 68  ;;  %p539_p12 = scmp.lt.s32.totalorder (!%p460_p10), %s2775_s25, 1 }
  0x1b   : > { %s2928_s29 = scalar_select %p338_p11, %s2767_s23, %s340_s19  }
  0x1c   : > { %s2176_s13 = sshll.u32 (!%p460_p10), %s3714_s30, 6  ;;  %p541_p13 = scmp.lt.s32.totalorder (!%p460_p10), %s2771_s24, 3 }
  0x1d   : > { %3731 = sst [smem:[#allocation16_spill]] %s2928_s29  ;;  %s552_s14 = sadd.s32 (!%p460_p10), 1, %s2771_s24 }
  0x1e   : > { %p553_p0 = scmp.lt.s32.totalorder (!%p460_p10), %s552_s14, 3  ;;  %p2189_p1 = scmp.ne.s32.totalorder (!%p460_p10), %s2771_s24, 0 }
  0x21   : > { %s540_s15 = scalar_select %p539_p12, %s2775_s25, 1 }
  0x22   : > { %s542_s18 = scalar_select %p541_p13, %s2771_s24, 3 }
  0x23   : > { %s2178_s19 = sshll.u32 %s540_s15, 5  ;;  %s3754_s14 = smov (!%p553_p0, %s552_s14), 3  ;;  %v2789_v0 = vmov (!%p2189_p1), 0.0  }
  0x24   : > { %s2177_s20 = sshll.u32 %s542_s18, 3  ;;  %s3756_s14 = smov (!%p553_p0, %s3754_s14), 3  ;;  %592 = vst [vmem:[#allocation2] sm:$0xff] (!%p2189_p1), %v2789_v0  ;;  %593 = vst [vmem:[#allocation2 + $0x8] sm:$0xff] (!%p2189_p1), %v2789_v0 }
  0x25   : > { %s548_s27 = sadd.s32 %s2178_s19, %s2177_s20  ;;  %s2183_s30 = sshll.u32 %s3756_s14, 3  ;;  %594 = vst [vmem:[#allocation2 + $0x10] sm:$0xff] (!%p2189_p1), %v2789_v0  ;;  %595 = vst [vmem:[#allocation2 + $0x18] sm:$0xff] (!%p2189_p1), %v2789_v0 }
  0x26   : > { %s2179_s26 = sshll.u32 %s548_s27, 3  ;;  %s565_s16 = sadd.s32 %s2183_s30, %s2178_s19  ;;  %596 = vst [vmem:[#allocation2 + $0x20] sm:$0xff] (!%p2189_p1), %v2789_v0  ;;  %597 = vst [vmem:[#allocation2 + $0x28] sm:$0xff] (!%p2189_p1), %v2789_v0 }
  0x27   : > { %s2943_s17 = scalar_lea.vmem %s3691_s0, %s2179_s26  ;;  %s2948_s12 = scalar_lea.vmem %s3693_s2, %s2179_s26  ;;  %598 = vst [vmem:[#allocation2 + $0x30] sm:$0xff] (!%p2189_p1), %v2789_v0  ;;  %599 = vst [vmem:[#allocation2 + $0x38] sm:$0xff] (!%p2189_p1), %v2789_v0 }
  0x28   : > { %s2185_s22 = sshll.u32 %s565_s16, 3  ;;  %s2955_s27 = scalar_lea.vmem [#allocation3], %s2176_s13 }
  0x29   : > { %s2953_s20 = scalar_lea.vmem %s3692_s1, %s2185_s22  ;;  %591 = sbr.rel (%p2189_p1) target bundleno = 48 (0x30), region = 72 }
  0x30 PF: > { %v2959_v1 = vld [vmem:[%s2943_s17] sm:$0xff]  ;;  %v2962_v2 = vld [vmem:[%s2943_s17 + $0x8] sm:$0xff]  ;;  %s609_s21 = scalar_select %p541_p13, 1.0, 0.0  ;;  %v2978_v11 = vld [vmem:[%s2943_s17 + $0x10] sm:$0xff] }
  0x31   : > { %v610_v3 = vld [vmem:[#allocation2] sm:$0xff]  ;;  %661 = vadd.xlane.f32.xlu0 %v2959_v1  ;;  %v687_v4 = vmul.f32 %v2962_v2, %v2962_v2  ;;  %v611_v7 = vld [vmem:[#allocation2 + $0x8] sm:$0xff]  ;;  %v612_v12 = vld [vmem:[#allocation2 + $0x10] sm:$0xff]  ;;  %v686_v19 = vmul.f32 %v2959_v1, %v2959_v1  ;;  %v688_v52 = vmul.f32 %v2978_v11, %v2978_v11  ;;  %s2293_s30 = sshll.u32 %s2771_s24, 3  ;;  %s2294_s19 = sshll.u32 %s2775_s25, 5 }
  0x32   : > { %v618_v5 = vadd.f32 %v610_v3, %v2959_v1  ;;  %v626_v6 = vld [vmem:[%s2953_s20] sm:$0xff]  ;;  %2004 = vst [vmem:[#allocation2] sm:$0xff] %v2959_v1  ;;  %v627_v8 = vld [vmem:[%s2953_s20 + $0x8] sm:$0xff]  ;;  %v2973_v9 = vstv %s609_s21  ;;  %v619_v10 = vadd.f32 %v611_v7, %v2962_v2  ;;  %2005 = vst [vmem:[#allocation2 + $0x8] sm:$0xff] %v2962_v2  ;;  %v620_v32 = vadd.f32 %v612_v12, %v2978_v11  ;;  %s2027_s15 = sadd.s32 %s2294_s19, %s2293_s30  ;;  %s2030_s24 = sshll.u32 %s2955_s27, 4  ;;  %s3633_s24 = int_to_ptr.vmem [resolvable:$true] %s2030_s24 }
  0x33   : > { %696 = vadd.xlane.f32.xlu1 %v687_v4  ;;  %v635_v13 = vmul.f32 %v2973_v9, %v626_v6  ;;  %v636_v14 = vmul.f32 %v2973_v9, %v627_v8  ;;  %v2983_v15 = vld [vmem:[%s2943_s17 + $0x18] sm:$0xff]  ;;  %2006 = vst [vmem:[#allocation2 + $0x10] sm:$0xff] %v2978_v11  ;;  %v2988_v17 = vld [vmem:[%s2943_s17 + $0x20] sm:$0xff]  ;;  %v628_v22 = vld [vmem:[%s2953_s20 + $0x10] sm:$0xff]  ;;  %s2295_s21 = sshll.u32 %s2027_s15, 7  ;;  %s3734_s23 = sld [smem:[#allocation17_spill]] }
  0x34   : > { %v613_v16 = vld [vmem:[#allocation2 + $0x18] sm:$0xff]  ;;  %v614_v18 = vld [vmem:[#allocation2 + $0x20] sm:$0xff]  ;;  %v2995_v23 = vld [vmem:[%s2943_s17 + $0x28] sm:$0xff]  ;;  %v637_v33 = vmul.f32 %v2973_v9, %v628_v22  ;;  %v689_v55 = vmul.f32 %v2983_v15, %v2983_v15  ;;  %s2791_s16 = smov [#allocation3]  }
  0x35   : > { %2007 = vst [vmem:[#allocation2 + $0x18] sm:$0xff] %v2983_v15  ;;  %663 = vadd.xlane.f32.xlu0 %v2962_v2  ;;  %v643_v20 = vadd.f32 %v635_v13, %v618_v5  ;;  %v644_v21 = vadd.f32 %v636_v14, %v619_v10  ;;  %2008 = vst [vmem:[#allocation2 + $0x20] sm:$0xff] %v2988_v17  ;;  %v615_v24 = vld [vmem:[#allocation2 + $0x28] sm:$0xff]  ;;  %v629_v25 = vld [vmem:[%s2953_s20 + $0x18] sm:$0xff]  ;;  %v621_v37 = vadd.f32 %v613_v16, %v2983_v15 }
  0x36   : > { %2009 = vst [vmem:[#allocation2 + $0x28] sm:$0xff] %v2995_v23  ;;  %v3001_v26 = vld [vmem:[%s2943_s17 + $0x30] sm:$0xff]  ;;  %v630_v29 = vld [vmem:[%s2953_s20 + $0x20] sm:$0xff]  ;;  %v3009_v30 = vld [vmem:[%s2943_s17 + $0x38] sm:$0xff]  ;;  %v638_v38 = vmul.f32 %v2973_v9, %v629_v25  ;;  %v622_v39 = vadd.f32 %v614_v18, %v2988_v17  ;;  %v623_v41 = vadd.f32 %v615_v24, %v2995_v23  ;;  %v645_v44 = vadd.f32 %v637_v33, %v620_v32  ;;  %s2697_s17 = sshll.u32 %s2791_s16, 4  ;;  %s2698_s17 = int_to_ptr.vmem [resolvable:$false] %s2697_s17 }
  0x37   : > { %v3003_v27 = vld [vmem:[#allocation2 + $0x30] sm:$0xff]  ;;  %v3005_v28 = vmul.f32 0.33333334, %v643_v20  ;;  %v3012_v31 = vld [vmem:[#allocation2 + $0x38] sm:$0xff]  ;;  %v631_v34 = vld [vmem:[%s2953_s20 + $0x28] sm:$0xff]  ;;  %v639_v40 = vmul.f32 %v2973_v9, %v630_v29  ;;  %v690_v10 = vmul.f32 %v2988_v17, %v2988_v17  ;;  %v691_v20 = vmul.f32 %v2995_v23, %v2995_v23  ;;  %s2699_s29 = scalar_lea.vmem %s2698_s17, 2048  ;;  %p2700_p6 = scmp.lt.s32.totalorder %s3633_s24, %s2698_s17 }
  0x38   : > { %2010 = vst [vmem:[#allocation2 + $0x30] sm:$0xff] %v3001_v26  ;;  %2011 = vst [vmem:[#allocation2 + $0x38] sm:$0xff] %v3009_v30  ;;  %v3019_v35 = vmul.f32 0.33333334, %v644_v21  ;;  %v640_v42 = vmul.f32 %v2973_v9, %v631_v34  ;;  %v646_v45 = vadd.f32 %v638_v38, %v621_v37  ;;  %v3033_v48 = vmul.f32 0.33333334, %v645_v44 }
  0x39   : > { %694 = vadd.xlane.f32.xlu0 %v686_v19  ;;  %796 = vadd.xlane.f32.xlu1 %v3005_v28  ;;  %v820_v36 = vmul.f32 %v3005_v28, %v3005_v28  ;;  %v647_v46 = vadd.f32 %v639_v40, %v622_v39  ;;  %v2453_v53 = vld [vmem:[%s3698_s7 + $0x4] ss:$16 sps:$4 sm:$0xff]   ;;  %v2455_v54 = vld [vmem:[%s3698_s7 + $0xc] ss:$16 sps:$4 sm:$0xff]   ;;  %v2457_v57 = vld [vmem:[%s3698_s7] ss:$16 sps:$4 sm:$0xff]   ;;  %v624_v14 = vadd.f32 %v3003_v27, %v3001_v26  ;;  %s3735_s13 = smov %s3734_s23  ;;  %s3631_s26 = scalar_lea.hbm %s3734_s23, %s2295_s21 }
  0x3a   : > { %v821_v43 = vmul.f32 %v3019_v35, %v3019_v35  ;;  %v648_v47 = vadd.f32 %v640_v42, %v623_v41  ;;  %v3035_v49 = vmul.f32 0.33333334, %v646_v45  ;;  %v822_v56 = vmul.f32 %v3033_v48, %v3033_v48  ;;  %v2458_v58 = vld [vmem:[%s3698_s7 + $0x8] ss:$16 sps:$4 sm:$0xff]   ;;  %1154 = vmatprep.subr.bf16.mxu0 %v2453_v53  ;;  %1227 = vmatprep.subr.bf16.mxu1 %v2455_v54  ;;  %v2459_v59 = vld [vmem:[%s3698_s7 + $0x24] ss:$16 sps:$4 sm:$0xff]  }
  0x3b   : > { %v3037_v50 = vmul.f32 0.33333334, %v647_v46  ;;  %1155 = vmatpush1.bf16.msra.mxu0 %v2457_v57  ;;  %1228 = vmatpush1.bf16.msra.mxu1 %v2458_v58  ;;  %v2461_v60 = vld [vmem:[%s3698_s7 + $0x2c] ss:$16 sps:$4 sm:$0xff]   ;;  %v2463_v62 = vld [vmem:[%s3698_s7 + $0x20] ss:$16 sps:$4 sm:$0xff]   ;;  %v625_v32 = vadd.f32 %v3012_v31, %v3009_v30  ;;  %v692_v44 = vmul.f32 %v3001_v26, %v3001_v26  ;;  %v693_v53 = vmul.f32 %v3009_v30, %v3009_v30 }
  0x3c   : > { %v3039_v51 = vmul.f32 0.33333334, %v648_v47  ;;  %v823_v61 = vmul.f32 %v3035_v49, %v3035_v49  ;;  %v2464_v63 = vld [vmem:[%s3698_s7 + $0x28] ss:$16 sps:$4 sm:$0xff]   ;;  %1156 = vmatprep.subr.bf16.mxu0 %v2459_v59  ;;  %1229 = vmatprep.subr.bf16.mxu1 %v2461_v60  ;;  %v2465_v0 = vld [vmem:[%s3698_s7 + $0x44] ss:$16 sps:$4 sm:$0xff]  }
  0x3d   : > { %798 = vadd.xlane.f32.xlu1 %v3019_v35  ;;  %828 = vadd.xlane.f32.xlu0 %v820_v36  ;;  %v2467_v3 = vld [vmem:[%s3698_s7 + $0x4c] ss:$16 sps:$4 sm:$0xff]   ;;  %v2469_v4 = vld [vmem:[%s3698_s7 + $0x40] ss:$16 sps:$4 sm:$0xff]   ;;  %v2470_v5 = vld [vmem:[%s3698_s7 + $0x48] ss:$16 sps:$4 sm:$0xff]   ;;  %v824_v21 = vmul.f32 %v3037_v50, %v3037_v50 }
  0x3e   : > { %v632_v6 = vld [vmem:[%s2953_s20 + $0x30] sm:$0xff]  ;;  %v2473_v8 = vld [vmem:[%s3698_s7 + $0x6c] ss:$16 sps:$4 sm:$0xff]   ;;  %v2476_v13 = vld [vmem:[%s3698_s7 + $0x68] ss:$16 sps:$4 sm:$0xff]   ;;  %v825_v29 = vmul.f32 %v3039_v51, %v3039_v51 }
  0x3f   : > { %1157 = vmatpush1.bf16.msra.mxu0 %v2463_v62  ;;  %1230 = vmatpush1.bf16.msra.mxu1 %v2464_v63  ;;  %v2471_v7 = vld [vmem:[%s3698_s7 + $0x64] ss:$16 sps:$4 sm:$0xff]   ;;  %v2475_v12 = vld [vmem:[%s3698_s7 + $0x60] ss:$16 sps:$4 sm:$0xff]   ;;  %v641_v16 = vmul.f32 %v2973_v9, %v632_v6  ;;  %v2479_v19 = vld [vmem:[%s3698_s7 + $0x8c] ss:$16 sps:$4 sm:$0xff]  }
  0x40   : > { %1158 = vmatprep.subr.bf16.mxu0 %v2465_v0  ;;  %1231 = vmatprep.subr.bf16.mxu1 %v2467_v3  ;;  %v2477_v18 = vld [vmem:[%s3698_s7 + $0x84] ss:$16 sps:$4 sm:$0xff]   ;;  %v633_v22 = vld [vmem:[%s2953_s20 + $0x38] sm:$0xff]  ;;  %v2481_v24 = vld [vmem:[%s3698_s7 + $0x80] ss:$16 sps:$4 sm:$0xff]   ;;  %s3732_s20 = sld [smem:[#allocation7_spill]] }
  0x41   : > { %830 = vadd.xlane.f32.xlu1 %v821_v43  ;;  %665 = vadd.xlane.f32.xlu0 %v2978_v11  ;;  %v2482_v25 = vld [vmem:[%s3698_s7 + $0x88] ss:$16 sps:$4 sm:$0xff]   ;;  %v649_v27 = vadd.f32 %v641_v16, %v624_v14  ;;  %v642_v33 = vmul.f32 %v2973_v9, %v633_v22  ;;  %v2483_v34 = vld [vmem:[%s3698_s7 + $0xa4] ss:$16 sps:$4 sm:$0xff]   ;;  %v2485_v36 = vld [vmem:[%s3698_s7 + $0xac] ss:$16 sps:$4 sm:$0xff]  }
  0x42   : > { %v2487_v37 = vld [vmem:[%s3698_s7 + $0xa0] ss:$16 sps:$4 sm:$0xff]   ;;  %v2488_v38 = vld [vmem:[%s3698_s7 + $0xa8] ss:$16 sps:$4 sm:$0xff]   ;;  %v2489_v39 = vld [vmem:[%s3698_s7 + $0xc4] ss:$16 sps:$4 sm:$0xff]  }
  0x43   : > { %1159 = vmatpush1.bf16.msra.mxu0 %v2469_v4  ;;  %1232 = vmatpush1.bf16.msra.mxu1 %v2470_v5  ;;  %v3144_v31 = vmul.f32 0.33333334, %v649_v27  ;;  %v650_v9 = vadd.f32 %v642_v33, %v625_v32  ;;  %v2491_v40 = vld [vmem:[%s3698_s7 + $0xcc] ss:$16 sps:$4 sm:$0xff]   ;;  %v2493_v41 = vld [vmem:[%s3698_s7 + $0xc0] ss:$16 sps:$4 sm:$0xff]  }
  0x44   : > { %1160 = vmatprep.subr.bf16.mxu0 %v2471_v7  ;;  %1233 = vmatprep.subr.bf16.mxu1 %v2473_v8  ;;  %v2494_v42 = vld [vmem:[%s3698_s7 + $0xc8] ss:$16 sps:$4 sm:$0xff]   ;;  %v2495_v45 = vld [vmem:[%s3698_s7 + $0xe4] ss:$16 sps:$4 sm:$0xff]   ;;  %v2497_v46 = vld [vmem:[%s3698_s7 + $0xec] ss:$16 sps:$4 sm:$0xff]  }
  0x45   : > { %667 = vadd.xlane.f32.xlu1 %v2983_v15  ;;  %800 = vadd.xlane.f32.xlu0 %v3033_v48  ;;  %v3161_v43 = vmul.f32 0.33333334, %v650_v9  ;;  %v2499_v47 = vld [vmem:[%s3698_s7 + $0xe0] ss:$16 sps:$4 sm:$0xff]   ;;  %v826_v54 = vmul.f32 %v3144_v31, %v3144_v31 }
  0x46   : > { %s3736_s28 = sand.u32 1, %s3732_s20  }
  0x47   : > { %1161 = vmatpush1.bf16.msra.mxu0 %v2475_v12  ;;  %1234 = vmatpush1.bf16.msra.mxu1 %v2476_v13  ;;  %s3639_s14 = scalar_lea.sflag [#allocation4], %s3736_s28 }
  0x48   : > { %1162 = vmatprep.subr.bf16.mxu0 %v2477_v18  ;;  %1235 = vmatprep.subr.bf16.mxu1 %v2479_v19 }
  0x49   : > { %802 = vadd.xlane.f32.xlu1 %v3035_v49  ;;  %698 = vadd.xlane.f32.xlu0 %v688_v52  ;;  %v2500_v52 = vld [vmem:[%s3698_s7 + $0xe8] ss:$16 sps:$4 sm:$0xff]  }
  0x4b   : > { %1163 = vmatpush1.bf16.msra.mxu0 %v2481_v24  ;;  %1236 = vmatpush1.bf16.msra.mxu1 %v2482_v25 }
  0x4c   : > { %1164 = vmatprep.subr.bf16.mxu0 %v2483_v34  ;;  %1237 = vmatprep.subr.bf16.mxu1 %v2485_v36 }
  0x4d   : > { %700 = vadd.xlane.f32.xlu1 %v689_v55  ;;  %832 = vadd.xlane.f32.xlu0 %v822_v56  ;;  %v2790_v55 = vmov 0   ;;  %v827_v56 = vmul.f32 %v3161_v43, %v3161_v43 }
  0x4e   : > { %1186 = vmatprep.mubr.bf16.mxu0 %v2790_v55  ;;  %1259 = vmatprep.mubr.bf16.mxu1 %v2790_v55 }
  0x4f   : > { %1165 = vmatpush1.bf16.msra.mxu0 %v2487_v37  ;;  %1238 = vmatpush1.bf16.msra.mxu1 %v2488_v38 }
  0x50   : > { %1166 = vmatprep.subr.bf16.mxu0 %v2489_v39  ;;  %1239 = vmatprep.subr.bf16.mxu1 %v2491_v40 }
  0x51   : > { %834 = vadd.xlane.f32.xlu1 %v823_v61  ;;  %669 = vadd.xlane.f32.xlu0 %v2988_v17 }
  0x53   : > { %1167 = vmatpush1.bf16.msra.mxu0 %v2493_v41  ;;  %1240 = vmatpush1.bf16.msra.mxu1 %v2494_v42 }
  0x54   : > { %1168 = vmatprep.subr.bf16.mxu0 %v2495_v45  ;;  %1241 = vmatprep.subr.bf16.mxu1 %v2497_v46 }
  0x55   : > { %671 = vadd.xlane.f32.xlu1 %v2995_v23  ;;  %804 = vadd.xlane.f32.xlu0 %v3037_v50 }
  0x57   : > { %1169 = vmatpush1.bf16.msra.mxu0 %v2499_v47  ;;  %1242 = vmatpush1.bf16.msra.mxu1 %v2500_v52 }
  0x59   : > { %806 = vadd.xlane.f32.xlu1 %v3039_v51  ;;  %702 = vadd.xlane.f32.xlu0 %v690_v10 }
  0x5d   : > { %704 = vadd.xlane.f32.xlu1 %v691_v20  ;;  %836 = vadd.xlane.f32.xlu0 %v824_v21 }
  0x61   : > { %838 = vadd.xlane.f32.xlu1 %v825_v29  ;;  %673 = vadd.xlane.f32.xlu0 %v3001_v26 }
  0x65   : > { %675 = vadd.xlane.f32.xlu1 %v3009_v30  ;;  %808 = vadd.xlane.f32.xlu0 %v3144_v31 }
  0x69   : > { %810 = vadd.xlane.f32.xlu1 %v3161_v43  ;;  %706 = vadd.xlane.f32.xlu0 %v692_v44 }
  0x6d   : > { %708 = vadd.xlane.f32.xlu1 %v693_v53  ;;  %840 = vadd.xlane.f32.xlu0 %v826_v54 }
  0x71   : > { %842 = vadd.xlane.f32.xlu1 %v827_v56 }
  0xbe   : > { %v662_v57 = vpop.xlane.xlu0 %661 }
  0xbf   : > { %v678_v60 = vmul.f32 0.0078125, %v662_v57 }
  0xc0   : > { %v697_v58 = vpop.xlane.xlu1 %696 }
  0xc1   : > { %v711_v62 = vmul.f32 0.0078125, %v697_v58  ;;  %v718_v4 = vmul.f32 %v678_v60, %v678_v60  ;;  %v734_v45 = vsub.f32 %v2959_v1, %v678_v60  ;;  %v3206_v1 = vld [vmem:[%s3696_s5] ss:$0 sm:$0xff] }
  0xc2   : > { %v664_v59 = vpop.xlane.xlu0 %663 }
  0xc3   : > { %v679_v61 = vmul.f32 0.0078125, %v664_v59 }
  0xc5   : > { %v719_v63 = vmul.f32 %v679_v61, %v679_v61  ;;  %v735_v47 = vsub.f32 %v2962_v2, %v679_v61  ;;  %v3211_v61 = vld [vmem:[%s3694_s3] ss:$0 sm:$0xff] }
  0xc6   : > { %v695_v0 = vpop.xlane.xlu0 %694  ;;  %v797_v3 = vpop.xlane.xlu1 %796 }
  0xc7   : > { %v727_v5 = vsub.f32 %v711_v62, %v719_v63  ;;  %v710_v6 = vmul.f32 0.0078125, %v695_v0  ;;  %v812_v7 = vmul.f32 0.0078125, %v797_v3 }
  0xc9   : > { %v726_v8 = vsub.f32 %v710_v6, %v718_v4  ;;  %v743_v10 = vadd.f32 1e-06, %v727_v5  ;;  %v852_v16 = vmul.f32 %v812_v7, %v812_v7  ;;  %v868_v52 = vsub.f32 %v3005_v28, %v812_v7 }
  0xca   : > { %v799_v12 = vpop.xlane.xlu1 %798  ;;  %v829_v13 = vpop.xlane.xlu0 %828 }
  0xcb   : > { %v742_v14 = vadd.f32 1e-06, %v726_v8  ;;  %v813_v18 = vmul.f32 0.0078125, %v799_v12  ;;  %v844_v19 = vmul.f32 0.0078125, %v829_v13  ;;  %2533 = vrsqrt.f32 %v743_v10  ;;  %v3219_v10 = vld [vmem:[%s3697_s6] ss:$0 sm:$0xff] }
  0xcd   : > { %v860_v20 = vsub.f32 %v844_v19, %v852_v16  ;;  %2535 = vrsqrt.f32 %v742_v14  ;;  %v853_v24 = vmul.f32 %v813_v18, %v813_v18  ;;  %v869_v5 = vsub.f32 %v3019_v35, %v813_v18 }
  0xce   : > { %v831_v21 = vpop.xlane.xlu1 %830  ;;  %v666_v22 = vpop.xlane.xlu0 %665 }
  0xcf   : > { %v876_v25 = vadd.f32 1e-06, %v860_v20  ;;  %v845_v27 = vmul.f32 0.0078125, %v831_v21  ;;  %v3186_v36 = vmul.f32 0.0078125, %v666_v22  ;;  %v3227_v22 = vld [vmem:[%s3695_s4] ss:$0 sm:$0xff] }
  0xd1   : > { %2537 = vrsqrt.f32 %v876_v25  ;;  %v861_v29 = vsub.f32 %v845_v27, %v853_v24  ;;  %v720_v39 = vmul.f32 %v3186_v36, %v3186_v36 }
  0xd2   : > { %v668_v32 = vpop.xlane.xlu1 %667  ;;  %v801_v33 = vpop.xlane.xlu0 %800 }
  0xd3   : > { %v877_v34 = vadd.f32 1e-06, %v861_v29  ;;  %v3188_v37 = vmul.f32 0.0078125, %v668_v32  ;;  %v3192_v40 = vmul.f32 0.0078125, %v801_v33 }
  0xd5   : > { %2539 = vrsqrt.f32 %v877_v34  ;;  %v2534_v42 = vpop.eup %2533  ;;  %v721_v53 = vmul.f32 %v3188_v37, %v3188_v37  ;;  %v854_v59 = vmul.f32 %v3192_v40, %v3192_v40 }
  0xd6   : > { %v803_v38 = vpop.xlane.xlu1 %802  ;;  %v699_v9 = vpop.xlane.xlu0 %698  ;;  %v759_v2 = vmul.f32 %v2534_v42, %v735_v47 }
  0xd7   : > { %v712_v41 = vmul.f32 0.0078125, %v699_v9  ;;  %v2536_v44 = vpop.eup %2535  ;;  %v3199_v54 = vmul.f32 0.0078125, %v803_v38 }
  0xd8   : > { %v758_v28 = vmul.f32 %v2536_v44, %v734_v45  ;;  %v773_v20 = vmul.f32 %v3211_v61, %v759_v2 }
  0xd9   : > { %v728_v46 = vsub.f32 %v712_v41, %v720_v39  ;;  %v855_v6 = vmul.f32 %v3199_v54, %v3199_v54 }
  0xda   : > { %v701_v56 = vpop.xlane.xlu1 %700  ;;  %v833_v57 = vpop.xlane.xlu0 %832  ;;  %v772_v35 = vmul.f32 %v3211_v61, %v758_v28  ;;  %v787_v38 = vadd.f32 %v3227_v22, %v773_v20 }
  0xdb   : > { %v2538_v58 = vpop.eup %2537  ;;  %v744_v62 = vadd.f32 1e-06, %v728_v46  ;;  %v713_v63 = vmul.f32 0.0078125, %v701_v56  ;;  %v846_v0 = vmul.f32 0.0078125, %v833_v57  ;;  %v736_v57 = vsub.f32 %v2978_v11, %v3186_v36 }
  0xdc   : > { %v892_v60 = vmul.f32 %v2538_v58, %v868_v52  ;;  %v786_v34 = vadd.f32 %v3227_v22, %v772_v35 }
  0xdd   : > { %v729_v3 = vsub.f32 %v713_v63, %v721_v53  ;;  %v862_v4 = vsub.f32 %v846_v0, %v854_v59  ;;  %2541 = vrsqrt.f32 %v744_v62  ;;  %v737_v59 = vsub.f32 %v2983_v15, %v3188_v37 }
  0xde   : > { %v835_v7 = vpop.xlane.xlu1 %834  ;;  %v670_v8 = vpop.xlane.xlu0 %669  ;;  %v906_v12 = vmul.f32 %v3206_v1, %v892_v60  ;;  %v870_v62 = vsub.f32 %v3033_v48, %v3192_v40 }
  0xdf   : > { %v2540_v13 = vpop.eup %2539  ;;  %v745_v14 = vadd.f32 1e-06, %v729_v3  ;;  %v878_v16 = vadd.f32 1e-06, %v862_v4  ;;  %v847_v19 = vmul.f32 0.0078125, %v835_v7  ;;  %v3231_v33 = vmul.f32 0.0078125, %v670_v8 }
  0xe0   : > { %v893_v18 = vmul.f32 %v2540_v13, %v869_v5  ;;  %v920_v29 = vadd.f32 %v3219_v10, %v906_v12  ;;  %v871_v7 = vsub.f32 %v3035_v49, %v3199_v54 }
  0xe1   : > { %2543 = vrsqrt.f32 %v745_v14  ;;  %v863_v21 = vsub.f32 %v847_v19, %v855_v6  ;;  %v722_v46 = vmul.f32 %v3231_v33, %v3231_v33 }
  0xe2   : > { %2545 = vrsqrt.f32 %v878_v16  ;;  %v672_v24 = vpop.xlane.xlu1 %671  ;;  %v805_v25 = vpop.xlane.xlu0 %804  ;;  %v907_v27 = vmul.f32 %v3206_v1, %v893_v18  ;;  %v928_v44 = vadd.f32 %v920_v29, %v786_v34 }
  0xe3   : > { %v879_v32 = vadd.f32 1e-06, %v863_v21  ;;  %v3236_v39 = vmul.f32 0.0078125, %v672_v24  ;;  %v3240_v47 = vmul.f32 0.0078125, %v805_v25 }
  0xe4   : > { %v921_v9 = vadd.f32 %v3219_v10, %v907_v27 }
  0xe5   : > { %2547 = vrsqrt.f32 %v879_v32  ;;  %v723_v63 = vmul.f32 %v3236_v39, %v3236_v39  ;;  %v856_v11 = vmul.f32 %v3240_v47, %v3240_v47 }
  0xe6   : > { %v807_v41 = vpop.xlane.xlu1 %806  ;;  %v703_v42 = vpop.xlane.xlu0 %702  ;;  %v929_v45 = vadd.f32 %v921_v9, %v787_v38 }
  0xe7   : > { %v714_v52 = vmul.f32 0.0078125, %v703_v42  ;;  %v2542_v56 = vpop.eup %2541  ;;  %v3250_v0 = vmul.f32 0.0078125, %v807_v41 }
  0xe8   : > { %v936_v53 = vpack.c.bf16 %v929_v45, %v928_v44  ;;  %v760_v48 = vmul.f32 %v2542_v56, %v736_v57 }
  0xe9   : > { %v730_v58 = vsub.f32 %v714_v52, %v722_v46  ;;  %v857_v8 = vmul.f32 %v3250_v0, %v3250_v0 }
  0xea   : > { %v705_v2 = vpop.xlane.xlu1 %704  ;;  %1187 = vmatmul.mubr.bf16.vlgmr.msra.gmra.mrb[0].mxu0 %v936_v53  ;;  %1260 = vmatmul.mubr.bf16.vlgmr.msra.gmra.mrb[0].mxu1 %v936_v53  ;;  %v837_v28 = vpop.xlane.xlu0 %836  ;;  %v774_v35 = vmul.f32 %v3211_v61, %v760_v48 }
  0xeb   : > { %v2544_v60 = vpop.eup %2543  ;;  %v746_v36 = vadd.f32 1e-06, %v730_v58  ;;  %v715_v3 = vmul.f32 0.0078125, %v705_v2  ;;  %v848_v4 = vmul.f32 0.0078125, %v837_v28  ;;  %1196 = vmatprep.mubr.bf16.mxu0 %v2790_v55  ;;  %1269 = vmatprep.mubr.bf16.mxu1 %v2790_v55  ;;  %v739_v2 = vsub.f32 %v2995_v23, %v3236_v39 }
  0xec   : > { %v2546_v15 = vpop.eup %2545  ;;  %v761_v37 = vmul.f32 %v2544_v60, %v737_v59  ;;  %v788_v38 = vadd.f32 %v3227_v22, %v774_v35  ;;  %v872_v28 = vsub.f32 %v3037_v50, %v3240_v47 }
  0xed   : > { %v731_v40 = vsub.f32 %v715_v3, %v723_v63  ;;  %v864_v5 = vsub.f32 %v848_v4, %v856_v11  ;;  %v894_v6 = vmul.f32 %v2546_v15, %v870_v62  ;;  %2549 = vrsqrt.f32 %v746_v36 }
  0xee   : > { %v839_v12 = vpop.xlane.xlu1 %838  ;;  %v674_v13 = vpop.xlane.xlu0 %673  ;;  %v775_v18 = vmul.f32 %v3211_v61, %v761_v37  ;;  %v738_v62 = vsub.f32 %v2988_v17, %v3231_v33 }
  0xef   : > { %v2548_v14 = vpop.eup %2547  ;;  %v747_v16 = vadd.f32 1e-06, %v731_v40  ;;  %v880_v19 = vadd.f32 1e-06, %v864_v5  ;;  %v849_v20 = vmul.f32 0.0078125, %v839_v12  ;;  %v908_v24 = vmul.f32 %v3206_v1, %v894_v6 }
  0xf0   : > { %v895_v21 = vmul.f32 %v2548_v14, %v871_v7  ;;  %v3265_v34 = vmul.f32 0.0078125, %v674_v13  ;;  %v789_v9 = vadd.f32 %v3227_v22, %v775_v18  ;;  %v873_v5 = vsub.f32 %v3039_v51, %v3250_v0 }
  0xf1   : > { %2551 = vrsqrt.f32 %v747_v16  ;;  %v865_v25 = vsub.f32 %v849_v20, %v857_v8  ;;  %v922_v29 = vadd.f32 %v3219_v10, %v908_v24 }
  0xf2   : > { %2553 = vrsqrt.f32 %v880_v19  ;;  %v676_v49 = vpop.xlane.xlu1 %675  ;;  %v809_v54 = vpop.xlane.xlu0 %808  ;;  %v909_v27 = vmul.f32 %v3206_v1, %v895_v21  ;;  %v724_v53 = vmul.f32 %v3265_v34, %v3265_v34 }
  0xf3   : > { %v881_v32 = vadd.f32 1e-06, %v865_v25  ;;  %v3270_v42 = vmul.f32 0.0078125, %v676_v49  ;;  %v930_v46 = vadd.f32 %v922_v29, %v788_v38  ;;  %v3274_v56 = vmul.f32 0.0078125, %v809_v54 }
  0xf4   : > { %v923_v41 = vadd.f32 %v3219_v10, %v909_v27  ;;  %v740_v38 = vsub.f32 %v3001_v26, %v3265_v34 }
  0xf5   : > { %2555 = vrsqrt.f32 %v881_v32  ;;  %v725_v60 = vmul.f32 %v3270_v42, %v3270_v42  ;;  %v858_v15 = vmul.f32 %v3274_v56, %v3274_v56 }
  0xf6   : > { %v811_v44 = vpop.xlane.xlu1 %810  ;;  %v707_v45 = vpop.xlane.xlu0 %706  ;;  %v931_v52 = vadd.f32 %v923_v41, %v789_v9  ;;  %v741_v9 = vsub.f32 %v3009_v30, %v3270_v42 }
  0xf7   : > { %v716_v57 = vmul.f32 0.0078125, %v707_v45  ;;  %v2550_v59 = vpop.eup %2549  ;;  %v819_v11 = vmul.f32 0.0078125, %v811_v44  ;;  %v874_v44 = vsub.f32 %v3144_v31, %v3274_v56 }
  0xf8   : > { %v937_v58 = vpack.c.bf16 %v931_v52, %v930_v46  ;;  %v762_v50 = vmul.f32 %v2550_v59, %v738_v62 }
  0xf9   : > { %v732_v63 = vsub.f32 %v716_v57, %v724_v53  ;;  %v859_v6 = vmul.f32 %v819_v11, %v819_v11  ;;  %v875_v57 = vsub.f32 %v3161_v43, %v819_v11  ;;  %v2507_v11 = vld [vmem:[%s3700_s9 + $0x8] sm:$0xff]  }
  0xfa   : > { %v709_v36 = vpop.xlane.xlu1 %708  ;;  %1197 = vmatmul.mubr.bf16.gmra.mrb[4].mxu0 %v937_v58  ;;  %1270 = vmatmul.mubr.bf16.gmra.mrb[4].mxu1 %v937_v58  ;;  %v841_v3 = vpop.xlane.xlu0 %840  ;;  %v776_v19 = vmul.f32 %v3211_v61, %v762_v50  ;;  %v2516_v50 = vld [vmem:[%s3700_s9 + $0x98] sm:$0xff]  }
  0xfb   : > { %v2552_v4 = vpop.eup %2551  ;;  %v748_v17 = vadd.f32 1e-06, %v732_v63  ;;  %v717_v33 = vmul.f32 0.0078125, %v709_v36  ;;  %v850_v48 = vmul.f32 0.0078125, %v841_v3  ;;  %1206 = vmatprep.mubr.bf16.mxu0 %v2790_v55  ;;  %1279 = vmatprep.mubr.bf16.mxu1 %v2790_v55  ;;  %v2508_v36 = vld [vmem:[%s3700_s9 + $0x88] sm:$0xff]   ;;  %v2509_v3 = vld [vmem:[%s3700_s9 + $0x50] sm:$0xff]  }
  0xfc   : > { %v2554_v23 = vpop.eup %2553  ;;  %v763_v39 = vmul.f32 %v2552_v4, %v739_v2  ;;  %v790_v24 = vadd.f32 %v3227_v22, %v776_v19  ;;  %v2510_v4 = vld [vmem:[%s3700_s9 + $0xd0] sm:$0xff]   ;;  %v2529_v19 = vld [vmem:[%s3700_s9 + $0x78] sm:$0xff]  }
  0xfd   : > { %v733_v47 = vsub.f32 %v717_v33, %v725_v60  ;;  %v866_v37 = vsub.f32 %v850_v48, %v858_v15  ;;  %v896_v40 = vmul.f32 %v2554_v23, %v872_v28  ;;  %2557 = vrsqrt.f32 %v748_v17  ;;  %v2503_v28 = vld [vmem:[%s3700_s9] sm:$0xff]   ;;  %v2506_v60 = vld [vmem:[%s3700_s9 + $0xc8] sm:$0xff]   ;;  %v2511_v15 = vld [vmem:[%s3700_s9 + $0x10] sm:$0xff]  }
  0xfe   : > { %v843_v7 = vpop.xlane.xlu1 %842  ;;  %v777_v20 = vmul.f32 %v3211_v61, %v763_v39  ;;  %v2512_v17 = vld [vmem:[%s3700_s9 + $0x90] sm:$0xff]   ;;  %v2513_v33 = vld [vmem:[%s3700_s9 + $0x58] sm:$0xff]   ;;  %v2517_v39 = vld [vmem:[%s3700_s9 + $0x60] sm:$0xff]  }
  0xff   : > { %v2556_v8 = vpop.eup %2555  ;;  %v749_v12 = vadd.f32 1e-06, %v733_v47  ;;  %v882_v13 = vadd.f32 1e-06, %v866_v37  ;;  %v851_v14 = vmul.f32 0.0078125, %v843_v7  ;;  %v910_v16 = vmul.f32 %v3206_v1, %v896_v40  ;;  %v2514_v48 = vld [vmem:[%s3700_s9 + $0xd8] sm:$0xff]  }
 0x100   : > { %v897_v35 = vmul.f32 %v2556_v8, %v873_v5  ;;  %v791_v25 = vadd.f32 %v3227_v22, %v777_v20  ;;  %v2515_v23 = vld [vmem:[%s3700_s9 + $0x18] sm:$0xff]   ;;  %v2518_v47 = vld [vmem:[%s3700_s9 + $0xe0] sm:$0xff]   ;;  %v2521_v5 = vld [vmem:[%s3700_s9 + $0x68] sm:$0xff]  }
 0x101   : > { %2559 = vrsqrt.f32 %v749_v12  ;;  %v867_v18 = vsub.f32 %v851_v14, %v859_v6  ;;  %v924_v51 = vadd.f32 %v3219_v10, %v910_v16  ;;  %v2519_v37 = vld [vmem:[%s3700_s9 + $0x20] sm:$0xff]   ;;  %v2522_v6 = vld [vmem:[%s3700_s9 + $0xe8] sm:$0xff]   ;;  %v2525_v12 = vld [vmem:[%s3700_s9 + $0x70] sm:$0xff]  }
 0x102   : > { %2561 = vrsqrt.f32 %v882_v13  ;;  %v911_v21 = vmul.f32 %v3206_v1, %v897_v35  ;;  %v2520_v40 = vld [vmem:[%s3700_s9 + $0xa0] sm:$0xff]   ;;  %v2523_v7 = vld [vmem:[%s3700_s9 + $0x28] sm:$0xff]   ;;  %v2526_v13 = vld [vmem:[%s3700_s9 + $0xf0] sm:$0xff]  }
 0x103   : > { %v883_v0 = vadd.f32 1e-06, %v867_v18  ;;  %v932_v54 = vadd.f32 %v924_v51, %v790_v24  ;;  %v2524_v8 = vld [vmem:[%s3700_s9 + $0xa8] sm:$0xff]   ;;  %v2527_v14 = vld [vmem:[%s3700_s9 + $0x30] sm:$0xff]   ;;  %v2530_v20 = vld [vmem:[%s3700_s9 + $0xf8] sm:$0xff]  }
 0x104   : > { %v925_v49 = vadd.f32 %v3219_v10, %v911_v21  ;;  %v2528_v16 = vld [vmem:[%s3700_s9 + $0xb0] sm:$0xff]   ;;  %v2531_v35 = vld [vmem:[%s3700_s9 + $0x38] sm:$0xff]   ;;  %v974_v21 = vlaneseq }
 0x105   : > { %2563 = vrsqrt.f32 %v883_v0  ;;  %v2532_v18 = vld [vmem:[%s3700_s9 + $0xb8] sm:$0xff]  }
 0x106   : > { %v933_v27 = vadd.f32 %v925_v49, %v791_v25  ;;  %v975_v51 = vshrl.u32 %v974_v21, 7  ;;  %v972_v25 = vld [vmem:[%s3699_s8] sm:$0xf] }
 0x107   : > { %v2558_v29 = vpop.eup %2557 }
 0x108   : > { %v938_v32 = vpack.c.bf16 %v933_v27, %v932_v54  ;;  %v764_v46 = vmul.f32 %v2558_v29, %v740_v38  ;;  %v976_v0 = vsub.s32 0, %v975_v51  ;;  %v984_v24 = vsub.s32 2, %v975_v51 }
 0x109   : > { %v980_v49 = vsub.s32 1, %v975_v51  ;;  %v988_v54 = vsub.s32 3, %v975_v51 }
 0x10a   : > { %1207 = vmatmul.mubr.bf16.gmra.mrb[8].mxu0 %v938_v32  ;;  %1280 = vmatmul.mubr.bf16.gmra.mrb[8].mxu1 %v938_v32  ;;  %v778_v30 = vmul.f32 %v3211_v61, %v764_v46  ;;  %v3414_v27 = vrot.slane %v972_v25, %v976_v0  ;;  %v3416_v29 = vrot.slane %v972_v25, %v984_v24 }
 0x10b   : > { %v2560_v41 = vpop.eup %2559  ;;  %1216 = vmatprep.mubr.bf16.mxu0 %v2790_v55  ;;  %1289 = vmatprep.mubr.bf16.mxu1 %v2790_v55  ;;  %v3418_v32 = vrot.slane %v972_v25, %v980_v49  ;;  %v3420_v38 = vrot.slane %v972_v25, %v988_v54 }
 0x10c   : > { %v2562_v45 = vpop.eup %2561  ;;  %v765_v52 = vmul.f32 %v2560_v41, %v741_v9  ;;  %v792_v55 = vadd.f32 %v3227_v22, %v778_v30 }
 0x10d   : > { %v898_v53 = vmul.f32 %v2562_v45, %v874_v44 }
 0x10e   : > { %v779_v42 = vmul.f32 %v3211_v61, %v765_v52  ;;  %v2501_v61 = vld [vmem:[%s3700_s9 + $0x40] sm:$0xff]  }
 0x10f   : > { %v2564_v26 = vpop.eup %2563  ;;  %v912_v34 = vmul.f32 %v3206_v1, %v898_v53  ;;  %2298 = vmatprep.subr.bf16.mxu0 %v2501_v61 }
 0x110   : > { %v899_v58 = vmul.f32 %v2564_v26, %v875_v57  ;;  %v793_v59 = vadd.f32 %v3227_v22, %v779_v42  ;;  %2299 = vmatpush3.bf16.msra.mxu0 %v2503_v28  ;;  %v2505_v22 = vld [vmem:[%s3700_s9 + $0x48] sm:$0xff]  }
 0x111   : > { %v926_v56 = vadd.f32 %v3219_v10, %v912_v34  ;;  %2300 = vmatprep.subr.bf16.mxu0 %v2505_v22 }
 0x112   : > { %v913_v31 = vmul.f32 %v3206_v1, %v899_v58  ;;  %v2502_v1 = vld [vmem:[%s3700_s9 + $0xc0] sm:$0xff]  }
 0x113   : > { %v934_v63 = vadd.f32 %v926_v56, %v792_v55  ;;  %2338 = vmatprep.subr.bf16.mxu1 %v2502_v1 }
 0x114   : > { %v927_v62 = vadd.f32 %v3219_v10, %v913_v31  ;;  %v2504_v10 = vld [vmem:[%s3700_s9 + $0x80] sm:$0xff]   ;;  %2301 = vmatpush3.bf16.msra.mxu0 %v2507_v11 }
 0x115   : > { %2339 = vmatpush3.bf16.msra.mxu1 %v2504_v10  ;;  %2302 = vmatprep.subr.bf16.mxu0 %v2509_v3 }
 0x116   : > { %v935_v43 = vadd.f32 %v927_v62, %v793_v59  ;;  %2340 = vmatprep.subr.bf16.mxu1 %v2506_v60 }
 0x118   : > { %v939_v2 = vpack.c.bf16 %v935_v43, %v934_v63  ;;  %2303 = vmatpush3.bf16.msra.mxu0 %v2511_v15 }
 0x119   : > { %2341 = vmatpush3.bf16.msra.mxu1 %v2508_v36  ;;  %2304 = vmatprep.subr.bf16.mxu0 %v2513_v33 }
 0x11a   : > { %1217 = vmatmul.mubr.bf16.gmra.mrb[12].mxu0 %v939_v2  ;;  %1290 = vmatmul.mubr.bf16.gmra.mrb[12].mxu1 %v939_v2 }
 0x11b   : > { %2342 = vmatprep.subr.bf16.mxu1 %v2510_v4 }
 0x11c   : > { %2305 = vmatpush3.bf16.msra.mxu0 %v2515_v23 }
 0x11d   : > { %2343 = vmatpush3.bf16.msra.mxu1 %v2512_v17  ;;  %2306 = vmatprep.subr.bf16.mxu0 %v2517_v39 }
 0x11e   : > { %2344 = vmatprep.subr.bf16.mxu1 %v2514_v48 }
 0x120   : > { %2307 = vmatpush3.bf16.msra.mxu0 %v2519_v37 }
 0x121   : > { %2345 = vmatpush3.bf16.msra.mxu1 %v2516_v50  ;;  %2308 = vmatprep.subr.bf16.mxu0 %v2521_v5 }
 0x122   : > { %2346 = vmatprep.subr.bf16.mxu1 %v2518_v47 }
 0x124   : > { %2309 = vmatpush3.bf16.msra.mxu0 %v2523_v7 }
 0x125   : > { %2347 = vmatpush3.bf16.msra.mxu1 %v2520_v40  ;;  %2310 = vmatprep.subr.bf16.mxu0 %v2525_v12 }
 0x126   : > { %2348 = vmatprep.subr.bf16.mxu1 %v2522_v6 }
 0x128   : > { %2311 = vmatpush3.bf16.msra.mxu0 %v2527_v14 }
 0x129   : > { %2349 = vmatpush3.bf16.msra.mxu1 %v2524_v8  ;;  %2312 = vmatprep.subr.bf16.mxu0 %v2529_v19 }
 0x12a   : > { %2350 = vmatprep.subr.bf16.mxu1 %v2526_v13 }
 0x12c   : > { %2313 = vmatpush3.bf16.msra.mxu0 %v2531_v35 }
 0x12d   : > { %2351 = vmatpush3.bf16.msra.mxu1 %v2528_v16 }
 0x12e   : > { %2352 = vmatprep.subr.bf16.mxu1 %v2530_v20 }
 0x131   : > { %2353 = vmatpush3.bf16.msra.mxu1 %v2532_v18 }
 0x1bd   : > { %v1188_v9 = vpop.f32.mrb[0].mxu0  ;;  %v1261_v41 = vpop.f32.mrb[0].mxu1 }
 0x1be   : > { %v3423_v44 = vadd.f32 %v1188_v9, %v3414_v27  ;;  %v3426_v45 = vadd.f32 %v1261_v41, %v3416_v29  ;;  %v1190_v46 = vpop.f32.mrb[1].mxu0  ;;  %v1263_v52 = vpop.f32.mrb[1].mxu1 }
 0x1bf   : > { %v3429_v53 = vadd.f32 %v1190_v46, %v3418_v32  ;;  %v3432_v57 = vadd.f32 %v1263_v52, %v3420_v38  ;;  %v1192_v26 = vpop.f32.mrb[2].mxu0  ;;  %v1265_v34 = vpop.f32.mrb[2].mxu1 }
 0x1c0   : > { %v2226_v30 = vmul.f32 -1.702, %v3423_v44  ;;  %v2228_v42 = vmul.f32 -1.702, %v3426_v45  ;;  %v3437_v58 = vadd.f32 %v1192_v26, %v3414_v27  ;;  %v3440_v31 = vadd.f32 %v1265_v34, %v3416_v29  ;;  %v1194_v56 = vpop.f32.mrb[3].mxu0  ;;  %v1267_v55 = vpop.f32.mrb[3].mxu1 }
 0x1c1   : > { %v2227_v59 = vmul.f32 -1.702, %v3429_v53  ;;  %v2229_v62 = vmul.f32 -1.702, %v3432_v57  ;;  %v3445_v63 = vadd.f32 %v1194_v56, %v3418_v32  ;;  %v3448_v43 = vadd.f32 %v1267_v55, %v3420_v38 }
 0x1c2   : > { %v1364_v2 = vmul.f32 1.442695, %v2226_v30  ;;  %v1368_v61 = vmul.f32 1.442695, %v2228_v42  ;;  %v2230_v1 = vmul.f32 -1.702, %v3437_v58 }
 0x1c3   : > { %v1366_v28 = vmul.f32 1.442695, %v2227_v59  ;;  %v1370_v10 = vmul.f32 1.442695, %v2229_v62  ;;  %v2232_v22 = vmul.f32 -1.702, %v3440_v31 }
 0x1c4   : > { %2565 = vpow2.f32 %v1364_v2  ;;  %v1372_v60 = vmul.f32 1.442695, %v2230_v1  ;;  %v2231_v11 = vmul.f32 -1.702, %v3445_v63  ;;  %v2233_v36 = vmul.f32 -1.702, %v3448_v43 }
 0x1c5   : > { %2567 = vpow2.f32 %v1368_v61  ;;  %v1376_v3 = vmul.f32 1.442695, %v2232_v22 }
 0x1c6   : > { %2569 = vpow2.f32 %v1366_v28  ;;  %v1374_v4 = vmul.f32 1.442695, %v2231_v11  ;;  %v1378_v15 = vmul.f32 1.442695, %v2233_v36 }
 0x1c7   : > { %2571 = vpow2.f32 %v1370_v10 }
 0x1c8   : > { %2573 = vpow2.f32 %v1372_v60 }
 0x1c9   : > { %2575 = vpow2.f32 %v1376_v3 }
 0x1ca   : > { %2577 = vpow2.f32 %v1374_v4 }
 0x1cb   : > { %2579 = vpow2.f32 %v1378_v15 }
 0x1cd   : > { %v1198_v17 = vpop.f32.mrb[4].mxu0  ;;  %v1271_v33 = vpop.f32.mrb[4].mxu1 }
 0x1ce   : > { %v2566_v48 = vpop.eup %2565  ;;  %v3455_v23 = vadd.f32 %v1198_v17, %v3414_v27  ;;  %v3458_v50 = vadd.f32 %v1271_v33, %v3416_v29  ;;  %v1200_v39 = vpop.f32.mrb[5].mxu0 }
 0x1cf   : > { %v1273_v47 = vpop.f32.mrb[5].mxu1  ;;  %v2568_v37 = vpop.eup %2567  ;;  %v1428_v40 = vadd.f32 1.0, %v2566_v48  ;;  %v3461_v5 = vadd.f32 %v1200_v39, %v3418_v32 }
 0x1d0   : > { %v3464_v6 = vadd.f32 %v1273_v47, %v3420_v38  ;;  %v1202_v7 = vpop.f32.mrb[6].mxu0  ;;  %v1275_v8 = vpop.f32.mrb[6].mxu1  ;;  %v1430_v13 = vadd.f32 1.0, %v2568_v37  ;;  %v2234_v14 = vmul.f32 -1.702, %v3455_v23 }
 0x1d1   : > { %v2570_v12 = vpop.eup %2569  ;;  %v3468_v16 = vadd.f32 %v1202_v7, %v3414_v27  ;;  %v1204_v19 = vpop.f32.mrb[7].mxu0  ;;  %2581 = vrcp.f32 %v1428_v40  ;;  %v2236_v0 = vmul.f32 -1.702, %v3458_v50  ;;  %v2235_v24 = vmul.f32 -1.702, %v3461_v5 }
 0x1d2   : > { %v2572_v20 = vpop.eup %2571  ;;  %v1429_v35 = vadd.f32 1.0, %v2570_v12  ;;  %v1277_v18 = vpop.f32.mrb[7].mxu1  ;;  %2583 = vrcp.f32 %v1430_v13  ;;  %v1380_v54 = vmul.f32 1.442695, %v2234_v14  ;;  %v2237_v9 = vmul.f32 -1.702, %v3464_v6 }
 0x1d3   : > { %v2574_v21 = vpop.eup %2573  ;;  %v1431_v51 = vadd.f32 1.0, %v2572_v20  ;;  %v2238_v52 = vmul.f32 -1.702, %v3468_v16  ;;  %v3475_v26 = vadd.f32 %v1275_v8, %v3416_v29  ;;  %v3478_v42 = vadd.f32 %v1204_v19, %v3418_v32 }
 0x1d4   : > { %v2576_v25 = vpop.eup %2575  ;;  %2585 = vrcp.f32 %v1429_v35  ;;  %v1432_v49 = vadd.f32 1.0, %v2574_v21  ;;  %v3481_v56 = vadd.f32 %v1277_v18, %v3420_v38  ;;  %v1384_v59 = vmul.f32 1.442695, %v2236_v0 }
 0x1d5   : > { %v2578_v41 = vpop.eup %2577  ;;  %2587 = vrcp.f32 %v1431_v51  ;;  %v1434_v46 = vadd.f32 1.0, %v2576_v25  ;;  %v2240_v62 = vmul.f32 -1.702, %v3475_v26  ;;  %v1382_v2 = vmul.f32 1.442695, %v2235_v24 }
 0x1d6   : > { %v2580_v34 = vpop.eup %2579  ;;  %2589 = vrcp.f32 %v1432_v49  ;;  %v1433_v30 = vadd.f32 1.0, %v2578_v41  ;;  %v2239_v61 = vmul.f32 -1.702, %v3478_v42  ;;  %v1386_v1 = vmul.f32 1.442695, %v2237_v9 }
 0x1d7   : > { %2591 = vrcp.f32 %v1434_v46  ;;  %v1435_v55 = vadd.f32 1.0, %v2580_v34  ;;  %v2241_v28 = vmul.f32 -1.702, %v3481_v56  ;;  %v1388_v10 = vmul.f32 1.442695, %v2238_v52 }
 0x1d8   : > { %2593 = vrcp.f32 %v1433_v30  ;;  %v1392_v22 = vmul.f32 1.442695, %v2240_v62  ;;  %v1390_v11 = vmul.f32 1.442695, %v2239_v61 }
 0x1d9   : > { %2595 = vrcp.f32 %v1435_v55  ;;  %v1394_v3 = vmul.f32 1.442695, %v2241_v28 }
 0x1da   : > { %2597 = vpow2.f32 %v1380_v54 }
 0x1db   : > { %2599 = vpow2.f32 %v1384_v59  ;;  %v2582_v60 = vpop.eup %2581 }
 0x1dc   : > { %2601 = vpow2.f32 %v1382_v2  ;;  %v2584_v36 = vpop.eup %2583  ;;  %v3493_v7 = vmul.f32 %v2582_v60, %v3423_v44 }
 0x1dd   : > { %2603 = vpow2.f32 %v1386_v1  ;;  %v1208_v15 = vpop.f32.mrb[8].mxu0  ;;  %v1281_v17 = vpop.f32.mrb[8].mxu1  ;;  %v1526_v44 = vmul.f32 %v2584_v36, %v3426_v45 }
 0x1de   : > { %v2586_v4 = vpop.eup %2585  ;;  %2605 = vpow2.f32 %v1388_v10  ;;  %v3487_v48 = vadd.f32 %v1208_v15, %v3414_v27  ;;  %v3490_v39 = vadd.f32 %v1281_v17, %v3416_v29  ;;  %v1210_v47 = vpop.f32.mrb[9].mxu0 }
 0x1df   : > { %v2588_v33 = vpop.eup %2587  ;;  %2607 = vpow2.f32 %v1392_v22  ;;  %v1283_v37 = vpop.f32.mrb[9].mxu1  ;;  %v3496_v8 = vadd.f32 %v1210_v47, %v3418_v32  ;;  %v1525_v25 = vmul.f32 %v2586_v4, %v3429_v53 }
 0x1e0   : > { %v2590_v40 = vpop.eup %2589  ;;  %2609 = vpow2.f32 %v1390_v11  ;;  %v1212_v12 = vpop.f32.mrb[10].mxu0  ;;  %v2242_v20 = vmul.f32 -1.702, %v3487_v48  ;;  %v2244_v35 = vmul.f32 -1.702, %v3490_v39  ;;  %v1527_v41 = vmul.f32 %v2588_v33, %v3432_v57 }
 0x1e1   : > { %v1285_v13 = vpop.f32.mrb[10].mxu1  ;;  %v2592_v14 = vpop.eup %2591  ;;  %v1528_v19 = vmul.f32 %v2590_v40, %v3437_v58  ;;  %2611 = vpow2.f32 %v1394_v3  ;;  %v2243_v52 = vmul.f32 -1.702, %v3496_v8  ;;  %v3508_v34 = vadd.f32 %v1283_v37, %v3420_v38 }
 0x1e2   : > { %v1214_v18 = vpop.f32.mrb[11].mxu0  ;;  %v1287_v21 = vpop.f32.mrb[11].mxu1  ;;  %v1530_v0 = vmul.f32 %v2592_v14, %v3440_v31  ;;  %v1396_v54 = vmul.f32 1.442695, %v2242_v20  ;;  %v1400_v9 = vmul.f32 1.442695, %v2244_v35  ;;  %v3512_v53 = vadd.f32 %v1212_v12, %v3414_v27 }
 0x1e3   : > { %v2594_v51 = vpop.eup %2593  ;;  %v1556_v49 = vpack.c.bf16 %v1528_v19, %v3493_v7  ;;  %v3515_v62 = vadd.f32 %v1285_v13, %v3416_v29  ;;  %v3518_v57 = vadd.f32 %v1214_v18, %v3418_v32  ;;  %v1398_v22 = vmul.f32 1.442695, %v2243_v52 }
 0x1e4   : > { %v2596_v24 = vpop.eup %2595  ;;  %v1558_v46 = vpack.c.bf16 %v1530_v0, %v1526_v44  ;;  %v1529_v45 = vmul.f32 %v2594_v51, %v3445_v63  ;;  %2613 = vpow2.f32 %v1396_v54  ;;  %v3522_v63 = vadd.f32 %v1287_v21, %v3420_v38 }
 0x1e5   : > { %v2598_v58 = vpop.eup %2597  ;;  %2615 = vpow2.f32 %v1400_v9  ;;  %v1531_v61 = vmul.f32 %v2596_v24, %v3448_v43  ;;  %v2245_v60 = vmul.f32 -1.702, %v3508_v34  ;;  %v2246_v3 = vmul.f32 -1.702, %v3512_v53 }
 0x1e6   : > { %v2600_v30 = vpop.eup %2599  ;;  %v1436_v31 = vadd.f32 1.0, %v2598_v58  ;;  %v1557_v4 = vpack.c.bf16 %v1529_v45, %v1525_v25  ;;  %v2248_v17 = vmul.f32 -1.702, %v3515_v62  ;;  %v2247_v33 = vmul.f32 -1.702, %v3518_v57 }
 0x1e7   : > { %v2602_v55 = vpop.eup %2601  ;;  %v1438_v59 = vadd.f32 1.0, %v2600_v30  ;;  %v2249_v40 = vmul.f32 -1.702, %v3522_v63  ;;  %v1559_v7 = vpack.c.bf16 %v1531_v61, %v1527_v41  ;;  %v1402_v13 = vmul.f32 1.442695, %v2245_v60 }
 0x1e8   : > { %v2604_v2 = vpop.eup %2603  ;;  %2617 = vrcp.f32 %v1436_v31  ;;  %v1437_v1 = vadd.f32 1.0, %v2602_v55  ;;  %1867 = vmatprep.mubr.bf16.mxu0 %v1557_v4  ;;  %v1404_v14 = vmul.f32 1.442695, %v2246_v3  ;;  %v1408_v19 = vmul.f32 1.442695, %v2248_v17 }
 0x1e9   : > { %v2606_v28 = vpop.eup %2605  ;;  %2619 = vrcp.f32 %v1438_v59  ;;  %v1439_v10 = vadd.f32 1.0, %v2604_v2  ;;  %1868 = vmatmul.mubr.bf16.vlgmr.msra.gmra.mrb[16].mxu0 %v1556_v49  ;;  %1932 = vmatprep.mubr.bf16.mxu1 %v1559_v7  ;;  %v1406_v20 = vmul.f32 1.442695, %v2247_v33  ;;  %v1410_v51 = vmul.f32 1.442695, %v2249_v40 }
 0x1ea   : > { %v2608_v11 = vpop.eup %2607  ;;  %2621 = vrcp.f32 %v1437_v1  ;;  %v1440_v36 = vadd.f32 1.0, %v2606_v28  ;;  %1933 = vmatmul.mubr.bf16.vlgmr.msra.gmra.mrb[16].mxu1 %v1558_v46 }
 0x1eb   : > { %v2610_v15 = vpop.eup %2609  ;;  %2623 = vrcp.f32 %v1439_v10  ;;  %v1442_v43 = vadd.f32 1.0, %v2608_v11 }
 0x1ec   : > { %v2612_v47 = vpop.eup %2611  ;;  %2625 = vrcp.f32 %v1440_v36  ;;  %v1441_v37 = vadd.f32 1.0, %v2610_v15 }
 0x1ed   : > { %2627 = vrcp.f32 %v1442_v43  ;;  %v1443_v12 = vadd.f32 1.0, %v2612_v47  ;;  %v1218_v35 = vpop.f32.mrb[12].mxu0  ;;  %v1291_v18 = vpop.f32.mrb[12].mxu1 }
 0x1ee   : > { %2629 = vrcp.f32 %v1441_v37  ;;  %v2614_v21 = vpop.eup %2613  ;;  %v3530_v44 = vadd.f32 %v1218_v35, %v3414_v27  ;;  %v3533_v0 = vadd.f32 %v1291_v18, %v3416_v29  ;;  %v1220_v24 = vpop.f32.mrb[13].mxu0 }
 0x1ef   : > { %2631 = vrcp.f32 %v1443_v12  ;;  %v1293_v25 = vpop.f32.mrb[13].mxu1  ;;  %v2616_v49 = vpop.eup %2615  ;;  %v1444_v54 = vadd.f32 1.0, %v2614_v21  ;;  %v3536_v9 = vadd.f32 %v1220_v24, %v3418_v32 }
 0x1f0   : > { %2633 = vpow2.f32 %v1398_v22  ;;  %v3539_v58 = vadd.f32 %v1293_v25, %v3420_v38  ;;  %v1222_v41 = vpop.f32.mrb[14].mxu0  ;;  %v1295_v46 = vpop.f32.mrb[14].mxu1  ;;  %v1446_v30 = vadd.f32 1.0, %v2616_v49  ;;  %v2250_v45 = vmul.f32 -1.702, %v3530_v44 }
 0x1f1   : > { %2635 = vpow2.f32 %v1402_v13  ;;  %v2252_v31 = vmul.f32 -1.702, %v3533_v0  ;;  %v1224_v55 = vpop.f32.mrb[15].mxu0  ;;  %v2251_v2 = vmul.f32 -1.702, %v3536_v9  ;;  %v1297_v1 = vpop.f32.mrb[15].mxu1  ;;  %v3548_v15 = vadd.f32 %v1222_v41, %v3414_v27 }
 0x1f2   : > { %v2618_v52 = vpop.eup %2617  ;;  %2637 = vpow2.f32 %v1404_v14  ;;  %v2253_v61 = vmul.f32 -1.702, %v3539_v58  ;;  %v1412_v10 = vmul.f32 1.442695, %v2250_v45  ;;  %v3551_v43 = vadd.f32 %v1295_v46, %v3416_v29 }
 0x1f3   : > { %v2620_v59 = vpop.eup %2619  ;;  %2639 = vrcp.f32 %v1444_v54  ;;  %v1532_v60 = vmul.f32 %v2618_v52, %v3455_v23  ;;  %v1416_v36 = vmul.f32 1.442695, %v2252_v31  ;;  %v1414_v4 = vmul.f32 1.442695, %v2251_v2 }
 0x1f4   : > { %v2622_v28 = vpop.eup %2621  ;;  %2641 = vrcp.f32 %v1446_v30  ;;  %v1534_v11 = vmul.f32 %v2620_v59, %v3458_v50  ;;  %v1418_v47 = vmul.f32 1.442695, %v2253_v61  ;;  %v3555_v23 = vadd.f32 %v1224_v55, %v3418_v32 }
 0x1f5   : > { %v2624_v22 = vpop.eup %2623  ;;  %2643 = vpow2.f32 %v1408_v19  ;;  %v1533_v33 = vmul.f32 %v2622_v28, %v3461_v5  ;;  %v2254_v40 = vmul.f32 -1.702, %v3548_v15  ;;  %v2256_v27 = vmul.f32 -1.702, %v3551_v43 }
 0x1f6   : > { %v2626_v3 = vpop.eup %2625  ;;  %2645 = vpow2.f32 %v1406_v20  ;;  %v2255_v5 = vmul.f32 -1.702, %v3555_v23  ;;  %v1535_v32 = vmul.f32 %v2624_v22, %v3464_v6 }
 0x1f7   : > { %v2628_v17 = vpop.eup %2627  ;;  %2647 = vpow2.f32 %v1410_v51  ;;  %v1536_v37 = vmul.f32 %v2626_v3, %v3468_v16  ;;  %v1420_v16 = vmul.f32 1.442695, %v2254_v40  ;;  %v1424_v35 = vmul.f32 1.442695, %v2256_v27 }
 0x1f8   : > { %v2630_v50 = vpop.eup %2629  ;;  %2649 = vpow2.f32 %v1412_v10  ;;  %v1538_v29 = vmul.f32 %v2628_v17, %v3475_v26  ;;  %v1422_v18 = vmul.f32 1.442695, %v2255_v5 }
 0x1f9   : > { %v2632_v7 = vpop.eup %2631  ;;  %v1537_v12 = vmul.f32 %v2630_v50, %v3478_v42  ;;  %2651 = vpow2.f32 %v1416_v36  ;;  %v1560_v49 = vpack.c.bf16 %v1536_v37, %v1532_v60 }
 0x1fa   : > { %v2634_v13 = vpop.eup %2633  ;;  %v1539_v14 = vmul.f32 %v2632_v7, %v3481_v56  ;;  %2653 = vpow2.f32 %v1414_v4  ;;  %v1562_v54 = vpack.c.bf16 %v1538_v29, %v1534_v11  ;;  %v3566_v56 = vadd.f32 %v1297_v1, %v3420_v38 }
 0x1fb   : > { %v2636_v19 = vpop.eup %2635  ;;  %v1445_v20 = vadd.f32 1.0, %v2634_v13  ;;  %2655 = vpow2.f32 %v1418_v47  ;;  %v1561_v26 = vpack.c.bf16 %v1537_v12, %v1533_v33 }
 0x1fc   : > { %v2638_v21 = vpop.eup %2637  ;;  %v1447_v51 = vadd.f32 1.0, %v2636_v19  ;;  %2657 = vpow2.f32 %v1420_v16  ;;  %v1563_v42 = vpack.c.bf16 %v1539_v14, %v1535_v32  ;;  %v2257_v59 = vmul.f32 -1.702, %v3566_v56 }
 0x1fd   : > { %v2640_v24 = vpop.eup %2639  ;;  %2659 = vrcp.f32 %v1445_v20  ;;  %v1448_v25 = vadd.f32 1.0, %v2638_v21  ;;  %1875 = vmatprep.mubr.bf16.mxu0 %v1561_v26 }
 0x1fe   : > { %v2642_v6 = vpop.eup %2641  ;;  %2661 = vrcp.f32 %v1447_v51  ;;  %1940 = vmatprep.mubr.bf16.mxu1 %v1563_v42  ;;  %1876 = vmatmul.mubr.bf16.gmra.mrb[20].mxu0 %v1560_v49  ;;  %v1426_v10 = vmul.f32 1.442695, %v2257_v59  ;;  %v1540_v33 = vmul.f32 %v2640_v24, %v3487_v48 }
 0x1ff   : > { %v2644_v41 = vpop.eup %2643  ;;  %2663 = vrcp.f32 %v1448_v25  ;;  %1941 = vmatmul.mubr.bf16.gmra.mrb[20].mxu1 %v1562_v54  ;;  %v1542_v12 = vmul.f32 %v2642_v6, %v3490_v39 }
 0x200   : > { %v2646_v46 = vpop.eup %2645  ;;  %v1450_v52 = vadd.f32 1.0, %v2644_v41  ;;  %2665 = vpow2.f32 %v1424_v35 }
 0x201   : > { %v2648_v30 = vpop.eup %2647  ;;  %v1449_v45 = vadd.f32 1.0, %v2646_v46  ;;  %2667 = vpow2.f32 %v1422_v18 }
 0x202   : > { %v2650_v31 = vpop.eup %2649  ;;  %2669 = vrcp.f32 %v1450_v52  ;;  %v1451_v55 = vadd.f32 1.0, %v2648_v30 }
 0x203   : > { %v2652_v2 = vpop.eup %2651  ;;  %2671 = vrcp.f32 %v1449_v45  ;;  %v1452_v38 = vadd.f32 1.0, %v2650_v31 }
 0x204   : > { %v2654_v61 = vpop.eup %2653  ;;  %2673 = vrcp.f32 %v1451_v55  ;;  %v1454_v60 = vadd.f32 1.0, %v2652_v2 }
 0x205   : > { %v2656_v1 = vpop.eup %2655  ;;  %2675 = vrcp.f32 %v1452_v38  ;;  %v1453_v3 = vadd.f32 1.0, %v2654_v61  ;;  %v3594_v61 = vld [vmem:[%s3702_s11] ss:$0 sm:$0xff] }
 0x206   : > { %v2658_v28 = vpop.eup %2657  ;;  %v1455_v35 = vadd.f32 1.0, %v2656_v1 }
 0x207   : > { %v2660_v22 = vpop.eup %2659  ;;  %v1456_v11 = vadd.f32 1.0, %v2658_v28 }
 0x208   : > { %v2662_v36 = vpop.eup %2661  ;;  %v1541_v32 = vmul.f32 %v2660_v22, %v3496_v8 }
 0x209   : > { %v2664_v4 = vpop.eup %2663  ;;  %2677 = vrcp.f32 %v1456_v11 }
 0x20a   : > { %v2666_v17 = vpop.eup %2665  ;;  %v1544_v47 = vmul.f32 %v2664_v4, %v3512_v53  ;;  %2679 = vpow2.f32 %v1426_v10  ;;  %v1543_v53 = vmul.f32 %v2662_v36, %v3508_v34 }
 0x20b   : > { %v2668_v50 = vpop.eup %2667  ;;  %2681 = vrcp.f32 %v1454_v60  ;;  %v1458_v37 = vadd.f32 1.0, %v2666_v17  ;;  %v1965_v60 = vld [vmem:[%s2948_s12] sm:$0xff] }
 0x20c   : > { %v2670_v40 = vpop.eup %2669  ;;  %2683 = vrcp.f32 %v1453_v3  ;;  %v1457_v27 = vadd.f32 1.0, %v2668_v50  ;;  %v1564_v7 = vpack.c.bf16 %v1544_v47, %v1540_v33  ;;  %v1966_v3 = vld [vmem:[%s2948_s12 + $0x8] sm:$0xff] }
 0x20d   : > { %v2672_v29 = vpop.eup %2671  ;;  %v1546_v5 = vmul.f32 %v2670_v40, %v3515_v62  ;;  %2685 = vrcp.f32 %v1458_v37 }
 0x20e   : > { %v2674_v13 = vpop.eup %2673  ;;  %v1545_v48 = vmul.f32 %v2672_v29, %v3518_v57  ;;  %2687 = vrcp.f32 %v1457_v27 }
 0x20f   : > { %v1547_v14 = vmul.f32 %v2674_v13, %v3522_v63  ;;  %v1566_v16 = vpack.c.bf16 %v1546_v5, %v1542_v12  ;;  %v2676_v20 = vpop.eup %2675  ;;  %2689 = vrcp.f32 %v1455_v35 }
 0x210   : > { %v1565_v19 = vpack.c.bf16 %v1545_v48, %v1541_v32  ;;  %v1548_v21 = vmul.f32 %v2676_v20, %v3530_v44 }
 0x211   : > { %v1567_v18 = vpack.c.bf16 %v1547_v14, %v1543_v53 }
 0x212   : > { %1883 = vmatprep.mubr.bf16.mxu0 %v1565_v19  ;;  %v1967_v19 = vld [vmem:[%s2948_s12 + $0x10] sm:$0xff] }
 0x213   : > { %v2678_v39 = vpop.eup %2677  ;;  %1948 = vmatprep.mubr.bf16.mxu1 %v1567_v18  ;;  %1884 = vmatmul.mubr.bf16.gmra.mrb[24].mxu0 %v1564_v7  ;;  %v1968_v18 = vld [vmem:[%s2948_s12 + $0x18] sm:$0xff] }
 0x214   : > { %v2680_v62 = vpop.eup %2679  ;;  %v1552_v8 = vmul.f32 %v2678_v39, %v3548_v15  ;;  %1949 = vmatmul.mubr.bf16.gmra.mrb[24].mxu1 %v1566_v16 }
 0x215   : > { %v2682_v57 = vpop.eup %2681  ;;  %v1459_v34 = vadd.f32 1.0, %v2680_v62 }
 0x216   : > { %v2684_v51 = vpop.eup %2683  ;;  %v1568_v63 = vpack.c.bf16 %v1552_v8, %v1548_v21  ;;  %v1550_v24 = vmul.f32 %v2682_v57, %v3533_v0 }
 0x217   : > { %v2686_v26 = vpop.eup %2685  ;;  %2691 = vrcp.f32 %v1459_v34  ;;  %v1549_v49 = vmul.f32 %v2684_v51, %v3536_v9  ;;  %v3588_v9 = vld [vmem:[%s3701_s10] ss:$0 sm:$0xff] }
 0x218   : > { %v2688_v42 = vpop.eup %2687  ;;  %v1554_v25 = vmul.f32 %v2686_v26, %v3551_v43 }
 0x219   : > { %v1553_v54 = vmul.f32 %v2688_v42, %v3555_v23  ;;  %v2690_v15 = vpop.eup %2689 }
 0x21a   : > { %v1570_v44 = vpack.c.bf16 %v1554_v25, %v1550_v24  ;;  %v1551_v46 = vmul.f32 %v2690_v15, %v3539_v58 }
 0x21b   : > { %v1569_v6 = vpack.c.bf16 %v1553_v54, %v1549_v49 }
 0x21d   : > { %1891 = vmatprep.mubr.bf16.mxu0 %v1569_v6 }
 0x21e   : > { %1892 = vmatmul.mubr.bf16.gmra.mrb[28].mxu0 %v1568_v63 }
 0x221   : > { %v2692_v41 = vpop.eup %2691 }
 0x222   : > { %v1555_v52 = vmul.f32 %v2692_v41, %v3566_v56 }
 0x224   : > { %v1571_v30 = vpack.c.bf16 %v1555_v52, %v1551_v46  ;;  %v1969_v46 = vld [vmem:[%s2948_s12 + $0x20] sm:$0xff] }
 0x226   : > { %1956 = vmatprep.mubr.bf16.mxu1 %v1571_v30 }
 0x227   : > { %1957 = vmatmul.mubr.bf16.gmra.mrb[28].mxu1 %v1570_v44 }
 0x2bc   : > { %v2314_v0 = vpop.f32.mrb[16].mxu0 }
 0x2bd   : > { %v2315_v43 = vpop.f32.mrb[17].mxu0  ;;  %v2354_v23 = vpop.f32.mrb[16].mxu1 }
 0x2be   : > { %v2316_v45 = vadd.f32 %v2315_v43, %v2314_v0  ;;  %v2317_v31 = vpop.f32.mrb[18].mxu0  ;;  %v2355_v55 = vpop.f32.mrb[17].mxu1  ;;  %v1970_v0 = vld [vmem:[%s2948_s12 + $0x28] sm:$0xff] }
 0x2bf   : > { %v2318_v59 = vpop.f32.mrb[19].mxu0  ;;  %v2356_v56 = vadd.f32 %v2355_v55, %v2354_v23  ;;  %v2357_v2 = vpop.f32.mrb[18].mxu1 }
 0x2c0   : > { %v1870_v58 = vadd.f32 %v2316_v45, %v3588_v9  ;;  %v2319_v38 = vadd.f32 %v2318_v59, %v2317_v31  ;;  %v2358_v1 = vpop.f32.mrb[19].mxu1 }
 0x2c1   : > { %v2359_v22 = vadd.f32 %v2358_v1, %v2357_v2 }
 0x2c2   : > { %v1935_v28 = vadd.f32 %v2356_v56, %v1870_v58  ;;  %v1873_v10 = vadd.f32 %v2319_v38, %v3588_v9 }
 0x2c4   : > { %v1980_v11 = vmul.f32 %v3594_v61, %v1935_v28  ;;  %v1938_v36 = vadd.f32 %v2359_v22, %v1873_v10 }
 0x2c6   : > { %v1988_v4 = vadd.f32 %v1980_v11, %v1965_v60  ;;  %v1981_v17 = vmul.f32 %v3594_v61, %v1938_v36 }
 0x2c8   : > { %1996 = vst [vmem:[%s2955_s27] sm:$0xff] %v1988_v4  ;;  %v1989_v33 = vadd.f32 %v1981_v17, %v1966_v3  ;;  %v1971_v4 = vld [vmem:[%s2948_s12 + $0x30] sm:$0xff] }
 0x2ca   : > { %1997 = vst [vmem:[%s2955_s27 + $0x8] sm:$0xff] %v1989_v33 }
 0x2d1   : > { %v2320_v47 = vpop.f32.mrb[20].mxu0 }
 0x2d2   : > { %v2360_v50 = vpop.f32.mrb[20].mxu1  ;;  %v2321_v37 = vpop.f32.mrb[21].mxu0 }
 0x2d3   : > { %v2361_v40 = vpop.f32.mrb[21].mxu1  ;;  %v2322_v27 = vadd.f32 %v2321_v37, %v2320_v47  ;;  %v2323_v29 = vpop.f32.mrb[22].mxu0  ;;  %v1972_v47 = vld [vmem:[%s2948_s12 + $0x38] sm:$0xff]  ;;  %s2693_s12 = scalar_lea.vmem %s3633_s24, 1024 }
 0x2d4   : > { %v2362_v7 = vadd.f32 %v2361_v40, %v2360_v50  ;;  %v2363_v12 = vpop.f32.mrb[22].mxu1  ;;  %v2324_v5 = vpop.f32.mrb[23].mxu0  ;;  %p2694_p2 = scmp.ne.s32.totalorder %s3633_s24, %s2693_s12  ;;  %p2701_p7 = scmp.lt.s32.totalorder %s2699_s29, %s2693_s12 }
 0x2d5   : > { %v2364_v13 = vpop.f32.mrb[23].mxu1  ;;  %v1878_v32 = vadd.f32 %v2322_v27, %v3588_v9  ;;  %v2325_v48 = vadd.f32 %v2324_v5, %v2323_v29 }
 0x2d6   : > { %v2365_v53 = vadd.f32 %v2364_v13, %v2363_v12  ;;  %p2695_p4 = pnand %p2694_p2, %p2910_p3  ;;  %p2702_p9 = por %p2701_p7, %p2700_p6 }
 0x2d7   : > { %v1943_v14 = vadd.f32 %v2362_v7, %v1878_v32  ;;  %v1881_v16 = vadd.f32 %v2325_v48, %v3588_v9 }
 0x2d8   : > { %p2696_p5 = pneg %p2695_p4 }
 0x2d9   : > { %v1982_v20 = vmul.f32 %v3594_v61, %v1943_v14  ;;  %v1946_v35 = vadd.f32 %v2365_v53, %v1881_v16 }
 0x2da   : > { %p2703_p10 = pnand %p2702_p9, %p2696_p5 }
 0x2db   : > { %v1990_v39 = vadd.f32 %v1982_v20, %v1967_v19  ;;  %v1983_v62 = vmul.f32 %v3594_v61, %v1946_v35 }
 0x2dd   : > { %1998 = vst [vmem:[%s2955_s27 + $0x10] sm:$0xff] %v1990_v39  ;;  %v1991_v21 = vadd.f32 %v1983_v62, %v1968_v18 }
 0x2df   : > { %1999 = vst [vmem:[%s2955_s27 + $0x18] sm:$0xff] %v1991_v21 }
 0x2e6   : > { %v2326_v8 = vpop.f32.mrb[24].mxu0 }
 0x2e7   : > { %v2366_v57 = vpop.f32.mrb[24].mxu1  ;;  %v2327_v34 = vpop.f32.mrb[25].mxu0 }
 0x2e8   : > { %v2328_v51 = vadd.f32 %v2327_v34, %v2326_v8  ;;  %v2367_v63 = vpop.f32.mrb[25].mxu1  ;;  %v2329_v26 = vpop.f32.mrb[26].mxu0 }
 0x2e9   : > { %v2368_v42 = vadd.f32 %v2367_v63, %v2366_v57  ;;  %v2369_v24 = vpop.f32.mrb[26].mxu1  ;;  %v2330_v25 = vpop.f32.mrb[27].mxu0 }
 0x2ea   : > { %v1886_v49 = vadd.f32 %v2328_v51, %v3588_v9  ;;  %v2331_v54 = vadd.f32 %v2330_v25, %v2329_v26  ;;  %v2370_v44 = vpop.f32.mrb[27].mxu1 }
 0x2eb   : > { %v2371_v6 = vadd.f32 %v2370_v44, %v2369_v24 }
 0x2ec   : > { %v1951_v15 = vadd.f32 %v2368_v42, %v1886_v49  ;;  %v1889_v41 = vadd.f32 %v2331_v54, %v3588_v9 }
 0x2ee   : > { %v1984_v52 = vmul.f32 %v3594_v61, %v1951_v15  ;;  %v1954_v30 = vadd.f32 %v2371_v6, %v1889_v41 }
 0x2f0   : > { %v1992_v43 = vadd.f32 %v1984_v52, %v1969_v46  ;;  %v1985_v23 = vmul.f32 %v3594_v61, %v1954_v30 }
 0x2f1   : > { %v2332_v45 = vpop.f32.mrb[28].mxu0 }
 0x2f2   : > { %2000 = vst [vmem:[%s2955_s27 + $0x20] sm:$0xff] %v1992_v43  ;;  %v1993_v31 = vadd.f32 %v1985_v23, %v1970_v0  ;;  %v2333_v55 = vpop.f32.mrb[29].mxu0 }
 0x2f3   : > { %v2334_v59 = vadd.f32 %v2333_v55, %v2332_v45  ;;  %v2335_v58 = vpop.f32.mrb[30].mxu0 }
 0x2f4   : > { %2001 = vst [vmem:[%s2955_s27 + $0x28] sm:$0xff] %v1993_v31  ;;  %v2336_v56 = vpop.f32.mrb[31].mxu0 }
 0x2f5   : > { %v2337_v2 = vadd.f32 %v2336_v56, %v2335_v58  ;;  %v1894_v1 = vadd.f32 %v2334_v59, %v3588_v9 }
 0x2f7   : > { %v1897_v60 = vadd.f32 %v2337_v2, %v3588_v9 }
 0x2fa   : > { %v2372_v38 = vpop.f32.mrb[28].mxu1 }
 0x2fb   : > { %v2373_v28 = vpop.f32.mrb[29].mxu1 }
 0x2fc   : > { %v2374_v10 = vadd.f32 %v2373_v28, %v2372_v38  ;;  %v2375_v22 = vpop.f32.mrb[30].mxu1 }
 0x2fd   : > { %v2376_v11 = vpop.f32.mrb[31].mxu1 }
 0x2fe   : > { %v1959_v36 = vadd.f32 %v2374_v10, %v1894_v1  ;;  %v2377_v3 = vadd.f32 %v2376_v11, %v2375_v22 }
 0x300   : > { %v1986_v17 = vmul.f32 %v3594_v61, %v1959_v36  ;;  %v1962_v33 = vadd.f32 %v2377_v3, %v1897_v60 }
 0x302   : > { %v1994_v50 = vadd.f32 %v1986_v17, %v1971_v4  ;;  %v1987_v37 = vmul.f32 %v3594_v61, %v1962_v33 }
 0x304   : > { %2002 = vst [vmem:[%s2955_s27 + $0x30] sm:$0xff] %v1994_v50  ;;  %v1995_v9 = vadd.f32 %v1987_v37, %v1972_v47 }
 0x306   : > { %2003 = vst [vmem:[%s2955_s27 + $0x38] sm:$0xff] %v1995_v9 }
 0x307   : > { %2706 = shalt.err (!%p2703_p10)
}
 0x308   : > { %s2707_s27 = scalar_lea.hbm %s3631_s26, 1024  ;;  %s2711_s15 = scalar_lea.hbm %s3735_s13, 8192 }
 0x309   : > { %p2708_p11 = scmp.ne.s32.totalorder %s3631_s26, %s2707_s27  ;;  %p2712_p0 = scmp.lt.u32.totalorder %s3631_s26, %s3735_s13 }
 0x30a   : > { %p2713_p1 = scmp.lt.u32.totalorder %s2711_s15, %s2707_s27  ;;  %p2715_p4 = scmp.lt.u32.totalorder %s2707_s27, %s3631_s26 }
 0x30b   : > { %p2709_p12 = pnand %p2708_p11, %p2910_p3 }
 0x30c   : > { %p2714_p2 = por %p2713_p1, %p2712_p0 }
 0x30d   : > { %p2710_p13 = pneg %p2709_p12 }
 0x30e   : > { %p2716_p5 = por %p2715_p4, %p2714_p2 }
 0x310   : > { %p2717_p6 = pnand %p2716_p5, %p2710_p13 }
 0x312   : > { %2720 = shalt.err (!%p2717_p6)
}
 0x313   : > { %s2792_s25 = smov 128   ;;  %s2793_s22 = smov 8  }
 0x314   : > { %2378 = dma.vmem_to_hbm [thread:$0]  (%p2910_p3), %s3633_s24, 1024, %s3631_s26, %s3639_s14, %s2792_s25, %s2792_s25, %s2793_s22  }
 0x315 PF: > { %s3737_s23 = sld [smem:[#allocation11_spill]]  ;;  %s3738_s28 = sld [smem:[#allocation6_spill]] }
 0x31b   : > { %p2384_p7 = scmp.ge.s32.totalorder %s3737_s23, 2  ;;  %s2045_s16 = sand.u32 1, %s3738_s28  }
 0x31c   : > { %s2046_s17 = scalar_lea.sflag [#allocation4], %s2045_s16 }
 0x31d   : > { %p2381_p9 = pnand %p2384_p7, %p2919_p8 }
 0x31f   : > { %2754 = dma.done.wait (!%p2381_p9), %s2046_s17, 1024  }
 0x320   : > { %2756 = vsyncadd (!%p2381_p9), %s2046_s17, 4294966272  ;;  %s25_s28 = sadd.s32 1, %s3737_s23   ;;  %s3740_s21 = sld [smem:[#allocation7_spill]] }
 0x321   : > { %p22_p10 = scmp.ge.s32.totalorder %s25_s28, 10   ;;  %s3741_s22 = sld [smem:[#allocation8_spill]] }
 0x322   : > { %s3742_s23 = sld [smem:[#allocation16_spill]]  ;;  %s3743_s24 = sld [smem:[#allocation9_spill]] }
 0x323   : > { %s3744_s25 = sld [smem:[#allocation10_spill]]  ;;  %s3745_s26 = sld [smem:[#allocation12_spill]] }
 0x324   : > { %s3746_s27 = sld [smem:[#allocation14_spill]]  ;;  %24 = sbr.rel (!%p22_p10) target bundleno = 7 (0x7), region = 113 }
 0x32b   :  { %2051 = vsyncpa [#allocation4], 1 }
 0x32c   :  { %2053 = vsyncpa [#allocation4 + $0x1], 1 }

// kernel: _lambda_.2
= control target key start
LH: loop header
LB: loop body
LE: loop exit
PB: predicated region body
PF: predicated region fallthrough
CT: control target
= control target key end

     0   :  { %s6947_s18 = smov 0   ;;  %s6949_s19 = smov 0   ;;  %s11282_s0 = inlined_call_operand.vmem [shape: f32[2,4,8,1024], index: 0, kind: input, shape index: {}]   ;;  %s11283_s1 = inlined_call_operand.vmem [shape: f32[2,4,1,1024], index: 1, kind: input, shape index: {}]   ;;  %s11284_s2 = inlined_call_operand.vmem [shape: f32[2,4,1,1024], index: 2, kind: input, shape index: {}]   ;;  %s11285_s3 = inlined_call_operand.vmem [shape: f32[49,1024], index: 3, kind: input, shape index: {}]   ;;  %s11286_s4 = inlined_call_operand.vmem [shape: f32[1,1024], index: 4, kind: input, shape index: {}]   ;;  %s11287_s5 = inlined_call_operand.vmem [shape: f32[2,4,8,1024], index: 5, kind: output, shape index: {}]  }
   0x1   :  { %s6951_s20 = smov 0   ;;  %s6953_s21 = smov 0  }
   0x2   :  { %s6955_s22 = smov 0  }
   0x3 LB: > { %s24_s23 = sadd.s32 1, %s6906_s20  ;;  %s27_s24 = sadd.s32 1, %s6910_s21  ;;  %s6914_s22 = sphi %s6955_s22, %s15_s22   ;;  %s6910_s21 = sphi %s6953_s21, %s12021_s21   ;;  %s6906_s20 = sphi %s6951_s20, %s12020_s20   ;;  %s6902_s19 = sphi %s6949_s19, %s12019_s19   ;;  %s6898_s18 = sphi %s6947_s18, %s12018_s18  }
   0x4   : > { %p25_p0 = scmp.ge.s32.totalorder %s24_s23, 4  ;;  %p6725_p1 = scmp.ge.s32.totalorder %s6914_s22, 1 }
   0x5   : > { %p237_p2 = scmp.lt.s32.totalorder %s6914_s22, 9 }
   0x6   : > { %s12023_s23 = smov (%p25_p0, %s24_s23), 0  ;;  %s12025_s24 = smov (!%p25_p0, %s27_s24), %s6910_s21 }
   0x7   : > { %p238_p3 = pnand %p6725_p1, %p237_p2  ;;  %p29_p4 = scmp.ge.s32.totalorder %s12025_s24, 2 }
   0x9   : > { %s12027_s24 = smov (%p29_p4, %s12025_s24), 0  ;;  %241 = sbr.rel (%p238_p3) target bundleno = 789 (0x315), region = 40 }
  0x10   : > { %p289_p5 = scmp.lt.s32.totalorder %s6902_s19, 1  ;;  %p291_p6 = scmp.lt.s32.totalorder %s6898_s18, 3 }
  0x11   : > { %p6736_p7 = scmp.ne.s32.totalorder %s6898_s18, 0 }
  0x12   : > { %s12029_s19 = smov (!%p289_p5, %s6902_s19), 1  ;;  %v6916_v0 = vmov (!%p6736_p7), 0.0  }
  0x13   : > { %s292_s25 = scalar_select %p291_p6, %s6898_s18, 3 }
  0x14   : > { %s6727_s26 = sshll.u32 %s12029_s19, 5  ;;  %326 = sbr.rel (%p6736_p7) target bundleno = 41 (0x29), region = 44  ;;  %327 = vst [vmem:[#allocation2] sm:$0xff] (!%p6736_p7), %v6916_v0  ;;  %328 = vst [vmem:[#allocation2 + $0x8] sm:$0xff] (!%p6736_p7), %v6916_v0 }
  0x15   : > { %s6726_s27 = sshll.u32 %s292_s25, 3  ;;  %329 = vst [vmem:[#allocation2 + $0x10] sm:$0xff] (!%p6736_p7), %v6916_v0  ;;  %330 = vst [vmem:[#allocation2 + $0x18] sm:$0xff] (!%p6736_p7), %v6916_v0 }
  0x16   : > { %s6977_s28 = sadd.s32 %s6727_s26, %s6726_s27  ;;  %331 = vst [vmem:[#allocation2 + $0x20] sm:$0xff] (!%p6736_p7), %v6916_v0  ;;  %332 = vst [vmem:[#allocation2 + $0x28] sm:$0xff] (!%p6736_p7), %v6916_v0 }
  0x17   : > { %s6728_s29 = sshll.u32 %s6977_s28, 3  ;;  %s305_s7 = scalar_lea.vmem %s11283_s1, %s6977_s28  ;;  %333 = vst [vmem:[#allocation2 + $0x30] sm:$0xff] (!%p6736_p7), %v6916_v0  ;;  %334 = vst [vmem:[#allocation2 + $0x38] sm:$0xff] (!%p6736_p7), %v6916_v0 }
  0x18   : > { %s6987_s10 = scalar_lea.vmem %s11282_s0, %s6728_s29  ;;  %s313_s13 = scalar_lea.vmem %s11284_s2, %s6977_s28  ;;  %335 = vst [vmem:[#allocation2 + $0x40] sm:$0xff] (!%p6736_p7), %v6916_v0  ;;  %336 = vst [vmem:[#allocation2 + $0x48] sm:$0xff] (!%p6736_p7), %v6916_v0 }
  0x19   : > { %s6996_s16 = scalar_lea.vmem %s11287_s5, %s6728_s29  ;;  %337 = vst [vmem:[#allocation2 + $0x50] sm:$0xff] (!%p6736_p7), %v6916_v0  ;;  %338 = vst [vmem:[#allocation2 + $0x58] sm:$0xff] (!%p6736_p7), %v6916_v0 }
  0x1a   : > { %339 = vst [vmem:[#allocation2 + $0x60] sm:$0xff] (!%p6736_p7), %v6916_v0  ;;  %340 = vst [vmem:[#allocation2 + $0x68] sm:$0xff] (!%p6736_p7), %v6916_v0 }
  0x1b   : > { %341 = vst [vmem:[#allocation2 + $0x70] sm:$0xff] %v6916_v0  ;;  %342 = vst [vmem:[#allocation2 + $0x78] sm:$0xff] %v6916_v0 }
  0x1c   : > { %343 = vst [vmem:[#allocation2 + $0x80] sm:$0xff] %v6916_v0  ;;  %344 = vst [vmem:[#allocation2 + $0x88] sm:$0xff] %v6916_v0 }
  0x1d   : > { %345 = vst [vmem:[#allocation2 + $0x90] sm:$0xff] %v6916_v0  ;;  %346 = vst [vmem:[#allocation2 + $0x98] sm:$0xff] %v6916_v0 }
  0x1e   : > { %347 = vst [vmem:[#allocation2 + $0xa0] sm:$0xff] %v6916_v0  ;;  %348 = vst [vmem:[#allocation2 + $0xa8] sm:$0xff] %v6916_v0 }
  0x1f   : > { %349 = vst [vmem:[#allocation2 + $0xb0] sm:$0xff] %v6916_v0  ;;  %350 = vst [vmem:[#allocation2 + $0xb8] sm:$0xff] %v6916_v0 }
  0x20   : > { %351 = vst [vmem:[#allocation2 + $0xc0] sm:$0xff] %v6916_v0  ;;  %352 = vst [vmem:[#allocation2 + $0xc8] sm:$0xff] %v6916_v0 }
  0x21   : > { %353 = vst [vmem:[#allocation2 + $0xd0] sm:$0xff] %v6916_v0  ;;  %354 = vst [vmem:[#allocation2 + $0xd8] sm:$0xff] %v6916_v0 }
  0x22   : > { %355 = vst [vmem:[#allocation2 + $0xe0] sm:$0xff] %v6916_v0  ;;  %356 = vst [vmem:[#allocation2 + $0xe8] sm:$0xff] %v6916_v0 }
  0x23   : > { %357 = vst [vmem:[#allocation2 + $0xf0] sm:$0xff] %v6916_v0  ;;  %358 = vst [vmem:[#allocation2 + $0xf8] sm:$0xff] %v6916_v0 }
  0x24   : > { %359 = vst [vmem:[#allocation2 + $0x100] sm:$0xff] %v6916_v0  ;;  %360 = vst [vmem:[#allocation2 + $0x108] sm:$0xff] %v6916_v0 }
  0x25   : > { %361 = vst [vmem:[#allocation2 + $0x110] sm:$0xff] %v6916_v0  ;;  %362 = vst [vmem:[#allocation2 + $0x118] sm:$0xff] %v6916_v0 }
  0x26   : > { %363 = vst [vmem:[#allocation2 + $0x120] sm:$0xff] %v6916_v0  ;;  %364 = vst [vmem:[#allocation2 + $0x128] sm:$0xff] %v6916_v0 }
  0x27   : > { %365 = vst [vmem:[#allocation2 + $0x130] sm:$0xff] %v6916_v0  ;;  %366 = vst [vmem:[#allocation2 + $0x138] sm:$0xff] %v6916_v0 }
  0x28   : > { %367 = vst [vmem:[#allocation2 + $0x140] sm:$0xff] %v6916_v0  ;;  %368 = vst [vmem:[#allocation2 + $0x148] sm:$0xff] %v6916_v0 }
  0x29 PF: > { %v369_v1 = vld [vmem:[%s6987_s10] sm:$0xff]  ;;  %v370_v2 = vld [vmem:[%s6987_s10 + $0x8] sm:$0xff]  ;;  %v371_v3 = vld [vmem:[%s6987_s10 + $0x10] sm:$0xff]  ;;  %v421_v9 = vlaneseq  ;;  %vm1060_vm0 = vcmask 1046528   ;;  %vm2020_vm1 = vcmask 1045504   ;;  %vm3645_vm2 = vcmask 1043456  }
  0x2a   : > { %v372_v4 = vld [vmem:[%s6987_s10 + $0x18] sm:$0xff]  ;;  %v373_v5 = vld [vmem:[%s6987_s10 + $0x20] sm:$0xff]  ;;  %v374_v6 = vld [vmem:[%s6987_s10 + $0x28] sm:$0xff]  ;;  %377 = vst [vmem:[#allocation2 + $0x88] sm:$0xff] %v369_v1  ;;  %vm4605_vm3 = vcmask 1042432   ;;  %vm5565_vm4 = vcmask 1041408  }
  0x2b   : > { %378 = vst [vmem:[#allocation2 + $0x90] sm:$0xff] %v370_v2  ;;  %379 = vst [vmem:[#allocation2 + $0x98] sm:$0xff] %v371_v3  ;;  %v375_v7 = vld [vmem:[%s6987_s10 + $0x30] sm:$0xff]  ;;  %v376_v8 = vld [vmem:[%s6987_s10 + $0x38] sm:$0xff]  ;;  %v422_v10 = vshrl.u32 %v421_v9, 7 }
  0x2c   : > { %380 = vst [vmem:[#allocation2 + $0xa0] sm:$0xff] %v372_v4  ;;  %381 = vst [vmem:[#allocation2 + $0xa8] sm:$0xff] %v373_v5  ;;  %v417_v11 = vld [vmem:[%s11285_s3] ss:$8 sm:$0xf] }
  0x2d   : > { %382 = vst [vmem:[#allocation2 + $0xb0] sm:$0xff] %v374_v6  ;;  %383 = vst [vmem:[#allocation2 + $0xb8] sm:$0xff] %v375_v7  ;;  %v418_v12 = vld [vmem:[%s11285_s3] ss:$8 sm:$0xf0]  ;;  %v7019_v18 = vsub.s32 0, %v422_v10 }
  0x2e   : > { %384 = vst [vmem:[#allocation2 + $0xc0] sm:$0xff] %v376_v8  ;;  %v386_v13 = vld [vmem:[%s11286_s4] sm:$0xff]  ;;  %v7015_v15 = vld [vmem:[#allocation2 + $0x8] sm:$0xe0]  ;;  %v7017_v16 = vld [vmem:[#allocation2 + $0x10] sm:$0xe0]  ;;  %v419_v17 = vor.u32 %v418_v12, %v417_v11 }
  0x2f   : > { %v389_v14 = vld [vmem:[#allocation2] sm:$0xe0]  ;;  %v7021_v19 = vsub.s32 1, %v422_v10  ;;  %v7023_v20 = vsub.s32 2, %v422_v10  ;;  %v7025_v21 = vld [vmem:[#allocation2 + $0x18] sm:$0xe0] }
  0x30   : > { %v7027_v22 = vld [vmem:[#allocation2 + $0x20] sm:$0xe0]  ;;  %v7029_v23 = vld [vmem:[#allocation2 + $0x28] sm:$0xe0]  ;;  %v7031_v24 = vld [vmem:[#allocation2 + $0x30] sm:$0xe0]  ;;  %v424_v34 = vrot.slane %v419_v17, %v7019_v18 }
  0x31   : > { %11542 = vst [vmem:[#allocation3_spill] sm:$0xff] %v7027_v22  ;;  %11543 = vst [vmem:[#allocation4_spill] sm:$0xff] %v7029_v23  ;;  %v7033_v25 = vsub.s32 3, %v422_v10  ;;  %v7035_v26 = vsub.s32 4, %v422_v10  ;;  %v7037_v27 = vsub.s32 5, %v422_v10  ;;  %v7039_v28 = vsub.s32 6, %v422_v10 }
  0x32   : > { %11544 = vst [vmem:[#allocation5_spill] sm:$0xff] %v7031_v24  ;;  %v387_v29 = vld [vmem:[%s313_s13] sm:$0xff]  ;;  %v7046_v30 = vld [vmem:[#allocation2 + $0x38] sm:$0xe0]  ;;  %v403_v31 = vld [vmem:[#allocation2 + $0x70] sm:$0x1f]  ;;  %v428_v35 = vrot.slane %v419_v17, %v7021_v19  ;;  %v432_v36 = vrot.slane %v419_v17, %v7023_v20  ;;  %v461_v51 = vmul.f32 %v424_v34, %v389_v14 }
  0x33   : > { %11545 = vst [vmem:[#allocation6_spill] sm:$0xff] %v7046_v30  ;;  %v7048_v32 = vld [vmem:[#allocation2 + $0x78] sm:$0x1f]  ;;  %v7050_v33 = vld [vmem:[#allocation2 + $0x80] sm:$0x1f]  ;;  %v7055_v37 = vsub.s32 7, %v422_v10  ;;  %v436_v41 = vrot.slane %v419_v17, %v7033_v25  ;;  %v440_v42 = vrot.slane %v419_v17, %v7035_v26  ;;  %v444_v43 = vrot.slane %v419_v17, %v7037_v27 }
  0x34   : > { %11546 = vst [vmem:[#allocation7_spill] sm:$0xff] %v7050_v33  ;;  %v7057_v38 = vld [vmem:[#allocation2 + $0x88] sm:$0x1f]  ;;  %v7059_v39 = vld [vmem:[#allocation2 + $0x90] sm:$0x1f]  ;;  %v448_v44 = vrot.slane %v419_v17, %v7039_v28  ;;  %v7078_v50 = vmul.f32 %v387_v29, %v386_v13  ;;  %v462_v52 = vmul.f32 %v428_v35, %v7015_v15  ;;  %v463_v53 = vmul.f32 %v432_v36, %v7017_v16 }
  0x35   : > { %11547 = vst [vmem:[#allocation8_spill] sm:$0xff] %v7057_v38  ;;  %11548 = vst [vmem:[#allocation9_spill] sm:$0xff] %v7059_v39  ;;  %v7061_v40 = vld [vmem:[#allocation2 + $0x98] sm:$0x1f]  ;;  %v7067_v45 = vld [vmem:[#allocation2 + $0xa0] sm:$0x1f]  ;;  %v452_v47 = vrot.slane %v419_v17, %v7055_v37  ;;  %v464_v56 = vmul.f32 %v436_v41, %v7025_v21  ;;  %v465_v57 = vmul.f32 %v440_v42, %v7027_v22 }
  0x36   : > { %11549 = vst [vmem:[#allocation10_spill] sm:$0xff] %v7061_v40  ;;  %11550 = vst [vmem:[#allocation11_spill] sm:$0xff] %v7067_v45  ;;  %v7069_v46 = vld [vmem:[#allocation2 + $0xa8] sm:$0x1f]  ;;  %v466_v58 = vmul.f32 %v444_v43, %v7029_v23  ;;  %v467_v59 = vmul.f32 %v448_v44, %v7031_v24  ;;  %v469_v63 = vmul.f32 %v424_v34, %v403_v31 }
  0x37   : > { %11551 = vst [vmem:[#allocation12_spill] sm:$0xff] %v7069_v46  ;;  %v6737_v48 = vld [vmem:[%s11285_s3 + $0x1] ss:$8 sm:$0xf]  ;;  %11552 = vst [vmem:[#allocation13_spill] sm:$0xff] %v7078_v50  ;;  %v468_v62 = vmul.f32 %v452_v47, %v7046_v30  ;;  %v470_v0 = vmul.f32 %v428_v35, %v7048_v32  ;;  %v471_v1 = vmul.f32 %v432_v36, %v7050_v33 }
  0x38   : > { %v6738_v49 = vld [vmem:[%s11285_s3 + $0x1] ss:$8 sm:$0xf0]  ;;  %v6739_v54 = vld [vmem:[%s11285_s3 + $0x2] ss:$8 sm:$0xf]  ;;  %v472_v4 = vmul.f32 %v436_v41, %v7057_v38  ;;  %v473_v5 = vmul.f32 %v440_v42, %v7059_v39  ;;  %v474_v6 = vmul.f32 %v444_v43, %v7061_v40  ;;  %v475_v10 = vmul.f32 %v448_v44, %v7067_v45 }
  0x39   : > { %v6740_v55 = vld [vmem:[%s11285_s3 + $0x2] ss:$8 sm:$0xf0]  ;;  %v6741_v60 = vld [vmem:[%s11285_s3 + $0x3] ss:$8 sm:$0xf]  ;;  %v496_v7 = vor.u32 %v6738_v49, %v6737_v48  ;;  %v476_v11 = vmul.f32 %v452_v47, %v7069_v46 }
  0x3a   : > { %v6742_v61 = vld [vmem:[%s11285_s3 + $0x3] ss:$8 sm:$0xf0]  ;;  %v6743_v2 = vld [vmem:[%s11285_s3 + $0x4] ss:$8 sm:$0xf]  ;;  %v573_v12 = vor.u32 %v6740_v55, %v6739_v54 }
  0x3b   : > { %v6744_v3 = vld [vmem:[%s11285_s3 + $0x4] ss:$8 sm:$0xf0]  ;;  %v6745_v8 = vld [vmem:[%s11285_s3 + $0x5] ss:$8 sm:$0xf]  ;;  %v7118_v13 = vor.u32 %v6742_v61, %v6741_v60  ;;  %v501_v29 = vrot.slane %v496_v7, %v7019_v18  ;;  %v505_v31 = vrot.slane %v496_v7, %v7021_v19  ;;  %v509_v34 = vrot.slane %v496_v7, %v7023_v20 }
  0x3c   : > { %v6746_v9 = vld [vmem:[%s11285_s3 + $0x5] ss:$8 sm:$0xf0]  ;;  %v6747_v14 = vld [vmem:[%s11285_s3 + $0x6] ss:$8 sm:$0xf]  ;;  %v513_v35 = vrot.slane %v496_v7, %v7033_v25  ;;  %v517_v41 = vrot.slane %v496_v7, %v7035_v26  ;;  %v521_v42 = vrot.slane %v496_v7, %v7037_v27  ;;  %v525_v43 = vrot.slane %v496_v7, %v7039_v28 }
  0x3d   : > { %11553 = vst [vmem:[#allocation14_spill] sm:$0xff] %v7118_v13  ;;  %v6748_v17 = vld [vmem:[%s11285_s3 + $0x6] ss:$8 sm:$0xf0]  ;;  %v529_v44 = vrot.slane %v496_v7, %v7055_v37  ;;  %v538_v47 = vmul.f32 %v501_v29, %v7015_v15  ;;  %v7137_v48 = vor.u32 %v6744_v3, %v6743_v2  ;;  %v7139_v49 = vor.u32 %v6746_v9, %v6745_v8  ;;  %v7143_v55 = vld [vmem:[#allocation2 + $0xb0] sm:$0x1f] }
  0x3e   : > { %v7130_v36 = vld [vmem:[#allocation2 + $0x40] sm:$0xe0]  ;;  %v7141_v54 = vor.u32 %v6748_v17, %v6747_v14  ;;  %11558 = vst [vmem:[#allocation19_spill] sm:$0xff] %v7143_v55  ;;  %v539_v60 = vmul.f32 %v505_v31, %v7017_v16  ;;  %v540_v61 = vmul.f32 %v509_v34, %v7025_v21  ;;  %v541_v50 = vmul.f32 %v513_v35, %v7027_v22 }
  0x3f   : > { %11554 = vst [vmem:[#allocation15_spill] sm:$0xff] %v7130_v36  ;;  %11555 = vst [vmem:[#allocation16_spill] sm:$0xff] %v7137_v48  ;;  %v542_v13 = vmul.f32 %v517_v41, %v7029_v23  ;;  %v543_v7 = vmul.f32 %v521_v42, %v7031_v24  ;;  %v544_v15 = vmul.f32 %v525_v43, %v7046_v30 }
  0x40   : > { %11556 = vst [vmem:[#allocation17_spill] sm:$0xff] %v7139_v49  ;;  %11557 = vst [vmem:[#allocation18_spill] sm:$0xff] %v7141_v54  ;;  %v545_v2 = vmul.f32 %v529_v44, %v7130_v36  ;;  %v546_v3 = vmul.f32 %v501_v29, %v7048_v32  ;;  %v547_v8 = vmul.f32 %v505_v31, %v7050_v33 }
  0x41   : > { %v548_v9 = vmul.f32 %v509_v34, %v7057_v38  ;;  %v549_v14 = vmul.f32 %v513_v35, %v7059_v39  ;;  %v550_v17 = vmul.f32 %v517_v41, %v7061_v40  ;;  %v551_v54 = vmul.f32 %v521_v42, %v7067_v45 }
  0x42   : > { %v552_v49 = vmul.f32 %v525_v43, %v7069_v46  ;;  %v553_v48 = vmul.f32 %v529_v44, %v7143_v55  ;;  %v554_v24 = vadd.f32 %v538_v47, %v461_v51  ;;  %v555_v30 = vadd.f32 %v539_v60, %v462_v52  ;;  %v7164_v52 = vld [vmem:[#allocation2 + $0x48] sm:$0xe0]  ;;  %v11563_v47 = vld [vmem:[#allocation5_spill] sm:$0xff] }
  0x43   : > { %v556_v23 = vadd.f32 %v540_v61, %v463_v53  ;;  %v557_v36 = vadd.f32 %v541_v50, %v464_v56  ;;  %v558_v22 = vadd.f32 %v542_v13, %v465_v57  ;;  %v559_v32 = vadd.f32 %v543_v7, %v466_v58  ;;  %11559 = vst [vmem:[#allocation20_spill] sm:$0xff] %v7164_v52  ;;  %v11562_v13 = vld [vmem:[#allocation4_spill] sm:$0xff]  ;;  %v11564_v61 = vld [vmem:[#allocation6_spill] sm:$0xff] }
  0x44   : > { %v560_v29 = vadd.f32 %v544_v15, %v467_v59  ;;  %v561_v31 = vadd.f32 %v545_v2, %v468_v62  ;;  %v562_v33 = vadd.f32 %v546_v3, %v469_v63  ;;  %v563_v34 = vadd.f32 %v547_v8, %v470_v0  ;;  %v7171_v0 = vld [vmem:[#allocation2 + $0xb8] sm:$0x1f] }
  0x45   : > { %v564_v38 = vadd.f32 %v548_v9, %v471_v1  ;;  %v565_v35 = vadd.f32 %v549_v14, %v472_v4  ;;  %v566_v39 = vadd.f32 %v550_v17, %v473_v5  ;;  %v578_v41 = vrot.slane %v573_v12, %v7019_v18  ;;  %11560 = vst [vmem:[#allocation21_spill] sm:$0xff] %v7171_v0  ;;  %v11561_v4 = vld [vmem:[#allocation3_spill] sm:$0xff] }
  0x46   : > { %v582_v42 = vrot.slane %v573_v12, %v7021_v19  ;;  %v586_v43 = vrot.slane %v573_v12, %v7023_v20  ;;  %v590_v51 = vrot.slane %v573_v12, %v7033_v25  ;;  %v594_v50 = vrot.slane %v573_v12, %v7035_v26  ;;  %v11565_v15 = vld [vmem:[#allocation15_spill] sm:$0xff] }
  0x47   : > { %v598_v53 = vrot.slane %v573_v12, %v7037_v27  ;;  %v602_v56 = vrot.slane %v573_v12, %v7039_v28  ;;  %v606_v57 = vrot.slane %v573_v12, %v7055_v37  ;;  %v567_v58 = vadd.f32 %v551_v54, %v474_v6  ;;  %v11567_v12 = vld [vmem:[#allocation8_spill] sm:$0xff] }
  0x48   : > { %v568_v59 = vadd.f32 %v552_v49, %v475_v10  ;;  %v569_v62 = vadd.f32 %v553_v48, %v476_v11  ;;  %v615_v63 = vmul.f32 %v578_v41, %v7017_v16  ;;  %v616_v1 = vmul.f32 %v582_v42, %v7025_v21  ;;  %v11566_v10 = vld [vmem:[#allocation7_spill] sm:$0xff]  ;;  %v11568_v48 = vld [vmem:[#allocation9_spill] sm:$0xff] }
  0x49   : > { %v617_v5 = vmul.f32 %v586_v43, %v11561_v4  ;;  %v618_v44 = vmul.f32 %v590_v51, %v11562_v13  ;;  %v619_v60 = vmul.f32 %v594_v50, %v11563_v47  ;;  %v620_v7 = vmul.f32 %v598_v53, %v11564_v61 }
  0x4a   : > { %v621_v2 = vmul.f32 %v602_v56, %v11565_v15  ;;  %v622_v6 = vmul.f32 %v606_v57, %v7164_v52  ;;  %v623_v11 = vmul.f32 %v578_v41, %v11566_v10  ;;  %v624_v16 = vmul.f32 %v582_v42, %v11567_v12 }
  0x4b   : > { %v625_v49 = vmul.f32 %v586_v43, %v11568_v48  ;;  %v626_v54 = vmul.f32 %v590_v51, %v7061_v40  ;;  %v627_v3 = vmul.f32 %v594_v50, %v7067_v45  ;;  %v628_v8 = vmul.f32 %v598_v53, %v7069_v46  ;;  %v11569_v53 = vld [vmem:[#allocation14_spill] sm:$0xff] }
  0x4c   : > { %v629_v9 = vmul.f32 %v602_v56, %v7143_v55  ;;  %v630_v14 = vmul.f32 %v606_v57, %v7171_v0  ;;  %v631_v17 = vadd.f32 %v615_v63, %v554_v24  ;;  %v632_v15 = vadd.f32 %v616_v1, %v555_v30  ;;  %v7194_v24 = vld [vmem:[#allocation2 + $0x50] sm:$0xe0]  ;;  %v11571_v57 = vld [vmem:[#allocation5_spill] sm:$0xff]  ;;  %v11572_v63 = vld [vmem:[#allocation6_spill] sm:$0xff] }
  0x4d   : > { %v633_v61 = vadd.f32 %v617_v5, %v556_v23  ;;  %v634_v52 = vadd.f32 %v618_v44, %v557_v36  ;;  %v635_v47 = vadd.f32 %v619_v60, %v558_v22  ;;  %v636_v41 = vadd.f32 %v620_v7, %v559_v32  ;;  %11570 = vst [vmem:[#allocation3_spill] sm:$0xff] %v7194_v24  ;;  %v11573_v5 = vld [vmem:[#allocation15_spill] sm:$0xff]  ;;  %v11574_v60 = vld [vmem:[#allocation20_spill] sm:$0xff] }
  0x4e   : > { %v637_v10 = vadd.f32 %v621_v2, %v560_v29  ;;  %v638_v42 = vadd.f32 %v622_v6, %v561_v31  ;;  %v639_v12 = vadd.f32 %v623_v11, %v562_v33  ;;  %v640_v43 = vadd.f32 %v624_v16, %v563_v34  ;;  %v7207_v31 = vld [vmem:[#allocation2 + $0xc0] sm:$0x1f]  ;;  %v11575_v7 = vld [vmem:[#allocation8_spill] sm:$0xff]  ;;  %v11577_v11 = vld [vmem:[#allocation10_spill] sm:$0xff] }
  0x4f   : > { %v641_v48 = vadd.f32 %v625_v49, %v564_v38  ;;  %v642_v51 = vadd.f32 %v626_v54, %v565_v35  ;;  %v643_v40 = vadd.f32 %v627_v3, %v566_v39  ;;  %v644_v50 = vadd.f32 %v628_v8, %v567_v58  ;;  %v11576_v6 = vld [vmem:[#allocation9_spill] sm:$0xff]  ;;  %v11578_v54 = vld [vmem:[#allocation12_spill] sm:$0xff] }
  0x50   : > { %v655_v46 = vrot.slane %v11569_v53, %v7019_v18  ;;  %v659_v56 = vrot.slane %v11569_v53, %v7021_v19  ;;  %v663_v23 = vrot.slane %v11569_v53, %v7023_v20  ;;  %v667_v22 = vrot.slane %v11569_v53, %v7033_v25 }
  0x51   : > { %v671_v30 = vrot.slane %v11569_v53, %v7035_v26  ;;  %v679_v33 = vrot.slane %v11569_v53, %v7039_v28  ;;  %v683_v38 = vrot.slane %v11569_v53, %v7055_v37  ;;  %v645_v39 = vadd.f32 %v629_v9, %v568_v59 }
  0x52   : > { %v646_v36 = vadd.f32 %v630_v14, %v569_v62  ;;  %v675_v32 = vrot.slane %v11569_v53, %v7037_v27  ;;  %v692_v29 = vmul.f32 %v655_v46, %v7025_v21  ;;  %v693_v34 = vmul.f32 %v659_v56, %v11561_v4 }
  0x53   : > { %v694_v35 = vmul.f32 %v663_v23, %v11562_v13  ;;  %v695_v58 = vmul.f32 %v667_v22, %v11571_v57  ;;  %v696_v1 = vmul.f32 %v671_v30, %v11572_v63  ;;  %v698_v59 = vmul.f32 %v679_v33, %v11574_v60 }
  0x54   : > { %v697_v44 = vmul.f32 %v675_v32, %v11573_v5  ;;  %v699_v62 = vmul.f32 %v683_v38, %v7194_v24  ;;  %v700_v2 = vmul.f32 %v655_v46, %v11575_v7  ;;  %v701_v21 = vmul.f32 %v659_v56, %v11576_v6 }
  0x55   : > { %v702_v16 = vmul.f32 %v663_v23, %v11577_v11  ;;  %v703_v49 = vmul.f32 %v667_v22, %v7067_v45  ;;  %v704_v3 = vmul.f32 %v671_v30, %v11578_v54  ;;  %v705_v8 = vmul.f32 %v675_v32, %v7143_v55  ;;  %v11579_v32 = vld [vmem:[#allocation16_spill] sm:$0xff] }
  0x56   : > { %v706_v9 = vmul.f32 %v679_v33, %v7171_v0  ;;  %v707_v14 = vmul.f32 %v683_v38, %v7207_v31  ;;  %v708_v53 = vadd.f32 %v692_v29, %v631_v17  ;;  %v709_v60 = vadd.f32 %v693_v34, %v632_v15  ;;  %v11582_v29 = vld [vmem:[#allocation15_spill] sm:$0xff] }
  0x57   : > { %v710_v5 = vadd.f32 %v694_v35, %v633_v61  ;;  %v711_v24 = vadd.f32 %v695_v58, %v634_v52  ;;  %v712_v63 = vadd.f32 %v696_v1, %v635_v47  ;;  %v713_v46 = vadd.f32 %v697_v44, %v636_v41  ;;  %v7230_v52 = vld [vmem:[#allocation2 + $0x58] sm:$0xe0]  ;;  %v11584_v1 = vld [vmem:[#allocation3_spill] sm:$0xff]  ;;  %v11585_v44 = vld [vmem:[#allocation9_spill] sm:$0xff] }
  0x58   : > { %v714_v7 = vadd.f32 %v698_v59, %v637_v10  ;;  %v715_v56 = vadd.f32 %v699_v62, %v638_v42  ;;  %v716_v6 = vadd.f32 %v700_v2, %v639_v12  ;;  %v717_v23 = vadd.f32 %v701_v21, %v640_v43  ;;  %11580 = vst [vmem:[#allocation4_spill] sm:$0xff] %v7230_v52  ;;  %v7243_v42 = vld [vmem:[#allocation2 + $0xc8] sm:$0x1f]  ;;  %v11583_v35 = vld [vmem:[#allocation20_spill] sm:$0xff]  ;;  %v11587_v2 = vld [vmem:[#allocation11_spill] sm:$0xff] }
  0x59   : > { %v718_v11 = vadd.f32 %v702_v16, %v641_v48  ;;  %v719_v22 = vadd.f32 %v703_v49, %v642_v51  ;;  %v720_v45 = vadd.f32 %v704_v3, %v643_v40  ;;  %v721_v30 = vadd.f32 %v705_v8, %v644_v50  ;;  %v11581_v50 = vld [vmem:[#allocation6_spill] sm:$0xff]  ;;  %v11588_v49 = vld [vmem:[#allocation19_spill] sm:$0xff] }
  0x5a   : > { %v732_v55 = vrot.slane %v11579_v32, %v7019_v18  ;;  %v736_v33 = vrot.slane %v11579_v32, %v7021_v19  ;;  %v740_v61 = vrot.slane %v11579_v32, %v7023_v20  ;;  %v744_v47 = vrot.slane %v11579_v32, %v7033_v25  ;;  %v11586_v62 = vld [vmem:[#allocation10_spill] sm:$0xff] }
  0x5b   : > { %v748_v15 = vrot.slane %v11579_v32, %v7035_v26  ;;  %v756_v40 = vrot.slane %v11579_v32, %v7039_v28  ;;  %v760_v12 = vrot.slane %v11579_v32, %v7055_v37  ;;  %v722_v48 = vadd.f32 %v706_v9, %v645_v39 }
  0x5c   : > { %v723_v17 = vadd.f32 %v707_v14, %v646_v36  ;;  %v752_v41 = vrot.slane %v11579_v32, %v7037_v27  ;;  %v769_v10 = vmul.f32 %v732_v55, %v11561_v4  ;;  %v770_v43 = vmul.f32 %v736_v33, %v11562_v13 }
  0x5d   : > { %v771_v51 = vmul.f32 %v740_v61, %v11571_v57  ;;  %v772_v38 = vmul.f32 %v744_v47, %v11581_v50  ;;  %v773_v34 = vmul.f32 %v748_v15, %v11582_v29  ;;  %v775_v39 = vmul.f32 %v756_v40, %v11584_v1 }
  0x5e   : > { %v774_v58 = vmul.f32 %v752_v41, %v11583_v35  ;;  %v776_v36 = vmul.f32 %v760_v12, %v7230_v52  ;;  %v777_v59 = vmul.f32 %v732_v55, %v11585_v44  ;;  %v778_v4 = vmul.f32 %v736_v33, %v11586_v62 }
  0x5f   : > { %v779_v21 = vmul.f32 %v740_v61, %v11587_v2  ;;  %v780_v16 = vmul.f32 %v744_v47, %v11578_v54  ;;  %v781_v3 = vmul.f32 %v748_v15, %v11588_v49  ;;  %v782_v8 = vmul.f32 %v752_v41, %v7171_v0  ;;  %v11589_v41 = vld [vmem:[#allocation17_spill] sm:$0xff] }
  0x60   : > { %v783_v9 = vmul.f32 %v756_v40, %v7207_v31  ;;  %v784_v14 = vmul.f32 %v760_v12, %v7243_v42  ;;  %v785_v32 = vadd.f32 %v769_v10, %v708_v53  ;;  %v786_v1 = vadd.f32 %v770_v43, %v709_v60  ;;  %v11591_v10 = vld [vmem:[#allocation20_spill] sm:$0xff] }
  0x61   : > { %v787_v35 = vadd.f32 %v771_v51, %v710_v5  ;;  %v788_v52 = vadd.f32 %v772_v38, %v711_v24  ;;  %v789_v29 = vadd.f32 %v773_v34, %v712_v63  ;;  %v790_v55 = vadd.f32 %v774_v58, %v713_v46  ;;  %v401_v24 = vld [vmem:[#allocation2 + $0x60] sm:$0xe0]  ;;  %v11592_v51 = vld [vmem:[#allocation3_spill] sm:$0xff]  ;;  %v11593_v34 = vld [vmem:[#allocation4_spill] sm:$0xff] }
  0x62   : > { %v791_v44 = vadd.f32 %v775_v39, %v714_v7  ;;  %v792_v33 = vadd.f32 %v776_v36, %v715_v56  ;;  %v793_v62 = vadd.f32 %v777_v59, %v716_v6  ;;  %v794_v61 = vadd.f32 %v778_v4, %v717_v23  ;;  %v415_v56 = vld [vmem:[#allocation2 + $0xd0] sm:$0x1f]  ;;  %v11596_v4 = vld [vmem:[#allocation12_spill] sm:$0xff] }
  0x63   : > { %v795_v2 = vadd.f32 %v779_v21, %v718_v11  ;;  %v796_v47 = vadd.f32 %v780_v16, %v719_v22  ;;  %v797_v54 = vadd.f32 %v781_v3, %v720_v45  ;;  %v798_v15 = vadd.f32 %v782_v8, %v721_v30  ;;  %v11590_v30 = vld [vmem:[#allocation15_spill] sm:$0xff]  ;;  %v11597_v16 = vld [vmem:[#allocation21_spill] sm:$0xff] }
  0x64   : > { %v809_v0 = vrot.slane %v11589_v41, %v7019_v18  ;;  %v813_v40 = vrot.slane %v11589_v41, %v7021_v19  ;;  %v817_v5 = vrot.slane %v11589_v41, %v7023_v20  ;;  %v821_v63 = vrot.slane %v11589_v41, %v7033_v25  ;;  %v11595_v36 = vld [vmem:[#allocation11_spill] sm:$0xff] }
  0x65   : > { %v825_v60 = vrot.slane %v11589_v41, %v7035_v26  ;;  %v833_v45 = vrot.slane %v11589_v41, %v7039_v28  ;;  %v837_v6 = vrot.slane %v11589_v41, %v7055_v37  ;;  %v799_v11 = vadd.f32 %v783_v9, %v722_v48 }
  0x66   : > { %v800_v53 = vadd.f32 %v784_v14, %v723_v17  ;;  %v829_v46 = vrot.slane %v11589_v41, %v7037_v27  ;;  %v846_v7 = vmul.f32 %v809_v0, %v11562_v13  ;;  %v847_v23 = vmul.f32 %v813_v40, %v11571_v57  ;;  %v11594_v17 = vld [vmem:[#allocation10_spill] sm:$0xff] }
  0x67   : > { %v848_v22 = vmul.f32 %v817_v5, %v11581_v50  ;;  %v849_v12 = vmul.f32 %v821_v63, %v11590_v30  ;;  %v850_v43 = vmul.f32 %v825_v60, %v11591_v10  ;;  %v852_v58 = vmul.f32 %v833_v45, %v11593_v34 }
  0x68   : > { %v851_v38 = vmul.f32 %v829_v46, %v11592_v51  ;;  %v853_v48 = vmul.f32 %v837_v6, %v401_v24  ;;  %v854_v39 = vmul.f32 %v809_v0, %v11594_v17  ;;  %v855_v59 = vmul.f32 %v813_v40, %v11595_v36 }
  0x69   : > { %v856_v13 = vmul.f32 %v817_v5, %v11596_v4  ;;  %v857_v21 = vmul.f32 %v821_v63, %v11588_v49  ;;  %v858_v3 = vmul.f32 %v825_v60, %v11597_v16  ;;  %v859_v8 = vmul.f32 %v829_v46, %v7207_v31  ;;  %v11598_v60 = vld [vmem:[#allocation18_spill] sm:$0xff]  ;;  %v11600_v46 = vld [vmem:[#allocation15_spill] sm:$0xff] }
  0x6a   : > { %v860_v9 = vmul.f32 %v833_v45, %v7243_v42  ;;  %v861_v14 = vmul.f32 %v837_v6, %v415_v56  ;;  %v862_v41 = vadd.f32 %v846_v7, %v785_v32  ;;  %v863_v51 = vadd.f32 %v847_v23, %v786_v1  ;;  %v11601_v23 = vld [vmem:[#allocation20_spill] sm:$0xff] }
  0x6b   : > { %v864_v10 = vadd.f32 %v848_v22, %v787_v35  ;;  %v865_v34 = vadd.f32 %v849_v12, %v788_v52  ;;  %v866_v30 = vadd.f32 %v850_v43, %v789_v29  ;;  %v867_v50 = vadd.f32 %v851_v38, %v790_v55  ;;  %v402_v29 = vld [vmem:[#allocation2 + $0x68] sm:$0xe0]  ;;  %v11602_v12 = vld [vmem:[#allocation3_spill] sm:$0xff]  ;;  %v11603_v38 = vld [vmem:[#allocation4_spill] sm:$0xff] }
  0x6c   : > { %v868_v0 = vadd.f32 %v852_v58, %v791_v44  ;;  %v869_v17 = vadd.f32 %v853_v48, %v792_v33  ;;  %v870_v40 = vadd.f32 %v854_v39, %v793_v62  ;;  %v871_v36 = vadd.f32 %v855_v59, %v794_v61  ;;  %v416_v61 = vld [vmem:[#allocation2 + $0xd8] sm:$0x1f]  ;;  %v11604_v59 = vld [vmem:[#allocation11_spill] sm:$0xff] }
  0x6d   : > { %v872_v5 = vadd.f32 %v856_v13, %v795_v2  ;;  %v873_v4 = vadd.f32 %v857_v21, %v796_v47  ;;  %v874_v63 = vadd.f32 %v858_v3, %v797_v54  ;;  %v886_v16 = vrot.slane %v11598_v60, %v7019_v18  ;;  %v11599_v47 = vld [vmem:[#allocation6_spill] sm:$0xff] }
  0x6e   : > { %v890_v45 = vrot.slane %v11598_v60, %v7021_v19  ;;  %v894_v1 = vrot.slane %v11598_v60, %v7023_v20  ;;  %v898_v52 = vrot.slane %v11598_v60, %v7033_v25  ;;  %v902_v35 = vrot.slane %v11598_v60, %v7035_v26 }
  0x6f   : > { %v906_v62 = vrot.slane %v11598_v60, %v7037_v27  ;;  %v910_v54 = vrot.slane %v11598_v60, %v7039_v28  ;;  %v914_v2 = vrot.slane %v11598_v60, %v7055_v37  ;;  %v875_v32 = vadd.f32 %v859_v8, %v798_v15  ;;  %v11605_v15 = vld [vmem:[#allocation12_spill] sm:$0xff] }
  0x70   : > { %v876_v55 = vadd.f32 %v860_v9, %v799_v11  ;;  %v877_v44 = vadd.f32 %v861_v14, %v800_v53  ;;  %v923_v33 = vmul.f32 %v886_v16, %v11571_v57  ;;  %v924_v6 = vmul.f32 %v890_v45, %v11599_v47  ;;  %v11606_v57 = vld [vmem:[#allocation21_spill] sm:$0xff] }
  0x71   : > { %v925_v7 = vmul.f32 %v894_v1, %v11600_v46  ;;  %v926_v22 = vmul.f32 %v898_v52, %v11601_v23  ;;  %v927_v43 = vmul.f32 %v902_v35, %v11602_v12  ;;  %v928_v58 = vmul.f32 %v906_v62, %v11603_v38  ;;  %v6749_v8 = vld [vmem:[%s11285_s3 + $0x7] ss:$8 sm:$0xf]  ;;  %v969_v12 = vld [vmem:[#allocation2 + $0x70] sm:$0x3f] }
  0x72   : > { %v929_v48 = vmul.f32 %v910_v54, %v401_v24  ;;  %v930_v39 = vmul.f32 %v914_v2, %v402_v29  ;;  %v931_v13 = vmul.f32 %v886_v16, %v11604_v59  ;;  %v932_v11 = vmul.f32 %v890_v45, %v11605_v15  ;;  %v6750_v9 = vld [vmem:[%s11285_s3 + $0x7] ss:$8 sm:$0xf0]  ;;  %v6753_v45 = vld [vmem:[%s11285_s3 + $0x41] ss:$8 sm:$0xf] }
  0x73   : > { %v933_v53 = vmul.f32 %v894_v1, %v11588_v49  ;;  %v934_v21 = vmul.f32 %v898_v52, %v11606_v57  ;;  %v935_v3 = vmul.f32 %v902_v35, %v7207_v31  ;;  %v936_v24 = vmul.f32 %v906_v62, %v7243_v42  ;;  %v6751_v49 = vld [vmem:[%s11285_s3 + $0x40] ss:$8 sm:$0xf]  ;;  %v6754_v42 = vld [vmem:[%s11285_s3 + $0x41] ss:$8 sm:$0xf0] }
  0x74   : > { %v937_v14 = vmul.f32 %v910_v54, %v415_v56  ;;  %v938_v16 = vmul.f32 %v914_v2, %v416_v61  ;;  %v7324_v60 = vadd.f32 %v923_v33, %v862_v41  ;;  %v6752_v31 = vld [vmem:[%s11285_s3 + $0x40] ss:$8 sm:$0xf0]  ;;  %v7338_v56 = vadd.f32 %v924_v6, %v863_v51  ;;  %v6755_v29 = vld [vmem:[%s11285_s3 + $0x42] ss:$8 sm:$0xf] }
  0x75   : > { %v7340_v41 = vadd.f32 %v925_v7, %v864_v10  ;;  %v7342_v1 = vadd.f32 %v926_v22, %v865_v34  ;;  %v7344_v52 = vadd.f32 %v927_v43, %v866_v30  ;;  %v6756_v35 = vld [vmem:[%s11285_s3 + $0x42] ss:$8 sm:$0xf0]  ;;  %v7352_v62 = vadd.f32 %v928_v58, %v867_v50  ;;  %v6757_v30 = vld [vmem:[%s11285_s3 + $0x43] ss:$8 sm:$0xf] }
  0x76   : > { %v7354_v54 = vadd.f32 %v929_v48, %v868_v0  ;;  %v7356_v51 = vadd.f32 %v930_v39, %v869_v17  ;;  %v7358_v10 = vadd.f32 %v931_v13, %v870_v40  ;;  %v6758_v34 = vld [vmem:[%s11285_s3 + $0x43] ss:$8 sm:$0xf0]  ;;  %v7366_v2 = vadd.f32 %v932_v11, %v871_v36  ;;  %v955_v17 = vld [vmem:[#allocation2] sm:$0xc0] }
  0x77   : > { %v7368_v33 = vadd.f32 %v933_v53, %v872_v5  ;;  %v7370_v50 = vadd.f32 %v934_v21, %v873_v4  ;;  %v7372_v0 = vadd.f32 %v935_v3, %v874_v63  ;;  %v7374_v61 = vadd.f32 %v936_v24, %v875_v32  ;;  %v7380_v6 = vld [vmem:[#allocation2 + $0x8] sm:$0xc0]  ;;  %v7382_v46 = vld [vmem:[#allocation2 + $0x10] sm:$0xc0]  ;;  %v7384_v7 = vld [vmem:[#allocation2 + $0x18] sm:$0xc0] }
  0x78   : > { %v7376_v40 = vadd.f32 %v937_v14, %v876_v55  ;;  %v7378_v47 = vadd.f32 %v938_v16, %v877_v44  ;;  %v986_v36 = vor.u32 %v6750_v9, %v6749_v8  ;;  %v7386_v5 = vld [vmem:[#allocation2 + $0x20] sm:$0xc0]  ;;  %v7388_v4 = vld [vmem:[#allocation2 + $0x28] sm:$0xc0]  ;;  %v7390_v63 = vld [vmem:[#allocation2 + $0x30] sm:$0xc0]  ;;  %v7392_v23 = vor.u32 %v6752_v31, %v6751_v49 }
  0x79   : > { %11607 = vst [vmem:[#allocation7_spill] sm:$0xff] %v7374_v61  ;;  %11610 = vst [vmem:[#allocation8_spill] sm:$0xff] %v7390_v63  ;;  %v7394_v32 = vor.u32 %v6754_v42, %v6753_v45  ;;  %v7396_v55 = vor.u32 %v6756_v35, %v6755_v29  ;;  %v7398_v44 = vor.u32 %v6758_v34, %v6757_v30  ;;  %v7400_v22 = vld [vmem:[#allocation2 + $0x38] sm:$0xc0]  ;;  %v7402_v43 = vld [vmem:[#allocation2 + $0x78] sm:$0x3f] }
  0x7a   : > { %11608 = vst [vmem:[#allocation14_spill] sm:$0xff] %v7376_v40  ;;  %11609 = vst [vmem:[#allocation5_spill] sm:$0xff] %v7378_v47  ;;  %v991_v38 = vrot.slane %v986_v36, %v7019_v18  ;;  %v995_v58 = vrot.slane %v986_v36, %v7021_v19  ;;  %v999_v48 = vrot.slane %v986_v36, %v7023_v20  ;;  %v7408_v59 = vld [vmem:[#allocation2 + $0x80] sm:$0x3f]  ;;  %v7410_v13 = vld [vmem:[#allocation2 + $0x88] sm:$0x3f] }
  0x7b   : > { %11611 = vst [vmem:[#allocation16_spill] sm:$0xff] %v7394_v32  ;;  %11612 = vst [vmem:[#allocation9_spill] sm:$0xff] %v7396_v55  ;;  %v1003_v39 = vrot.slane %v986_v36, %v7033_v25  ;;  %v7412_v15 = vld [vmem:[#allocation2 + $0x90] sm:$0x3f]  ;;  %v1007_v11 = vrot.slane %v986_v36, %v7035_v26  ;;  %v1011_v53 = vrot.slane %v986_v36, %v7037_v27  ;;  %v7418_v3 = vld [vmem:[#allocation2 + $0x98] sm:$0x3f] }
  0x7c   : > { %11613 = vst [vmem:[#allocation19_spill] sm:$0xff] %v7398_v44  ;;  %11614 = vst [vmem:[#allocation17_spill] sm:$0xff] %v7400_v22  ;;  %v1015_v57 = vrot.slane %v986_v36, %v7039_v28  ;;  %v1019_v21 = vrot.slane %v986_v36, %v7055_v37  ;;  %v7420_v8 = vld [vmem:[#allocation2 + $0xa0] sm:$0x3f]  ;;  %v7422_v9 = vld [vmem:[#allocation2 + $0xa8] sm:$0x3f]  ;;  %v1028_v24 = vmul.f32 %v991_v38, %v955_v17 }
  0x7d   : > { %11615 = vst [vmem:[#allocation10_spill] sm:$0xff] %v7408_v59  ;;  %11616 = vst [vmem:[#allocation18_spill] sm:$0xff] %v7410_v13  ;;  %v1029_v14 = vmul.f32 %v995_v58, %v7380_v6  ;;  %v1030_v16 = vmul.f32 %v999_v48, %v7382_v46  ;;  %v1031_v49 = vmul.f32 %v1003_v39, %v7384_v7  ;;  %v6759_v36 = vld [vmem:[%s11285_s3 + $0x44] ss:$8 sm:$0xf] }
  0x7e   : > { %11617 = vst [vmem:[#allocation6_spill] sm:$0xff] %v7412_v15  ;;  %11618 = vst [vmem:[#allocation15_spill] sm:$0xff] %v7418_v3  ;;  %v1032_v31 = vmul.f32 %v1007_v11, %v7386_v5  ;;  %v1033_v45 = vmul.f32 %v1011_v53, %v7388_v4  ;;  %v1034_v42 = vmul.f32 %v1015_v57, %v7390_v63  ;;  %v6760_v44 = vld [vmem:[%s11285_s3 + $0x44] ss:$8 sm:$0xf0] }
  0x7f   : > { %11619 = vst [vmem:[#allocation20_spill] sm:$0xff] %v7420_v8  ;;  %11620 = vst [vmem:[#allocation3_spill] sm:$0xff] %v7422_v9  ;;  %v1035_v29 = vmul.f32 %v1019_v21, %v7400_v22  ;;  %v1036_v35 = vmul.f32 %v991_v38, %v969_v12  ;;  %v1037_v30 = vmul.f32 %v995_v58, %v7402_v43  ;;  %v6761_v58 = vld [vmem:[%s11285_s3 + $0x45] ss:$8 sm:$0xf] }
  0x80   : > { %v1038_v34 = vmul.f32 %v999_v48, %v7408_v59  ;;  %v1039_v17 = vmul.f32 %v1003_v39, %v7410_v13  ;;  %v1040_v55 = vmul.f32 %v1007_v11, %v7412_v15  ;;  %v7442_v32 = vmul.f32 %v1011_v53, %v7418_v3  ;;  %v6762_v48 = vld [vmem:[%s11285_s3 + $0x45] ss:$8 sm:$0xf0]  ;;  %v6763_v53 = vld [vmem:[%s11285_s3 + $0x46] ss:$8 sm:$0xf] }
  0x81   : > { %v7445_v12 = vmul.f32 %v1015_v57, %v7420_v8  ;;  %v7448_v38 = vmul.f32 %v1019_v21, %v7422_v9  ;;  %v1061_v39 = vrot.slane %v1028_v24, 1  ;;  %v1062_v47 = vrot.slane %v1036_v35, 1  ;;  %v6764_v24 = vld [vmem:[%s11285_s3 + $0x46] ss:$8 sm:$0xf0] }
  0x82   : > { %v1064_v11 = vrot.slane %v1029_v14, 1  ;;  %v1065_v40 = vrot.slane %v1037_v30, 1  ;;  %v1067_v57 = vrot.slane %v1030_v16, 1  ;;  %v1068_v61 = vrot.slane %v1038_v34, 1 }
  0x83   : > { %v1070_v21 = vrot.slane %v1031_v49, 1  ;;  %v1071_v9 = vrot.slane %v1039_v17, 1  ;;  %v1073_v8 = vrot.slane %v1032_v31, 1  ;;  %v1074_v3 = vrot.slane %v1040_v55, 1 }
  0x84   : > { %v7459_v15 = vor.u32 %v6760_v44, %v6759_v36  ;;  %v7461_v13 = vor.u32 %v6762_v48, %v6761_v58  ;;  %v1063_v14 = vsel %vm1060_vm0, %v1061_v39, %v1062_v47  ;;  %v1066_v35 = vsel %vm1060_vm0, %v1064_v11, %v1065_v40 }
  0x85   : > { %v1076_v30 = vrot.slane %v1033_v45, 1  ;;  %v1077_v16 = vrot.slane %v7442_v32, 1  ;;  %v1069_v49 = vsel %vm1060_vm0, %v1067_v57, %v1068_v61  ;;  %v1079_v34 = vrot.slane %v1034_v42, 1 }
  0x86   : > { %11621 = vst [vmem:[#allocation4_spill] sm:$0xff] %v7459_v15  ;;  %11622 = vst [vmem:[#allocation11_spill] sm:$0xff] %v7461_v13  ;;  %v1080_v55 = vrot.slane %v7445_v12, 1  ;;  %v1082_v44 = vrot.slane %v1035_v29, 1  ;;  %v1072_v31 = vsel %vm1060_vm0, %v1070_v21, %v1071_v9  ;;  %v1075_v17 = vsel %vm1060_vm0, %v1073_v8, %v1074_v3 }
  0x87   : > { %v1083_v36 = vrot.slane %v7448_v38, 1  ;;  %v7474_v58 = vor.u32 %v6764_v24, %v6763_v53  ;;  %v1078_v48 = vsel %vm1060_vm0, %v1076_v30, %v1077_v16  ;;  %v7479_v32 = vadd.f32 %v1063_v14, %v7324_v60 }
  0x88   : > { %v1081_v45 = vsel %vm1060_vm0, %v1079_v34, %v1080_v55  ;;  %v7482_v42 = vadd.f32 %v1066_v35, %v7338_v56  ;;  %v7486_v12 = vadd.f32 %v1069_v49, %v7340_v41  ;;  %v7489_v8 = vadd.f32 %v1072_v31, %v7342_v1  ;;  %v11626_v49 = vld [vmem:[#allocation18_spill] sm:$0xff]  ;;  %v11628_v31 = vld [vmem:[#allocation15_spill] sm:$0xff] }
  0x89   : > { %11623 = vst [vmem:[#allocation12_spill] sm:$0xff] %v7474_v58  ;;  %v1084_v29 = vsel %vm1060_vm0, %v1082_v44, %v1083_v36  ;;  %v7492_v38 = vadd.f32 %v1075_v17, %v7344_v52  ;;  %v7495_v39 = vadd.f32 %v1078_v48, %v7352_v62  ;;  %v7498_v60 = vadd.f32 %v1081_v45, %v7354_v54  ;;  %v7518_v54 = vld [vmem:[#allocation2 + $0x40] sm:$0xc0]  ;;  %v11627_v34 = vld [vmem:[#allocation6_spill] sm:$0xff]  ;;  %v11629_v48 = vld [vmem:[#allocation20_spill] sm:$0xff] }
  0x8a   : > { %v7501_v56 = vadd.f32 %v1084_v29, %v7356_v51  ;;  %v7504_v11 = vadd.f32 %v1062_v47, %v7358_v10  ;;  %v7507_v41 = vadd.f32 %v1065_v40, %v7366_v2  ;;  %v7510_v1 = vadd.f32 %v1068_v61, %v7368_v33  ;;  %11624 = vst [vmem:[#allocation21_spill] sm:$0xff] %v7518_v54  ;;  %v7536_v47 = vld [vmem:[#allocation2 + $0xb0] sm:$0x3f] }
  0x8b   : > { %v7513_v52 = vadd.f32 %v1071_v9, %v7370_v50  ;;  %v7516_v62 = vadd.f32 %v1074_v3, %v7372_v0  ;;  %v1125_v51 = vrot.slane %v7392_v23, %v7019_v18  ;;  %v1129_v10 = vrot.slane %v7392_v23, %v7021_v19  ;;  %11625 = vst [vmem:[#allocation22_spill] sm:$0xff] %v7536_v47  ;;  %v11630_v29 = vld [vmem:[#allocation3_spill] sm:$0xff] }
  0x8c   : > { %v1133_v2 = vrot.slane %v7392_v23, %v7023_v20  ;;  %v1137_v33 = vrot.slane %v7392_v23, %v7033_v25  ;;  %v1141_v50 = vrot.slane %v7392_v23, %v7035_v26  ;;  %v1145_v0 = vrot.slane %v7392_v23, %v7037_v27 }
  0x8d   : > { %v1149_v61 = vrot.slane %v7392_v23, %v7039_v28  ;;  %v1153_v40 = vrot.slane %v7392_v23, %v7055_v37  ;;  %v1162_v3 = vmul.f32 %v1125_v51, %v7380_v6  ;;  %v1163_v9 = vmul.f32 %v1129_v10, %v7382_v46 }
  0x8e   : > { %v1164_v53 = vmul.f32 %v1133_v2, %v7384_v7  ;;  %v1165_v57 = vmul.f32 %v1137_v33, %v7386_v5  ;;  %v1166_v21 = vmul.f32 %v1141_v50, %v7388_v4  ;;  %v1167_v24 = vmul.f32 %v1145_v0, %v7390_v63 }
  0x8f   : > { %v1168_v14 = vmul.f32 %v1149_v61, %v7400_v22  ;;  %v1169_v35 = vmul.f32 %v1153_v40, %v7518_v54  ;;  %v1170_v23 = vmul.f32 %v1125_v51, %v7402_v43  ;;  %v1171_v30 = vmul.f32 %v1129_v10, %v7408_v59 }
  0x90   : > { %v1172_v6 = vmul.f32 %v1133_v2, %v11626_v49  ;;  %v1173_v44 = vmul.f32 %v1137_v33, %v11627_v34  ;;  %v1174_v17 = vmul.f32 %v1141_v50, %v11628_v31  ;;  %v7552_v45 = vmul.f32 %v1145_v0, %v11629_v48  ;;  %v11631_v33 = vld [vmem:[#allocation7_spill] sm:$0xff]  ;;  %v11632_v50 = vld [vmem:[#allocation14_spill] sm:$0xff] }
  0x91   : > { %v7555_v58 = vmul.f32 %v1149_v61, %v11630_v29  ;;  %v7558_v13 = vmul.f32 %v1153_v40, %v7536_v47  ;;  %v1194_v15 = vrot.slane %v1162_v3, 1  ;;  %v1195_v54 = vrot.slane %v1170_v23, 1  ;;  %v11633_v23 = vld [vmem:[#allocation5_spill] sm:$0xff] }
  0x92   : > { %v1197_v43 = vrot.slane %v1163_v9, 1  ;;  %v1198_v51 = vrot.slane %v1171_v30, 1  ;;  %v1200_v10 = vrot.slane %v1164_v53, 1  ;;  %v1201_v59 = vrot.slane %v1172_v6, 1 }
  0x93   : > { %v1203_v2 = vrot.slane %v1165_v57, 1  ;;  %v1204_v49 = vrot.slane %v1173_v44, 1  ;;  %v7561_v34 = vadd.f32 %v1077_v16, %v11631_v33  ;;  %v7564_v0 = vadd.f32 %v1080_v55, %v11632_v50 }
  0x94   : > { %v1206_v48 = vrot.slane %v1166_v21, 1  ;;  %v1207_v61 = vrot.slane %v1174_v17, 1  ;;  %v1196_v29 = vsel %vm1060_vm0, %v1194_v15, %v1195_v54  ;;  %v1199_v40 = vsel %vm1060_vm0, %v1197_v43, %v1198_v51 }
  0x95   : > { %v1209_v3 = vrot.slane %v1167_v24, 1  ;;  %v1210_v9 = vrot.slane %v7552_v45, 1  ;;  %v1116_v53 = vadd.f32 %v1083_v36, %v11633_v23  ;;  %v1212_v30 = vrot.slane %v1168_v14, 1  ;;  %v11638_v23 = vld [vmem:[#allocation10_spill] sm:$0xff] }
  0x96   : > { %v1213_v57 = vrot.slane %v7555_v58, 1  ;;  %v1215_v6 = vrot.slane %v1169_v35, 1  ;;  %v1202_v16 = vsel %vm1060_vm0, %v1200_v10, %v1201_v59  ;;  %v1205_v55 = vsel %vm1060_vm0, %v1203_v2, %v1204_v49 }
  0x97   : > { %v1208_v21 = vsel %vm1060_vm0, %v1206_v48, %v1207_v61  ;;  %v1216_v44 = vrot.slane %v7558_v13, 1  ;;  %v1211_v15 = vsel %vm1060_vm0, %v1209_v3, %v1210_v9  ;;  %v7578_v17 = vadd.f32 %v1196_v29, %v7479_v32 }
  0x98   : > { %v1214_v24 = vsel %vm1060_vm0, %v1212_v30, %v1213_v57  ;;  %v7581_v36 = vadd.f32 %v1199_v40, %v7482_v42  ;;  %v7585_v14 = vadd.f32 %v1202_v16, %v7486_v12  ;;  %v7588_v35 = vadd.f32 %v1205_v55, %v7489_v8  ;;  %v11640_v55 = vld [vmem:[#allocation6_spill] sm:$0xff] }
  0x99   : > { %v1217_v58 = vsel %vm1060_vm0, %v1215_v6, %v1216_v44  ;;  %v7591_v13 = vadd.f32 %v1208_v21, %v7492_v38  ;;  %v7594_v48 = vadd.f32 %v1211_v15, %v7495_v39  ;;  %v7597_v32 = vadd.f32 %v1214_v24, %v7498_v60  ;;  %v7617_v60 = vld [vmem:[#allocation2 + $0x48] sm:$0xc0]  ;;  %v11641_v15 = vld [vmem:[#allocation20_spill] sm:$0xff] }
  0x9a   : > { %v7600_v42 = vadd.f32 %v1217_v58, %v7501_v56  ;;  %v7603_v45 = vadd.f32 %v1195_v54, %v7504_v11  ;;  %v7606_v12 = vadd.f32 %v1198_v51, %v7507_v41  ;;  %v7609_v8 = vadd.f32 %v1201_v59, %v7510_v1  ;;  %11634 = vst [vmem:[#allocation7_spill] sm:$0xff] %v7617_v60  ;;  %v11635_v56 = vld [vmem:[#allocation16_spill] sm:$0xff]  ;;  %v11639_v6 = vld [vmem:[#allocation18_spill] sm:$0xff]  ;;  %v11642_v58 = vld [vmem:[#allocation3_spill] sm:$0xff] }
  0x9b   : > { %v7612_v38 = vadd.f32 %v1204_v49, %v7513_v52  ;;  %v7615_v39 = vadd.f32 %v1207_v61, %v7516_v62  ;;  %v1258_v29 = vrot.slane %v11635_v56, %v7019_v18  ;;  %v1262_v11 = vrot.slane %v11635_v56, %v7021_v19  ;;  %v7635_v49 = vld [vmem:[#allocation2 + $0xb8] sm:$0x3f]  ;;  %v11637_v61 = vld [vmem:[#allocation21_spill] sm:$0xff] }
  0x9c   : > { %v1266_v41 = vrot.slane %v11635_v56, %v7023_v20  ;;  %v1270_v59 = vrot.slane %v11635_v56, %v7033_v25  ;;  %v1274_v1 = vrot.slane %v11635_v56, %v7035_v26  ;;  %v1278_v52 = vrot.slane %v11635_v56, %v7037_v27  ;;  %11636 = vst [vmem:[#allocation14_spill] sm:$0xff] %v7635_v49 }
  0x9d   : > { %v1282_v62 = vrot.slane %v11635_v56, %v7039_v28  ;;  %v1286_v54 = vrot.slane %v11635_v56, %v7055_v37  ;;  %v1295_v43 = vmul.f32 %v1258_v29, %v7382_v46  ;;  %v1296_v51 = vmul.f32 %v1262_v11, %v7384_v7 }
  0x9e   : > { %v1297_v10 = vmul.f32 %v1266_v41, %v7386_v5  ;;  %v1298_v2 = vmul.f32 %v1270_v59, %v7388_v4  ;;  %v1299_v33 = vmul.f32 %v1274_v1, %v7390_v63  ;;  %v1300_v50 = vmul.f32 %v1278_v52, %v7400_v22 }
  0x9f   : > { %v1301_v40 = vmul.f32 %v1282_v62, %v11637_v61  ;;  %v1302_v3 = vmul.f32 %v1286_v54, %v7617_v60  ;;  %v1303_v30 = vmul.f32 %v1258_v29, %v11638_v23  ;;  %v1304_v16 = vmul.f32 %v1262_v11, %v11639_v6 }
  0xa0   : > { %v1305_v46 = vmul.f32 %v1266_v41, %v11640_v55  ;;  %v1306_v21 = vmul.f32 %v1270_v59, %v11628_v31  ;;  %v1307_v24 = vmul.f32 %v1274_v1, %v11641_v15  ;;  %v7651_v56 = vmul.f32 %v1278_v52, %v11642_v58 }
  0xa1   : > { %v7654_v63 = vmul.f32 %v1282_v62, %v7536_v47  ;;  %v7657_v61 = vmul.f32 %v1286_v54, %v7635_v49  ;;  %v1327_v60 = vrot.slane %v1295_v43, 1  ;;  %v1328_v22 = vrot.slane %v1303_v30, 1 }
  0xa2   : > { %v1330_v29 = vrot.slane %v1296_v51, 1  ;;  %v1331_v23 = vrot.slane %v1304_v16, 1  ;;  %v1333_v11 = vrot.slane %v1297_v10, 1  ;;  %v1334_v6 = vrot.slane %v1305_v46, 1 }
  0xa3   : > { %v1336_v41 = vrot.slane %v1298_v2, 1  ;;  %v1337_v55 = vrot.slane %v1306_v21, 1  ;;  %v7660_v59 = vadd.f32 %v1210_v9, %v7561_v34  ;;  %v7663_v1 = vadd.f32 %v1213_v57, %v7564_v0 }
  0xa4   : > { %v1339_v52 = vrot.slane %v1299_v33, 1  ;;  %v1340_v62 = vrot.slane %v1307_v24, 1  ;;  %v7665_v47 = vadd.f32 %v1216_v44, %v1116_v53  ;;  %v1329_v54 = vsel %vm1060_vm0, %v1327_v60, %v1328_v22 }
  0xa5   : > { %v1342_v43 = vrot.slane %v1300_v50, 1  ;;  %v1343_v51 = vrot.slane %v7651_v56, 1  ;;  %v1332_v10 = vsel %vm1060_vm0, %v1330_v29, %v1331_v23  ;;  %v1345_v30 = vrot.slane %v1301_v40, 1 }
  0xa6   : > { %v1346_v2 = vrot.slane %v7654_v63, 1  ;;  %v1348_v16 = vrot.slane %v1302_v3, 1  ;;  %v1335_v34 = vsel %vm1060_vm0, %v1333_v11, %v1334_v6  ;;  %v1338_v0 = vsel %vm1060_vm0, %v1336_v41, %v1337_v55  ;;  %v11647_v41 = vld [vmem:[#allocation17_spill] sm:$0xff] }
  0xa7   : > { %v1341_v9 = vsel %vm1060_vm0, %v1339_v52, %v1340_v62  ;;  %v1349_v53 = vrot.slane %v7657_v61, 1  ;;  %v1344_v57 = vsel %vm1060_vm0, %v1342_v43, %v1343_v51  ;;  %v7678_v60 = vadd.f32 %v1329_v54, %v7578_v17  ;;  %v11649_v43 = vld [vmem:[#allocation7_spill] sm:$0xff] }
  0xa8   : > { %v1347_v44 = vsel %vm1060_vm0, %v1345_v30, %v1346_v2  ;;  %v7681_v33 = vadd.f32 %v1332_v10, %v7581_v36  ;;  %v7685_v50 = vadd.f32 %v1335_v34, %v7585_v14  ;;  %v7688_v40 = vadd.f32 %v1338_v0, %v7588_v35  ;;  %v11651_v0 = vld [vmem:[#allocation6_spill] sm:$0xff] }
  0xa9   : > { %v1350_v63 = vsel %vm1060_vm0, %v1348_v16, %v1349_v53  ;;  %v7691_v61 = vadd.f32 %v1341_v9, %v7591_v13  ;;  %v7694_v3 = vadd.f32 %v1344_v57, %v7594_v48  ;;  %v7697_v17 = vadd.f32 %v1347_v44, %v7597_v32  ;;  %v7717_v32 = vld [vmem:[#allocation2 + $0x50] sm:$0xc0]  ;;  %v11650_v16 = vld [vmem:[#allocation18_spill] sm:$0xff] }
  0xaa   : > { %v7700_v36 = vadd.f32 %v1350_v63, %v7600_v42  ;;  %v7703_v46 = vadd.f32 %v1328_v22, %v7603_v45  ;;  %v7706_v14 = vadd.f32 %v1331_v23, %v7606_v12  ;;  %v7709_v35 = vadd.f32 %v1334_v6, %v7609_v8  ;;  %11643 = vst [vmem:[#allocation5_spill] sm:$0xff] %v7717_v32  ;;  %v11644_v42 = vld [vmem:[#allocation9_spill] sm:$0xff]  ;;  %v11646_v23 = vld [vmem:[#allocation8_spill] sm:$0xff]  ;;  %v11652_v63 = vld [vmem:[#allocation22_spill] sm:$0xff] }
  0xab   : > { %v7712_v13 = vadd.f32 %v1337_v55, %v7612_v38  ;;  %v7715_v48 = vadd.f32 %v1340_v62, %v7615_v39  ;;  %v1391_v21 = vrot.slane %v11644_v42, %v7019_v18  ;;  %v1395_v22 = vrot.slane %v11644_v42, %v7021_v19  ;;  %v7735_v55 = vld [vmem:[#allocation2 + $0xc0] sm:$0x3f] }
  0xac   : > { %v1399_v45 = vrot.slane %v11644_v42, %v7023_v20  ;;  %v1403_v12 = vrot.slane %v11644_v42, %v7033_v25  ;;  %v1407_v8 = vrot.slane %v11644_v42, %v7035_v26  ;;  %v1411_v38 = vrot.slane %v11644_v42, %v7037_v27  ;;  %11645 = vst [vmem:[#allocation16_spill] sm:$0xff] %v7735_v55  ;;  %v11648_v62 = vld [vmem:[#allocation21_spill] sm:$0xff] }
  0xad   : > { %v1415_v39 = vrot.slane %v11644_v42, %v7039_v28  ;;  %v1419_v6 = vrot.slane %v11644_v42, %v7055_v37  ;;  %v1428_v24 = vmul.f32 %v1391_v21, %v7384_v7  ;;  %v1429_v56 = vmul.f32 %v1395_v22, %v7386_v5 }
  0xae   : > { %v1430_v29 = vmul.f32 %v1399_v45, %v7388_v4  ;;  %v1431_v11 = vmul.f32 %v1403_v12, %v11646_v23  ;;  %v1432_v52 = vmul.f32 %v1407_v8, %v11647_v41  ;;  %v1433_v54 = vmul.f32 %v1411_v38, %v11648_v62 }
  0xaf   : > { %v1434_v10 = vmul.f32 %v1415_v39, %v11649_v43  ;;  %v1435_v30 = vmul.f32 %v1419_v6, %v7717_v32  ;;  %v1436_v34 = vmul.f32 %v1391_v21, %v11650_v16  ;;  %v1437_v9 = vmul.f32 %v1395_v22, %v11651_v0 }
  0xb0   : > { %v1438_v7 = vmul.f32 %v1399_v45, %v11628_v31  ;;  %v1439_v57 = vmul.f32 %v1403_v12, %v11641_v15  ;;  %v1440_v44 = vmul.f32 %v1407_v8, %v11642_v58  ;;  %v7751_v42 = vmul.f32 %v1411_v38, %v11652_v63 }
  0xb1   : > { %v7754_v41 = vmul.f32 %v1415_v39, %v7635_v49  ;;  %v7757_v43 = vmul.f32 %v1419_v6, %v7735_v55  ;;  %v1460_v32 = vrot.slane %v1428_v24, 1  ;;  %v1461_v62 = vrot.slane %v1436_v34, 1 }
  0xb2   : > { %v1463_v21 = vrot.slane %v1429_v56, 1  ;;  %v1464_v16 = vrot.slane %v1437_v9, 1  ;;  %v1466_v22 = vrot.slane %v1430_v29, 1  ;;  %v1467_v0 = vrot.slane %v1438_v7, 1 }
  0xb3   : > { %v1469_v45 = vrot.slane %v1431_v11, 1  ;;  %v1470_v31 = vrot.slane %v1439_v57, 1  ;;  %v7760_v12 = vadd.f32 %v1343_v51, %v7660_v59  ;;  %v7763_v8 = vadd.f32 %v1346_v2, %v7663_v1 }
  0xb4   : > { %v1472_v38 = vrot.slane %v1432_v52, 1  ;;  %v1473_v39 = vrot.slane %v1440_v44, 1  ;;  %v7766_v49 = vadd.f32 %v1349_v53, %v7665_v47  ;;  %v1462_v6 = vsel %vm1060_vm0, %v1460_v32, %v1461_v62 }
  0xb5   : > { %v1475_v24 = vrot.slane %v1433_v54, 1  ;;  %v1476_v56 = vrot.slane %v7751_v42, 1  ;;  %v1465_v29 = vsel %vm1060_vm0, %v1463_v21, %v1464_v16  ;;  %v1478_v11 = vrot.slane %v1434_v10, 1 }
  0xb6   : > { %v1479_v34 = vrot.slane %v7754_v41, 1  ;;  %v1481_v59 = vrot.slane %v1435_v30, 1  ;;  %v1468_v51 = vsel %vm1060_vm0, %v1466_v22, %v1467_v0  ;;  %v1471_v1 = vsel %vm1060_vm0, %v1469_v45, %v1470_v31  ;;  %v11657_v45 = vld [vmem:[#allocation21_spill] sm:$0xff] }
  0xb7   : > { %v1474_v2 = vsel %vm1060_vm0, %v1472_v38, %v1473_v39  ;;  %v1482_v47 = vrot.slane %v7757_v43, 1  ;;  %v1477_v53 = vsel %vm1060_vm0, %v1475_v24, %v1476_v56  ;;  %v7779_v52 = vadd.f32 %v1462_v6, %v7678_v60  ;;  %v11659_v24 = vld [vmem:[#allocation5_spill] sm:$0xff] }
  0xb8   : > { %v1480_v32 = vsel %vm1060_vm0, %v1478_v11, %v1479_v34  ;;  %v7782_v54 = vadd.f32 %v1465_v29, %v7681_v33  ;;  %v7786_v10 = vadd.f32 %v1468_v51, %v7685_v50  ;;  %v7789_v30 = vadd.f32 %v1471_v1, %v7688_v40  ;;  %v11661_v1 = vld [vmem:[#allocation15_spill] sm:$0xff] }
  0xb9   : > { %v1483_v41 = vsel %vm1060_vm0, %v1481_v59, %v1482_v47  ;;  %v7792_v43 = vadd.f32 %v1474_v2, %v7691_v61  ;;  %v7795_v9 = vadd.f32 %v1477_v53, %v7694_v3  ;;  %v7798_v60 = vadd.f32 %v1480_v32, %v7697_v17  ;;  %v7818_v17 = vld [vmem:[#allocation2 + $0x58] sm:$0xc0]  ;;  %v11660_v59 = vld [vmem:[#allocation6_spill] sm:$0xff] }
  0xba   : > { %v7801_v33 = vadd.f32 %v1483_v41, %v7700_v36  ;;  %v7804_v7 = vadd.f32 %v1461_v62, %v7703_v46  ;;  %v7807_v50 = vadd.f32 %v1464_v16, %v7706_v14  ;;  %v7810_v40 = vadd.f32 %v1467_v0, %v7709_v35  ;;  %11653 = vst [vmem:[#allocation10_spill] sm:$0xff] %v7818_v17  ;;  %v11654_v36 = vld [vmem:[#allocation19_spill] sm:$0xff]  ;;  %v7836_v0 = vld [vmem:[#allocation2 + $0xc8] sm:$0x3f]  ;;  %v11656_v16 = vld [vmem:[#allocation17_spill] sm:$0xff] }
  0xbb   : > { %v7813_v61 = vadd.f32 %v1470_v31, %v7712_v13  ;;  %v7816_v3 = vadd.f32 %v1473_v39, %v7715_v48  ;;  %v1524_v57 = vrot.slane %v11654_v36, %v7019_v18  ;;  %v1528_v46 = vrot.slane %v11654_v36, %v7021_v19  ;;  %11655 = vst [vmem:[#allocation9_spill] sm:$0xff] %v7836_v0  ;;  %v11658_v39 = vld [vmem:[#allocation7_spill] sm:$0xff]  ;;  %v11662_v41 = vld [vmem:[#allocation14_spill] sm:$0xff] }
  0xbc   : > { %v1532_v14 = vrot.slane %v11654_v36, %v7023_v20  ;;  %v1536_v35 = vrot.slane %v11654_v36, %v7033_v25  ;;  %v1540_v31 = vrot.slane %v11654_v36, %v7035_v26  ;;  %v1544_v13 = vrot.slane %v11654_v36, %v7037_v27 }
  0xbd   : > { %v1548_v48 = vrot.slane %v11654_v36, %v7039_v28  ;;  %v1552_v62 = vrot.slane %v11654_v36, %v7055_v37  ;;  %v1561_v44 = vmul.f32 %v1524_v57, %v7386_v5  ;;  %v1562_v42 = vmul.f32 %v1528_v46, %v7388_v4 }
  0xbe   : > { %v1563_v21 = vmul.f32 %v1532_v14, %v11646_v23  ;;  %v1564_v22 = vmul.f32 %v1536_v35, %v11656_v16  ;;  %v1565_v38 = vmul.f32 %v1540_v31, %v11657_v45  ;;  %v1566_v6 = vmul.f32 %v1544_v13, %v11658_v39 }
  0xbf   : > { %v1567_v29 = vmul.f32 %v1548_v48, %v11659_v24  ;;  %v1568_v11 = vmul.f32 %v1552_v62, %v7818_v17  ;;  %v1569_v51 = vmul.f32 %v1524_v57, %v11660_v59  ;;  %v1570_v2 = vmul.f32 %v1528_v46, %v11661_v1 }
  0xc0   : > { %v1571_v5 = vmul.f32 %v1532_v14, %v11641_v15  ;;  %v1572_v53 = vmul.f32 %v1536_v35, %v11642_v58  ;;  %v1573_v32 = vmul.f32 %v1540_v31, %v11652_v63  ;;  %v7852_v36 = vmul.f32 %v1544_v13, %v11662_v41 }
  0xc1   : > { %v7855_v45 = vmul.f32 %v1548_v48, %v7735_v55  ;;  %v7858_v24 = vmul.f32 %v1552_v62, %v7836_v0  ;;  %v1593_v17 = vrot.slane %v1561_v44, 1  ;;  %v1594_v39 = vrot.slane %v1569_v51, 1 }
  0xc2   : > { %v1596_v57 = vrot.slane %v1562_v42, 1  ;;  %v1597_v59 = vrot.slane %v1570_v2, 1  ;;  %v1599_v46 = vrot.slane %v1563_v21, 1  ;;  %v1600_v1 = vrot.slane %v1571_v5, 1 }
  0xc3   : > { %v1602_v14 = vrot.slane %v1564_v22, 1  ;;  %v1603_v15 = vrot.slane %v1572_v53, 1  ;;  %v7861_v35 = vadd.f32 %v1476_v56, %v7760_v12  ;;  %v7864_v31 = vadd.f32 %v1479_v34, %v7763_v8 }
  0xc4   : > { %v1605_v13 = vrot.slane %v1565_v38, 1  ;;  %v1606_v48 = vrot.slane %v1573_v32, 1  ;;  %v7867_v55 = vadd.f32 %v1482_v47, %v7766_v49  ;;  %v1595_v62 = vsel %vm1060_vm0, %v1593_v17, %v1594_v39 }
  0xc5   : > { %v1608_v44 = vrot.slane %v1566_v6, 1  ;;  %v1609_v42 = vrot.slane %v7852_v36, 1  ;;  %v1598_v21 = vsel %vm1060_vm0, %v1596_v57, %v1597_v59  ;;  %v1611_v22 = vrot.slane %v1567_v29, 1 }
  0xc6   : > { %v1612_v51 = vrot.slane %v7855_v45, 1  ;;  %v1614_v12 = vrot.slane %v1568_v11, 1  ;;  %v1601_v56 = vsel %vm1060_vm0, %v1599_v46, %v1600_v1  ;;  %v1604_v8 = vsel %vm1060_vm0, %v1602_v14, %v1603_v15  ;;  %v11666_v14 = vld [vmem:[#allocation7_spill] sm:$0xff] }
  0xc7   : > { %v1607_v34 = vsel %vm1060_vm0, %v1605_v13, %v1606_v48  ;;  %v1615_v49 = vrot.slane %v7858_v24, 1  ;;  %v1610_v47 = vsel %vm1060_vm0, %v1608_v44, %v1609_v42  ;;  %v7880_v38 = vadd.f32 %v1595_v62, %v7779_v52  ;;  %v11668_v44 = vld [vmem:[#allocation10_spill] sm:$0xff] }
  0xc8   : > { %v1613_v17 = vsel %vm1060_vm0, %v1611_v22, %v1612_v51  ;;  %v7883_v6 = vadd.f32 %v1598_v21, %v7782_v54  ;;  %v7887_v29 = vadd.f32 %v1601_v56, %v7786_v10  ;;  %v7890_v11 = vadd.f32 %v1604_v8, %v7789_v30  ;;  %v11670_v8 = vld [vmem:[#allocation20_spill] sm:$0xff] }
  0xc9   : > { %v1616_v45 = vsel %vm1060_vm0, %v1614_v12, %v1615_v49  ;;  %v7893_v24 = vadd.f32 %v1607_v34, %v7792_v43  ;;  %v7896_v2 = vadd.f32 %v1610_v47, %v7795_v9  ;;  %v7899_v52 = vadd.f32 %v1613_v17, %v7798_v60  ;;  %v7919_v60 = vld [vmem:[#allocation2 + $0x60] sm:$0xc0]  ;;  %v11669_v12 = vld [vmem:[#allocation15_spill] sm:$0xff] }
  0xca   : > { %v7902_v54 = vadd.f32 %v1616_v45, %v7801_v33  ;;  %v7905_v5 = vadd.f32 %v1594_v39, %v7804_v7  ;;  %v7908_v10 = vadd.f32 %v1597_v59, %v7807_v50  ;;  %v7911_v30 = vadd.f32 %v1600_v1, %v7810_v40  ;;  %11663 = vst [vmem:[#allocation8_spill] sm:$0xff] %v7919_v60  ;;  %v11664_v33 = vld [vmem:[#allocation4_spill] sm:$0xff]  ;;  %v7937_v1 = vld [vmem:[#allocation2 + $0xd0] sm:$0x3f]  ;;  %v11665_v59 = vld [vmem:[#allocation21_spill] sm:$0xff] }
  0xcb   : > { %v7914_v43 = vadd.f32 %v1603_v15, %v7813_v61  ;;  %v7917_v9 = vadd.f32 %v1606_v48, %v7816_v3  ;;  %v1657_v53 = vrot.slane %v11664_v33, %v7019_v18  ;;  %v1661_v7 = vrot.slane %v11664_v33, %v7021_v19  ;;  %v11667_v48 = vld [vmem:[#allocation5_spill] sm:$0xff]  ;;  %v11671_v45 = vld [vmem:[#allocation16_spill] sm:$0xff] }
  0xcc   : > { %v1665_v50 = vrot.slane %v11664_v33, %v7023_v20  ;;  %v1669_v40 = vrot.slane %v11664_v33, %v7033_v25  ;;  %v1673_v15 = vrot.slane %v11664_v33, %v7035_v26  ;;  %v1677_v61 = vrot.slane %v11664_v33, %v7037_v27 }
  0xcd   : > { %v1681_v3 = vrot.slane %v11664_v33, %v7039_v28  ;;  %v1685_v39 = vrot.slane %v11664_v33, %v7055_v37  ;;  %v1694_v32 = vmul.f32 %v1657_v53, %v7388_v4  ;;  %v1695_v36 = vmul.f32 %v1661_v7, %v11646_v23 }
  0xce   : > { %v1696_v57 = vmul.f32 %v1665_v50, %v11656_v16  ;;  %v1697_v46 = vmul.f32 %v1669_v40, %v11665_v59  ;;  %v1698_v13 = vmul.f32 %v1673_v15, %v11666_v14  ;;  %v1699_v62 = vmul.f32 %v1677_v61, %v11667_v48 }
  0xcf   : > { %v1700_v21 = vmul.f32 %v1681_v3, %v11668_v44  ;;  %v1701_v22 = vmul.f32 %v1685_v39, %v7919_v60  ;;  %v1702_v56 = vmul.f32 %v1657_v53, %v11669_v12  ;;  %v1703_v34 = vmul.f32 %v1661_v7, %v11670_v8 }
  0xd0   : > { %v1704_v4 = vmul.f32 %v1665_v50, %v11642_v58  ;;  %v1705_v47 = vmul.f32 %v1669_v40, %v11652_v63  ;;  %v1706_v17 = vmul.f32 %v1673_v15, %v11662_v41  ;;  %v7953_v33 = vmul.f32 %v1677_v61, %v11671_v45 }
  0xd1   : > { %v7956_v14 = vmul.f32 %v1681_v3, %v7836_v0  ;;  %v7959_v44 = vmul.f32 %v1685_v39, %v7937_v1  ;;  %v1726_v60 = vrot.slane %v1694_v32, 1  ;;  %v1727_v48 = vrot.slane %v1702_v56, 1 }
  0xd2   : > { %v1729_v53 = vrot.slane %v1695_v36, 1  ;;  %v1730_v12 = vrot.slane %v1703_v34, 1  ;;  %v1732_v7 = vrot.slane %v1696_v57, 1  ;;  %v1733_v8 = vrot.slane %v1704_v4, 1 }
  0xd3   : > { %v1735_v50 = vrot.slane %v1697_v46, 1  ;;  %v1736_v58 = vrot.slane %v1705_v47, 1  ;;  %v7962_v40 = vadd.f32 %v1609_v42, %v7861_v35  ;;  %v7965_v15 = vadd.f32 %v1612_v51, %v7864_v31  ;;  %v11672_v47 = vld [vmem:[#allocation11_spill] sm:$0xff] }
  0xd4   : > { %v1738_v61 = vrot.slane %v1698_v13, 1  ;;  %v1739_v3 = vrot.slane %v1706_v17, 1  ;;  %v7968_v0 = vadd.f32 %v1615_v49, %v7867_v55  ;;  %v1728_v39 = vsel %vm1060_vm0, %v1726_v60, %v1727_v48 }
  0xd5   : > { %v1741_v32 = vrot.slane %v1699_v62, 1  ;;  %v1742_v36 = vrot.slane %v7953_v33, 1  ;;  %v1731_v57 = vsel %vm1060_vm0, %v1729_v53, %v1730_v12  ;;  %v1744_v46 = vrot.slane %v1700_v21, 1 }
  0xd6   : > { %v1745_v56 = vrot.slane %v7956_v14, 1  ;;  %v1747_v35 = vrot.slane %v1701_v22, 1  ;;  %v1734_v42 = vsel %vm1060_vm0, %v1732_v7, %v1733_v8  ;;  %v1737_v31 = vsel %vm1060_vm0, %v1735_v50, %v1736_v58  ;;  %v11674_v50 = vld [vmem:[#allocation5_spill] sm:$0xff] }
  0xd7   : > { %v1740_v51 = vsel %vm1060_vm0, %v1738_v61, %v1739_v3  ;;  %v1748_v55 = vrot.slane %v7959_v44, 1  ;;  %v1743_v49 = vsel %vm1060_vm0, %v1741_v32, %v1742_v36  ;;  %v7981_v13 = vadd.f32 %v1728_v39, %v7880_v38  ;;  %v11676_v32 = vld [vmem:[#allocation8_spill] sm:$0xff] }
  0xd8   : > { %v1746_v60 = vsel %vm1060_vm0, %v1744_v46, %v1745_v56  ;;  %v7984_v62 = vadd.f32 %v1731_v57, %v7883_v6  ;;  %v7988_v21 = vadd.f32 %v1734_v42, %v7887_v29  ;;  %v7991_v22 = vadd.f32 %v1737_v31, %v7890_v11  ;;  %v11678_v31 = vld [vmem:[#allocation3_spill] sm:$0xff] }
  0xd9   : > { %v1749_v14 = vsel %vm1060_vm0, %v1747_v35, %v1748_v55  ;;  %v7994_v44 = vadd.f32 %v1740_v51, %v7893_v24  ;;  %v7997_v34 = vadd.f32 %v1743_v49, %v7896_v2  ;;  %v8000_v38 = vadd.f32 %v1746_v60, %v7899_v52  ;;  %v968_v52 = vld [vmem:[#allocation2 + $0x68] sm:$0xc0]  ;;  %v11677_v35 = vld [vmem:[#allocation20_spill] sm:$0xff] }
  0xda   : > { %v8003_v6 = vadd.f32 %v1749_v14, %v7902_v54  ;;  %v8006_v4 = vadd.f32 %v1727_v48, %v7905_v5  ;;  %v8009_v29 = vadd.f32 %v1730_v12, %v7908_v10  ;;  %v8012_v11 = vadd.f32 %v1733_v8, %v7911_v30  ;;  %v982_v8 = vld [vmem:[#allocation2 + $0xd8] sm:$0x3f]  ;;  %v11673_v12 = vld [vmem:[#allocation7_spill] sm:$0xff] }
  0xdb   : > { %v8015_v24 = vadd.f32 %v1736_v58, %v7914_v43  ;;  %v8018_v2 = vadd.f32 %v1739_v3, %v7917_v9  ;;  %v1790_v54 = vrot.slane %v11672_v47, %v7019_v18  ;;  %v1794_v5 = vrot.slane %v11672_v47, %v7021_v19  ;;  %v11675_v3 = vld [vmem:[#allocation10_spill] sm:$0xff] }
  0xdc   : > { %v1798_v10 = vrot.slane %v11672_v47, %v7023_v20  ;;  %v1802_v30 = vrot.slane %v11672_v47, %v7033_v25  ;;  %v1806_v58 = vrot.slane %v11672_v47, %v7035_v26  ;;  %v1810_v43 = vrot.slane %v11672_v47, %v7037_v27 }
  0xdd   : > { %v1814_v9 = vrot.slane %v11672_v47, %v7039_v28  ;;  %v1818_v48 = vrot.slane %v11672_v47, %v7055_v37  ;;  %v1827_v17 = vmul.f32 %v1790_v54, %v11646_v23  ;;  %v1828_v33 = vmul.f32 %v1794_v5, %v11656_v16 }
  0xde   : > { %v1829_v53 = vmul.f32 %v1798_v10, %v11665_v59  ;;  %v1830_v7 = vmul.f32 %v1802_v30, %v11673_v12  ;;  %v1831_v61 = vmul.f32 %v1806_v58, %v11674_v50  ;;  %v1832_v39 = vmul.f32 %v1810_v43, %v11675_v3  ;;  %v11679_v59 = vld [vmem:[#allocation9_spill] sm:$0xff] }
  0xdf   : > { %v1833_v57 = vmul.f32 %v1814_v9, %v11676_v32  ;;  %v1834_v46 = vmul.f32 %v1818_v48, %v968_v52  ;;  %v1835_v42 = vmul.f32 %v1790_v54, %v11677_v35  ;;  %v1836_v51 = vmul.f32 %v1794_v5, %v11678_v31  ;;  %v8107_v31 = vld [vmem:[#allocation2 + $0x20] sm:$0x80] }
  0xe0   : > { %v1837_v49 = vmul.f32 %v1798_v10, %v11652_v63  ;;  %v1838_v23 = vmul.f32 %v1802_v30, %v11662_v41  ;;  %v1839_v16 = vmul.f32 %v1806_v58, %v11671_v45  ;;  %v8049_v60 = vmul.f32 %v1810_v43, %v11679_v59  ;;  %11681 = vst [vmem:[#allocation22_spill] sm:$0xff] %v8107_v31 }
  0xe1   : > { %v8052_v14 = vmul.f32 %v1814_v9, %v7937_v1  ;;  %v8054_v47 = vmul.f32 %v1818_v48, %v982_v8  ;;  %v1859_v12 = vrot.slane %v1827_v17, 1  ;;  %v1860_v52 = vrot.slane %v1835_v42, 1 }
  0xe2   : > { %v1862_v50 = vrot.slane %v1828_v33, 1  ;;  %v1863_v54 = vrot.slane %v1836_v51, 1  ;;  %v1865_v3 = vrot.slane %v1829_v53, 1  ;;  %v1866_v5 = vrot.slane %v1837_v49, 1  ;;  %v8123_v51 = vld [vmem:[#allocation2 + $0x8] sm:$0x80] }
  0xe3   : > { %v1868_v32 = vrot.slane %v1830_v7, 1  ;;  %v1869_v63 = vrot.slane %v1838_v23, 1  ;;  %v1779_v41 = vadd.f32 %v1742_v36, %v7962_v40  ;;  %v8058_v45 = vadd.f32 %v1745_v56, %v7965_v15  ;;  %v8125_v49 = vld [vmem:[#allocation2 + $0x10] sm:$0x80] }
  0xe4   : > { %v1871_v10 = vrot.slane %v1831_v61, 1  ;;  %v1872_v30 = vrot.slane %v1839_v16, 1  ;;  %v8061_v1 = vadd.f32 %v1748_v55, %v7968_v0  ;;  %v1861_v58 = vsel %vm1060_vm0, %v1859_v12, %v1860_v52  ;;  %v8127_v23 = vld [vmem:[#allocation2 + $0x30] sm:$0x80]  ;;  %v8129_v16 = vld [vmem:[#allocation2 + $0x38] sm:$0x80] }
  0xe5   : > { %v1874_v43 = vrot.slane %v1832_v39, 1  ;;  %v1875_v9 = vrot.slane %v8049_v60, 1  ;;  %v1864_v48 = vsel %vm1060_vm0, %v1862_v50, %v1863_v54  ;;  %v1877_v8 = vrot.slane %v1833_v57, 1  ;;  %11683 = vst [vmem:[#allocation17_spill] sm:$0xff] %v8127_v23  ;;  %11684 = vst [vmem:[#allocation6_spill] sm:$0xff] %v8129_v16 }
  0xe6   : > { %v11367_v17 = vrot.slane %v8052_v14, 1  ;;  %v1880_v33 = vrot.slane %v1834_v46, 1  ;;  %v1867_v40 = vsel %vm1060_vm0, %v1865_v3, %v1866_v5  ;;  %v1870_v15 = vsel %vm1060_vm0, %v1868_v32, %v1869_v63  ;;  %v1929_v12 = vld [vmem:[#allocation2 + $0x70] sm:$0x7f]  ;;  %v8143_v50 = vld [vmem:[#allocation2 + $0x80] sm:$0x7f] }
  0xe7   : > { %v1876_v36 = vsel %vm1060_vm0, %v1874_v43, %v1875_v9  ;;  %v11366_v0 = vrot.slane %v8054_v47, 1  ;;  %v1873_v56 = vsel %vm1060_vm0, %v1871_v10, %v1872_v30  ;;  %v8076_v53 = vadd.f32 %v1861_v58, %v7981_v13  ;;  %11688 = vst [vmem:[#allocation21_spill] sm:$0xff] %v8143_v50  ;;  %v8155_v10 = vld [vmem:[#allocation2 + $0x90] sm:$0x7f]  ;;  %v8159_v58 = vld [vmem:[#allocation2 + $0xa0] sm:$0x7f] }
  0xe8   : > { %v1879_v55 = vsel %vm1060_vm0, %v1877_v8, %v11367_v17  ;;  %v8079_v7 = vadd.f32 %v1864_v48, %v7984_v62  ;;  %v8085_v39 = vadd.f32 %v1867_v40, %v7988_v21  ;;  %v8088_v57 = vadd.f32 %v1870_v15, %v7991_v22  ;;  %v8105_v21 = vld [vmem:[#allocation2 + $0x18] sm:$0x80]  ;;  %v8109_v22 = vld [vmem:[#allocation2 + $0x28] sm:$0x80]  ;;  %11689 = vst [vmem:[#allocation15_spill] sm:$0xff] %v8155_v10 }
  0xe9   : > { %v1882_v61 = vsel %vm1060_vm0, %v1880_v33, %v11366_v0  ;;  %v8091_v46 = vadd.f32 %v1873_v56, %v7994_v44  ;;  %v8094_v35 = vadd.f32 %v1876_v36, %v7997_v34  ;;  %v8097_v13 = vadd.f32 %v1879_v55, %v8000_v38  ;;  %11680 = vst [vmem:[#allocation18_spill] sm:$0xff] %v8105_v21  ;;  %v8163_v33 = vld [vmem:[#allocation2 + $0xa8] sm:$0x7f] }
  0xea   : > { %v8100_v62 = vadd.f32 %v1882_v61, %v8003_v6  ;;  %v8103_v42 = vadd.f32 %v1860_v52, %v8006_v4  ;;  %11682 = vst [vmem:[#allocation19_spill] sm:$0xff] %v8109_v22  ;;  %v8112_v44 = vadd.f32 %v1863_v54, %v8009_v29  ;;  %v8115_v34 = vadd.f32 %v1866_v5, %v8012_v11  ;;  %v1915_v4 = vld [vmem:[#allocation2] sm:$0x80]  ;;  %v8131_v29 = vld [vmem:[#allocation2 + $0x88] sm:$0x7f]  ;;  %v11686_v11 = vld [vmem:[#allocation12_spill] sm:$0xff] }
  0xeb   : > { %v8118_v38 = vadd.f32 %v1869_v63, %v8015_v24  ;;  %v8121_v6 = vadd.f32 %v1872_v30, %v8018_v2  ;;  %11685 = vst [vmem:[#allocation14_spill] sm:$0xff] %v8131_v29  ;;  %v1951_v59 = vrot.slane %v11686_v11, %v7019_v18  ;;  %v1955_v24 = vrot.slane %v11686_v11, %v7021_v19  ;;  %v8141_v52 = vld [vmem:[#allocation2 + $0x78] sm:$0x7f] }
  0xec   : > { %v1959_v2 = vrot.slane %v11686_v11, %v7023_v20  ;;  %v1963_v60 = vrot.slane %v11686_v11, %v7033_v25  ;;  %11687 = vst [vmem:[#allocation4_spill] sm:$0xff] %v8141_v52  ;;  %v1967_v54 = vrot.slane %v11686_v11, %v7035_v26  ;;  %v1971_v3 = vrot.slane %v11686_v11, %v7037_v27  ;;  %v8157_v30 = vld [vmem:[#allocation2 + $0x98] sm:$0x7f] }
  0xed   : > { %v1975_v5 = vrot.slane %v11686_v11, %v7039_v28  ;;  %v1979_v32 = vrot.slane %v11686_v11, %v7055_v37  ;;  %v8153_v63 = vadd.f32 %v1875_v9, %v1779_v41  ;;  %11690 = vst [vmem:[#allocation16_spill] sm:$0xff] %v8157_v30  ;;  %11691 = vst [vmem:[#allocation11_spill] sm:$0xff] %v8159_v58 }
  0xee   : > { %v1988_v43 = vmul.f32 %v1951_v59, %v1915_v4  ;;  %v1989_v48 = vmul.f32 %v1955_v24, %v8123_v51  ;;  %v1990_v8 = vmul.f32 %v1959_v2, %v8125_v49  ;;  %11692 = vst [vmem:[#allocation7_spill] sm:$0xff] %v8163_v33  ;;  %v1991_v40 = vmul.f32 %v1963_v60, %v8105_v21 }
  0xef   : > { %v1992_v15 = vmul.f32 %v1967_v54, %v8107_v31  ;;  %v1993_v41 = vmul.f32 %v1971_v3, %v8109_v22  ;;  %v1994_v9 = vmul.f32 %v1975_v5, %v8127_v23  ;;  %v1996_v36 = vmul.f32 %v1951_v59, %v1929_v12 }
  0xf0   : > { %v1997_v56 = vmul.f32 %v1955_v24, %v8141_v52  ;;  %v1998_v55 = vmul.f32 %v1959_v2, %v8143_v50  ;;  %v1999_v61 = vmul.f32 %v1963_v60, %v8131_v29  ;;  %v1995_v4 = vmul.f32 %v1979_v32, %v8129_v16 }
  0xf1   : > { %v2000_v11 = vmul.f32 %v1967_v54, %v8155_v10  ;;  %v2001_v0 = vmul.f32 %v1971_v3, %v8157_v30  ;;  %v2002_v17 = vmul.f32 %v1975_v5, %v8159_v58  ;;  %v2003_v31 = vmul.f32 %v1979_v32, %v8163_v33 }
  0xf2   : > { %v2021_v22 = vrot.slane %v1988_v43, 2  ;;  %v2022_v21 = vrot.slane %v1996_v36, 2  ;;  %v2024_v23 = vrot.slane %v1989_v48, 2  ;;  %v2025_v59 = vrot.slane %v1997_v56, 2 }
  0xf3   : > { %v2027_v12 = vrot.slane %v1990_v8, 2  ;;  %v2028_v24 = vrot.slane %v1998_v55, 2  ;;  %v2030_v52 = vrot.slane %v1991_v40, 2  ;;  %v2031_v2 = vrot.slane %v1999_v61, 2 }
  0xf4   : > { %v2033_v60 = vrot.slane %v1992_v15, 2  ;;  %v2034_v29 = vrot.slane %v2000_v11, 2  ;;  %v11693_v54 = vrot.slane %v8052_v14, 1  ;;  %v2023_v3 = vsel %vm2020_vm1, %v2021_v22, %v2022_v21  ;;  %v6765_v14 = vld [vmem:[%s11285_s3 + $0x47] ss:$8 sm:$0xf] }
  0xf5   : > { %v2036_v5 = vrot.slane %v1993_v41, 2  ;;  %v2037_v58 = vrot.slane %v2001_v0, 2  ;;  %v2026_v32 = vsel %vm2020_vm1, %v2024_v23, %v2025_v59  ;;  %v2029_v43 = vsel %vm2020_vm1, %v2027_v12, %v2028_v24  ;;  %v6770_v61 = vld [vmem:[%s11285_s3 + $0x81] ss:$8 sm:$0xf0] }
  0xf6   : > { %v1913_v10 = vadd.f32 %v11693_v54, %v8058_v45  ;;  %v2039_v48 = vrot.slane %v1994_v9, 2  ;;  %v2040_v8 = vrot.slane %v2002_v17, 2  ;;  %v11694_v40 = vrot.slane %v8054_v47, 1  ;;  %v6766_v45 = vld [vmem:[%s11285_s3 + $0x47] ss:$8 sm:$0xf0] }
  0xf7   : > { %v2032_v15 = vsel %vm2020_vm1, %v2030_v52, %v2031_v2  ;;  %v2042_v56 = vrot.slane %v1995_v4, 2  ;;  %v2043_v55 = vrot.slane %v2003_v31, 2  ;;  %v2035_v0 = vsel %vm2020_vm1, %v2033_v60, %v2034_v29  ;;  %v6768_v31 = vld [vmem:[%s11285_s3 + $0x80] ss:$8 sm:$0xf0] }
  0xf8   : > { %v1914_v36 = vadd.f32 %v11694_v40, %v8061_v1  ;;  %v2038_v17 = vsel %vm2020_vm1, %v2036_v5, %v2037_v58  ;;  %v2041_v22 = vsel %vm2020_vm1, %v2039_v48, %v2040_v8  ;;  %v8197_v47 = vadd.f32 %v2023_v3, %v8076_v53  ;;  %v6767_v1 = vld [vmem:[%s11285_s3 + $0x80] ss:$8 sm:$0xf]  ;;  %v6769_v53 = vld [vmem:[%s11285_s3 + $0x81] ss:$8 sm:$0xf] }
  0xf9   : > { %v2044_v23 = vsel %vm2020_vm1, %v2042_v56, %v2043_v55  ;;  %v8207_v52 = vadd.f32 %v2026_v32, %v8079_v7  ;;  %v8210_v41 = vadd.f32 %v2029_v43, %v8085_v39  ;;  %v8213_v9 = vadd.f32 %v2032_v15, %v8088_v57  ;;  %v6771_v11 = vld [vmem:[%s11285_s3 + $0x82] ss:$8 sm:$0xf] }
  0xfa   : > { %v8222_v4 = vadd.f32 %v2035_v0, %v8091_v46  ;;  %v8225_v7 = vadd.f32 %v2038_v17, %v8094_v35  ;;  %v8228_v39 = vadd.f32 %v2041_v22, %v8097_v13  ;;  %v8231_v57 = vadd.f32 %v2044_v23, %v8100_v62  ;;  %v6772_v12 = vld [vmem:[%s11285_s3 + $0x82] ss:$8 sm:$0xf0]  ;;  %v6773_v22 = vld [vmem:[%s11285_s3 + $0x83] ss:$8 sm:$0xf] }
  0xfb   : > { %v8240_v46 = vadd.f32 %v2022_v21, %v8103_v42  ;;  %v8243_v35 = vadd.f32 %v2025_v59, %v8112_v44  ;;  %v8246_v13 = vadd.f32 %v2028_v24, %v8115_v34  ;;  %v8249_v62 = vadd.f32 %v2031_v2, %v8118_v38  ;;  %v8267_v59 = vld [vmem:[#allocation2 + $0x40] sm:$0x80]  ;;  %v8277_v32 = vld [vmem:[#allocation2 + $0xb0] sm:$0x7f] }
  0xfc   : > { %v8252_v60 = vadd.f32 %v2034_v29, %v8121_v6  ;;  %v8255_v54 = vadd.f32 %v2037_v58, %v8153_v63  ;;  %v8257_v3 = vadd.f32 %v2040_v8, %v1913_v10  ;;  %v2080_v5 = vor.u32 %v6766_v45, %v6765_v14  ;;  %11700 = vst [vmem:[#allocation9_spill] sm:$0xff] %v8267_v59  ;;  %v11702_v8 = vld [vmem:[#allocation18_spill] sm:$0xff]  ;;  %v11704_v56 = vld [vmem:[#allocation19_spill] sm:$0xff]  ;;  %v11705_v14 = vld [vmem:[#allocation17_spill] sm:$0xff] }
  0xfd   : > { %v8259_v42 = vadd.f32 %v2043_v55, %v1914_v36  ;;  %v8261_v21 = vor.u32 %v6768_v31, %v6767_v1  ;;  %v8263_v44 = vor.u32 %v6770_v61, %v6769_v53  ;;  %v8265_v34 = vor.u32 %v6772_v12, %v6771_v11  ;;  %11701 = vst [vmem:[#allocation12_spill] sm:$0xff] %v8277_v32  ;;  %v11703_v36 = vld [vmem:[#allocation22_spill] sm:$0xff]  ;;  %v11706_v1 = vld [vmem:[#allocation4_spill] sm:$0xff]  ;;  %v11708_v11 = vld [vmem:[#allocation15_spill] sm:$0xff] }
  0xfe   : > { %11695 = vst [vmem:[#allocation5_spill] sm:$0xff] %v8255_v54  ;;  %11696 = vst [vmem:[#allocation10_spill] sm:$0xff] %v8257_v3  ;;  %v2085_v38 = vrot.slane %v2080_v5, %v7019_v18  ;;  %v2089_v6 = vrot.slane %v2080_v5, %v7021_v19  ;;  %v2093_v29 = vrot.slane %v2080_v5, %v7023_v20  ;;  %v11707_v53 = vld [vmem:[#allocation14_spill] sm:$0xff] }
  0xff   : > { %11697 = vst [vmem:[#allocation8_spill] sm:$0xff] %v8259_v42  ;;  %11698 = vst [vmem:[#allocation20_spill] sm:$0xff] %v8263_v44  ;;  %v2097_v63 = vrot.slane %v2080_v5, %v7033_v25  ;;  %v2101_v10 = vrot.slane %v2080_v5, %v7035_v26  ;;  %v2105_v58 = vrot.slane %v2080_v5, %v7037_v27  ;;  %v11709_v42 = vld [vmem:[#allocation11_spill] sm:$0xff] }
 0x100   : > { %11699 = vst [vmem:[#allocation3_spill] sm:$0xff] %v8265_v34  ;;  %v2109_v24 = vrot.slane %v2080_v5, %v7039_v28  ;;  %v2113_v2 = vrot.slane %v2080_v5, %v7055_v37  ;;  %v2122_v43 = vmul.f32 %v2085_v38, %v8123_v51  ;;  %v2123_v48 = vmul.f32 %v2089_v6, %v8125_v49  ;;  %v6774_v51 = vld [vmem:[%s11285_s3 + $0x83] ss:$8 sm:$0xf0] }
 0x101   : > { %v2124_v40 = vmul.f32 %v2093_v29, %v11702_v8  ;;  %v2125_v15 = vmul.f32 %v2097_v63, %v11703_v36  ;;  %v2126_v55 = vmul.f32 %v2101_v10, %v11704_v56  ;;  %v2127_v45 = vmul.f32 %v2105_v58, %v11705_v14  ;;  %v6775_v5 = vld [vmem:[%s11285_s3 + $0x84] ss:$8 sm:$0xf] }
 0x102   : > { %v2128_v0 = vmul.f32 %v2109_v24, %v8129_v16  ;;  %v2129_v17 = vmul.f32 %v2113_v2, %v8267_v59  ;;  %v2130_v31 = vmul.f32 %v2085_v38, %v11706_v1  ;;  %v2131_v23 = vmul.f32 %v2089_v6, %v8143_v50  ;;  %v6776_v34 = vld [vmem:[%s11285_s3 + $0x84] ss:$8 sm:$0xf0] }
 0x103   : > { %v2132_v61 = vmul.f32 %v2093_v29, %v11707_v53  ;;  %v2133_v12 = vmul.f32 %v2097_v63, %v11708_v11  ;;  %v2134_v44 = vmul.f32 %v2101_v10, %v8157_v30  ;;  %v8305_v3 = vmul.f32 %v2105_v58, %v11709_v42  ;;  %v6777_v29 = vld [vmem:[%s11285_s3 + $0x85] ss:$8 sm:$0xf] }
 0x104   : > { %v8308_v38 = vmul.f32 %v2109_v24, %v8163_v33  ;;  %v8311_v6 = vmul.f32 %v2113_v2, %v8277_v32  ;;  %v6778_v63 = vld [vmem:[%s11285_s3 + $0x85] ss:$8 sm:$0xf0]  ;;  %v2154_v1 = vrot.slane %v2122_v43, 2  ;;  %v2155_v54 = vrot.slane %v2130_v31, 2 }
 0x105   : > { %v2157_v10 = vrot.slane %v2123_v48, 2  ;;  %v2158_v30 = vrot.slane %v2131_v23, 2  ;;  %v2160_v58 = vrot.slane %v2124_v40, 2  ;;  %v2161_v42 = vrot.slane %v2132_v61, 2 }
 0x106   : > { %v2163_v11 = vrot.slane %v2125_v15, 2  ;;  %v2164_v24 = vrot.slane %v2133_v12, 2  ;;  %v2166_v33 = vrot.slane %v2126_v55, 2  ;;  %v2167_v53 = vrot.slane %v2134_v44, 2 }
 0x107   : > { %v8319_v2 = vor.u32 %v6774_v51, %v6773_v22  ;;  %v8321_v32 = vor.u32 %v6776_v34, %v6775_v5  ;;  %v2156_v50 = vsel %vm2020_vm1, %v2154_v1, %v2155_v54  ;;  %v2159_v59 = vsel %vm2020_vm1, %v2157_v10, %v2158_v30  ;;  %v11717_v10 = vld [vmem:[#allocation21_spill] sm:$0xff] }
 0x108   : > { %v2169_v16 = vrot.slane %v2127_v45, 2  ;;  %v2170_v43 = vrot.slane %v8305_v3, 2  ;;  %v2172_v31 = vrot.slane %v2128_v0, 2  ;;  %v2173_v48 = vrot.slane %v8308_v38, 2  ;;  %v11715_v38 = vld [vmem:[#allocation6_spill] sm:$0xff] }
 0x109   : > { %11710 = vst [vmem:[#allocation18_spill] sm:$0xff] %v8319_v2  ;;  %11711 = vst [vmem:[#allocation22_spill] sm:$0xff] %v8321_v32  ;;  %v2175_v40 = vrot.slane %v2129_v17, 2  ;;  %v8327_v23 = vor.u32 %v6778_v63, %v6777_v29  ;;  %v2162_v15 = vsel %vm2020_vm1, %v2160_v58, %v2161_v42  ;;  %v2165_v44 = vsel %vm2020_vm1, %v2163_v11, %v2164_v24  ;;  %v11716_v29 = vld [vmem:[#allocation9_spill] sm:$0xff]  ;;  %v11718_v58 = vld [vmem:[#allocation14_spill] sm:$0xff] }
 0x10a   : > { %v2168_v34 = vsel %vm2020_vm1, %v2166_v33, %v2167_v53  ;;  %v2176_v55 = vrot.slane %v8311_v6, 2  ;;  %v2171_v22 = vsel %vm2020_vm1, %v2169_v16, %v2170_v43  ;;  %v2174_v45 = vsel %vm2020_vm1, %v2172_v31, %v2173_v48  ;;  %v11719_v31 = vld [vmem:[#allocation15_spill] sm:$0xff] }
 0x10b   : > { %11712 = vst [vmem:[#allocation19_spill] sm:$0xff] %v8327_v23  ;;  %v8336_v3 = vadd.f32 %v2156_v50, %v8197_v47  ;;  %v8339_v0 = vadd.f32 %v2159_v59, %v8207_v52  ;;  %v8343_v51 = vadd.f32 %v2162_v15, %v8210_v41  ;;  %v8346_v61 = vadd.f32 %v2165_v44, %v8213_v9  ;;  %v11721_v44 = vld [vmem:[#allocation11_spill] sm:$0xff] }
 0x10c   : > { %v2177_v17 = vsel %vm2020_vm1, %v2175_v40, %v2176_v55  ;;  %v8349_v33 = vadd.f32 %v2168_v34, %v8222_v4  ;;  %v8352_v16 = vadd.f32 %v2171_v22, %v8225_v7  ;;  %v8355_v50 = vadd.f32 %v2174_v45, %v8228_v39  ;;  %v8375_v39 = vld [vmem:[#allocation2 + $0x48] sm:$0x80]  ;;  %v11720_v40 = vld [vmem:[#allocation16_spill] sm:$0xff]  ;;  %v11722_v22 = vld [vmem:[#allocation7_spill] sm:$0xff] }
 0x10d   : > { %v8358_v47 = vadd.f32 %v2177_v17, %v8231_v57  ;;  %v8361_v52 = vadd.f32 %v2155_v54, %v8240_v46  ;;  %v8364_v41 = vadd.f32 %v2158_v30, %v8243_v35  ;;  %v8367_v9 = vadd.f32 %v2161_v42, %v8246_v13  ;;  %11713 = vst [vmem:[#allocation17_spill] sm:$0xff] %v8375_v39  ;;  %v8393_v42 = vld [vmem:[#allocation2 + $0xb8] sm:$0x7f] }
 0x10e   : > { %v8370_v4 = vadd.f32 %v2164_v24, %v8249_v62  ;;  %v8373_v7 = vadd.f32 %v2167_v53, %v8252_v60  ;;  %v2218_v57 = vrot.slane %v8261_v21, %v7019_v18  ;;  %v2222_v46 = vrot.slane %v8261_v21, %v7021_v19  ;;  %11714 = vst [vmem:[#allocation4_spill] sm:$0xff] %v8393_v42  ;;  %v11723_v17 = vld [vmem:[#allocation12_spill] sm:$0xff] }
 0x10f   : > { %v2226_v30 = vrot.slane %v8261_v21, %v7023_v20  ;;  %v2230_v35 = vrot.slane %v8261_v21, %v7033_v25  ;;  %v2234_v13 = vrot.slane %v8261_v21, %v7035_v26  ;;  %v2238_v62 = vrot.slane %v8261_v21, %v7037_v27 }
 0x110   : > { %v2242_v60 = vrot.slane %v8261_v21, %v7039_v28  ;;  %v2246_v54 = vrot.slane %v8261_v21, %v7055_v37  ;;  %v2255_v59 = vmul.f32 %v2218_v57, %v8125_v49  ;;  %v2256_v53 = vmul.f32 %v2222_v46, %v11702_v8 }
 0x111   : > { %v2257_v11 = vmul.f32 %v2226_v30, %v11703_v36  ;;  %v2258_v12 = vmul.f32 %v2230_v35, %v11704_v56  ;;  %v2259_v5 = vmul.f32 %v2234_v13, %v11705_v14  ;;  %v2260_v6 = vmul.f32 %v2238_v62, %v11715_v38 }
 0x112   : > { %v2261_v63 = vmul.f32 %v2242_v60, %v11716_v29  ;;  %v2262_v1 = vmul.f32 %v2246_v54, %v8375_v39  ;;  %v2263_v21 = vmul.f32 %v2218_v57, %v11717_v10  ;;  %v2264_v24 = vmul.f32 %v2222_v46, %v11718_v58 }
 0x113   : > { %v2265_v49 = vmul.f32 %v2226_v30, %v11719_v31  ;;  %v2266_v15 = vmul.f32 %v2230_v35, %v11720_v40  ;;  %v2267_v34 = vmul.f32 %v2234_v13, %v11721_v44  ;;  %v8409_v45 = vmul.f32 %v2238_v62, %v11722_v22  ;;  %v11724_v35 = vld [vmem:[#allocation5_spill] sm:$0xff]  ;;  %v11725_v13 = vld [vmem:[#allocation10_spill] sm:$0xff] }
 0x114   : > { %v8412_v23 = vmul.f32 %v2242_v60, %v11723_v17  ;;  %v8415_v32 = vmul.f32 %v2246_v54, %v8393_v42  ;;  %v2287_v2 = vrot.slane %v2255_v59, 2  ;;  %v2288_v39 = vrot.slane %v2263_v21, 2  ;;  %v11726_v17 = vld [vmem:[#allocation8_spill] sm:$0xff] }
 0x115   : > { %v2290_v57 = vrot.slane %v2256_v53, 2  ;;  %v2291_v10 = vrot.slane %v2264_v24, 2  ;;  %v2293_v46 = vrot.slane %v2257_v11, 2  ;;  %v2294_v58 = vrot.slane %v2265_v49, 2 }
 0x116   : > { %v2296_v30 = vrot.slane %v2258_v12, 2  ;;  %v2297_v31 = vrot.slane %v2266_v15, 2  ;;  %v8418_v40 = vadd.f32 %v2170_v43, %v11724_v35  ;;  %v8421_v62 = vadd.f32 %v2173_v48, %v11725_v13  ;;  %v11730_v13 = vld [vmem:[#allocation17_spill] sm:$0xff] }
 0x117   : > { %v2299_v22 = vrot.slane %v2259_v5, 2  ;;  %v2300_v60 = vrot.slane %v2267_v34, 2  ;;  %v8424_v44 = vadd.f32 %v2176_v55, %v11726_v17  ;;  %v2289_v54 = vsel %vm2020_vm1, %v2287_v2, %v2288_v39 }
 0x118   : > { %v2302_v59 = vrot.slane %v2260_v6, 2  ;;  %v2303_v53 = vrot.slane %v8409_v45, 2  ;;  %v2292_v11 = vsel %vm2020_vm1, %v2290_v57, %v2291_v10  ;;  %v2305_v12 = vrot.slane %v2261_v63, 2 }
 0x119   : > { %v2306_v21 = vrot.slane %v8412_v23, 2  ;;  %v2308_v43 = vrot.slane %v2262_v1, 2  ;;  %v2295_v24 = vsel %vm2020_vm1, %v2293_v46, %v2294_v58  ;;  %v2298_v48 = vsel %vm2020_vm1, %v2296_v30, %v2297_v31 }
 0x11a   : > { %v2301_v5 = vsel %vm2020_vm1, %v2299_v22, %v2300_v60  ;;  %v2309_v55 = vrot.slane %v8415_v32, 2  ;;  %v2304_v49 = vsel %vm2020_vm1, %v2302_v59, %v2303_v53  ;;  %v8437_v6 = vadd.f32 %v2289_v54, %v8336_v3  ;;  %v11731_v59 = vld [vmem:[#allocation14_spill] sm:$0xff] }
 0x11b   : > { %v2307_v2 = vsel %vm2020_vm1, %v2305_v12, %v2306_v21  ;;  %v8440_v63 = vadd.f32 %v2292_v11, %v8339_v0  ;;  %v8444_v1 = vadd.f32 %v2295_v24, %v8343_v51  ;;  %v8447_v15 = vadd.f32 %v2298_v48, %v8346_v61  ;;  %v11732_v12 = vld [vmem:[#allocation15_spill] sm:$0xff]  ;;  %v11733_v24 = vld [vmem:[#allocation16_spill] sm:$0xff] }
 0x11c   : > { %v2310_v23 = vsel %vm2020_vm1, %v2308_v43, %v2309_v55  ;;  %v8450_v32 = vadd.f32 %v2301_v5, %v8349_v33  ;;  %v8453_v34 = vadd.f32 %v2304_v49, %v8352_v16  ;;  %v8456_v3 = vadd.f32 %v2307_v2, %v8355_v50  ;;  %v8476_v50 = vld [vmem:[#allocation2 + $0x50] sm:$0x80] }
 0x11d   : > { %v8459_v0 = vadd.f32 %v2310_v23, %v8358_v47  ;;  %v8462_v22 = vadd.f32 %v2288_v39, %v8361_v52  ;;  %v8465_v51 = vadd.f32 %v2291_v10, %v8364_v41  ;;  %v8468_v61 = vadd.f32 %v2294_v58, %v8367_v9  ;;  %11727 = vst [vmem:[#allocation21_spill] sm:$0xff] %v8476_v50  ;;  %v11728_v47 = vld [vmem:[#allocation20_spill] sm:$0xff]  ;;  %v11734_v48 = vld [vmem:[#allocation11_spill] sm:$0xff] }
 0x11e   : > { %v8471_v33 = vadd.f32 %v2297_v31, %v8370_v4  ;;  %v8474_v16 = vadd.f32 %v2300_v60, %v8373_v7  ;;  %v2351_v45 = vrot.slane %v11728_v47, %v7019_v18  ;;  %v2355_v52 = vrot.slane %v11728_v47, %v7021_v19  ;;  %v8494_v31 = vld [vmem:[#allocation2 + $0xc0] sm:$0x7f]  ;;  %v11735_v49 = vld [vmem:[#allocation7_spill] sm:$0xff]  ;;  %v11736_v23 = vld [vmem:[#allocation12_spill] sm:$0xff] }
 0x11f   : > { %v2359_v41 = vrot.slane %v11728_v47, %v7023_v20  ;;  %v2363_v9 = vrot.slane %v11728_v47, %v7033_v25  ;;  %v2367_v4 = vrot.slane %v11728_v47, %v7035_v26  ;;  %v2371_v7 = vrot.slane %v11728_v47, %v7037_v27  ;;  %11729 = vst [vmem:[#allocation5_spill] sm:$0xff] %v8494_v31 }
 0x120   : > { %v2375_v39 = vrot.slane %v11728_v47, %v7039_v28  ;;  %v2379_v58 = vrot.slane %v11728_v47, %v7055_v37  ;;  %v2388_v17 = vmul.f32 %v2351_v45, %v11702_v8  ;;  %v2389_v57 = vmul.f32 %v2355_v52, %v11703_v36 }
 0x121   : > { %v2390_v10 = vmul.f32 %v2359_v41, %v11704_v56  ;;  %v2391_v46 = vmul.f32 %v2363_v9, %v11705_v14  ;;  %v2392_v30 = vmul.f32 %v2367_v4, %v11715_v38  ;;  %v2393_v35 = vmul.f32 %v2371_v7, %v11716_v29 }
 0x122   : > { %v2394_v60 = vmul.f32 %v2375_v39, %v11730_v13  ;;  %v2395_v54 = vmul.f32 %v2379_v58, %v8476_v50  ;;  %v2396_v11 = vmul.f32 %v2351_v45, %v11731_v59  ;;  %v2397_v43 = vmul.f32 %v2355_v52, %v11732_v12 }
 0x123   : > { %v2398_v8 = vmul.f32 %v2359_v41, %v11733_v24  ;;  %v2399_v5 = vmul.f32 %v2363_v9, %v11734_v48  ;;  %v2400_v2 = vmul.f32 %v2367_v4, %v11735_v49  ;;  %v8510_v47 = vmul.f32 %v2371_v7, %v11736_v23 }
 0x124   : > { %v8513_v38 = vmul.f32 %v2375_v39, %v8393_v42  ;;  %v8516_v13 = vmul.f32 %v2379_v58, %v8494_v31  ;;  %v2420_v50 = vrot.slane %v2388_v17, 2  ;;  %v2421_v29 = vrot.slane %v2396_v11, 2 }
 0x125   : > { %v2423_v45 = vrot.slane %v2389_v57, 2  ;;  %v2424_v59 = vrot.slane %v2397_v43, 2  ;;  %v2426_v52 = vrot.slane %v2390_v10, 2  ;;  %v2427_v12 = vrot.slane %v2398_v8, 2 }
 0x126   : > { %v2429_v41 = vrot.slane %v2391_v46, 2  ;;  %v2430_v24 = vrot.slane %v2399_v5, 2  ;;  %v8519_v9 = vadd.f32 %v2303_v53, %v8418_v40  ;;  %v8522_v4 = vadd.f32 %v2306_v21, %v8421_v62 }
 0x127   : > { %v2432_v7 = vrot.slane %v2392_v30, 2  ;;  %v2433_v39 = vrot.slane %v2400_v2, 2  ;;  %v8525_v42 = vadd.f32 %v2309_v55, %v8424_v44  ;;  %v2422_v58 = vsel %vm2020_vm1, %v2420_v50, %v2421_v29 }
 0x128   : > { %v2435_v17 = vrot.slane %v2393_v35, 2  ;;  %v2436_v57 = vrot.slane %v8510_v47, 2  ;;  %v2425_v10 = vsel %vm2020_vm1, %v2423_v45, %v2424_v59  ;;  %v2438_v46 = vrot.slane %v2394_v60, 2 }
 0x129   : > { %v2439_v11 = vrot.slane %v8513_v38, 2  ;;  %v2441_v40 = vrot.slane %v2395_v54, 2  ;;  %v2428_v53 = vsel %vm2020_vm1, %v2426_v52, %v2427_v12  ;;  %v2431_v62 = vsel %vm2020_vm1, %v2429_v41, %v2430_v24  ;;  %v11741_v41 = vld [vmem:[#allocation9_spill] sm:$0xff] }
 0x12a   : > { %v2434_v21 = vsel %vm2020_vm1, %v2432_v7, %v2433_v39  ;;  %v2442_v44 = vrot.slane %v8516_v13, 2  ;;  %v2437_v55 = vsel %vm2020_vm1, %v2435_v17, %v2436_v57  ;;  %v8538_v30 = vadd.f32 %v2422_v58, %v8437_v6  ;;  %v11743_v17 = vld [vmem:[#allocation21_spill] sm:$0xff] }
 0x12b   : > { %v2440_v50 = vsel %vm2020_vm1, %v2438_v46, %v2439_v11  ;;  %v8541_v35 = vadd.f32 %v2425_v10, %v8440_v63  ;;  %v8545_v60 = vadd.f32 %v2428_v53, %v8444_v1  ;;  %v8548_v54 = vadd.f32 %v2431_v62, %v8447_v15  ;;  %v11745_v62 = vld [vmem:[#allocation16_spill] sm:$0xff] }
 0x12c   : > { %v2443_v38 = vsel %vm2020_vm1, %v2441_v40, %v2442_v44  ;;  %v8551_v13 = vadd.f32 %v2434_v21, %v8450_v32  ;;  %v8554_v43 = vadd.f32 %v2437_v55, %v8453_v34  ;;  %v8557_v6 = vadd.f32 %v2440_v50, %v8456_v3  ;;  %v8577_v3 = vld [vmem:[#allocation2 + $0x58] sm:$0x80]  ;;  %v11744_v40 = vld [vmem:[#allocation15_spill] sm:$0xff] }
 0x12d   : > { %v8560_v63 = vadd.f32 %v2443_v38, %v8459_v0  ;;  %v8563_v8 = vadd.f32 %v2421_v29, %v8462_v22  ;;  %v8566_v1 = vadd.f32 %v2424_v59, %v8465_v51  ;;  %v8569_v15 = vadd.f32 %v2427_v12, %v8468_v61  ;;  %11737 = vst [vmem:[#allocation10_spill] sm:$0xff] %v8577_v3  ;;  %v11738_v0 = vld [vmem:[#allocation3_spill] sm:$0xff]  ;;  %v11740_v59 = vld [vmem:[#allocation6_spill] sm:$0xff]  ;;  %v11746_v38 = vld [vmem:[#allocation4_spill] sm:$0xff] }
 0x12e   : > { %v8572_v32 = vadd.f32 %v2430_v24, %v8471_v33  ;;  %v8575_v34 = vadd.f32 %v2433_v39, %v8474_v16  ;;  %v2484_v5 = vrot.slane %v11738_v0, %v7019_v18  ;;  %v2488_v29 = vrot.slane %v11738_v0, %v7021_v19  ;;  %v8595_v24 = vld [vmem:[#allocation2 + $0xc8] sm:$0x7f]  ;;  %v11742_v39 = vld [vmem:[#allocation17_spill] sm:$0xff] }
 0x12f   : > { %v2492_v22 = vrot.slane %v11738_v0, %v7023_v20  ;;  %v2496_v51 = vrot.slane %v11738_v0, %v7033_v25  ;;  %v2500_v61 = vrot.slane %v11738_v0, %v7035_v26  ;;  %v2504_v33 = vrot.slane %v11738_v0, %v7037_v27  ;;  %11739 = vst [vmem:[#allocation8_spill] sm:$0xff] %v8595_v24 }
 0x130   : > { %v2508_v16 = vrot.slane %v11738_v0, %v7039_v28  ;;  %v2512_v12 = vrot.slane %v11738_v0, %v7055_v37  ;;  %v2521_v2 = vmul.f32 %v2484_v5, %v11703_v36  ;;  %v2522_v47 = vmul.f32 %v2488_v29, %v11704_v56 }
 0x131   : > { %v2523_v45 = vmul.f32 %v2492_v22, %v11705_v14  ;;  %v2524_v52 = vmul.f32 %v2496_v51, %v11740_v59  ;;  %v2525_v7 = vmul.f32 %v2500_v61, %v11741_v41  ;;  %v2526_v58 = vmul.f32 %v2504_v33, %v11742_v39 }
 0x132   : > { %v2527_v10 = vmul.f32 %v2508_v16, %v11743_v17  ;;  %v2528_v46 = vmul.f32 %v2512_v12, %v8577_v3  ;;  %v2529_v53 = vmul.f32 %v2484_v5, %v11744_v40  ;;  %v2530_v21 = vmul.f32 %v2488_v29, %v11745_v62 }
 0x133   : > { %v2531_v36 = vmul.f32 %v2492_v22, %v11734_v48  ;;  %v2532_v55 = vmul.f32 %v2496_v51, %v11735_v49  ;;  %v2533_v50 = vmul.f32 %v2500_v61, %v11736_v23  ;;  %v8611_v0 = vmul.f32 %v2504_v33, %v11746_v38 }
 0x134   : > { %v8614_v41 = vmul.f32 %v2508_v16, %v8494_v31  ;;  %v8617_v17 = vmul.f32 %v2512_v12, %v8595_v24  ;;  %v2553_v3 = vrot.slane %v2521_v2, 2  ;;  %v2554_v39 = vrot.slane %v2529_v53, 2 }
 0x135   : > { %v2556_v5 = vrot.slane %v2522_v47, 2  ;;  %v2557_v40 = vrot.slane %v2530_v21, 2  ;;  %v2559_v29 = vrot.slane %v2523_v45, 2  ;;  %v2560_v62 = vrot.slane %v2531_v36, 2 }
 0x136   : > { %v2562_v22 = vrot.slane %v2524_v52, 2  ;;  %v2563_v48 = vrot.slane %v2532_v55, 2  ;;  %v8620_v51 = vadd.f32 %v2436_v57, %v8519_v9  ;;  %v8623_v61 = vadd.f32 %v2439_v11, %v8522_v4 }
 0x137   : > { %v2565_v33 = vrot.slane %v2525_v7, 2  ;;  %v2566_v16 = vrot.slane %v2533_v50, 2  ;;  %v8626_v31 = vadd.f32 %v2442_v44, %v8525_v42  ;;  %v2555_v12 = vsel %vm2020_vm1, %v2553_v3, %v2554_v39 }
 0x138   : > { %v2568_v2 = vrot.slane %v2526_v58, 2  ;;  %v2569_v47 = vrot.slane %v8611_v0, 2  ;;  %v2558_v45 = vsel %vm2020_vm1, %v2556_v5, %v2557_v40  ;;  %v2571_v52 = vrot.slane %v2527_v10, 2 }
 0x139   : > { %v2572_v53 = vrot.slane %v8614_v41, 2  ;;  %v2574_v9 = vrot.slane %v2528_v46, 2  ;;  %v2561_v57 = vsel %vm2020_vm1, %v2559_v29, %v2560_v62  ;;  %v2564_v4 = vsel %vm2020_vm1, %v2562_v22, %v2563_v48  ;;  %v11750_v22 = vld [vmem:[#allocation17_spill] sm:$0xff] }
 0x13a   : > { %v2567_v11 = vsel %vm2020_vm1, %v2565_v33, %v2566_v16  ;;  %v2575_v42 = vrot.slane %v8617_v17, 2  ;;  %v2570_v44 = vsel %vm2020_vm1, %v2568_v2, %v2569_v47  ;;  %v8639_v7 = vadd.f32 %v2555_v12, %v8538_v30  ;;  %v11752_v2 = vld [vmem:[#allocation10_spill] sm:$0xff] }
 0x13b   : > { %v2573_v3 = vsel %vm2020_vm1, %v2571_v52, %v2572_v53  ;;  %v8642_v58 = vadd.f32 %v2558_v45, %v8541_v35  ;;  %v8646_v10 = vadd.f32 %v2561_v57, %v8545_v60  ;;  %v8649_v46 = vadd.f32 %v2564_v4, %v8548_v54  ;;  %v11754_v4 = vld [vmem:[#allocation11_spill] sm:$0xff] }
 0x13c   : > { %v2576_v41 = vsel %vm2020_vm1, %v2574_v9, %v2575_v42  ;;  %v8652_v17 = vadd.f32 %v2567_v11, %v8551_v13  ;;  %v8655_v21 = vadd.f32 %v2570_v44, %v8554_v43  ;;  %v8658_v30 = vadd.f32 %v2573_v3, %v8557_v6  ;;  %v8678_v6 = vld [vmem:[#allocation2 + $0x60] sm:$0x80]  ;;  %v11753_v9 = vld [vmem:[#allocation16_spill] sm:$0xff] }
 0x13d   : > { %v8661_v35 = vadd.f32 %v2576_v41, %v8560_v63  ;;  %v8664_v36 = vadd.f32 %v2554_v39, %v8563_v8  ;;  %v8667_v60 = vadd.f32 %v2557_v40, %v8566_v1  ;;  %v8670_v54 = vadd.f32 %v2560_v62, %v8569_v15  ;;  %11747 = vst [vmem:[#allocation20_spill] sm:$0xff] %v8678_v6  ;;  %v11748_v63 = vld [vmem:[#allocation18_spill] sm:$0xff]  ;;  %v8696_v62 = vld [vmem:[#allocation2 + $0xd0] sm:$0x7f]  ;;  %v11749_v40 = vld [vmem:[#allocation9_spill] sm:$0xff] }
 0x13e   : > { %v8673_v13 = vadd.f32 %v2563_v48, %v8572_v32  ;;  %v8676_v43 = vadd.f32 %v2566_v16, %v8575_v34  ;;  %v2617_v55 = vrot.slane %v11748_v63, %v7019_v18  ;;  %v2621_v8 = vrot.slane %v11748_v63, %v7021_v19  ;;  %v11751_v16 = vld [vmem:[#allocation21_spill] sm:$0xff] }
 0x13f   : > { %v2625_v1 = vrot.slane %v11748_v63, %v7023_v20  ;;  %v2629_v15 = vrot.slane %v11748_v63, %v7033_v25  ;;  %v2633_v48 = vrot.slane %v11748_v63, %v7035_v26  ;;  %v2637_v32 = vrot.slane %v11748_v63, %v7037_v27  ;;  %v11755_v41 = vld [vmem:[#allocation5_spill] sm:$0xff] }
 0x140   : > { %v2641_v34 = vrot.slane %v11748_v63, %v7039_v28  ;;  %v2645_v39 = vrot.slane %v11748_v63, %v7055_v37  ;;  %v2654_v50 = vmul.f32 %v2617_v55, %v11704_v56  ;;  %v2655_v0 = vmul.f32 %v2621_v8, %v11705_v14 }
 0x141   : > { %v2656_v5 = vmul.f32 %v2625_v1, %v11740_v59  ;;  %v2657_v29 = vmul.f32 %v2629_v15, %v11749_v40  ;;  %v2658_v33 = vmul.f32 %v2633_v48, %v11750_v22  ;;  %v2659_v12 = vmul.f32 %v2637_v32, %v11751_v16 }
 0x142   : > { %v2660_v45 = vmul.f32 %v2641_v34, %v11752_v2  ;;  %v2661_v52 = vmul.f32 %v2645_v39, %v8678_v6  ;;  %v2662_v57 = vmul.f32 %v2617_v55, %v11753_v9  ;;  %v2663_v11 = vmul.f32 %v2621_v8, %v11754_v4 }
 0x143   : > { %v2664_v56 = vmul.f32 %v2625_v1, %v11735_v49  ;;  %v2665_v44 = vmul.f32 %v2629_v15, %v11736_v23  ;;  %v2666_v3 = vmul.f32 %v2633_v48, %v11746_v38  ;;  %v8712_v63 = vmul.f32 %v2637_v32, %v11755_v41 }
 0x144   : > { %v8715_v22 = vmul.f32 %v2641_v34, %v8595_v24  ;;  %v8718_v2 = vmul.f32 %v2645_v39, %v8696_v62  ;;  %v2686_v6 = vrot.slane %v2654_v50, 2  ;;  %v2687_v16 = vrot.slane %v2662_v57, 2 }
 0x145   : > { %v2689_v55 = vrot.slane %v2655_v0, 2  ;;  %v2690_v9 = vrot.slane %v2663_v11, 2  ;;  %v2692_v8 = vrot.slane %v2656_v5, 2  ;;  %v2693_v4 = vrot.slane %v2664_v56, 2 }
 0x146   : > { %v2695_v1 = vrot.slane %v2657_v29, 2  ;;  %v2696_v49 = vrot.slane %v2665_v44, 2  ;;  %v8721_v15 = vadd.f32 %v2569_v47, %v8620_v51  ;;  %v8724_v48 = vadd.f32 %v2572_v53, %v8623_v61  ;;  %v11756_v44 = vld [vmem:[#allocation22_spill] sm:$0xff] }
 0x147   : > { %v2698_v32 = vrot.slane %v2658_v33, 2  ;;  %v2699_v34 = vrot.slane %v2666_v3, 2  ;;  %v8727_v24 = vadd.f32 %v2575_v42, %v8626_v31  ;;  %v2688_v39 = vsel %vm2020_vm1, %v2686_v6, %v2687_v16 }
 0x148   : > { %v2701_v50 = vrot.slane %v2659_v12, 2  ;;  %v2702_v0 = vrot.slane %v8712_v63, 2  ;;  %v2691_v5 = vsel %vm2020_vm1, %v2689_v55, %v2690_v9  ;;  %v2704_v29 = vrot.slane %v2660_v45, 2 }
 0x149   : > { %v2705_v57 = vrot.slane %v8715_v22, 2  ;;  %v2707_v51 = vrot.slane %v2661_v52, 2  ;;  %v2694_v47 = vsel %vm2020_vm1, %v2692_v8, %v2693_v4  ;;  %v2697_v61 = vsel %vm2020_vm1, %v2695_v1, %v2696_v49  ;;  %v11758_v1 = vld [vmem:[#allocation21_spill] sm:$0xff] }
 0x14a   : > { %v2700_v53 = vsel %vm2020_vm1, %v2698_v32, %v2699_v34  ;;  %v2708_v31 = vrot.slane %v8718_v2, 2  ;;  %v2703_v42 = vsel %vm2020_vm1, %v2701_v50, %v2702_v0  ;;  %v8740_v33 = vadd.f32 %v2688_v39, %v8639_v7  ;;  %v11760_v50 = vld [vmem:[#allocation20_spill] sm:$0xff] }
 0x14b   : > { %v2706_v6 = vsel %vm2020_vm1, %v2704_v29, %v2705_v57  ;;  %v8743_v12 = vadd.f32 %v2691_v5, %v8642_v58  ;;  %v8747_v45 = vadd.f32 %v2694_v47, %v8646_v10  ;;  %v8750_v52 = vadd.f32 %v2697_v61, %v8649_v46  ;;  %v11762_v61 = vld [vmem:[#allocation7_spill] sm:$0xff] }
 0x14c   : > { %v2709_v22 = vsel %vm2020_vm1, %v2707_v51, %v2708_v31  ;;  %v8753_v2 = vadd.f32 %v2700_v53, %v8652_v17  ;;  %v8756_v11 = vadd.f32 %v2703_v42, %v8655_v21  ;;  %v8759_v7 = vadd.f32 %v2706_v6, %v8658_v30  ;;  %v1928_v30 = vld [vmem:[#allocation2 + $0x68] sm:$0x80]  ;;  %v11761_v51 = vld [vmem:[#allocation11_spill] sm:$0xff] }
 0x14d   : > { %v8762_v58 = vadd.f32 %v2709_v22, %v8661_v35  ;;  %v8765_v56 = vadd.f32 %v2687_v16, %v8664_v36  ;;  %v8768_v10 = vadd.f32 %v2690_v9, %v8667_v60  ;;  %v8771_v46 = vadd.f32 %v2693_v4, %v8670_v54  ;;  %v1942_v4 = vld [vmem:[#allocation2 + $0xd8] sm:$0x7f]  ;;  %v11757_v9 = vld [vmem:[#allocation17_spill] sm:$0xff] }
 0x14e   : > { %v8774_v17 = vadd.f32 %v2696_v49, %v8673_v13  ;;  %v8777_v21 = vadd.f32 %v2699_v34, %v8676_v43  ;;  %v2750_v35 = vrot.slane %v11756_v44, %v7019_v18  ;;  %v2754_v36 = vrot.slane %v11756_v44, %v7021_v19  ;;  %v11759_v34 = vld [vmem:[#allocation10_spill] sm:$0xff] }
 0x14f   : > { %v2758_v60 = vrot.slane %v11756_v44, %v7023_v20  ;;  %v2762_v54 = vrot.slane %v11756_v44, %v7033_v25  ;;  %v2766_v49 = vrot.slane %v11756_v44, %v7035_v26  ;;  %v2770_v13 = vrot.slane %v11756_v44, %v7037_v27 }
 0x150   : > { %v2774_v43 = vrot.slane %v11756_v44, %v7039_v28  ;;  %v2778_v16 = vrot.slane %v11756_v44, %v7055_v37  ;;  %v2787_v3 = vmul.f32 %v2750_v35, %v11705_v14  ;;  %v2788_v63 = vmul.f32 %v2754_v36, %v11740_v59 }
 0x151   : > { %v2789_v55 = vmul.f32 %v2758_v60, %v11749_v40  ;;  %v2790_v8 = vmul.f32 %v2762_v54, %v11757_v9  ;;  %v2791_v32 = vmul.f32 %v2766_v49, %v11758_v1  ;;  %v2792_v39 = vmul.f32 %v2770_v13, %v11759_v34  ;;  %v11763_v40 = vld [vmem:[#allocation8_spill] sm:$0xff] }
 0x152   : > { %v2793_v5 = vmul.f32 %v2774_v43, %v11760_v50  ;;  %v2794_v29 = vmul.f32 %v2778_v16, %v1928_v30  ;;  %v2795_v47 = vmul.f32 %v2750_v35, %v11761_v51  ;;  %v2796_v53 = vmul.f32 %v2754_v36, %v11762_v61 }
 0x153   : > { %v2797_v42 = vmul.f32 %v2758_v60, %v11736_v23  ;;  %v2798_v14 = vmul.f32 %v2762_v54, %v11746_v38  ;;  %v2799_v59 = vmul.f32 %v2766_v49, %v11755_v41  ;;  %v8808_v6 = vmul.f32 %v2770_v13, %v11763_v40  ;;  %v11764_v40 = vld [vmem:[#allocation19_spill] sm:$0xff] }
 0x154   : > { %v8811_v22 = vmul.f32 %v2774_v43, %v8696_v62  ;;  %v8813_v44 = vmul.f32 %v2778_v16, %v1942_v4  ;;  %v2819_v9 = vrot.slane %v2787_v3, 2  ;;  %v2820_v30 = vrot.slane %v2795_v47, 2 }
 0x155   : > { %v2822_v1 = vrot.slane %v2788_v63, 2  ;;  %v2823_v35 = vrot.slane %v2796_v53, 2  ;;  %v2825_v34 = vrot.slane %v2789_v55, 2  ;;  %v2826_v36 = vrot.slane %v2797_v42, 2  ;;  %v8838_v42 = vld [vmem:[#allocation2 + $0x88] sm:$0xff] }
 0x156   : > { %v2828_v50 = vrot.slane %v2790_v8, 2  ;;  %v2829_v23 = vrot.slane %v2798_v14, 2  ;;  %v2739_v38 = vadd.f32 %v2702_v0, %v8721_v15  ;;  %v2740_v41 = vadd.f32 %v2705_v57, %v8724_v48  ;;  %v2875_v14 = vld [vmem:[#allocation2 + $0x70] sm:$0xff] }
 0x157   : > { %v2831_v60 = vrot.slane %v2791_v32, 2  ;;  %v2832_v54 = vrot.slane %v2799_v59, 2  ;;  %v2741_v49 = vadd.f32 %v2708_v31, %v8727_v24  ;;  %v2821_v62 = vsel %vm2020_vm1, %v2819_v9, %v2820_v30  ;;  %v8854_v59 = vld [vmem:[#allocation2 + $0xa8] sm:$0xff] }
 0x158   : > { %v2834_v13 = vrot.slane %v2792_v39, 2  ;;  %v2835_v43 = vrot.slane %v8808_v6, 2  ;;  %v2824_v16 = vsel %vm2020_vm1, %v2822_v1, %v2823_v35  ;;  %v2837_v4 = vrot.slane %v2793_v5, 2 }
 0x159   : > { %v2838_v3 = vrot.slane %v8811_v22, 2  ;;  %v2840_v63 = vrot.slane %v2794_v29, 2  ;;  %v2827_v55 = vsel %vm2020_vm1, %v2825_v34, %v2826_v36  ;;  %v2830_v15 = vsel %vm2020_vm1, %v2828_v50, %v2829_v23 }
 0x15a   : > { %v2836_v48 = vsel %vm2020_vm1, %v2834_v13, %v2835_v43  ;;  %v2841_v0 = vrot.slane %v8813_v44, 2  ;;  %v2833_v24 = vsel %vm2020_vm1, %v2831_v60, %v2832_v54  ;;  %v2859_v31 = vadd.f32 %v2821_v62, %v8740_v33  ;;  %v8840_v33 = vld [vmem:[#allocation2 + $0x90] sm:$0xff] }
 0x15b   : > { %v2839_v57 = vsel %vm2020_vm1, %v2837_v4, %v2838_v3  ;;  %v2860_v8 = vadd.f32 %v2824_v16, %v8743_v12  ;;  %v2861_v39 = vadd.f32 %v2827_v55, %v8747_v45  ;;  %v2862_v5 = vadd.f32 %v2830_v15, %v8750_v52 }
 0x15c   : > { %v2842_v32 = vsel %vm2020_vm1, %v2840_v63, %v2841_v0  ;;  %v2863_v29 = vadd.f32 %v2833_v24, %v8753_v2  ;;  %v2864_v51 = vadd.f32 %v2836_v48, %v8756_v11  ;;  %v2865_v47 = vadd.f32 %v2839_v57, %v8759_v7  ;;  %v8846_v11 = vld [vmem:[#allocation2 + $0x78] sm:$0xff]  ;;  %v8848_v7 = vld [vmem:[#allocation2 + $0x80] sm:$0xff] }
 0x15d   : > { %v2866_v61 = vadd.f32 %v2842_v32, %v8762_v58  ;;  %v2867_v53 = vadd.f32 %v2820_v30, %v8765_v56  ;;  %v2868_v12 = vadd.f32 %v2823_v35, %v8768_v10  ;;  %v2869_v45 = vadd.f32 %v2826_v36, %v8771_v46  ;;  %v8850_v58 = vld [vmem:[#allocation2 + $0x98] sm:$0xff]  ;;  %v8852_v56 = vld [vmem:[#allocation2 + $0xa0] sm:$0xff] }
 0x15e   : > { %v2870_v52 = vadd.f32 %v2829_v23, %v8774_v17  ;;  %v2871_v2 = vadd.f32 %v2832_v54, %v8777_v21  ;;  %v2897_v10 = vrot.slane %v11764_v40, %v7019_v18  ;;  %v2901_v46 = vrot.slane %v11764_v40, %v7021_v19  ;;  %v6779_v48 = vld [vmem:[%s11285_s3 + $0x86] ss:$8 sm:$0xf] }
 0x15f   : > { %v2905_v17 = vrot.slane %v11764_v40, %v7023_v20  ;;  %v2909_v21 = vrot.slane %v11764_v40, %v7033_v25  ;;  %v2913_v6 = vrot.slane %v11764_v40, %v7035_v26  ;;  %v2917_v22 = vrot.slane %v11764_v40, %v7037_v27  ;;  %v6780_v24 = vld [vmem:[%s11285_s3 + $0x86] ss:$8 sm:$0xf0] }
 0x160   : > { %v2921_v44 = vrot.slane %v11764_v40, %v7039_v28  ;;  %v2925_v9 = vrot.slane %v11764_v40, %v7055_v37  ;;  %v2934_v30 = vmul.f32 %v2897_v10, %v2875_v14  ;;  %v2935_v1 = vmul.f32 %v2901_v46, %v8846_v11  ;;  %v6785_v46 = vld [vmem:[%s11285_s3 + $0xc1] ss:$8 sm:$0xf] }
 0x161   : > { %v2936_v35 = vmul.f32 %v2905_v17, %v8848_v7  ;;  %v2937_v34 = vmul.f32 %v2909_v21, %v8838_v42  ;;  %v2938_v36 = vmul.f32 %v2913_v6, %v8840_v33  ;;  %v2939_v50 = vmul.f32 %v2917_v22, %v8850_v58  ;;  %v6786_v17 = vld [vmem:[%s11285_s3 + $0xc1] ss:$8 sm:$0xf0] }
 0x162   : > { %v2940_v23 = vmul.f32 %v2921_v44, %v8852_v56  ;;  %v2941_v60 = vmul.f32 %v2925_v9, %v8854_v59  ;;  %v2872_v54 = vadd.f32 %v2835_v43, %v2739_v38  ;;  %v2950_v62 = vrot.slane %v2934_v30, 3  ;;  %v6781_v38 = vld [vmem:[%s11285_s3 + $0x87] ss:$8 sm:$0xf] }
 0x163   : > { %v2951_v13 = vrot.slane %v2935_v1, 3  ;;  %v2952_v16 = vrot.slane %v2936_v35, 3  ;;  %v2873_v4 = vadd.f32 %v2838_v3, %v2740_v41  ;;  %v2874_v63 = vadd.f32 %v2841_v0, %v2741_v49  ;;  %v6782_v41 = vld [vmem:[%s11285_s3 + $0x87] ss:$8 sm:$0xf0] }
 0x164   : > { %v2953_v55 = vrot.slane %v2937_v34, 3  ;;  %v2954_v15 = vrot.slane %v2938_v36, 3  ;;  %v2955_v57 = vrot.slane %v2939_v50, 3  ;;  %v2956_v32 = vrot.slane %v2940_v23, 3 }
 0x165   : > { %v2957_v14 = vrot.slane %v2941_v60, 3  ;;  %v2966_v40 = vadd.f32 %v2950_v62, %v2859_v31  ;;  %v6783_v49 = vld [vmem:[%s11285_s3 + $0xc0] ss:$8 sm:$0xf]  ;;  %v2967_v3 = vadd.f32 %v2951_v13, %v2860_v8  ;;  %v2968_v0 = vadd.f32 %v2952_v16, %v2861_v39 }
 0x166   : > { %v6784_v43 = vld [vmem:[%s11285_s3 + $0xc0] ss:$8 sm:$0xf0]  ;;  %v2969_v10 = vadd.f32 %v2953_v55, %v2862_v5  ;;  %v2970_v31 = vadd.f32 %v2954_v15, %v2863_v29  ;;  %v2971_v21 = vadd.f32 %v2955_v57, %v2864_v51  ;;  %v2972_v6 = vadd.f32 %v2956_v32, %v2865_v47  ;;  %v6787_v9 = vld [vmem:[%s11285_s3 + $0xc2] ss:$8 sm:$0xf] }
 0x167   : > { %v2973_v22 = vadd.f32 %v2957_v14, %v2866_v61  ;;  %v2974_v44 = vadd.f32 %v2950_v62, %v2867_v53  ;;  %v6788_v8 = vld [vmem:[%s11285_s3 + $0xc2] ss:$8 sm:$0xf0]  ;;  %v2975_v39 = vadd.f32 %v2951_v13, %v2868_v12  ;;  %v2976_v5 = vadd.f32 %v2952_v16, %v2869_v45  ;;  %v6789_v23 = vld [vmem:[%s11285_s3 + $0xc3] ss:$8 sm:$0xf] }
 0x168   : > { %v2977_v29 = vadd.f32 %v2953_v55, %v2870_v52  ;;  %v2978_v30 = vadd.f32 %v2954_v15, %v2871_v2  ;;  %v2979_v1 = vadd.f32 %v2955_v57, %v2872_v54  ;;  %v8909_v35 = vadd.f32 %v2956_v32, %v2873_v4  ;;  %v8913_v47 = vld [vmem:[#allocation2 + $0xb0] sm:$0xff] }
 0x169   : > { %v8911_v34 = vadd.f32 %v2957_v14, %v2874_v63  ;;  %v2985_v51 = vor.u32 %v6780_v24, %v6779_v48  ;;  %v8915_v61 = vor.u32 %v6782_v41, %v6781_v38  ;;  %v8917_v53 = vor.u32 %v6784_v43, %v6783_v49  ;;  %v6790_v60 = vld [vmem:[%s11285_s3 + $0xc3] ss:$8 sm:$0xf0]  ;;  %v6791_v4 = vld [vmem:[%s11285_s3 + $0xc4] ss:$8 sm:$0xf] }
 0x16a   : > { %v8919_v36 = vor.u32 %v6786_v17, %v6785_v46  ;;  %v8921_v50 = vor.u32 %v6788_v8, %v6787_v9  ;;  %v6792_v63 = vld [vmem:[%s11285_s3 + $0xc4] ss:$8 sm:$0xf0]  ;;  %v8951_v43 = vor.u32 %v6790_v60, %v6789_v23 }
 0x16b   : > { %v2990_v12 = vrot.slane %v2985_v51, %v7019_v18  ;;  %v2994_v45 = vrot.slane %v2985_v51, %v7021_v19  ;;  %v2998_v52 = vrot.slane %v2985_v51, %v7023_v20  ;;  %v3002_v2 = vrot.slane %v2985_v51, %v7033_v25 }
 0x16c   : > { %11765 = vst [vmem:[#allocation14_spill] sm:$0xff] %v8921_v50  ;;  %v3006_v54 = vrot.slane %v2985_v51, %v7035_v26  ;;  %v3010_v62 = vrot.slane %v2985_v51, %v7037_v27  ;;  %v3014_v13 = vrot.slane %v2985_v51, %v7039_v28  ;;  %v3018_v16 = vrot.slane %v2985_v51, %v7055_v37 }
 0x16d   : > { %v3027_v55 = vmul.f32 %v2990_v12, %v8846_v11  ;;  %v3028_v15 = vmul.f32 %v2994_v45, %v8848_v7  ;;  %v3029_v48 = vmul.f32 %v2998_v52, %v8838_v42  ;;  %v3030_v24 = vmul.f32 %v3002_v2, %v8840_v33 }
 0x16e   : > { %v3031_v57 = vmul.f32 %v3006_v54, %v8850_v58  ;;  %v3032_v32 = vmul.f32 %v3010_v62, %v8852_v56  ;;  %v3033_v14 = vmul.f32 %v3014_v13, %v8854_v59  ;;  %v3034_v38 = vmul.f32 %v3018_v16, %v8913_v47 }
 0x16f   : > { %v3043_v41 = vrot.slane %v3027_v55, 3  ;;  %v3044_v49 = vrot.slane %v3028_v15, 3  ;;  %v8953_v46 = vor.u32 %v6792_v63, %v6791_v4  ;;  %v3045_v11 = vrot.slane %v3029_v48, 3  ;;  %v8955_v48 = vld [vmem:[#allocation2 + $0xb8] sm:$0xff] }
 0x170   : > { %v3046_v17 = vrot.slane %v3030_v24, 3  ;;  %v3047_v9 = vrot.slane %v3031_v57, 3  ;;  %v3048_v8 = vrot.slane %v3032_v32, 3  ;;  %v3049_v51 = vrot.slane %v3033_v14, 3 }
 0x171   : > { %v3050_v12 = vrot.slane %v3034_v38, 3  ;;  %v3059_v45 = vadd.f32 %v3043_v41, %v2966_v40  ;;  %v3060_v52 = vadd.f32 %v3044_v49, %v2967_v3  ;;  %v3061_v2 = vadd.f32 %v3045_v11, %v2968_v0 }
 0x172   : > { %v3062_v54 = vadd.f32 %v3046_v17, %v2969_v10  ;;  %v3063_v62 = vadd.f32 %v3047_v9, %v2970_v31  ;;  %v3064_v13 = vadd.f32 %v3048_v8, %v2971_v21  ;;  %v3065_v50 = vadd.f32 %v3049_v51, %v2972_v6 }
 0x173   : > { %v3066_v16 = vadd.f32 %v3050_v12, %v2973_v22  ;;  %v3067_v55 = vadd.f32 %v3043_v41, %v2974_v44  ;;  %v3068_v15 = vadd.f32 %v3044_v49, %v2975_v39  ;;  %v3069_v23 = vadd.f32 %v3045_v11, %v2976_v5 }
 0x174   : > { %v3070_v60 = vadd.f32 %v3046_v17, %v2977_v29  ;;  %v3071_v4 = vadd.f32 %v3047_v9, %v2978_v30  ;;  %v3072_v63 = vadd.f32 %v3048_v8, %v2979_v1  ;;  %v3083_v24 = vrot.slane %v8915_v61, %v7019_v18 }
 0x175   : > { %v3087_v40 = vrot.slane %v8915_v61, %v7021_v19  ;;  %v3091_v3 = vrot.slane %v8915_v61, %v7023_v20  ;;  %v3095_v0 = vrot.slane %v8915_v61, %v7033_v25  ;;  %v3099_v10 = vrot.slane %v8915_v61, %v7035_v26 }
 0x176   : > { %v3103_v31 = vrot.slane %v8915_v61, %v7037_v27  ;;  %v3107_v21 = vrot.slane %v8915_v61, %v7039_v28  ;;  %v3111_v6 = vrot.slane %v8915_v61, %v7055_v37  ;;  %v3120_v22 = vmul.f32 %v3083_v24, %v8848_v7 }
 0x177   : > { %v3121_v44 = vmul.f32 %v3087_v40, %v8838_v42  ;;  %v3122_v39 = vmul.f32 %v3091_v3, %v8840_v33  ;;  %v3123_v5 = vmul.f32 %v3095_v0, %v8850_v58  ;;  %v3124_v29 = vmul.f32 %v3099_v10, %v8852_v56 }
 0x178   : > { %v3125_v30 = vmul.f32 %v3103_v31, %v8854_v59  ;;  %v3126_v1 = vmul.f32 %v3107_v21, %v8913_v47  ;;  %v3127_v57 = vmul.f32 %v3111_v6, %v8955_v48  ;;  %v3073_v32 = vadd.f32 %v3049_v51, %v8909_v35 }
 0x179   : > { %v3074_v61 = vadd.f32 %v3050_v12, %v8911_v34  ;;  %v3136_v14 = vrot.slane %v3120_v22, 3  ;;  %v3137_v7 = vrot.slane %v3121_v44, 3  ;;  %v3138_v38 = vrot.slane %v3122_v39, 3  ;;  %v8983_v44 = vld [vmem:[#allocation2 + $0xc0] sm:$0xff] }
 0x17a   : > { %v3139_v41 = vrot.slane %v3123_v5, 3  ;;  %v3140_v49 = vrot.slane %v3124_v29, 3  ;;  %v3141_v11 = vrot.slane %v3125_v30, 3  ;;  %v3142_v17 = vrot.slane %v3126_v1, 3 }
 0x17b   : > { %v3143_v9 = vrot.slane %v3127_v57, 3  ;;  %v3152_v8 = vadd.f32 %v3136_v14, %v3059_v45  ;;  %v3153_v24 = vadd.f32 %v3137_v7, %v3060_v52  ;;  %v3154_v40 = vadd.f32 %v3138_v38, %v3061_v2 }
 0x17c   : > { %v3155_v3 = vadd.f32 %v3139_v41, %v3062_v54  ;;  %v3156_v0 = vadd.f32 %v3140_v49, %v3063_v62  ;;  %v3157_v10 = vadd.f32 %v3141_v11, %v3064_v13  ;;  %v3158_v31 = vadd.f32 %v3142_v17, %v3065_v50 }
 0x17d   : > { %v3159_v21 = vadd.f32 %v3143_v9, %v3066_v16  ;;  %v3160_v6 = vadd.f32 %v3136_v14, %v3067_v55  ;;  %v3161_v35 = vadd.f32 %v3137_v7, %v3068_v15  ;;  %v3162_v51 = vadd.f32 %v3138_v38, %v3069_v23 }
 0x17e   : > { %v3163_v34 = vadd.f32 %v3139_v41, %v3070_v60  ;;  %v3164_v12 = vadd.f32 %v3140_v49, %v3071_v4  ;;  %v3165_v22 = vadd.f32 %v3141_v11, %v3072_v63  ;;  %v3176_v39 = vrot.slane %v8917_v53, %v7019_v18 }
 0x17f   : > { %v3180_v45 = vrot.slane %v8917_v53, %v7021_v19  ;;  %v3184_v52 = vrot.slane %v8917_v53, %v7023_v20  ;;  %v3188_v50 = vrot.slane %v8917_v53, %v7033_v25  ;;  %v3192_v2 = vrot.slane %v8917_v53, %v7035_v26 }
 0x180   : > { %v3196_v54 = vrot.slane %v8917_v53, %v7037_v27  ;;  %v3200_v62 = vrot.slane %v8917_v53, %v7039_v28  ;;  %v3204_v13 = vrot.slane %v8917_v53, %v7055_v37  ;;  %v3213_v16 = vmul.f32 %v3176_v39, %v8838_v42 }
 0x181   : > { %v3214_v55 = vmul.f32 %v3180_v45, %v8840_v33  ;;  %v3215_v15 = vmul.f32 %v3184_v52, %v8850_v58  ;;  %v3216_v23 = vmul.f32 %v3188_v50, %v8852_v56  ;;  %v3217_v60 = vmul.f32 %v3192_v2, %v8854_v59 }
 0x182   : > { %v3218_v4 = vmul.f32 %v3196_v54, %v8913_v47  ;;  %v3219_v63 = vmul.f32 %v3200_v62, %v8955_v48  ;;  %v3220_v5 = vmul.f32 %v3204_v13, %v8983_v44  ;;  %v3166_v29 = vadd.f32 %v3142_v17, %v3073_v32 }
 0x183   : > { %v3167_v30 = vadd.f32 %v3143_v9, %v3074_v61  ;;  %v3229_v1 = vrot.slane %v3213_v16, 3  ;;  %v3230_v53 = vrot.slane %v3214_v55, 3  ;;  %v3231_v57 = vrot.slane %v3215_v15, 3  ;;  %v9009_v16 = vld [vmem:[#allocation2 + $0xc8] sm:$0xff] }
 0x184   : > { %v3232_v42 = vrot.slane %v3216_v23, 3  ;;  %v3233_v14 = vrot.slane %v3217_v60, 3  ;;  %v3234_v7 = vrot.slane %v3218_v4, 3  ;;  %v3235_v38 = vrot.slane %v3219_v63, 3 }
 0x185   : > { %v3236_v41 = vrot.slane %v3220_v5, 3  ;;  %v3245_v49 = vadd.f32 %v3229_v1, %v3152_v8  ;;  %v3246_v11 = vadd.f32 %v3230_v53, %v3153_v24  ;;  %v3247_v39 = vadd.f32 %v3231_v57, %v3154_v40 }
 0x186   : > { %v3248_v45 = vadd.f32 %v3232_v42, %v3155_v3  ;;  %v3249_v52 = vadd.f32 %v3233_v14, %v3156_v0  ;;  %v3250_v50 = vadd.f32 %v3234_v7, %v3157_v10  ;;  %v3251_v2 = vadd.f32 %v3235_v38, %v3158_v31 }
 0x187   : > { %v3252_v54 = vadd.f32 %v3236_v41, %v3159_v21  ;;  %v3253_v62 = vadd.f32 %v3229_v1, %v3160_v6  ;;  %v3254_v13 = vadd.f32 %v3230_v53, %v3161_v35  ;;  %v3255_v32 = vadd.f32 %v3231_v57, %v3162_v51 }
 0x188   : > { %v3256_v61 = vadd.f32 %v3232_v42, %v3163_v34  ;;  %v3257_v17 = vadd.f32 %v3233_v14, %v3164_v12  ;;  %v3258_v9 = vadd.f32 %v3234_v7, %v3165_v22  ;;  %v3269_v55 = vrot.slane %v8919_v36, %v7019_v18 }
 0x189   : > { %v3273_v8 = vrot.slane %v8919_v36, %v7021_v19  ;;  %v3277_v24 = vrot.slane %v8919_v36, %v7023_v20  ;;  %v3281_v40 = vrot.slane %v8919_v36, %v7033_v25  ;;  %v3285_v3 = vrot.slane %v8919_v36, %v7035_v26 }
 0x18a   : > { %v3289_v0 = vrot.slane %v8919_v36, %v7037_v27  ;;  %v3293_v10 = vrot.slane %v8919_v36, %v7039_v28  ;;  %v3297_v31 = vrot.slane %v8919_v36, %v7055_v37  ;;  %v3306_v21 = vmul.f32 %v3269_v55, %v8840_v33 }
 0x18b   : > { %v3307_v6 = vmul.f32 %v3273_v8, %v8850_v58  ;;  %v3308_v35 = vmul.f32 %v3277_v24, %v8852_v56  ;;  %v3309_v51 = vmul.f32 %v3281_v40, %v8854_v59  ;;  %v3310_v34 = vmul.f32 %v3285_v3, %v8913_v47 }
 0x18c   : > { %v3311_v12 = vmul.f32 %v3289_v0, %v8955_v48  ;;  %v3312_v22 = vmul.f32 %v3293_v10, %v8983_v44  ;;  %v3313_v15 = vmul.f32 %v3297_v31, %v9009_v16  ;;  %v3259_v23 = vadd.f32 %v3235_v38, %v3166_v29 }
 0x18d   : > { %v3322_v60 = vrot.slane %v3306_v21, 3  ;;  %v3323_v4 = vrot.slane %v3307_v6, 3  ;;  %v3324_v36 = vrot.slane %v3308_v35, 3  ;;  %v3325_v63 = vrot.slane %v3309_v51, 3  ;;  %v2887_v6 = vld [vmem:[#allocation2 + $0xd0] sm:$0xff]  ;;  %v11766_v35 = vld [vmem:[#allocation14_spill] sm:$0xff] }
 0x18e   : > { %v3326_v33 = vrot.slane %v3310_v34, 3  ;;  %v3327_v5 = vrot.slane %v3311_v12, 3  ;;  %v3329_v1 = vrot.slane %v3313_v15, 3  ;;  %v3260_v53 = vadd.f32 %v3236_v41, %v3167_v30 }
 0x18f   : > { %v3328_v57 = vrot.slane %v3312_v22, 3  ;;  %v3338_v42 = vadd.f32 %v3322_v60, %v3245_v49  ;;  %v3339_v14 = vadd.f32 %v3323_v4, %v3246_v11  ;;  %v3340_v7 = vadd.f32 %v3324_v36, %v3247_v39 }
 0x190   : > { %v3341_v55 = vadd.f32 %v3325_v63, %v3248_v45  ;;  %v3342_v8 = vadd.f32 %v3326_v33, %v3249_v52  ;;  %v3343_v24 = vadd.f32 %v3327_v5, %v3250_v50  ;;  %v3345_v3 = vadd.f32 %v3329_v1, %v3252_v54 }
 0x191   : > { %v3344_v40 = vadd.f32 %v3328_v57, %v3251_v2  ;;  %v3346_v0 = vadd.f32 %v3322_v60, %v3253_v62  ;;  %v3347_v10 = vadd.f32 %v3323_v4, %v3254_v13  ;;  %v3348_v29 = vadd.f32 %v3324_v36, %v3255_v32 }
 0x192   : > { %v3349_v38 = vadd.f32 %v3325_v63, %v3256_v61  ;;  %v3350_v31 = vadd.f32 %v3326_v33, %v3257_v17  ;;  %v3351_v21 = vadd.f32 %v3327_v5, %v3258_v9  ;;  %v3362_v51 = vrot.slane %v11766_v35, %v7019_v18 }
 0x193   : > { %v3366_v30 = vrot.slane %v11766_v35, %v7021_v19  ;;  %v3370_v41 = vrot.slane %v11766_v35, %v7023_v20  ;;  %v3374_v49 = vrot.slane %v11766_v35, %v7033_v25  ;;  %v3378_v11 = vrot.slane %v11766_v35, %v7035_v26 }
 0x194   : > { %v3382_v39 = vrot.slane %v11766_v35, %v7037_v27  ;;  %v3386_v45 = vrot.slane %v11766_v35, %v7039_v28  ;;  %v3390_v52 = vrot.slane %v11766_v35, %v7055_v37  ;;  %v3399_v50 = vmul.f32 %v3362_v51, %v8850_v58 }
 0x195   : > { %v3400_v2 = vmul.f32 %v3366_v30, %v8852_v56  ;;  %v3401_v54 = vmul.f32 %v3370_v41, %v8854_v59  ;;  %v3402_v62 = vmul.f32 %v3374_v49, %v8913_v47  ;;  %v3403_v13 = vmul.f32 %v3378_v11, %v8955_v48 }
 0x196   : > { %v3404_v32 = vmul.f32 %v3382_v39, %v8983_v44  ;;  %v3405_v61 = vmul.f32 %v3386_v45, %v9009_v16  ;;  %v3406_v17 = vmul.f32 %v3390_v52, %v2887_v6  ;;  %v3415_v9 = vrot.slane %v3399_v50, 3 }
 0x197   : > { %v3416_v34 = vrot.slane %v3400_v2, 3  ;;  %v3417_v12 = vrot.slane %v3401_v54, 3  ;;  %v3418_v22 = vrot.slane %v3402_v62, 3  ;;  %v3419_v15 = vrot.slane %v3403_v13, 3  ;;  %v2888_v62 = vld [vmem:[#allocation2 + $0xd8] sm:$0xff] }
 0x198   : > { %v3420_v60 = vrot.slane %v3404_v32, 3  ;;  %v3421_v58 = vrot.slane %v3405_v61, 3  ;;  %v3422_v4 = vrot.slane %v3406_v17, 3  ;;  %v3352_v36 = vadd.f32 %v3328_v57, %v3259_v23 }
 0x199   : > { %v3353_v63 = vadd.f32 %v3329_v1, %v3260_v53  ;;  %v3431_v33 = vadd.f32 %v3415_v9, %v3338_v42  ;;  %v3432_v5 = vadd.f32 %v3416_v34, %v3339_v14  ;;  %v3433_v35 = vadd.f32 %v3417_v12, %v3340_v7 }
 0x19a   : > { %v3434_v51 = vadd.f32 %v3418_v22, %v3341_v55  ;;  %v3435_v30 = vadd.f32 %v3419_v15, %v3342_v8  ;;  %v3436_v41 = vadd.f32 %v3420_v60, %v3343_v24  ;;  %v3437_v49 = vadd.f32 %v3421_v58, %v3344_v40 }
 0x19b   : > { %v3438_v11 = vadd.f32 %v3422_v4, %v3345_v3  ;;  %v3439_v39 = vadd.f32 %v3415_v9, %v3346_v0  ;;  %v3440_v45 = vadd.f32 %v3416_v34, %v3347_v10  ;;  %v3441_v52 = vadd.f32 %v3417_v12, %v3348_v29  ;;  %v9102_v12 = vld [vmem:[#allocation2 + $0x88] sm:$0xfe] }
 0x19c   : > { %v3442_v50 = vadd.f32 %v3418_v22, %v3349_v38  ;;  %v3443_v2 = vadd.f32 %v3419_v15, %v3350_v31  ;;  %v3444_v54 = vadd.f32 %v3420_v60, %v3351_v21  ;;  %v3455_v13 = vrot.slane %v8951_v43, %v7019_v18  ;;  %11767 = vst [vmem:[#allocation12_spill] sm:$0xff] %v9102_v12 }
 0x19d   : > { %v3459_v23 = vrot.slane %v8951_v43, %v7021_v19  ;;  %v3463_v1 = vrot.slane %v8951_v43, %v7023_v20  ;;  %v3467_v53 = vrot.slane %v8951_v43, %v7033_v25  ;;  %v3471_v57 = vrot.slane %v8951_v43, %v7035_v26 }
 0x19e   : > { %v3475_v42 = vrot.slane %v8951_v43, %v7037_v27  ;;  %v3479_v14 = vrot.slane %v8951_v43, %v7039_v28  ;;  %v3483_v7 = vrot.slane %v8951_v43, %v7055_v37  ;;  %v3492_v55 = vmul.f32 %v3455_v13, %v8852_v56  ;;  %v9148_v13 = vld [vmem:[#allocation2 + $0xe8] sm:$0x1] }
 0x19f   : > { %v3493_v8 = vmul.f32 %v3459_v23, %v8854_v59  ;;  %v3494_v24 = vmul.f32 %v3463_v1, %v8913_v47  ;;  %v3495_v40 = vmul.f32 %v3467_v53, %v8955_v48  ;;  %v3496_v3 = vmul.f32 %v3471_v57, %v8983_v44  ;;  %11775 = vst [vmem:[#allocation5_spill] sm:$0xff] %v9148_v13  ;;  %v9150_v23 = vld [vmem:[#allocation2 + $0xf0] sm:$0x1] }
 0x1a0   : > { %v3497_v0 = vmul.f32 %v3475_v42, %v9009_v16  ;;  %v9080_v10 = vmul.f32 %v3479_v14, %v2887_v6  ;;  %v9082_v29 = vmul.f32 %v3483_v7, %v2888_v62  ;;  %v3508_v38 = vrot.slane %v3492_v55, 3  ;;  %v3554_v62 = vld [vmem:[#allocation2 + $0xe0] sm:$0x1]  ;;  %11776 = vst [vmem:[#allocation22_spill] sm:$0xff] %v9150_v23  ;;  %v9160_v14 = vld [vmem:[#allocation2 + $0x108] sm:$0x1] }
 0x1a1   : > { %v3509_v31 = vrot.slane %v3493_v8, 3  ;;  %v3510_v21 = vrot.slane %v3494_v24, 3  ;;  %v3511_v43 = vrot.slane %v3495_v40, 3  ;;  %v3512_v32 = vrot.slane %v3496_v3, 3  ;;  %11777 = vst [vmem:[#allocation17_spill] sm:$0xff] %v9160_v14 }
 0x1a2   : > { %v3513_v56 = vrot.slane %v3497_v0, 3  ;;  %v11417_v59 = vrot.slane %v9080_v10, 3  ;;  %v11416_v47 = vrot.slane %v9082_v29, 3  ;;  %v9086_v61 = vadd.f32 %v3421_v58, %v3352_v36  ;;  %v9118_v36 = vld [vmem:[#allocation2 + $0x98] sm:$0xfe] }
 0x1a3   : > { %v9088_v48 = vadd.f32 %v3422_v4, %v3353_v63  ;;  %v9090_v44 = vadd.f32 %v3508_v38, %v3431_v33  ;;  %v9092_v16 = vadd.f32 %v3509_v31, %v3432_v5  ;;  %v9094_v6 = vadd.f32 %v3510_v21, %v3433_v35  ;;  %v9116_v4 = vld [vmem:[#allocation2 + $0x90] sm:$0xfe]  ;;  %11769 = vst [vmem:[#allocation6_spill] sm:$0xff] %v9118_v36  ;;  %v9120_v63 = vld [vmem:[#allocation2 + $0xa0] sm:$0xfe] }
 0x1a4   : > { %v9096_v17 = vadd.f32 %v3511_v43, %v3434_v51  ;;  %v9098_v9 = vadd.f32 %v3512_v32, %v3435_v30  ;;  %v9100_v34 = vadd.f32 %v3513_v56, %v3436_v41  ;;  %v9106_v22 = vadd.f32 %v11417_v59, %v3437_v49  ;;  %11768 = vst [vmem:[#allocation3_spill] sm:$0xff] %v9116_v4  ;;  %v3540_v30 = vld [vmem:[#allocation2 + $0x70] sm:$0xfe]  ;;  %v9130_v41 = vld [vmem:[#allocation2 + $0x78] sm:$0xfe] }
 0x1a5   : > { %v9110_v15 = vadd.f32 %v11416_v47, %v3438_v11  ;;  %v9112_v60 = vadd.f32 %v3508_v38, %v3439_v39  ;;  %v9114_v58 = vadd.f32 %v3509_v31, %v3440_v45  ;;  %11770 = vst [vmem:[#allocation15_spill] sm:$0xff] %v9120_v63  ;;  %v9122_v33 = vadd.f32 %v3510_v21, %v3441_v52  ;;  %v9132_v49 = vld [vmem:[#allocation2 + $0x80] sm:$0xfe]  ;;  %v9134_v11 = vld [vmem:[#allocation2 + $0xa8] sm:$0xfe] }
 0x1a6   : > { %v9124_v5 = vadd.f32 %v3511_v43, %v3442_v50  ;;  %v9126_v35 = vadd.f32 %v3512_v32, %v3443_v2  ;;  %v9128_v51 = vadd.f32 %v3513_v56, %v3444_v54  ;;  %11771 = vst [vmem:[#allocation4_spill] sm:$0xff] %v9132_v49  ;;  %11772 = vst [vmem:[#allocation18_spill] sm:$0xff] %v9134_v11  ;;  %v9136_v39 = vld [vmem:[#allocation2 + $0xf8] sm:$0x1]  ;;  %v9138_v45 = vld [vmem:[#allocation2 + $0x100] sm:$0x1] }
 0x1a7   : > { %11773 = vst [vmem:[#allocation9_spill] sm:$0xff] %v9136_v39  ;;  %11774 = vst [vmem:[#allocation16_spill] sm:$0xff] %v9138_v45  ;;  %v3576_v52 = vrot.slane %v8953_v46, %v7019_v18  ;;  %v3580_v50 = vrot.slane %v8953_v46, %v7021_v19  ;;  %v3584_v2 = vrot.slane %v8953_v46, %v7023_v20  ;;  %v9162_v7 = vld [vmem:[#allocation2 + $0x110] sm:$0x1]  ;;  %v9164_v55 = vld [vmem:[#allocation2 + $0x118] sm:$0x1] }
 0x1a8   : > { %v3588_v54 = vrot.slane %v8953_v46, %v7033_v25  ;;  %v3592_v1 = vrot.slane %v8953_v46, %v7035_v26  ;;  %v3596_v53 = vrot.slane %v8953_v46, %v7037_v27  ;;  %v3600_v57 = vrot.slane %v8953_v46, %v7039_v28  ;;  %11778 = vst [vmem:[#allocation21_spill] sm:$0xff] %v9162_v7 }
 0x1a9   : > { %v3604_v42 = vrot.slane %v8953_v46, %v7055_v37  ;;  %11779 = vst [vmem:[#allocation10_spill] sm:$0xff] %v9164_v55  ;;  %v3613_v8 = vmul.f32 %v3576_v52, %v3540_v30  ;;  %v3614_v24 = vmul.f32 %v3580_v50, %v9130_v41  ;;  %v3615_v40 = vmul.f32 %v3584_v2, %v9132_v49 }
 0x1aa   : > { %v3616_v3 = vmul.f32 %v3588_v54, %v9102_v12  ;;  %v3617_v0 = vmul.f32 %v3592_v1, %v9116_v4  ;;  %v3618_v38 = vmul.f32 %v3596_v53, %v9118_v36  ;;  %v3619_v31 = vmul.f32 %v3600_v57, %v9120_v63 }
 0x1ab   : > { %v3620_v46 = vmul.f32 %v3604_v42, %v9134_v11  ;;  %v3621_v21 = vmul.f32 %v3576_v52, %v3554_v62  ;;  %v3622_v43 = vmul.f32 %v3580_v50, %v9148_v13  ;;  %v3623_v32 = vmul.f32 %v3584_v2, %v9150_v23 }
 0x1ac   : > { %v3624_v56 = vmul.f32 %v3588_v54, %v9136_v39  ;;  %v3625_v30 = vmul.f32 %v3592_v1, %v9138_v45  ;;  %v3626_v47 = vmul.f32 %v3596_v53, %v9160_v14  ;;  %v3627_v59 = vmul.f32 %v3600_v57, %v9162_v7 }
 0x1ad   : > { %v3628_v4 = vmul.f32 %v3604_v42, %v9164_v55  ;;  %v3646_v36 = vrot.slane %v3613_v8, 4  ;;  %v3647_v12 = vrot.slane %v3614_v24, 4  ;;  %v3648_v63 = vrot.slane %v3615_v40, 4 }
 0x1ae   : > { %v3649_v49 = vrot.slane %v3616_v3, 4  ;;  %v3650_v11 = vrot.slane %v3617_v0, 4  ;;  %v3651_v52 = vrot.slane %v3618_v38, 4  ;;  %v3652_v62 = vrot.slane %v3619_v31, 4 }
 0x1af   : > { %v3653_v50 = vrot.slane %v3620_v46, 4  ;;  %v3654_v13 = vrot.slane %v3621_v21, 4  ;;  %v3656_v2 = vrot.slane %v3622_v43, 4  ;;  %v3658_v23 = vrot.slane %v3623_v32, 4 }
 0x1b0   : > { %v3660_v54 = vrot.slane %v3624_v56, 4  ;;  %v3662_v39 = vrot.slane %v3625_v30, 4  ;;  %v3664_v1 = vrot.slane %v3626_v47, 4  ;;  %v3666_v45 = vrot.slane %v3627_v59, 4 }
 0x1b1   : > { %v3668_v53 = vrot.slane %v3628_v4, 4  ;;  %v11780_v57 = vrot.slane %v9080_v10, 3  ;;  %v11781_v8 = vrot.slane %v9082_v29, 3  ;;  %v3655_v40 = vsel %vm3645_vm2, %v3646_v36, %v3654_v13  ;;  %v6793_v10 = vld [vmem:[%s11285_s3 + $0xc5] ss:$8 sm:$0xf] }
 0x1b2   : > { %v3657_v3 = vsel %vm3645_vm2, %v3647_v12, %v3656_v2  ;;  %v3659_v0 = vsel %vm3645_vm2, %v3648_v63, %v3658_v23  ;;  %v3661_v38 = vsel %vm3645_vm2, %v3649_v49, %v3660_v54  ;;  %v3663_v47 = vsel %vm3645_vm2, %v3650_v11, %v3662_v39  ;;  %v6794_v29 = vld [vmem:[%s11285_s3 + $0xc5] ss:$8 sm:$0xf0]  ;;  %v6797_v31 = vld [vmem:[%s11285_s3 + $0xc7] ss:$8 sm:$0xf] }
 0x1b3   : > { %v3538_v42 = vadd.f32 %v11780_v57, %v9086_v61  ;;  %v3539_v24 = vadd.f32 %v11781_v8, %v9088_v48  ;;  %v3665_v59 = vsel %vm3645_vm2, %v3651_v52, %v3664_v1  ;;  %v6795_v61 = vld [vmem:[%s11285_s3 + $0xc6] ss:$8 sm:$0xf]  ;;  %v3667_v4 = vsel %vm3645_vm2, %v3652_v62, %v3666_v45  ;;  %v6798_v46 = vld [vmem:[%s11285_s3 + $0xc7] ss:$8 sm:$0xf0] }
 0x1b4   : > { %v6796_v48 = vld [vmem:[%s11285_s3 + $0xc6] ss:$8 sm:$0xf0]  ;;  %v3669_v39 = vsel %vm3645_vm2, %v3653_v50, %v3668_v53  ;;  %v9207_v13 = vadd.f32 %v3646_v36, %v9090_v44  ;;  %v9210_v23 = vadd.f32 %v3647_v12, %v9092_v16  ;;  %v6799_v45 = vld [vmem:[%s11285_s3 + $0x100] ss:$8 sm:$0xf]  ;;  %v9225_v36 = vadd.f32 %v3648_v63, %v9094_v6 }
 0x1b5   : > { %v6800_v44 = vld [vmem:[%s11285_s3 + $0x100] ss:$8 sm:$0xf0]  ;;  %v9228_v16 = vadd.f32 %v3649_v49, %v9096_v17  ;;  %v9231_v12 = vadd.f32 %v3650_v11, %v9098_v9  ;;  %v9234_v21 = vadd.f32 %v3651_v52, %v9100_v34  ;;  %v6801_v43 = vld [vmem:[%s11285_s3 + $0x101] ss:$8 sm:$0xf]  ;;  %v9243_v6 = vadd.f32 %v3652_v62, %v9106_v22 }
 0x1b6   : > { %v6802_v32 = vld [vmem:[%s11285_s3 + $0x101] ss:$8 sm:$0xf0]  ;;  %v9246_v17 = vadd.f32 %v3653_v50, %v9110_v15  ;;  %v9249_v9 = vadd.f32 %v3655_v40, %v9112_v60  ;;  %v9252_v34 = vadd.f32 %v3657_v3, %v9114_v58  ;;  %v6803_v63 = vld [vmem:[%s11285_s3 + $0x102] ss:$8 sm:$0xf]  ;;  %v9261_v22 = vadd.f32 %v3659_v0, %v9122_v33 }
 0x1b7   : > { %v6804_v49 = vld [vmem:[%s11285_s3 + $0x102] ss:$8 sm:$0xf0]  ;;  %v9264_v15 = vadd.f32 %v3661_v38, %v9124_v5  ;;  %v9267_v60 = vadd.f32 %v3663_v47, %v9126_v35  ;;  %v9270_v58 = vadd.f32 %v3665_v59, %v9128_v51  ;;  %v9272_v11 = vadd.f32 %v3667_v4, %v3538_v42 }
 0x1b8   : > { %v9274_v56 = vadd.f32 %v3669_v39, %v3539_v24  ;;  %v3705_v30 = vor.u32 %v6794_v29, %v6793_v10  ;;  %v9276_v52 = vor.u32 %v6796_v48, %v6795_v61  ;;  %v9278_v62 = vor.u32 %v6798_v46, %v6797_v31  ;;  %v9286_v35 = vld [vmem:[#allocation2 + $0xb0] sm:$0xfe]  ;;  %v9296_v24 = vld [vmem:[#allocation2 + $0x120] sm:$0x1]  ;;  %v11789_v3 = vld [vmem:[#allocation4_spill] sm:$0xff] }
 0x1b9   : > { %v9280_v33 = vor.u32 %v6800_v44, %v6799_v45  ;;  %v9282_v50 = vor.u32 %v6802_v32, %v6801_v43  ;;  %v9284_v5 = vor.u32 %v6804_v49, %v6803_v63  ;;  %11787 = vst [vmem:[#allocation14_spill] sm:$0xff] %v9286_v35  ;;  %11788 = vst [vmem:[#allocation23_spill] sm:$0xff] %v9296_v24  ;;  %v11790_v38 = vld [vmem:[#allocation12_spill] sm:$0xff]  ;;  %v11791_v59 = vld [vmem:[#allocation3_spill] sm:$0xff] }
 0x1ba   : > { %11782 = vst [vmem:[#allocation20_spill] sm:$0xff] %v9274_v56  ;;  %11783 = vst [vmem:[#allocation11_spill] sm:$0xff] %v9278_v62  ;;  %v3710_v51 = vrot.slane %v3705_v30, %v7019_v18  ;;  %v3714_v2 = vrot.slane %v3705_v30, %v7021_v19  ;;  %v3718_v54 = vrot.slane %v3705_v30, %v7023_v20  ;;  %v11792_v29 = vld [vmem:[#allocation6_spill] sm:$0xff]  ;;  %v11793_v48 = vld [vmem:[#allocation15_spill] sm:$0xff] }
 0x1bb   : > { %11784 = vst [vmem:[#allocation7_spill] sm:$0xff] %v9280_v33  ;;  %11785 = vst [vmem:[#allocation8_spill] sm:$0xff] %v9282_v50  ;;  %v3722_v1 = vrot.slane %v3705_v30, %v7033_v25  ;;  %v3726_v53 = vrot.slane %v3705_v30, %v7035_v26  ;;  %v3730_v57 = vrot.slane %v3705_v30, %v7037_v27  ;;  %v11794_v39 = vld [vmem:[#allocation18_spill] sm:$0xff]  ;;  %v11795_v45 = vld [vmem:[#allocation5_spill] sm:$0xff] }
 0x1bc   : > { %11786 = vst [vmem:[#allocation19_spill] sm:$0xff] %v9284_v5  ;;  %v3734_v42 = vrot.slane %v3705_v30, %v7039_v28  ;;  %v3738_v8 = vrot.slane %v3705_v30, %v7055_v37  ;;  %v3747_v40 = vmul.f32 %v3710_v51, %v9130_v41  ;;  %v3748_v0 = vmul.f32 %v3714_v2, %v11789_v3  ;;  %v11796_v43 = vld [vmem:[#allocation22_spill] sm:$0xff]  ;;  %v11797_v63 = vld [vmem:[#allocation9_spill] sm:$0xff]  ;;  %v11798_v49 = vld [vmem:[#allocation16_spill] sm:$0xff] }
 0x1bd   : > { %v3749_v47 = vmul.f32 %v3718_v54, %v11790_v38  ;;  %v3750_v10 = vmul.f32 %v3722_v1, %v11791_v59  ;;  %v3751_v61 = vmul.f32 %v3726_v53, %v11792_v29  ;;  %v3752_v4 = vmul.f32 %v3730_v57, %v11793_v48  ;;  %v6805_v56 = vld [vmem:[%s11285_s3 + $0x103] ss:$8 sm:$0xf] }
 0x1be   : > { %v3753_v31 = vmul.f32 %v3734_v42, %v11794_v39  ;;  %v3754_v46 = vmul.f32 %v3738_v8, %v9286_v35  ;;  %v3755_v44 = vmul.f32 %v3710_v51, %v11795_v45  ;;  %v3756_v32 = vmul.f32 %v3714_v2, %v11796_v43  ;;  %v6806_v51 = vld [vmem:[%s11285_s3 + $0x103] ss:$8 sm:$0xf0] }
 0x1bf   : > { %v3757_v41 = vmul.f32 %v3718_v54, %v11797_v63  ;;  %v3758_v30 = vmul.f32 %v3722_v1, %v11798_v49  ;;  %v3759_v5 = vmul.f32 %v3726_v53, %v9160_v14  ;;  %v3760_v50 = vmul.f32 %v3730_v57, %v9162_v7 }
 0x1c0   : > { %v3761_v33 = vmul.f32 %v3734_v42, %v9164_v55  ;;  %v3762_v62 = vmul.f32 %v3738_v8, %v9296_v24  ;;  %v3779_v2 = vrot.slane %v3747_v40, 4  ;;  %v3780_v54 = vrot.slane %v3748_v0, 4 }
 0x1c1   : > { %v3781_v45 = vrot.slane %v3749_v47, 4  ;;  %v3782_v1 = vrot.slane %v3750_v10, 4  ;;  %v3783_v49 = vrot.slane %v3751_v61, 4  ;;  %v3784_v53 = vrot.slane %v3752_v4, 4 }
 0x1c2   : > { %v3785_v14 = vrot.slane %v3753_v31, 4  ;;  %v3786_v57 = vrot.slane %v3754_v46, 4  ;;  %v3787_v7 = vrot.slane %v3755_v44, 4  ;;  %v3789_v42 = vrot.slane %v3756_v32, 4 }
 0x1c3   : > { %v3791_v55 = vrot.slane %v3757_v41, 4  ;;  %v3793_v8 = vrot.slane %v3758_v30, 4  ;;  %v3795_v24 = vrot.slane %v3759_v5, 4  ;;  %v3797_v63 = vrot.slane %v3760_v50, 4 }
 0x1c4   : > { %v3799_v43 = vrot.slane %v3761_v33, 4  ;;  %v3801_v35 = vrot.slane %v3762_v62, 4  ;;  %v3788_v39 = vsel %vm3645_vm2, %v3779_v2, %v3787_v7  ;;  %v3790_v48 = vsel %vm3645_vm2, %v3780_v54, %v3789_v42  ;;  %v11809_v42 = vld [vmem:[#allocation21_spill] sm:$0xff] }
 0x1c5   : > { %v3792_v40 = vsel %vm3645_vm2, %v3781_v45, %v3791_v55  ;;  %v9323_v0 = vor.u32 %v6806_v51, %v6805_v56  ;;  %v3794_v47 = vsel %vm3645_vm2, %v3782_v1, %v3793_v8  ;;  %v3796_v10 = vsel %vm3645_vm2, %v3783_v49, %v3795_v24 }
 0x1c6   : > { %v3798_v61 = vsel %vm3645_vm2, %v3784_v53, %v3797_v63  ;;  %v3800_v4 = vsel %vm3645_vm2, %v3785_v14, %v3799_v43  ;;  %v3802_v50 = vsel %vm3645_vm2, %v3786_v57, %v3801_v35  ;;  %v9331_v62 = vadd.f32 %v3779_v2, %v9207_v13  ;;  %v11802_v43 = vld [vmem:[#allocation15_spill] sm:$0xff]  ;;  %v11803_v63 = vld [vmem:[#allocation18_spill] sm:$0xff] }
 0x1c7   : > { %11799 = vst [vmem:[#allocation4_spill] sm:$0xff] %v9323_v0  ;;  %v9334_v7 = vadd.f32 %v3780_v54, %v9210_v23  ;;  %v9337_v55 = vadd.f32 %v3781_v45, %v9225_v36  ;;  %v9340_v56 = vadd.f32 %v3782_v1, %v9228_v16  ;;  %v9343_v33 = vadd.f32 %v3783_v49, %v9231_v12  ;;  %v11804_v49 = vld [vmem:[#allocation14_spill] sm:$0xff]  ;;  %v11806_v54 = vld [vmem:[#allocation9_spill] sm:$0xff]  ;;  %v11807_v1 = vld [vmem:[#allocation16_spill] sm:$0xff] }
 0x1c8   : > { %v9346_v5 = vadd.f32 %v3784_v53, %v9234_v21  ;;  %v9349_v35 = vadd.f32 %v3785_v14, %v9243_v6  ;;  %v9352_v13 = vadd.f32 %v3786_v57, %v9246_v17  ;;  %v9355_v23 = vadd.f32 %v3788_v39, %v9249_v9  ;;  %v9375_v17 = vld [vmem:[#allocation2 + $0xb8] sm:$0xfe]  ;;  %v11805_v2 = vld [vmem:[#allocation22_spill] sm:$0xff]  ;;  %v11808_v53 = vld [vmem:[#allocation17_spill] sm:$0xff] }
 0x1c9   : > { %v9358_v36 = vadd.f32 %v3790_v48, %v9252_v34  ;;  %v9361_v16 = vadd.f32 %v3792_v40, %v9261_v22  ;;  %v9364_v12 = vadd.f32 %v3794_v47, %v9264_v15  ;;  %v9367_v21 = vadd.f32 %v3796_v10, %v9267_v60  ;;  %11800 = vst [vmem:[#allocation12_spill] sm:$0xff] %v9375_v17  ;;  %v9393_v48 = vld [vmem:[#allocation2 + $0x128] sm:$0x1]  ;;  %v11811_v10 = vld [vmem:[#allocation23_spill] sm:$0xff] }
 0x1ca   : > { %v9370_v14 = vadd.f32 %v3798_v61, %v9270_v58  ;;  %v9373_v6 = vadd.f32 %v3800_v4, %v9272_v11  ;;  %v3843_v9 = vrot.slane %v9276_v52, %v7019_v18  ;;  %v3847_v34 = vrot.slane %v9276_v52, %v7021_v19  ;;  %11801 = vst [vmem:[#allocation3_spill] sm:$0xff] %v9393_v48  ;;  %v11810_v40 = vld [vmem:[#allocation10_spill] sm:$0xff] }
 0x1cb   : > { %v3851_v22 = vrot.slane %v9276_v52, %v7023_v20  ;;  %v3855_v15 = vrot.slane %v9276_v52, %v7033_v25  ;;  %v3859_v60 = vrot.slane %v9276_v52, %v7035_v26  ;;  %v3863_v58 = vrot.slane %v9276_v52, %v7037_v27 }
 0x1cc   : > { %v3867_v11 = vrot.slane %v9276_v52, %v7039_v28  ;;  %v3871_v24 = vrot.slane %v9276_v52, %v7055_v37  ;;  %v3880_v39 = vmul.f32 %v3843_v9, %v11789_v3  ;;  %v3881_v31 = vmul.f32 %v3847_v34, %v11790_v38 }
 0x1cd   : > { %v3882_v46 = vmul.f32 %v3851_v22, %v11791_v59  ;;  %v3883_v44 = vmul.f32 %v3855_v15, %v11792_v29  ;;  %v3884_v32 = vmul.f32 %v3859_v60, %v11802_v43  ;;  %v3885_v41 = vmul.f32 %v3863_v58, %v11803_v63 }
 0x1ce   : > { %v3886_v30 = vmul.f32 %v3867_v11, %v11804_v49  ;;  %v3887_v51 = vmul.f32 %v3871_v24, %v9375_v17  ;;  %v3888_v52 = vmul.f32 %v3843_v9, %v11805_v2  ;;  %v3889_v45 = vmul.f32 %v3847_v34, %v11806_v54 }
 0x1cf   : > { %v3890_v3 = vmul.f32 %v3851_v22, %v11807_v1  ;;  %v3891_v57 = vmul.f32 %v3855_v15, %v11808_v53  ;;  %v3892_v8 = vmul.f32 %v3859_v60, %v11809_v42  ;;  %v3893_v47 = vmul.f32 %v3863_v58, %v11810_v40  ;;  %v11812_v40 = vld [vmem:[#allocation20_spill] sm:$0xff] }
 0x1d0   : > { %v3894_v61 = vmul.f32 %v3867_v11, %v11811_v10  ;;  %v3895_v4 = vmul.f32 %v3871_v24, %v9393_v48  ;;  %v3912_v0 = vrot.slane %v3880_v39, 4  ;;  %v3913_v49 = vrot.slane %v3881_v31, 4 }
 0x1d1   : > { %v3914_v63 = vrot.slane %v3882_v46, 4  ;;  %v3915_v17 = vrot.slane %v3883_v44, 4  ;;  %v3916_v43 = vrot.slane %v3884_v32, 4  ;;  %v3917_v9 = vrot.slane %v3885_v41, 4 }
 0x1d2   : > { %v3918_v2 = vrot.slane %v3886_v30, 4  ;;  %v3919_v34 = vrot.slane %v3887_v51, 4  ;;  %v3920_v54 = vrot.slane %v3888_v52, 4  ;;  %v3922_v22 = vrot.slane %v3889_v45, 4 }
 0x1d3   : > { %v3924_v1 = vrot.slane %v3890_v3, 4  ;;  %v3926_v15 = vrot.slane %v3891_v57, 4  ;;  %v3928_v53 = vrot.slane %v3892_v8, 4  ;;  %v3930_v60 = vrot.slane %v3893_v47, 4 }
 0x1d4   : > { %v3932_v42 = vrot.slane %v3894_v61, 4  ;;  %v3934_v58 = vrot.slane %v3895_v4, 4  ;;  %v9412_v11 = vadd.f32 %v3802_v50, %v11812_v40  ;;  %v3921_v24 = vsel %vm3645_vm2, %v3912_v0, %v3920_v54  ;;  %v11816_v40 = vld [vmem:[#allocation18_spill] sm:$0xff] }
 0x1d5   : > { %v3923_v39 = vsel %vm3645_vm2, %v3913_v49, %v3922_v22  ;;  %v3925_v31 = vsel %vm3645_vm2, %v3914_v63, %v3924_v1  ;;  %v3927_v46 = vsel %vm3645_vm2, %v3915_v17, %v3926_v15  ;;  %v3929_v44 = vsel %vm3645_vm2, %v3916_v43, %v3928_v53  ;;  %v11817_v61 = vld [vmem:[#allocation14_spill] sm:$0xff]  ;;  %v11819_v22 = vld [vmem:[#allocation9_spill] sm:$0xff] }
 0x1d6   : > { %v3931_v32 = vsel %vm3645_vm2, %v3917_v9, %v3930_v60  ;;  %v3933_v41 = vsel %vm3645_vm2, %v3918_v2, %v3932_v42  ;;  %v3935_v30 = vsel %vm3645_vm2, %v3919_v34, %v3934_v58  ;;  %v9423_v51 = vadd.f32 %v3912_v0, %v9331_v62  ;;  %v11815_v42 = vld [vmem:[#allocation15_spill] sm:$0xff]  ;;  %v11820_v60 = vld [vmem:[#allocation16_spill] sm:$0xff] }
 0x1d7   : > { %v9426_v50 = vadd.f32 %v3913_v49, %v9334_v7  ;;  %v9429_v52 = vadd.f32 %v3914_v63, %v9337_v55  ;;  %v9432_v54 = vadd.f32 %v3915_v17, %v9340_v56  ;;  %v9435_v45 = vadd.f32 %v3916_v43, %v9343_v33  ;;  %v9485_v63 = vld [vmem:[#allocation2 + $0x130] sm:$0x1] }
 0x1d8   : > { %v9438_v1 = vadd.f32 %v3917_v9, %v9346_v5  ;;  %v9441_v3 = vadd.f32 %v3918_v2, %v9349_v35  ;;  %v9444_v0 = vadd.f32 %v3919_v34, %v9352_v13  ;;  %v9447_v62 = vadd.f32 %v3921_v24, %v9355_v23  ;;  %v9467_v13 = vld [vmem:[#allocation2 + $0xc0] sm:$0xfe]  ;;  %v11814_v23 = vld [vmem:[#allocation11_spill] sm:$0xff]  ;;  %v11818_v9 = vld [vmem:[#allocation12_spill] sm:$0xff] }
 0x1d9   : > { %v9450_v7 = vadd.f32 %v3923_v39, %v9358_v36  ;;  %v9453_v55 = vadd.f32 %v3925_v31, %v9361_v16  ;;  %v9456_v56 = vadd.f32 %v3927_v46, %v9364_v12  ;;  %v9459_v33 = vadd.f32 %v3929_v44, %v9367_v21  ;;  %11813 = vst [vmem:[#allocation6_spill] sm:$0xff] %v9467_v13  ;;  %v11821_v24 = vld [vmem:[#allocation17_spill] sm:$0xff]  ;;  %v11823_v46 = vld [vmem:[#allocation10_spill] sm:$0xff] }
 0x1da   : > { %v9462_v5 = vadd.f32 %v3931_v32, %v9370_v14  ;;  %v9465_v35 = vadd.f32 %v3933_v41, %v9373_v6  ;;  %v3976_v36 = vrot.slane %v11814_v23, %v7019_v18  ;;  %v3980_v16 = vrot.slane %v11814_v23, %v7021_v19  ;;  %v11822_v39 = vld [vmem:[#allocation21_spill] sm:$0xff] }
 0x1db   : > { %v3984_v12 = vrot.slane %v11814_v23, %v7023_v20  ;;  %v3988_v21 = vrot.slane %v11814_v23, %v7033_v25  ;;  %v3992_v14 = vrot.slane %v11814_v23, %v7035_v26  ;;  %v3996_v6 = vrot.slane %v11814_v23, %v7037_v27 }
 0x1dc   : > { %v4000_v17 = vrot.slane %v11814_v23, %v7039_v28  ;;  %v4004_v43 = vrot.slane %v11814_v23, %v7055_v37  ;;  %v4013_v49 = vmul.f32 %v3976_v36, %v11790_v38  ;;  %v4014_v53 = vmul.f32 %v3980_v16, %v11791_v59 }
 0x1dd   : > { %v4015_v57 = vmul.f32 %v3984_v12, %v11792_v29  ;;  %v4016_v8 = vmul.f32 %v3988_v21, %v11815_v42  ;;  %v4017_v47 = vmul.f32 %v3992_v14, %v11816_v40  ;;  %v4018_v4 = vmul.f32 %v3996_v6, %v11817_v61 }
 0x1de   : > { %v4019_v2 = vmul.f32 %v4000_v17, %v11818_v9  ;;  %v4020_v34 = vmul.f32 %v4004_v43, %v9467_v13  ;;  %v4021_v15 = vmul.f32 %v3976_v36, %v11819_v22  ;;  %v4022_v58 = vmul.f32 %v3980_v16, %v11820_v60 }
 0x1df   : > { %v4023_v38 = vmul.f32 %v3984_v12, %v11821_v24  ;;  %v4024_v31 = vmul.f32 %v3988_v21, %v11822_v39  ;;  %v4025_v44 = vmul.f32 %v3992_v14, %v11823_v46  ;;  %v4026_v32 = vmul.f32 %v3996_v6, %v11811_v10 }
 0x1e0   : > { %v4027_v41 = vmul.f32 %v4000_v17, %v9393_v48  ;;  %v4028_v23 = vmul.f32 %v4004_v43, %v9485_v63  ;;  %v4045_v61 = vrot.slane %v4013_v49, 4  ;;  %v4046_v9 = vrot.slane %v4014_v53, 4 }
 0x1e1   : > { %v4047_v40 = vrot.slane %v4015_v57, 4  ;;  %v4048_v13 = vrot.slane %v4016_v8, 4  ;;  %v4049_v42 = vrot.slane %v4017_v47, 4  ;;  %v4050_v36 = vrot.slane %v4018_v4, 4 }
 0x1e2   : > { %v4051_v22 = vrot.slane %v4019_v2, 4  ;;  %v4052_v16 = vrot.slane %v4020_v34, 4  ;;  %v4053_v60 = vrot.slane %v4021_v15, 4  ;;  %v4055_v12 = vrot.slane %v4022_v58, 4 }
 0x1e3   : > { %v4057_v24 = vrot.slane %v4023_v38, 4  ;;  %v4059_v21 = vrot.slane %v4024_v31, 4  ;;  %v4061_v39 = vrot.slane %v4025_v44, 4  ;;  %v4063_v14 = vrot.slane %v4026_v32, 4  ;;  %v11828_v32 = vld [vmem:[#allocation14_spill] sm:$0xff] }
 0x1e4   : > { %v4065_v46 = vrot.slane %v4027_v41, 4  ;;  %v4067_v6 = vrot.slane %v4028_v23, 4  ;;  %v9504_v17 = vadd.f32 %v3935_v30, %v9412_v11  ;;  %v4054_v43 = vsel %vm3645_vm2, %v4045_v61, %v4053_v60  ;;  %v11829_v23 = vld [vmem:[#allocation12_spill] sm:$0xff] }
 0x1e5   : > { %v4056_v49 = vsel %vm3645_vm2, %v4046_v9, %v4055_v12  ;;  %v4058_v53 = vsel %vm3645_vm2, %v4047_v40, %v4057_v24  ;;  %v4060_v57 = vsel %vm3645_vm2, %v4048_v13, %v4059_v21  ;;  %v4062_v8 = vsel %vm3645_vm2, %v4049_v42, %v4061_v39  ;;  %v11826_v39 = vld [vmem:[#allocation15_spill] sm:$0xff]  ;;  %v11831_v21 = vld [vmem:[#allocation16_spill] sm:$0xff] }
 0x1e6   : > { %v4064_v47 = vsel %vm3645_vm2, %v4050_v36, %v4063_v14  ;;  %v4066_v4 = vsel %vm3645_vm2, %v4051_v22, %v4065_v46  ;;  %v4068_v2 = vsel %vm3645_vm2, %v4052_v16, %v4067_v6  ;;  %v9515_v34 = vadd.f32 %v4045_v61, %v9423_v51  ;;  %v9577_v61 = vld [vmem:[#allocation2 + $0x138] sm:$0x1]  ;;  %v11827_v46 = vld [vmem:[#allocation18_spill] sm:$0xff]  ;;  %v11832_v6 = vld [vmem:[#allocation17_spill] sm:$0xff] }
 0x1e7   : > { %v9518_v11 = vadd.f32 %v4046_v9, %v9426_v50  ;;  %v9521_v30 = vadd.f32 %v4047_v40, %v9429_v52  ;;  %v9524_v15 = vadd.f32 %v4048_v13, %v9432_v54  ;;  %v9527_v60 = vadd.f32 %v4049_v42, %v9435_v45 }
 0x1e8   : > { %v9530_v58 = vadd.f32 %v4050_v36, %v9438_v1  ;;  %v9533_v24 = vadd.f32 %v4051_v22, %v9441_v3  ;;  %v9536_v51 = vadd.f32 %v4052_v16, %v9444_v0  ;;  %v9539_v50 = vadd.f32 %v4054_v43, %v9447_v62  ;;  %v9559_v62 = vld [vmem:[#allocation2 + $0xc8] sm:$0xfe] }
 0x1e9   : > { %v9542_v52 = vadd.f32 %v4056_v49, %v9450_v7  ;;  %v9545_v54 = vadd.f32 %v4058_v53, %v9453_v55  ;;  %v9548_v45 = vadd.f32 %v4060_v57, %v9456_v56  ;;  %v9551_v1 = vadd.f32 %v4062_v8, %v9459_v33  ;;  %11824 = vst [vmem:[#allocation5_spill] sm:$0xff] %v9559_v62  ;;  %v11825_v7 = vld [vmem:[#allocation7_spill] sm:$0xff]  ;;  %v11830_v22 = vld [vmem:[#allocation6_spill] sm:$0xff]  ;;  %v11833_v49 = vld [vmem:[#allocation21_spill] sm:$0xff] }
 0x1ea   : > { %v9554_v3 = vadd.f32 %v4064_v47, %v9462_v5  ;;  %v9557_v0 = vadd.f32 %v4066_v4, %v9465_v35  ;;  %v4109_v13 = vrot.slane %v11825_v7, %v7019_v18  ;;  %v4113_v55 = vrot.slane %v11825_v7, %v7021_v19  ;;  %v11834_v53 = vld [vmem:[#allocation10_spill] sm:$0xff] }
 0x1eb   : > { %v4117_v56 = vrot.slane %v11825_v7, %v7023_v20  ;;  %v4121_v33 = vrot.slane %v11825_v7, %v7033_v25  ;;  %v4125_v5 = vrot.slane %v11825_v7, %v7035_v26  ;;  %v4129_v35 = vrot.slane %v11825_v7, %v7037_v27 }
 0x1ec   : > { %v4133_v42 = vrot.slane %v11825_v7, %v7039_v28  ;;  %v4137_v40 = vrot.slane %v11825_v7, %v7055_v37  ;;  %v4146_v9 = vmul.f32 %v4109_v13, %v11791_v59  ;;  %v4147_v38 = vmul.f32 %v4113_v55, %v11792_v29 }
 0x1ed   : > { %v4148_v31 = vmul.f32 %v4117_v56, %v11826_v39  ;;  %v4149_v44 = vmul.f32 %v4121_v33, %v11827_v46  ;;  %v4150_v41 = vmul.f32 %v4125_v5, %v11828_v32  ;;  %v4151_v36 = vmul.f32 %v4129_v35, %v11829_v23 }
 0x1ee   : > { %v4152_v16 = vmul.f32 %v4133_v42, %v11830_v22  ;;  %v4153_v12 = vmul.f32 %v4137_v40, %v9559_v62  ;;  %v4154_v14 = vmul.f32 %v4109_v13, %v11831_v21  ;;  %v4155_v43 = vmul.f32 %v4113_v55, %v11832_v6 }
 0x1ef   : > { %v4156_v59 = vmul.f32 %v4117_v56, %v11833_v49  ;;  %v4157_v57 = vmul.f32 %v4121_v33, %v11834_v53  ;;  %v4158_v8 = vmul.f32 %v4125_v5, %v11811_v10  ;;  %v4159_v47 = vmul.f32 %v4129_v35, %v9393_v48 }
 0x1f0   : > { %v4160_v4 = vmul.f32 %v4133_v42, %v9485_v63  ;;  %v4161_v7 = vmul.f32 %v4137_v40, %v9577_v61  ;;  %v4178_v23 = vrot.slane %v4146_v9, 4  ;;  %v4179_v22 = vrot.slane %v4147_v38, 4 }
 0x1f1   : > { %v4180_v32 = vrot.slane %v4148_v31, 4  ;;  %v4181_v62 = vrot.slane %v4149_v44, 4  ;;  %v4182_v46 = vrot.slane %v4150_v41, 4  ;;  %v4183_v13 = vrot.slane %v4151_v36, 4 }
 0x1f2   : > { %v4184_v21 = vrot.slane %v4152_v16, 4  ;;  %v4185_v55 = vrot.slane %v4153_v12, 4  ;;  %v4186_v6 = vrot.slane %v4154_v14, 4  ;;  %v4188_v56 = vrot.slane %v4155_v43, 4 }
 0x1f3   : > { %v4190_v49 = vrot.slane %v4156_v59, 4  ;;  %v4192_v33 = vrot.slane %v4157_v57, 4  ;;  %v4194_v53 = vrot.slane %v4158_v8, 4  ;;  %v4196_v5 = vrot.slane %v4159_v47, 4  ;;  %v11837_v59 = vld [vmem:[#allocation18_spill] sm:$0xff]  ;;  %v11839_v47 = vld [vmem:[#allocation12_spill] sm:$0xff] }
 0x1f4   : > { %v4198_v10 = vrot.slane %v4160_v4, 4  ;;  %v4200_v35 = vrot.slane %v4161_v7, 4  ;;  %v9596_v42 = vadd.f32 %v4068_v2, %v9504_v17  ;;  %v4187_v40 = vsel %vm3645_vm2, %v4178_v23, %v4186_v6  ;;  %v11838_v57 = vld [vmem:[#allocation14_spill] sm:$0xff] }
 0x1f5   : > { %v4189_v9 = vsel %vm3645_vm2, %v4179_v22, %v4188_v56  ;;  %v4191_v38 = vsel %vm3645_vm2, %v4180_v32, %v4190_v49  ;;  %v4193_v31 = vsel %vm3645_vm2, %v4181_v62, %v4192_v33  ;;  %v4195_v44 = vsel %vm3645_vm2, %v4182_v46, %v4194_v53  ;;  %v11840_v7 = vld [vmem:[#allocation6_spill] sm:$0xff]  ;;  %v11842_v33 = vld [vmem:[#allocation17_spill] sm:$0xff] }
 0x1f6   : > { %v4197_v41 = vsel %vm3645_vm2, %v4183_v13, %v4196_v5  ;;  %v4199_v36 = vsel %vm3645_vm2, %v4184_v21, %v4198_v10  ;;  %v4201_v16 = vsel %vm3645_vm2, %v4185_v55, %v4200_v35  ;;  %v9607_v12 = vadd.f32 %v4178_v23, %v9515_v34  ;;  %v9669_v23 = vld [vmem:[#allocation2 + $0x140] sm:$0x1] }
 0x1f7   : > { %v9610_v17 = vadd.f32 %v4179_v22, %v9518_v11  ;;  %v9613_v2 = vadd.f32 %v4180_v32, %v9521_v30  ;;  %v9616_v14 = vadd.f32 %v4181_v62, %v9524_v15  ;;  %v9619_v6 = vadd.f32 %v4182_v46, %v9527_v60  ;;  %v11843_v35 = vld [vmem:[#allocation21_spill] sm:$0xff] }
 0x1f8   : > { %v9622_v43 = vadd.f32 %v4183_v13, %v9530_v58  ;;  %v9625_v10 = vadd.f32 %v4184_v21, %v9533_v24  ;;  %v9628_v34 = vadd.f32 %v4185_v55, %v9536_v51  ;;  %v9631_v11 = vadd.f32 %v4187_v40, %v9539_v50  ;;  %v9651_v50 = vld [vmem:[#allocation2 + $0xd0] sm:$0xfe]  ;;  %v11841_v21 = vld [vmem:[#allocation5_spill] sm:$0xff] }
 0x1f9   : > { %v9634_v30 = vadd.f32 %v4189_v9, %v9542_v52  ;;  %v9637_v15 = vadd.f32 %v4191_v38, %v9545_v54  ;;  %v9640_v60 = vadd.f32 %v4193_v31, %v9548_v45  ;;  %v9643_v58 = vadd.f32 %v4195_v44, %v9551_v1  ;;  %11835 = vst [vmem:[#allocation22_spill] sm:$0xff] %v9651_v50  ;;  %v11836_v52 = vld [vmem:[#allocation8_spill] sm:$0xff]  ;;  %v11844_v9 = vld [vmem:[#allocation10_spill] sm:$0xff]  ;;  %v11845_v38 = vld [vmem:[#allocation23_spill] sm:$0xff] }
 0x1fa   : > { %v9646_v24 = vadd.f32 %v4197_v41, %v9554_v3  ;;  %v9649_v51 = vadd.f32 %v4199_v36, %v9557_v0  ;;  %v4242_v62 = vrot.slane %v11836_v52, %v7019_v18  ;;  %v4246_v54 = vrot.slane %v11836_v52, %v7021_v19 }
 0x1fb   : > { %v4250_v45 = vrot.slane %v11836_v52, %v7023_v20  ;;  %v4254_v1 = vrot.slane %v11836_v52, %v7033_v25  ;;  %v4258_v3 = vrot.slane %v11836_v52, %v7035_v26  ;;  %v4262_v0 = vrot.slane %v11836_v52, %v7037_v27 }
 0x1fc   : > { %v4266_v46 = vrot.slane %v11836_v52, %v7039_v28  ;;  %v4270_v32 = vrot.slane %v11836_v52, %v7055_v37  ;;  %v4279_v22 = vmul.f32 %v4242_v62, %v11792_v29  ;;  %v4280_v49 = vmul.f32 %v4246_v54, %v11826_v39 }
 0x1fd   : > { %v4281_v53 = vmul.f32 %v4250_v45, %v11837_v59  ;;  %v4282_v8 = vmul.f32 %v4254_v1, %v11838_v57  ;;  %v4283_v4 = vmul.f32 %v4258_v3, %v11839_v47  ;;  %v4284_v13 = vmul.f32 %v4262_v0, %v11840_v7 }
 0x1fe   : > { %v4285_v55 = vmul.f32 %v4266_v46, %v11841_v21  ;;  %v4286_v56 = vmul.f32 %v4270_v32, %v9651_v50  ;;  %v4287_v5 = vmul.f32 %v4242_v62, %v11842_v33  ;;  %v4288_v40 = vmul.f32 %v4246_v54, %v11843_v35 }
 0x1ff   : > { %v4289_v29 = vmul.f32 %v4250_v45, %v11844_v9  ;;  %v4290_v31 = vmul.f32 %v4254_v1, %v11845_v38  ;;  %v4291_v44 = vmul.f32 %v4258_v3, %v9393_v48  ;;  %v4292_v41 = vmul.f32 %v4262_v0, %v9485_v63 }
 0x200   : > { %v4293_v36 = vmul.f32 %v4266_v46, %v9577_v61  ;;  %v4294_v52 = vmul.f32 %v4270_v32, %v9669_v23  ;;  %v4311_v7 = vrot.slane %v4279_v22, 4  ;;  %v4312_v21 = vrot.slane %v4280_v49, 4 }
 0x201   : > { %v4313_v47 = vrot.slane %v4281_v53, 4  ;;  %v4314_v50 = vrot.slane %v4282_v8, 4  ;;  %v4315_v57 = vrot.slane %v4283_v4, 4  ;;  %v4316_v62 = vrot.slane %v4284_v13, 4 }
 0x202   : > { %v4317_v33 = vrot.slane %v4285_v55, 4  ;;  %v4318_v54 = vrot.slane %v4286_v56, 4  ;;  %v4319_v35 = vrot.slane %v4287_v5, 4  ;;  %v4321_v45 = vrot.slane %v4288_v40, 4 }
 0x203   : > { %v4323_v9 = vrot.slane %v4289_v29, 4  ;;  %v4325_v1 = vrot.slane %v4290_v31, 4  ;;  %v4327_v38 = vrot.slane %v4291_v44, 4  ;;  %v4329_v3 = vrot.slane %v4292_v41, 4  ;;  %v11847_v29 = vld [vmem:[#allocation14_spill] sm:$0xff]  ;;  %v11848_v31 = vld [vmem:[#allocation12_spill] sm:$0xff] }
 0x204   : > { %v4331_v48 = vrot.slane %v4293_v36, 4  ;;  %v4333_v0 = vrot.slane %v4294_v52, 4  ;;  %v9688_v46 = vadd.f32 %v4201_v16, %v9596_v42  ;;  %v4320_v32 = vsel %vm3645_vm2, %v4311_v7, %v4319_v35  ;;  %v11849_v41 = vld [vmem:[#allocation6_spill] sm:$0xff]  ;;  %v11850_v52 = vld [vmem:[#allocation5_spill] sm:$0xff] }
 0x205   : > { %v4322_v22 = vsel %vm3645_vm2, %v4312_v21, %v4321_v45  ;;  %v4324_v49 = vsel %vm3645_vm2, %v4313_v47, %v4323_v9  ;;  %v4326_v53 = vsel %vm3645_vm2, %v4314_v50, %v4325_v1  ;;  %v4328_v8 = vsel %vm3645_vm2, %v4315_v57, %v4327_v38  ;;  %v11852_v1 = vld [vmem:[#allocation21_spill] sm:$0xff] }
 0x206   : > { %v4330_v4 = vsel %vm3645_vm2, %v4316_v62, %v4329_v3  ;;  %v4332_v13 = vsel %vm3645_vm2, %v4317_v33, %v4331_v48  ;;  %v4334_v55 = vsel %vm3645_vm2, %v4318_v54, %v4333_v0  ;;  %v9699_v56 = vadd.f32 %v4311_v7, %v9607_v12  ;;  %v3567_v7 = vld [vmem:[#allocation2 + $0x148] sm:$0x1] }
 0x207   : > { %v9702_v42 = vadd.f32 %v4312_v21, %v9610_v17  ;;  %v9705_v16 = vadd.f32 %v4313_v47, %v9613_v2  ;;  %v9708_v5 = vadd.f32 %v4314_v50, %v9616_v14  ;;  %v9711_v35 = vadd.f32 %v4315_v57, %v9619_v6  ;;  %v11846_v50 = vld [vmem:[#allocation19_spill] sm:$0xff]  ;;  %v11853_v0 = vld [vmem:[#allocation10_spill] sm:$0xff] }
 0x208   : > { %v9714_v40 = vadd.f32 %v4316_v62, %v9622_v43  ;;  %v9717_v48 = vadd.f32 %v4317_v33, %v9625_v10  ;;  %v9720_v12 = vadd.f32 %v4318_v54, %v9628_v34  ;;  %v9723_v17 = vadd.f32 %v4320_v32, %v9631_v11  ;;  %v3553_v11 = vld [vmem:[#allocation2 + $0xd8] sm:$0xfe]  ;;  %v11851_v33 = vld [vmem:[#allocation22_spill] sm:$0xff] }
 0x209   : > { %v9726_v2 = vadd.f32 %v4322_v22, %v9634_v30  ;;  %v9729_v14 = vadd.f32 %v4324_v49, %v9637_v15  ;;  %v9732_v6 = vadd.f32 %v4326_v53, %v9640_v60  ;;  %v9735_v43 = vadd.f32 %v4328_v8, %v9643_v58  ;;  %v11854_v22 = vld [vmem:[#allocation23_spill] sm:$0xff] }
 0x20a   : > { %v9738_v10 = vadd.f32 %v4330_v4, %v9646_v24  ;;  %v9741_v34 = vadd.f32 %v4332_v13, %v9649_v51  ;;  %v4375_v30 = vrot.slane %v11846_v50, %v7019_v18  ;;  %v4379_v15 = vrot.slane %v11846_v50, %v7021_v19 }
 0x20b   : > { %v4383_v60 = vrot.slane %v11846_v50, %v7023_v20  ;;  %v4387_v58 = vrot.slane %v11846_v50, %v7033_v25  ;;  %v4391_v24 = vrot.slane %v11846_v50, %v7035_v26  ;;  %v4395_v51 = vrot.slane %v11846_v50, %v7037_v27 }
 0x20c   : > { %v4399_v57 = vrot.slane %v11846_v50, %v7039_v28  ;;  %v4403_v47 = vrot.slane %v11846_v50, %v7055_v37  ;;  %v4412_v21 = vmul.f32 %v4375_v30, %v11826_v39  ;;  %v4413_v9 = vmul.f32 %v4379_v15, %v11837_v59  ;;  %v11855_v39 = vld [vmem:[#allocation3_spill] sm:$0xff] }
 0x20d   : > { %v4414_v38 = vmul.f32 %v4383_v60, %v11847_v29  ;;  %v4415_v44 = vmul.f32 %v4387_v58, %v11848_v31  ;;  %v4416_v36 = vmul.f32 %v4391_v24, %v11849_v41  ;;  %v4417_v62 = vmul.f32 %v4395_v51, %v11850_v52 }
 0x20e   : > { %v4418_v54 = vmul.f32 %v4399_v57, %v11851_v33  ;;  %v4419_v45 = vmul.f32 %v4403_v47, %v3553_v11  ;;  %v4420_v3 = vmul.f32 %v4375_v30, %v11852_v1  ;;  %v4421_v32 = vmul.f32 %v4379_v15, %v11853_v0 }
 0x20f   : > { %v4422_v49 = vmul.f32 %v4383_v60, %v11854_v22  ;;  %v4423_v53 = vmul.f32 %v4387_v58, %v11855_v39  ;;  %v4424_v59 = vmul.f32 %v4391_v24, %v9485_v63  ;;  %v4425_v8 = vmul.f32 %v4395_v51, %v9577_v61  ;;  %v9841_v39 = vld [vmem:[#allocation2 + $0x80] sm:$0xfc] }
 0x210   : > { %v4426_v4 = vmul.f32 %v4399_v57, %v9669_v23  ;;  %v4427_v13 = vmul.f32 %v4403_v47, %v3567_v7  ;;  %v4444_v50 = vrot.slane %v4412_v21, 4  ;;  %v4445_v29 = vrot.slane %v4413_v9, 4 }
 0x211   : > { %v4446_v31 = vrot.slane %v4414_v38, 4  ;;  %v4447_v41 = vrot.slane %v4415_v44, 4  ;;  %v4448_v11 = vrot.slane %v4416_v36, 4  ;;  %v4449_v52 = vrot.slane %v4417_v62, 4 }
 0x212   : > { %v4450_v30 = vrot.slane %v4418_v54, 4  ;;  %v4451_v33 = vrot.slane %v4419_v45, 4  ;;  %v4452_v15 = vrot.slane %v4420_v3, 4  ;;  %v4454_v1 = vrot.slane %v4421_v32, 4  ;;  %v9821_v3 = vld [vmem:[#allocation2 + $0x90] sm:$0xfc] }
 0x213   : > { %v4456_v60 = vrot.slane %v4422_v49, 4  ;;  %v4458_v0 = vrot.slane %v4423_v53, 4  ;;  %v4460_v58 = vrot.slane %v4424_v59, 4  ;;  %v4462_v22 = vrot.slane %v4425_v8, 4  ;;  %11857 = vst [vmem:[#allocation11_spill] sm:$0xff] %v9821_v3 }
 0x214   : > { %v4464_v63 = vrot.slane %v4426_v4, 4  ;;  %v4466_v24 = vrot.slane %v4427_v13, 4  ;;  %v9774_v61 = vadd.f32 %v4334_v55, %v9688_v46  ;;  %v4453_v23 = vsel %vm3645_vm2, %v4444_v50, %v4452_v15  ;;  %v9839_v49 = vld [vmem:[#allocation2 + $0x78] sm:$0xfc]  ;;  %v9843_v53 = vld [vmem:[#allocation2 + $0xa8] sm:$0xfc] }
 0x215   : > { %v4455_v51 = vsel %vm3645_vm2, %v4445_v29, %v4454_v1  ;;  %v4457_v57 = vsel %vm3645_vm2, %v4446_v31, %v4456_v60  ;;  %v4459_v47 = vsel %vm3645_vm2, %v4447_v41, %v4458_v0  ;;  %v4461_v7 = vsel %vm3645_vm2, %v4448_v11, %v4460_v58  ;;  %11860 = vst [vmem:[#allocation15_spill] sm:$0xff] %v9843_v53  ;;  %v9845_v59 = vld [vmem:[#allocation2 + $0xf8] sm:$0x3]  ;;  %v4514_v13 = vld [vmem:[#allocation2 + $0xe0] sm:$0x3] }
 0x216   : > { %v4463_v21 = vsel %vm3645_vm2, %v4449_v52, %v4462_v22  ;;  %v4465_v9 = vsel %vm3645_vm2, %v4450_v30, %v4464_v63  ;;  %v9784_v38 = vsel %vm3645_vm2, %v4451_v33, %v4466_v24  ;;  %v9787_v46 = vadd.f32 %v4444_v50, %v9699_v56  ;;  %v9807_v56 = vld [vmem:[#allocation2 + $0x88] sm:$0xfc]  ;;  %11861 = vst [vmem:[#allocation16_spill] sm:$0xff] %v9845_v59  ;;  %v9857_v50 = vld [vmem:[#allocation2 + $0xe8] sm:$0x3] }
 0x217   : > { %v9790_v55 = vadd.f32 %v4445_v29, %v9702_v42  ;;  %v9793_v44 = vadd.f32 %v4446_v31, %v9705_v16  ;;  %v9796_v36 = vadd.f32 %v4447_v41, %v9708_v5  ;;  %v9799_v62 = vadd.f32 %v4448_v11, %v9711_v35  ;;  %11856 = vst [vmem:[#allocation20_spill] sm:$0xff] %v9807_v56  ;;  %v9859_v29 = vld [vmem:[#allocation2 + $0xf0] sm:$0x3]  ;;  %v9873_v15 = vld [vmem:[#allocation2 + $0x118] sm:$0x3] }
 0x218   : > { %v9802_v54 = vadd.f32 %v4449_v52, %v9714_v40  ;;  %v9805_v45 = vadd.f32 %v4450_v30, %v9717_v48  ;;  %v9810_v42 = vadd.f32 %v4451_v33, %v9720_v12  ;;  %v9813_v16 = vadd.f32 %v4453_v23, %v9723_v17  ;;  %v9823_v40 = vld [vmem:[#allocation2 + $0x98] sm:$0xfc]  ;;  %v9825_v48 = vld [vmem:[#allocation2 + $0xa0] sm:$0xfc]  ;;  %11864 = vst [vmem:[#allocation18_spill] sm:$0xff] %v9857_v50 }
 0x219   : > { %v9816_v5 = vadd.f32 %v4455_v51, %v9726_v2  ;;  %v9819_v35 = vadd.f32 %v4457_v57, %v9729_v14  ;;  %11858 = vst [vmem:[#allocation9_spill] sm:$0xff] %v9823_v40  ;;  %11859 = vst [vmem:[#allocation7_spill] sm:$0xff] %v9825_v48  ;;  %v9828_v32 = vadd.f32 %v4459_v47, %v9732_v6  ;;  %v4500_v14 = vld [vmem:[#allocation2 + $0x70] sm:$0xfc]  ;;  %v9847_v6 = vld [vmem:[#allocation2 + $0x100] sm:$0x3] }
 0x21a   : > { %v9831_v12 = vadd.f32 %v4461_v7, %v9735_v43  ;;  %v9834_v17 = vadd.f32 %v4463_v21, %v9738_v10  ;;  %v9837_v2 = vadd.f32 %v4465_v9, %v9741_v34  ;;  %11862 = vst [vmem:[#allocation8_spill] sm:$0xff] %v9847_v6  ;;  %v11863_v43 = vld [vmem:[#allocation4_spill] sm:$0xff]  ;;  %11865 = vst [vmem:[#allocation17_spill] sm:$0xff] %v9859_v29  ;;  %v9869_v30 = vld [vmem:[#allocation2 + $0x108] sm:$0x3] }
 0x21b   : > { %v4536_v8 = vrot.slane %v11863_v43, %v7019_v18  ;;  %v4540_v10 = vrot.slane %v11863_v43, %v7021_v19  ;;  %v4544_v34 = vrot.slane %v11863_v43, %v7023_v20  ;;  %v4548_v4 = vrot.slane %v11863_v43, %v7033_v25  ;;  %11866 = vst [vmem:[#allocation19_spill] sm:$0xff] %v9869_v30  ;;  %v9871_v33 = vld [vmem:[#allocation2 + $0x110] sm:$0x3] }
 0x21c   : > { %v4552_v31 = vrot.slane %v11863_v43, %v7035_v26  ;;  %v4556_v41 = vrot.slane %v11863_v43, %v7037_v27  ;;  %v4560_v11 = vrot.slane %v11863_v43, %v7039_v28  ;;  %v4564_v52 = vrot.slane %v11863_v43, %v7055_v37  ;;  %11867 = vst [vmem:[#allocation14_spill] sm:$0xff] %v9871_v33 }
 0x21d   : > { %11868 = vst [vmem:[#allocation12_spill] sm:$0xff] %v9873_v15  ;;  %v4573_v1 = vmul.f32 %v4536_v8, %v4500_v14  ;;  %v4574_v60 = vmul.f32 %v4540_v10, %v9839_v49  ;;  %v4575_v0 = vmul.f32 %v4544_v34, %v9841_v39  ;;  %v4576_v58 = vmul.f32 %v4548_v4, %v9807_v56 }
 0x21e   : > { %v4577_v22 = vmul.f32 %v4552_v31, %v9821_v3  ;;  %v4578_v63 = vmul.f32 %v4556_v41, %v9823_v40  ;;  %v4579_v24 = vmul.f32 %v4560_v11, %v9825_v48  ;;  %v4580_v23 = vmul.f32 %v4564_v52, %v9843_v53 }
 0x21f   : > { %v4581_v51 = vmul.f32 %v4536_v8, %v4514_v13  ;;  %v4582_v57 = vmul.f32 %v4540_v10, %v9857_v50  ;;  %v4583_v47 = vmul.f32 %v4544_v34, %v9859_v29  ;;  %v4584_v7 = vmul.f32 %v4548_v4, %v9845_v59 }
 0x220   : > { %v4585_v21 = vmul.f32 %v4552_v31, %v9847_v6  ;;  %v4586_v9 = vmul.f32 %v4556_v41, %v9869_v30  ;;  %v4587_v14 = vmul.f32 %v4560_v11, %v9871_v33  ;;  %v4588_v43 = vmul.f32 %v4564_v52, %v9873_v15 }
 0x221   : > { %v4606_v40 = vrot.slane %v4573_v1, 5  ;;  %v4607_v3 = vrot.slane %v4574_v60, 5  ;;  %v4608_v48 = vrot.slane %v4575_v0, 5  ;;  %v4609_v56 = vrot.slane %v4576_v58, 5 }
 0x222   : > { %v4610_v53 = vrot.slane %v4577_v22, 5  ;;  %v4611_v8 = vrot.slane %v4578_v63, 5  ;;  %v4612_v13 = vrot.slane %v4579_v24, 5  ;;  %v4613_v10 = vrot.slane %v4580_v23, 5 }
 0x223   : > { %v4614_v50 = vrot.slane %v4581_v51, 5  ;;  %v4616_v34 = vrot.slane %v4582_v57, 5  ;;  %v4618_v29 = vrot.slane %v4583_v47, 5  ;;  %v4620_v4 = vrot.slane %v4584_v7, 5 }
 0x224   : > { %v4622_v59 = vrot.slane %v4585_v21, 5  ;;  %v4624_v31 = vrot.slane %v4586_v9, 5  ;;  %v4626_v6 = vrot.slane %v4587_v14, 5  ;;  %v4628_v41 = vrot.slane %v4588_v43, 5 }
 0x225   : > { %v4499_v11 = vadd.f32 %v9784_v38, %v9774_v61  ;;  %v4615_v52 = vsel %vm4605_vm3, %v4606_v40, %v4614_v50  ;;  %v4617_v1 = vsel %vm4605_vm3, %v4607_v3, %v4616_v34  ;;  %v4619_v60 = vsel %vm4605_vm3, %v4608_v48, %v4618_v29  ;;  %v6807_v24 = vld [vmem:[%s11285_s3 + $0x104] ss:$8 sm:$0xf]  ;;  %v6809_v38 = vld [vmem:[%s11285_s3 + $0x105] ss:$8 sm:$0xf] }
 0x226   : > { %v4621_v0 = vsel %vm4605_vm3, %v4609_v56, %v4620_v4  ;;  %v4623_v58 = vsel %vm4605_vm3, %v4610_v53, %v4622_v59  ;;  %v4625_v22 = vsel %vm4605_vm3, %v4611_v8, %v4624_v31  ;;  %v4627_v63 = vsel %vm4605_vm3, %v4612_v13, %v4626_v6  ;;  %v6808_v61 = vld [vmem:[%s11285_s3 + $0x104] ss:$8 sm:$0xf0]  ;;  %v6810_v59 = vld [vmem:[%s11285_s3 + $0x105] ss:$8 sm:$0xf0] }
 0x227   : > { %v6811_v6 = vld [vmem:[%s11285_s3 + $0x106] ss:$8 sm:$0xf]  ;;  %v4629_v29 = vsel %vm4605_vm3, %v4613_v10, %v4628_v41  ;;  %v9918_v23 = vadd.f32 %v4606_v40, %v9787_v46  ;;  %v9921_v51 = vadd.f32 %v4607_v3, %v9790_v55  ;;  %v9924_v57 = vadd.f32 %v4608_v48, %v9793_v44  ;;  %v6813_v47 = vld [vmem:[%s11285_s3 + $0x107] ss:$8 sm:$0xf] }
 0x228   : > { %v6812_v50 = vld [vmem:[%s11285_s3 + $0x106] ss:$8 sm:$0xf0]  ;;  %v6814_v7 = vld [vmem:[%s11285_s3 + $0x107] ss:$8 sm:$0xf0]  ;;  %v9939_v55 = vadd.f32 %v4609_v56, %v9796_v36  ;;  %v9942_v44 = vadd.f32 %v4610_v53, %v9799_v62  ;;  %v9945_v3 = vadd.f32 %v4611_v8, %v9802_v54  ;;  %v9948_v40 = vadd.f32 %v4612_v13, %v9805_v45 }
 0x229   : > { %v6815_v21 = vld [vmem:[%s11285_s3 + $0x140] ss:$8 sm:$0xf]  ;;  %v6817_v48 = vld [vmem:[%s11285_s3 + $0x141] ss:$8 sm:$0xf]  ;;  %v9957_v36 = vadd.f32 %v4613_v10, %v9810_v42  ;;  %v9960_v62 = vadd.f32 %v4615_v52, %v9813_v16  ;;  %v9963_v54 = vadd.f32 %v4617_v1, %v9816_v5  ;;  %v9966_v45 = vadd.f32 %v4619_v60, %v9819_v35 }
 0x22a   : > { %v6816_v46 = vld [vmem:[%s11285_s3 + $0x140] ss:$8 sm:$0xf0]  ;;  %v6818_v9 = vld [vmem:[%s11285_s3 + $0x141] ss:$8 sm:$0xf0]  ;;  %v9975_v42 = vadd.f32 %v4621_v0, %v9828_v32  ;;  %v9978_v16 = vadd.f32 %v4623_v58, %v9831_v12  ;;  %v9981_v5 = vadd.f32 %v4625_v22, %v9834_v17  ;;  %v9984_v35 = vadd.f32 %v4627_v63, %v9837_v2 }
 0x22b   : > { %v6819_v56 = vld [vmem:[%s11285_s3 + $0x142] ss:$8 sm:$0xf]  ;;  %v9986_v14 = vadd.f32 %v4629_v29, %v4499_v11  ;;  %v4665_v43 = vor.u32 %v6808_v61, %v6807_v24  ;;  %v9988_v8 = vor.u32 %v6810_v59, %v6809_v38  ;;  %v9990_v13 = vor.u32 %v6812_v50, %v6811_v6  ;;  %v10010_v0 = vld [vmem:[#allocation2 + $0x120] sm:$0x3] }
 0x22c   : > { %v6820_v53 = vld [vmem:[%s11285_s3 + $0x142] ss:$8 sm:$0xf0]  ;;  %v9992_v10 = vor.u32 %v6814_v7, %v6813_v47  ;;  %v9994_v32 = vor.u32 %v6816_v46, %v6815_v21  ;;  %v9996_v34 = vor.u32 %v6818_v9, %v6817_v48  ;;  %11875 = vst [vmem:[#allocation3_spill] sm:$0xff] %v10010_v0 }
 0x22d   : > { %11869 = vst [vmem:[#allocation6_spill] sm:$0xff] %v9990_v13  ;;  %v9998_v12 = vor.u32 %v6820_v53, %v6819_v56  ;;  %v10000_v17 = vld [vmem:[#allocation2 + $0xb0] sm:$0xfc]  ;;  %v4670_v2 = vrot.slane %v4665_v43, %v7019_v18  ;;  %v4674_v4 = vrot.slane %v4665_v43, %v7021_v19  ;;  %v4678_v31 = vrot.slane %v4665_v43, %v7023_v20  ;;  %v11876_v63 = vld [vmem:[#allocation20_spill] sm:$0xff]  ;;  %v11878_v59 = vld [vmem:[#allocation9_spill] sm:$0xff] }
 0x22e   : > { %11870 = vst [vmem:[#allocation5_spill] sm:$0xff] %v9992_v10  ;;  %11871 = vst [vmem:[#allocation22_spill] sm:$0xff] %v9994_v32  ;;  %v4682_v41 = vrot.slane %v4665_v43, %v7033_v25  ;;  %v4686_v11 = vrot.slane %v4665_v43, %v7035_v26  ;;  %v4690_v52 = vrot.slane %v4665_v43, %v7037_v27  ;;  %v11877_v61 = vld [vmem:[#allocation11_spill] sm:$0xff]  ;;  %v11881_v46 = vld [vmem:[#allocation18_spill] sm:$0xff] }
 0x22f   : > { %11872 = vst [vmem:[#allocation21_spill] sm:$0xff] %v9996_v34  ;;  %11873 = vst [vmem:[#allocation10_spill] sm:$0xff] %v9998_v12  ;;  %v4694_v1 = vrot.slane %v4665_v43, %v7039_v28  ;;  %v4698_v60 = vrot.slane %v4665_v43, %v7055_v37  ;;  %v4707_v58 = vmul.f32 %v4670_v2, %v9839_v49  ;;  %v11879_v50 = vld [vmem:[#allocation7_spill] sm:$0xff]  ;;  %v11882_v9 = vld [vmem:[#allocation17_spill] sm:$0xff] }
 0x230   : > { %11874 = vst [vmem:[#allocation23_spill] sm:$0xff] %v10000_v17  ;;  %v4708_v22 = vmul.f32 %v4674_v4, %v9841_v39  ;;  %v4709_v24 = vmul.f32 %v4678_v31, %v11876_v63  ;;  %v4710_v38 = vmul.f32 %v4682_v41, %v11877_v61  ;;  %v4711_v6 = vmul.f32 %v4686_v11, %v11878_v59  ;;  %v11880_v47 = vld [vmem:[#allocation15_spill] sm:$0xff]  ;;  %v11883_v53 = vld [vmem:[#allocation16_spill] sm:$0xff] }
 0x231   : > { %v4712_v29 = vmul.f32 %v4690_v52, %v11879_v50  ;;  %v4713_v7 = vmul.f32 %v4694_v1, %v11880_v47  ;;  %v4714_v21 = vmul.f32 %v4698_v60, %v10000_v17  ;;  %v4715_v48 = vmul.f32 %v4670_v2, %v11881_v46  ;;  %v11884_v43 = vld [vmem:[#allocation8_spill] sm:$0xff] }
 0x232   : > { %v4716_v56 = vmul.f32 %v4674_v4, %v11882_v9  ;;  %v4717_v49 = vmul.f32 %v4678_v31, %v11883_v53  ;;  %v4718_v12 = vmul.f32 %v4682_v41, %v11884_v43  ;;  %v4719_v34 = vmul.f32 %v4686_v11, %v9869_v30 }
 0x233   : > { %v4720_v32 = vmul.f32 %v4690_v52, %v9871_v33  ;;  %v4721_v10 = vmul.f32 %v4694_v1, %v9873_v15  ;;  %v4722_v13 = vmul.f32 %v4698_v60, %v10010_v0  ;;  %v4739_v50 = vrot.slane %v4707_v58, 5 }
 0x234   : > { %v4740_v47 = vrot.slane %v4708_v22, 5  ;;  %v4741_v59 = vrot.slane %v4709_v24, 5  ;;  %v4742_v17 = vrot.slane %v4710_v38, 5  ;;  %v4743_v61 = vrot.slane %v4711_v6, 5 }
 0x235   : > { %v4744_v2 = vrot.slane %v4712_v29, 5  ;;  %v4745_v46 = vrot.slane %v4713_v7, 5  ;;  %v4746_v4 = vrot.slane %v4714_v21, 5  ;;  %v4747_v9 = vrot.slane %v4715_v48, 5  ;;  %v11887_v21 = vld [vmem:[#allocation11_spill] sm:$0xff] }
 0x236   : > { %v4749_v31 = vrot.slane %v4716_v56, 5  ;;  %v4751_v53 = vrot.slane %v4717_v49, 5  ;;  %v4753_v41 = vrot.slane %v4718_v12, 5  ;;  %v4755_v43 = vrot.slane %v4719_v34, 5 }
 0x237   : > { %v4757_v11 = vrot.slane %v4720_v32, 5  ;;  %v4759_v30 = vrot.slane %v4721_v10, 5  ;;  %v4761_v52 = vrot.slane %v4722_v13, 5  ;;  %v4748_v1 = vsel %vm4605_vm3, %v4739_v50, %v4747_v9  ;;  %v11888_v9 = vld [vmem:[#allocation9_spill] sm:$0xff] }
 0x238   : > { %v4750_v60 = vsel %vm4605_vm3, %v4740_v47, %v4749_v31  ;;  %v4752_v58 = vsel %vm4605_vm3, %v4741_v59, %v4751_v53  ;;  %v4754_v22 = vsel %vm4605_vm3, %v4742_v17, %v4753_v41  ;;  %v4756_v24 = vsel %vm4605_vm3, %v4743_v61, %v4755_v43  ;;  %v11889_v53 = vld [vmem:[#allocation7_spill] sm:$0xff]  ;;  %v11892_v41 = vld [vmem:[#allocation17_spill] sm:$0xff] }
 0x239   : > { %v4758_v38 = vsel %vm4605_vm3, %v4744_v2, %v4757_v11  ;;  %v4760_v6 = vsel %vm4605_vm3, %v4745_v46, %v4759_v30  ;;  %v4762_v12 = vsel %vm4605_vm3, %v4746_v4, %v4761_v52  ;;  %v10037_v32 = vadd.f32 %v4739_v50, %v9918_v23  ;;  %v11890_v43 = vld [vmem:[#allocation15_spill] sm:$0xff]  ;;  %v11893_v11 = vld [vmem:[#allocation16_spill] sm:$0xff] }
 0x23a   : > { %v10040_v13 = vadd.f32 %v4740_v47, %v9921_v51  ;;  %v10043_v10 = vadd.f32 %v4741_v59, %v9924_v57  ;;  %v10046_v34 = vadd.f32 %v4742_v17, %v9939_v55  ;;  %v10049_v29 = vadd.f32 %v4743_v61, %v9942_v44  ;;  %v10102_v59 = vld [vmem:[#allocation2 + $0x128] sm:$0x3] }
 0x23b   : > { %v10052_v7 = vadd.f32 %v4744_v2, %v9945_v3  ;;  %v10055_v30 = vadd.f32 %v4745_v46, %v9948_v40  ;;  %v10058_v23 = vadd.f32 %v4746_v4, %v9957_v36  ;;  %v10061_v51 = vadd.f32 %v4748_v1, %v9960_v62  ;;  %11886 = vst [vmem:[#allocation20_spill] sm:$0xff] %v10102_v59  ;;  %v11891_v46 = vld [vmem:[#allocation23_spill] sm:$0xff]  ;;  %v11894_v1 = vld [vmem:[#allocation8_spill] sm:$0xff] }
 0x23c   : > { %v10064_v57 = vadd.f32 %v4750_v60, %v9963_v54  ;;  %v10067_v55 = vadd.f32 %v4752_v58, %v9966_v45  ;;  %v10070_v44 = vadd.f32 %v4754_v22, %v9975_v42  ;;  %v10073_v3 = vadd.f32 %v4756_v24, %v9978_v16  ;;  %v10084_v54 = vld [vmem:[#allocation2 + $0xb8] sm:$0xfc]  ;;  %v11895_v60 = vld [vmem:[#allocation19_spill] sm:$0xff] }
 0x23d   : > { %v10076_v40 = vadd.f32 %v4758_v38, %v9981_v5  ;;  %v10079_v36 = vadd.f32 %v4760_v6, %v9984_v35  ;;  %v10082_v62 = vadd.f32 %v4762_v12, %v9986_v14  ;;  %11885 = vst [vmem:[#allocation4_spill] sm:$0xff] %v10084_v54  ;;  %v4803_v45 = vrot.slane %v9988_v8, %v7019_v18 }
 0x23e   : > { %v4807_v42 = vrot.slane %v9988_v8, %v7021_v19  ;;  %v4811_v16 = vrot.slane %v9988_v8, %v7023_v20  ;;  %v4815_v5 = vrot.slane %v9988_v8, %v7033_v25  ;;  %v4819_v35 = vrot.slane %v9988_v8, %v7035_v26 }
 0x23f   : > { %v4823_v14 = vrot.slane %v9988_v8, %v7037_v27  ;;  %v4827_v17 = vrot.slane %v9988_v8, %v7039_v28  ;;  %v4831_v61 = vrot.slane %v9988_v8, %v7055_v37  ;;  %v4840_v50 = vmul.f32 %v4803_v45, %v9841_v39 }
 0x240   : > { %v4841_v47 = vmul.f32 %v4807_v42, %v11876_v63  ;;  %v4842_v48 = vmul.f32 %v4811_v16, %v11887_v21  ;;  %v4843_v56 = vmul.f32 %v4815_v5, %v11888_v9  ;;  %v4844_v49 = vmul.f32 %v4819_v35, %v11889_v53 }
 0x241   : > { %v4845_v2 = vmul.f32 %v4823_v14, %v11890_v43  ;;  %v4846_v4 = vmul.f32 %v4827_v17, %v11891_v46  ;;  %v4847_v31 = vmul.f32 %v4831_v61, %v10084_v54  ;;  %v4848_v8 = vmul.f32 %v4803_v45, %v11892_v41 }
 0x242   : > { %v4849_v52 = vmul.f32 %v4807_v42, %v11893_v11  ;;  %v4850_v39 = vmul.f32 %v4811_v16, %v11894_v1  ;;  %v4851_v58 = vmul.f32 %v4815_v5, %v11895_v60  ;;  %v4852_v22 = vmul.f32 %v4819_v35, %v9871_v33 }
 0x243   : > { %v4853_v24 = vmul.f32 %v4823_v14, %v9873_v15  ;;  %v4854_v38 = vmul.f32 %v4827_v17, %v10010_v0  ;;  %v4855_v6 = vmul.f32 %v4831_v61, %v10102_v59  ;;  %v4872_v12 = vrot.slane %v4840_v50, 5 }
 0x244   : > { %v4873_v46 = vrot.slane %v4841_v47, 5  ;;  %v4874_v43 = vrot.slane %v4842_v48, 5  ;;  %v4875_v54 = vrot.slane %v4843_v56, 5  ;;  %v4876_v53 = vrot.slane %v4844_v49, 5 }
 0x245   : > { %v4877_v45 = vrot.slane %v4845_v2, 5  ;;  %v4878_v41 = vrot.slane %v4846_v4, 5  ;;  %v4879_v42 = vrot.slane %v4847_v31, 5  ;;  %v4880_v11 = vrot.slane %v4848_v8, 5 }
 0x246   : > { %v4882_v16 = vrot.slane %v4849_v52, 5  ;;  %v4884_v1 = vrot.slane %v4850_v39, 5  ;;  %v4886_v5 = vrot.slane %v4851_v58, 5  ;;  %v4888_v60 = vrot.slane %v4852_v22, 5  ;;  %v11898_v22 = vld [vmem:[#allocation7_spill] sm:$0xff] }
 0x247   : > { %v4890_v35 = vrot.slane %v4853_v24, 5  ;;  %v4892_v33 = vrot.slane %v4854_v38, 5  ;;  %v4894_v14 = vrot.slane %v4855_v6, 5  ;;  %v4881_v17 = vsel %vm4605_vm3, %v4872_v12, %v4880_v11  ;;  %v11899_v38 = vld [vmem:[#allocation15_spill] sm:$0xff] }
 0x248   : > { %v4883_v61 = vsel %vm4605_vm3, %v4873_v46, %v4882_v16  ;;  %v4885_v50 = vsel %vm4605_vm3, %v4874_v43, %v4884_v1  ;;  %v4887_v47 = vsel %vm4605_vm3, %v4875_v54, %v4886_v5  ;;  %v4889_v48 = vsel %vm4605_vm3, %v4876_v53, %v4888_v60  ;;  %v11902_v5 = vld [vmem:[#allocation16_spill] sm:$0xff] }
 0x249   : > { %v4891_v56 = vsel %vm4605_vm3, %v4877_v45, %v4890_v35  ;;  %v4893_v49 = vsel %vm4605_vm3, %v4878_v41, %v4892_v33  ;;  %v4895_v2 = vsel %vm4605_vm3, %v4879_v42, %v4894_v14  ;;  %v10129_v4 = vadd.f32 %v4872_v12, %v10037_v32  ;;  %v11900_v12 = vld [vmem:[#allocation23_spill] sm:$0xff]  ;;  %v11903_v14 = vld [vmem:[#allocation8_spill] sm:$0xff] }
 0x24a   : > { %v10132_v31 = vadd.f32 %v4873_v46, %v10040_v13  ;;  %v10135_v8 = vadd.f32 %v4874_v43, %v10043_v10  ;;  %v10138_v11 = vadd.f32 %v4875_v54, %v10046_v34  ;;  %v10141_v52 = vadd.f32 %v4876_v53, %v10049_v29  ;;  %v10194_v46 = vld [vmem:[#allocation2 + $0x130] sm:$0x3] }
 0x24b   : > { %v10144_v1 = vadd.f32 %v4877_v45, %v10052_v7  ;;  %v10147_v33 = vadd.f32 %v4878_v41, %v10055_v30  ;;  %v10150_v32 = vadd.f32 %v4879_v42, %v10058_v23  ;;  %v10153_v13 = vadd.f32 %v4881_v17, %v10061_v51  ;;  %v11901_v41 = vld [vmem:[#allocation4_spill] sm:$0xff] }
 0x24c   : > { %v10156_v10 = vadd.f32 %v4883_v61, %v10064_v57  ;;  %v10159_v34 = vadd.f32 %v4885_v50, %v10067_v55  ;;  %v10162_v29 = vadd.f32 %v4887_v47, %v10070_v44  ;;  %v10165_v7 = vadd.f32 %v4889_v48, %v10073_v3  ;;  %v10176_v57 = vld [vmem:[#allocation2 + $0xc0] sm:$0xfc]  ;;  %v11897_v55 = vld [vmem:[#allocation6_spill] sm:$0xff]  ;;  %v11904_v61 = vld [vmem:[#allocation19_spill] sm:$0xff] }
 0x24d   : > { %v10168_v30 = vadd.f32 %v4891_v56, %v10076_v40  ;;  %v10171_v23 = vadd.f32 %v4893_v49, %v10079_v36  ;;  %v10174_v51 = vadd.f32 %v4895_v2, %v10082_v62  ;;  %11896 = vst [vmem:[#allocation18_spill] sm:$0xff] %v10176_v57  ;;  %v4936_v54 = vrot.slane %v11897_v55, %v7019_v18  ;;  %v11905_v50 = vld [vmem:[#allocation14_spill] sm:$0xff] }
 0x24e   : > { %v4940_v44 = vrot.slane %v11897_v55, %v7021_v19  ;;  %v4944_v3 = vrot.slane %v11897_v55, %v7023_v20  ;;  %v4948_v40 = vrot.slane %v11897_v55, %v7033_v25  ;;  %v4952_v36 = vrot.slane %v11897_v55, %v7035_v26 }
 0x24f   : > { %v4956_v62 = vrot.slane %v11897_v55, %v7037_v27  ;;  %v4960_v53 = vrot.slane %v11897_v55, %v7039_v28  ;;  %v4964_v43 = vrot.slane %v11897_v55, %v7055_v37  ;;  %v4973_v39 = vmul.f32 %v4936_v54, %v11876_v63 }
 0x250   : > { %v4974_v60 = vmul.f32 %v4940_v44, %v11887_v21  ;;  %v4975_v58 = vmul.f32 %v4944_v3, %v11888_v9  ;;  %v4976_v24 = vmul.f32 %v4948_v40, %v11898_v22  ;;  %v4977_v6 = vmul.f32 %v4952_v36, %v11899_v38 }
 0x251   : > { %v4978_v45 = vmul.f32 %v4956_v62, %v11900_v12  ;;  %v4979_v42 = vmul.f32 %v4960_v53, %v11901_v41  ;;  %v4980_v16 = vmul.f32 %v4964_v43, %v10176_v57  ;;  %v4981_v35 = vmul.f32 %v4936_v54, %v11902_v5 }
 0x252   : > { %v4982_v17 = vmul.f32 %v4940_v44, %v11903_v14  ;;  %v4983_v63 = vmul.f32 %v4944_v3, %v11904_v61  ;;  %v4984_v47 = vmul.f32 %v4948_v40, %v11905_v50  ;;  %v4985_v48 = vmul.f32 %v4952_v36, %v9873_v15 }
 0x253   : > { %v4986_v56 = vmul.f32 %v4956_v62, %v10010_v0  ;;  %v4987_v49 = vmul.f32 %v4960_v53, %v10102_v59  ;;  %v4988_v2 = vmul.f32 %v4964_v43, %v10194_v46  ;;  %v5005_v55 = vrot.slane %v4973_v39, 5 }
 0x254   : > { %v5006_v41 = vrot.slane %v4974_v60, 5  ;;  %v5007_v12 = vrot.slane %v4975_v58, 5  ;;  %v5008_v57 = vrot.slane %v4976_v24, 5  ;;  %v5009_v38 = vrot.slane %v4977_v6, 5 }
 0x255   : > { %v5010_v54 = vrot.slane %v4978_v45, 5  ;;  %v5011_v5 = vrot.slane %v4979_v42, 5  ;;  %v5012_v44 = vrot.slane %v4980_v16, 5  ;;  %v5013_v14 = vrot.slane %v4981_v35, 5 }
 0x256   : > { %v5015_v3 = vrot.slane %v4982_v17, 5  ;;  %v5017_v61 = vrot.slane %v4983_v63, 5  ;;  %v5019_v40 = vrot.slane %v4984_v47, 5  ;;  %v5021_v50 = vrot.slane %v4985_v48, 5  ;;  %v11908_v48 = vld [vmem:[#allocation15_spill] sm:$0xff] }
 0x257   : > { %v5023_v36 = vrot.slane %v4986_v56, 5  ;;  %v5025_v15 = vrot.slane %v4987_v49, 5  ;;  %v5027_v62 = vrot.slane %v4988_v2, 5  ;;  %v5014_v53 = vsel %vm4605_vm3, %v5005_v55, %v5013_v14  ;;  %v11909_v49 = vld [vmem:[#allocation23_spill] sm:$0xff] }
 0x258   : > { %v5016_v43 = vsel %vm4605_vm3, %v5006_v41, %v5015_v3  ;;  %v5018_v39 = vsel %vm4605_vm3, %v5007_v12, %v5017_v61  ;;  %v5020_v60 = vsel %vm4605_vm3, %v5008_v57, %v5019_v40  ;;  %v5022_v58 = vsel %vm4605_vm3, %v5009_v38, %v5021_v50  ;;  %v11912_v40 = vld [vmem:[#allocation8_spill] sm:$0xff] }
 0x259   : > { %v5024_v24 = vsel %vm4605_vm3, %v5010_v54, %v5023_v36  ;;  %v5026_v6 = vsel %vm4605_vm3, %v5011_v5, %v5025_v15  ;;  %v5028_v45 = vsel %vm4605_vm3, %v5012_v44, %v5027_v62  ;;  %v10221_v42 = vadd.f32 %v5005_v55, %v10129_v4  ;;  %v11910_v55 = vld [vmem:[#allocation4_spill] sm:$0xff]  ;;  %v11913_v62 = vld [vmem:[#allocation19_spill] sm:$0xff] }
 0x25a   : > { %v10224_v16 = vadd.f32 %v5006_v41, %v10132_v31  ;;  %v10227_v35 = vadd.f32 %v5007_v12, %v10135_v8  ;;  %v10230_v14 = vadd.f32 %v5008_v57, %v10138_v11  ;;  %v10233_v17 = vadd.f32 %v5009_v38, %v10141_v52  ;;  %v10286_v41 = vld [vmem:[#allocation2 + $0x138] sm:$0x3] }
 0x25b   : > { %v10236_v61 = vadd.f32 %v5010_v54, %v10144_v1  ;;  %v10239_v15 = vadd.f32 %v5011_v5, %v10147_v33  ;;  %v10242_v4 = vadd.f32 %v5012_v44, %v10150_v32  ;;  %v10245_v31 = vadd.f32 %v5014_v53, %v10153_v13  ;;  %v11911_v5 = vld [vmem:[#allocation18_spill] sm:$0xff] }
 0x25c   : > { %v10248_v8 = vadd.f32 %v5016_v43, %v10156_v10  ;;  %v10251_v11 = vadd.f32 %v5018_v39, %v10159_v34  ;;  %v10254_v52 = vadd.f32 %v5020_v60, %v10162_v29  ;;  %v10257_v1 = vadd.f32 %v5022_v58, %v10165_v7  ;;  %v10268_v10 = vld [vmem:[#allocation2 + $0xc8] sm:$0xfc]  ;;  %v11907_v34 = vld [vmem:[#allocation5_spill] sm:$0xff]  ;;  %v11915_v39 = vld [vmem:[#allocation12_spill] sm:$0xff] }
 0x25d   : > { %v10260_v33 = vadd.f32 %v5024_v24, %v10168_v30  ;;  %v10263_v32 = vadd.f32 %v5026_v6, %v10171_v23  ;;  %v10266_v13 = vadd.f32 %v5028_v45, %v10174_v51  ;;  %11906 = vst [vmem:[#allocation11_spill] sm:$0xff] %v10268_v10  ;;  %v5069_v57 = vrot.slane %v11907_v34, %v7019_v18  ;;  %v11914_v43 = vld [vmem:[#allocation14_spill] sm:$0xff] }
 0x25e   : > { %v5073_v29 = vrot.slane %v11907_v34, %v7021_v19  ;;  %v5077_v7 = vrot.slane %v11907_v34, %v7023_v20  ;;  %v5081_v30 = vrot.slane %v11907_v34, %v7033_v25  ;;  %v5085_v23 = vrot.slane %v11907_v34, %v7035_v26 }
 0x25f   : > { %v5089_v51 = vrot.slane %v11907_v34, %v7037_v27  ;;  %v5093_v38 = vrot.slane %v11907_v34, %v7039_v28  ;;  %v5097_v12 = vrot.slane %v11907_v34, %v7055_v37  ;;  %v5106_v63 = vmul.f32 %v5069_v57, %v11887_v21 }
 0x260   : > { %v5107_v50 = vmul.f32 %v5073_v29, %v11888_v9  ;;  %v5108_v47 = vmul.f32 %v5077_v7, %v11898_v22  ;;  %v5109_v56 = vmul.f32 %v5081_v30, %v11908_v48  ;;  %v5110_v2 = vmul.f32 %v5085_v23, %v11909_v49 }
 0x261   : > { %v5111_v54 = vmul.f32 %v5089_v51, %v11910_v55  ;;  %v5112_v44 = vmul.f32 %v5093_v38, %v11911_v5  ;;  %v5113_v3 = vmul.f32 %v5097_v12, %v10268_v10  ;;  %v5114_v36 = vmul.f32 %v5069_v57, %v11912_v40 }
 0x262   : > { %v5115_v53 = vmul.f32 %v5073_v29, %v11913_v62  ;;  %v5116_v21 = vmul.f32 %v5077_v7, %v11914_v43  ;;  %v5117_v60 = vmul.f32 %v5081_v30, %v11915_v39  ;;  %v5118_v58 = vmul.f32 %v5085_v23, %v10010_v0 }
 0x263   : > { %v5119_v24 = vmul.f32 %v5089_v51, %v10102_v59  ;;  %v5120_v6 = vmul.f32 %v5093_v38, %v10194_v46  ;;  %v5121_v45 = vmul.f32 %v5097_v12, %v10286_v41  ;;  %v5138_v34 = vrot.slane %v5106_v63, 5 }
 0x264   : > { %v5139_v5 = vrot.slane %v5107_v50, 5  ;;  %v5140_v55 = vrot.slane %v5108_v47, 5  ;;  %v5141_v10 = vrot.slane %v5109_v56, 5  ;;  %v5142_v49 = vrot.slane %v5110_v2, 5 }
 0x265   : > { %v5143_v57 = vrot.slane %v5111_v54, 5  ;;  %v5144_v40 = vrot.slane %v5112_v44, 5  ;;  %v5145_v29 = vrot.slane %v5113_v3, 5  ;;  %v5146_v62 = vrot.slane %v5114_v36, 5 }
 0x266   : > { %v5148_v7 = vrot.slane %v5115_v53, 5  ;;  %v5150_v43 = vrot.slane %v5116_v21, 5  ;;  %v5152_v30 = vrot.slane %v5117_v60, 5  ;;  %v5154_v39 = vrot.slane %v5118_v58, 5  ;;  %v11918_v58 = vld [vmem:[#allocation23_spill] sm:$0xff] }
 0x267   : > { %v5156_v23 = vrot.slane %v5119_v24, 5  ;;  %v5158_v0 = vrot.slane %v5120_v6, 5  ;;  %v5160_v51 = vrot.slane %v5121_v45, 5  ;;  %v5147_v38 = vsel %vm4605_vm3, %v5138_v34, %v5146_v62  ;;  %v11919_v6 = vld [vmem:[#allocation4_spill] sm:$0xff] }
 0x268   : > { %v5149_v12 = vsel %vm4605_vm3, %v5139_v5, %v5148_v7  ;;  %v5151_v63 = vsel %vm4605_vm3, %v5140_v55, %v5150_v43  ;;  %v5153_v50 = vsel %vm4605_vm3, %v5141_v10, %v5152_v30  ;;  %v5155_v47 = vsel %vm4605_vm3, %v5142_v49, %v5154_v39  ;;  %v11922_v30 = vld [vmem:[#allocation19_spill] sm:$0xff] }
 0x269   : > { %v5157_v56 = vsel %vm4605_vm3, %v5143_v57, %v5156_v23  ;;  %v5159_v2 = vsel %vm4605_vm3, %v5144_v40, %v5158_v0  ;;  %v5161_v54 = vsel %vm4605_vm3, %v5145_v29, %v5160_v51  ;;  %v10313_v44 = vadd.f32 %v5138_v34, %v10221_v42  ;;  %v11920_v34 = vld [vmem:[#allocation18_spill] sm:$0xff] }
 0x26a   : > { %v10316_v3 = vadd.f32 %v5139_v5, %v10224_v16  ;;  %v10319_v36 = vadd.f32 %v5140_v55, %v10227_v35  ;;  %v10322_v62 = vadd.f32 %v5141_v10, %v10230_v14  ;;  %v10325_v53 = vadd.f32 %v5142_v49, %v10233_v17  ;;  %v10378_v5 = vld [vmem:[#allocation2 + $0x140] sm:$0x3]  ;;  %v11923_v51 = vld [vmem:[#allocation14_spill] sm:$0xff] }
 0x26b   : > { %v10328_v43 = vadd.f32 %v5143_v57, %v10236_v61  ;;  %v10331_v0 = vadd.f32 %v5144_v40, %v10239_v15  ;;  %v10334_v42 = vadd.f32 %v5145_v29, %v10242_v4  ;;  %v10337_v16 = vadd.f32 %v5147_v38, %v10245_v31  ;;  %v11921_v40 = vld [vmem:[#allocation11_spill] sm:$0xff] }
 0x26c   : > { %v10340_v35 = vadd.f32 %v5149_v12, %v10248_v8  ;;  %v10343_v14 = vadd.f32 %v5151_v63, %v10251_v11  ;;  %v10346_v17 = vadd.f32 %v5153_v50, %v10254_v52  ;;  %v10349_v61 = vadd.f32 %v5155_v47, %v10257_v1  ;;  %v10360_v8 = vld [vmem:[#allocation2 + $0xd0] sm:$0xfc]  ;;  %v11917_v11 = vld [vmem:[#allocation22_spill] sm:$0xff]  ;;  %v11924_v12 = vld [vmem:[#allocation12_spill] sm:$0xff] }
 0x26d   : > { %v10352_v15 = vadd.f32 %v5157_v56, %v10260_v33  ;;  %v10355_v4 = vadd.f32 %v5159_v2, %v10263_v32  ;;  %v10358_v31 = vadd.f32 %v5161_v54, %v10266_v13  ;;  %11916 = vst [vmem:[#allocation9_spill] sm:$0xff] %v10360_v8  ;;  %v5202_v10 = vrot.slane %v11917_v11, %v7019_v18  ;;  %v11925_v63 = vld [vmem:[#allocation3_spill] sm:$0xff] }
 0x26e   : > { %v5206_v52 = vrot.slane %v11917_v11, %v7021_v19  ;;  %v5210_v1 = vrot.slane %v11917_v11, %v7023_v20  ;;  %v5214_v33 = vrot.slane %v11917_v11, %v7033_v25  ;;  %v5218_v32 = vrot.slane %v11917_v11, %v7035_v26 }
 0x26f   : > { %v5222_v13 = vrot.slane %v11917_v11, %v7037_v27  ;;  %v5226_v49 = vrot.slane %v11917_v11, %v7039_v28  ;;  %v5230_v55 = vrot.slane %v11917_v11, %v7055_v37  ;;  %v5239_v21 = vmul.f32 %v5202_v10, %v11888_v9 }
 0x270   : > { %v5240_v39 = vmul.f32 %v5206_v52, %v11898_v22  ;;  %v5241_v60 = vmul.f32 %v5210_v1, %v11908_v48  ;;  %v5242_v24 = vmul.f32 %v5214_v33, %v11918_v58  ;;  %v5243_v45 = vmul.f32 %v5218_v32, %v11919_v6 }
 0x271   : > { %v5244_v57 = vmul.f32 %v5222_v13, %v11920_v34  ;;  %v5245_v29 = vmul.f32 %v5226_v49, %v11921_v40  ;;  %v5246_v7 = vmul.f32 %v5230_v55, %v10360_v8  ;;  %v5247_v23 = vmul.f32 %v5202_v10, %v11922_v30 }
 0x272   : > { %v5248_v38 = vmul.f32 %v5206_v52, %v11923_v51  ;;  %v5249_v9 = vmul.f32 %v5210_v1, %v11924_v12  ;;  %v5250_v50 = vmul.f32 %v5214_v33, %v11925_v63  ;;  %v5251_v47 = vmul.f32 %v5218_v32, %v10102_v59 }
 0x273   : > { %v5252_v56 = vmul.f32 %v5222_v13, %v10194_v46  ;;  %v5253_v2 = vmul.f32 %v5226_v49, %v10286_v41  ;;  %v5254_v54 = vmul.f32 %v5230_v55, %v10378_v5  ;;  %v5271_v11 = vrot.slane %v5239_v21, 5 }
 0x274   : > { %v5272_v40 = vrot.slane %v5240_v39, 5  ;;  %v5273_v34 = vrot.slane %v5241_v60, 5  ;;  %v5274_v8 = vrot.slane %v5242_v24, 5  ;;  %v5275_v6 = vrot.slane %v5243_v45, 5 }
 0x275   : > { %v5276_v10 = vrot.slane %v5244_v57, 5  ;;  %v5277_v30 = vrot.slane %v5245_v29, 5  ;;  %v5278_v52 = vrot.slane %v5246_v7, 5  ;;  %v5279_v51 = vrot.slane %v5247_v23, 5 }
 0x276   : > { %v5281_v1 = vrot.slane %v5248_v38, 5  ;;  %v5283_v12 = vrot.slane %v5249_v9, 5  ;;  %v5285_v33 = vrot.slane %v5250_v50, 5  ;;  %v5287_v63 = vrot.slane %v5251_v47, 5  ;;  %v11927_v47 = vld [vmem:[#allocation4_spill] sm:$0xff] }
 0x277   : > { %v5289_v32 = vrot.slane %v5252_v56, 5  ;;  %v5291_v59 = vrot.slane %v5253_v2, 5  ;;  %v5293_v13 = vrot.slane %v5254_v54, 5  ;;  %v5280_v49 = vsel %vm4605_vm3, %v5271_v11, %v5279_v51  ;;  %v11928_v2 = vld [vmem:[#allocation18_spill] sm:$0xff] }
 0x278   : > { %v5282_v55 = vsel %vm4605_vm3, %v5272_v40, %v5281_v1  ;;  %v5284_v21 = vsel %vm4605_vm3, %v5273_v34, %v5283_v12  ;;  %v5286_v39 = vsel %vm4605_vm3, %v5274_v8, %v5285_v33  ;;  %v5288_v60 = vsel %vm4605_vm3, %v5275_v6, %v5287_v63  ;;  %v11931_v33 = vld [vmem:[#allocation14_spill] sm:$0xff] }
 0x279   : > { %v5290_v24 = vsel %vm4605_vm3, %v5276_v10, %v5289_v32  ;;  %v5292_v45 = vsel %vm4605_vm3, %v5277_v30, %v5291_v59  ;;  %v5294_v57 = vsel %vm4605_vm3, %v5278_v52, %v5293_v13  ;;  %v10405_v29 = vadd.f32 %v5271_v11, %v10313_v44  ;;  %v11929_v11 = vld [vmem:[#allocation11_spill] sm:$0xff]  ;;  %v11932_v13 = vld [vmem:[#allocation12_spill] sm:$0xff] }
 0x27a   : > { %v10408_v7 = vadd.f32 %v5272_v40, %v10316_v3  ;;  %v10411_v23 = vadd.f32 %v5273_v34, %v10319_v36  ;;  %v10414_v51 = vadd.f32 %v5274_v8, %v10322_v62  ;;  %v10417_v38 = vadd.f32 %v5275_v6, %v10325_v53  ;;  %v11926_v8 = vld [vmem:[#allocation21_spill] sm:$0xff]  ;;  %v4527_v40 = vld [vmem:[#allocation2 + $0x148] sm:$0x3] }
 0x27b   : > { %v10420_v12 = vadd.f32 %v5276_v10, %v10328_v43  ;;  %v10423_v59 = vadd.f32 %v5277_v30, %v10331_v0  ;;  %v10426_v44 = vadd.f32 %v5278_v52, %v10334_v42  ;;  %v10429_v3 = vadd.f32 %v5280_v49, %v10337_v16  ;;  %v11930_v30 = vld [vmem:[#allocation9_spill] sm:$0xff] }
 0x27c   : > { %v10432_v36 = vadd.f32 %v5282_v55, %v10340_v35  ;;  %v10435_v62 = vadd.f32 %v5284_v21, %v10343_v14  ;;  %v10438_v53 = vadd.f32 %v5286_v39, %v10346_v17  ;;  %v10441_v43 = vadd.f32 %v5288_v60, %v10349_v61  ;;  %v4513_v35 = vld [vmem:[#allocation2 + $0xd8] sm:$0xfc]  ;;  %v11933_v55 = vld [vmem:[#allocation3_spill] sm:$0xff] }
 0x27d   : > { %v10444_v0 = vadd.f32 %v5290_v24, %v10352_v15  ;;  %v10447_v42 = vadd.f32 %v5292_v45, %v10355_v4  ;;  %v10450_v16 = vadd.f32 %v5294_v57, %v10358_v31  ;;  %v5335_v14 = vrot.slane %v11926_v8, %v7019_v18 }
 0x27e   : > { %v5339_v17 = vrot.slane %v11926_v8, %v7021_v19  ;;  %v5343_v61 = vrot.slane %v11926_v8, %v7023_v20  ;;  %v5347_v15 = vrot.slane %v11926_v8, %v7033_v25  ;;  %v5351_v4 = vrot.slane %v11926_v8, %v7035_v26 }
 0x27f   : > { %v5355_v31 = vrot.slane %v11926_v8, %v7037_v27  ;;  %v5359_v6 = vrot.slane %v11926_v8, %v7039_v28  ;;  %v5363_v34 = vrot.slane %v11926_v8, %v7055_v37  ;;  %v5372_v9 = vmul.f32 %v5335_v14, %v11898_v22  ;;  %v11934_v22 = vld [vmem:[#allocation20_spill] sm:$0xff] }
 0x280   : > { %v5373_v63 = vmul.f32 %v5339_v17, %v11908_v48  ;;  %v5374_v50 = vmul.f32 %v5343_v61, %v11918_v58  ;;  %v5375_v56 = vmul.f32 %v5347_v15, %v11927_v47  ;;  %v5376_v54 = vmul.f32 %v5351_v4, %v11928_v2 }
 0x281   : > { %v5377_v10 = vmul.f32 %v5355_v31, %v11929_v11  ;;  %v5378_v52 = vmul.f32 %v5359_v6, %v11930_v30  ;;  %v5379_v1 = vmul.f32 %v5363_v34, %v4513_v35  ;;  %v5380_v32 = vmul.f32 %v5335_v14, %v11931_v33 }
 0x282   : > { %v5381_v49 = vmul.f32 %v5339_v17, %v11932_v13  ;;  %v5382_v21 = vmul.f32 %v5343_v61, %v11933_v55  ;;  %v5383_v39 = vmul.f32 %v5347_v15, %v11934_v22  ;;  %v5384_v48 = vmul.f32 %v5351_v4, %v10194_v46  ;;  %v10548_v22 = vld [vmem:[#allocation2 + $0x80] sm:$0xf8] }
 0x283   : > { %v5385_v58 = vmul.f32 %v5355_v31, %v10286_v41  ;;  %v5386_v60 = vmul.f32 %v5359_v6, %v10378_v5  ;;  %v5387_v24 = vmul.f32 %v5363_v34, %v4527_v40  ;;  %v5404_v45 = vrot.slane %v5372_v9, 5 }
 0x284   : > { %v5405_v57 = vrot.slane %v5373_v63, 5  ;;  %v5406_v8 = vrot.slane %v5374_v50, 5  ;;  %v5407_v47 = vrot.slane %v5375_v56, 5  ;;  %v5408_v35 = vrot.slane %v5376_v54, 5 }
 0x285   : > { %v5409_v2 = vrot.slane %v5377_v10, 5  ;;  %v5410_v14 = vrot.slane %v5378_v52, 5  ;;  %v5411_v11 = vrot.slane %v5379_v1, 5  ;;  %v5412_v17 = vrot.slane %v5380_v32, 5 }
 0x286   : > { %v5414_v30 = vrot.slane %v5381_v49, 5  ;;  %v5416_v61 = vrot.slane %v5382_v21, 5  ;;  %v5418_v33 = vrot.slane %v5383_v39, 5  ;;  %v5420_v15 = vrot.slane %v5384_v48, 5  ;;  %v10528_v49 = vld [vmem:[#allocation2 + $0x90] sm:$0xf8] }
 0x287   : > { %v5422_v13 = vrot.slane %v5385_v58, 5  ;;  %v5424_v46 = vrot.slane %v5386_v60, 5  ;;  %v5426_v4 = vrot.slane %v5387_v24, 5  ;;  %v5413_v41 = vsel %vm4605_vm3, %v5404_v45, %v5412_v17  ;;  %11935 = vst [vmem:[#allocation17_spill] sm:$0xff] %v10528_v49  ;;  %v10546_v21 = vld [vmem:[#allocation2 + $0x78] sm:$0xf8] }
 0x288   : > { %v5415_v5 = vsel %vm4605_vm3, %v5405_v57, %v5414_v30  ;;  %v5417_v31 = vsel %vm4605_vm3, %v5406_v8, %v5416_v61  ;;  %v5419_v6 = vsel %vm4605_vm3, %v5407_v47, %v5418_v33  ;;  %v5421_v34 = vsel %vm4605_vm3, %v5408_v35, %v5420_v15  ;;  %v10550_v39 = vld [vmem:[#allocation2 + $0xa8] sm:$0xf8]  ;;  %v10552_v48 = vld [vmem:[#allocation2 + $0xf8] sm:$0x7]  ;;  %v5474_v24 = vld [vmem:[#allocation2 + $0xe0] sm:$0x7] }
 0x289   : > { %v5423_v40 = vsel %vm4605_vm3, %v5409_v2, %v5422_v13  ;;  %v5425_v9 = vsel %vm4605_vm3, %v5410_v14, %v5424_v46  ;;  %v5427_v63 = vsel %vm4605_vm3, %v5411_v11, %v5426_v4  ;;  %v10491_v50 = vadd.f32 %v5404_v45, %v10405_v29  ;;  %11938 = vst [vmem:[#allocation16_spill] sm:$0xff] %v10550_v39  ;;  %v10564_v45 = vld [vmem:[#allocation2 + $0xe8] sm:$0x7]  ;;  %v10580_v17 = vld [vmem:[#allocation2 + $0x118] sm:$0x7] }
 0x28a   : > { %v10494_v56 = vadd.f32 %v5405_v57, %v10408_v7  ;;  %v10497_v54 = vadd.f32 %v5406_v8, %v10411_v23  ;;  %v10500_v10 = vadd.f32 %v5407_v47, %v10414_v51  ;;  %v10503_v52 = vadd.f32 %v5408_v35, %v10417_v38  ;;  %v10514_v7 = vld [vmem:[#allocation2 + $0x88] sm:$0xf8]  ;;  %11939 = vst [vmem:[#allocation5_spill] sm:$0xff] %v10552_v48  ;;  %v10566_v57 = vld [vmem:[#allocation2 + $0xf0] sm:$0x7] }
 0x28b   : > { %v10506_v1 = vadd.f32 %v5409_v2, %v10420_v12  ;;  %v10509_v32 = vadd.f32 %v5410_v14, %v10423_v59  ;;  %v10512_v29 = vadd.f32 %v5411_v11, %v10426_v44  ;;  %v10517_v23 = vadd.f32 %v5413_v41, %v10429_v3  ;;  %v10530_v59 = vld [vmem:[#allocation2 + $0x98] sm:$0xf8]  ;;  %v10532_v44 = vld [vmem:[#allocation2 + $0xa0] sm:$0xf8]  ;;  %11942 = vst [vmem:[#allocation8_spill] sm:$0xff] %v10564_v45 }
 0x28c   : > { %v10520_v51 = vadd.f32 %v5415_v5, %v10432_v36  ;;  %v10523_v38 = vadd.f32 %v5417_v31, %v10435_v62  ;;  %v10526_v12 = vadd.f32 %v5419_v6, %v10438_v53  ;;  %11936 = vst [vmem:[#allocation6_spill] sm:$0xff] %v10530_v59  ;;  %11937 = vst [vmem:[#allocation7_spill] sm:$0xff] %v10532_v44  ;;  %v5460_v53 = vld [vmem:[#allocation2 + $0x70] sm:$0xf8]  ;;  %v10576_v14 = vld [vmem:[#allocation2 + $0x108] sm:$0x7] }
 0x28d   : > { %v10535_v55 = vadd.f32 %v5421_v34, %v10441_v43  ;;  %v10538_v3 = vadd.f32 %v5423_v40, %v10444_v0  ;;  %v10541_v36 = vadd.f32 %v5425_v9, %v10447_v42  ;;  %v10544_v62 = vadd.f32 %v5427_v63, %v10450_v16  ;;  %v10554_v43 = vld [vmem:[#allocation2 + $0x100] sm:$0x7]  ;;  %v11941_v0 = vld [vmem:[#allocation10_spill] sm:$0xff]  ;;  %11943 = vst [vmem:[#allocation22_spill] sm:$0xff] %v10566_v57  ;;  %v10578_v11 = vld [vmem:[#allocation2 + $0x110] sm:$0x7] }
 0x28e   : > { %11940 = vst [vmem:[#allocation15_spill] sm:$0xff] %v10554_v43  ;;  %v5496_v58 = vrot.slane %v11941_v0, %v7019_v18  ;;  %v5500_v42 = vrot.slane %v11941_v0, %v7021_v19  ;;  %v5504_v16 = vrot.slane %v11941_v0, %v7023_v20  ;;  %v5508_v60 = vrot.slane %v11941_v0, %v7033_v25 }
 0x28f   : > { %v5512_v8 = vrot.slane %v11941_v0, %v7035_v26  ;;  %v5516_v47 = vrot.slane %v11941_v0, %v7037_v27  ;;  %v5520_v35 = vrot.slane %v11941_v0, %v7039_v28  ;;  %v5524_v2 = vrot.slane %v11941_v0, %v7055_v37  ;;  %11944 = vst [vmem:[#allocation23_spill] sm:$0xff] %v10576_v14 }
 0x290   : > { %11945 = vst [vmem:[#allocation19_spill] sm:$0xff] %v10578_v11  ;;  %11946 = vst [vmem:[#allocation21_spill] sm:$0xff] %v10580_v17  ;;  %v5533_v30 = vmul.f32 %v5496_v58, %v5460_v53  ;;  %v5534_v61 = vmul.f32 %v5500_v42, %v10546_v21  ;;  %v5535_v33 = vmul.f32 %v5504_v16, %v10548_v22 }
 0x291   : > { %v5536_v15 = vmul.f32 %v5508_v60, %v10514_v7  ;;  %v5537_v13 = vmul.f32 %v5512_v8, %v10528_v49  ;;  %v5538_v46 = vmul.f32 %v5516_v47, %v10530_v59  ;;  %v5539_v4 = vmul.f32 %v5520_v35, %v10532_v44 }
 0x292   : > { %v5540_v41 = vmul.f32 %v5524_v2, %v10550_v39  ;;  %v5541_v5 = vmul.f32 %v5496_v58, %v5474_v24  ;;  %v5542_v31 = vmul.f32 %v5500_v42, %v10564_v45  ;;  %v5543_v6 = vmul.f32 %v5504_v16, %v10566_v57 }
 0x293   : > { %v5544_v34 = vmul.f32 %v5508_v60, %v10552_v48  ;;  %v5545_v40 = vmul.f32 %v5512_v8, %v10554_v43  ;;  %v5546_v9 = vmul.f32 %v5516_v47, %v10576_v14  ;;  %v5547_v63 = vmul.f32 %v5520_v35, %v10578_v11 }
 0x294   : > { %v5548_v53 = vmul.f32 %v5524_v2, %v10580_v17  ;;  %v5566_v0 = vrot.slane %v5533_v30, 6  ;;  %v5567_v59 = vrot.slane %v5534_v61, 6  ;;  %v5568_v44 = vrot.slane %v5535_v33, 6 }
 0x295   : > { %v5569_v49 = vrot.slane %v5536_v15, 6  ;;  %v5570_v39 = vrot.slane %v5537_v13, 6  ;;  %v5571_v58 = vrot.slane %v5538_v46, 6  ;;  %v5572_v24 = vrot.slane %v5539_v4, 6 }
 0x296   : > { %v5573_v42 = vrot.slane %v5540_v41, 6  ;;  %v5574_v45 = vrot.slane %v5541_v5, 6  ;;  %v5576_v16 = vrot.slane %v5542_v31, 6  ;;  %v5578_v57 = vrot.slane %v5543_v6, 6  ;;  %v10627_v5 = vld [vmem:[%s305_s7] sm:$0xff] }
 0x297   : > { %v5580_v60 = vrot.slane %v5544_v34, 6  ;;  %v5582_v48 = vrot.slane %v5545_v40, 6  ;;  %v5584_v8 = vrot.slane %v5546_v9, 6  ;;  %v5586_v43 = vrot.slane %v5547_v63, 6  ;;  %11947 = vst [vmem:[#allocation4_spill] sm:$0xff] %v10627_v5 }
 0x298   : > { %v5588_v47 = vrot.slane %v5548_v53, 6  ;;  %v5575_v35 = vsel %vm5565_vm4, %v5566_v0, %v5574_v45  ;;  %v5577_v2 = vsel %vm5565_vm4, %v5567_v59, %v5576_v16  ;;  %v5579_v30 = vsel %vm5565_vm4, %v5568_v44, %v5578_v57  ;;  %v6821_v4 = vld [vmem:[%s11285_s3 + $0x143] ss:$8 sm:$0xf] }
 0x299   : > { %v5581_v61 = vsel %vm5565_vm4, %v5569_v49, %v5580_v60  ;;  %v5583_v33 = vsel %vm5565_vm4, %v5570_v39, %v5582_v48  ;;  %v5585_v15 = vsel %vm5565_vm4, %v5571_v58, %v5584_v8  ;;  %v5587_v13 = vsel %vm5565_vm4, %v5572_v24, %v5586_v43  ;;  %v6822_v45 = vld [vmem:[%s11285_s3 + $0x143] ss:$8 sm:$0xf0]  ;;  %v6823_v57 = vld [vmem:[%s11285_s3 + $0x144] ss:$8 sm:$0xf] }
 0x29a   : > { %v5589_v46 = vsel %vm5565_vm4, %v5573_v42, %v5588_v47  ;;  %v6824_v48 = vld [vmem:[%s11285_s3 + $0x144] ss:$8 sm:$0xf0]  ;;  %v6825_v43 = vld [vmem:[%s11285_s3 + $0x145] ss:$8 sm:$0xf]  ;;  %v10630_v31 = vadd.f32 %v5566_v0, %v10491_v50  ;;  %v10633_v6 = vadd.f32 %v5567_v59, %v10494_v56  ;;  %v10636_v34 = vadd.f32 %v5568_v44, %v10497_v54 }
 0x29b   : > { %v6826_v41 = vld [vmem:[%s11285_s3 + $0x145] ss:$8 sm:$0xf0]  ;;  %v10639_v40 = vadd.f32 %v5569_v49, %v10500_v10  ;;  %v6827_v9 = vld [vmem:[%s11285_s3 + $0x146] ss:$8 sm:$0xf]  ;;  %v10648_v50 = vadd.f32 %v5570_v39, %v10503_v52  ;;  %v10651_v56 = vadd.f32 %v5571_v58, %v10506_v1  ;;  %v10654_v54 = vadd.f32 %v5572_v24, %v10509_v32 }
 0x29c   : > { %v6828_v63 = vld [vmem:[%s11285_s3 + $0x146] ss:$8 sm:$0xf0]  ;;  %v10657_v10 = vadd.f32 %v5573_v42, %v10512_v29  ;;  %v6829_v49 = vld [vmem:[%s11285_s3 + $0x147] ss:$8 sm:$0xf]  ;;  %v10666_v52 = vadd.f32 %v5575_v35, %v10517_v23  ;;  %v10669_v1 = vadd.f32 %v5577_v2, %v10520_v51  ;;  %v10672_v32 = vadd.f32 %v5579_v30, %v10523_v38 }
 0x29d   : > { %v6830_v59 = vld [vmem:[%s11285_s3 + $0x147] ss:$8 sm:$0xf0]  ;;  %v10675_v29 = vadd.f32 %v5581_v61, %v10526_v12  ;;  %v6831_v44 = vld [vmem:[%s11285_s3 + $0x180] ss:$8 sm:$0xf]  ;;  %v10684_v23 = vadd.f32 %v5583_v33, %v10535_v55  ;;  %v10687_v51 = vadd.f32 %v5585_v15, %v10538_v3  ;;  %v10690_v38 = vadd.f32 %v5587_v13, %v10541_v36 }
 0x29e   : > { %v6832_v39 = vld [vmem:[%s11285_s3 + $0x180] ss:$8 sm:$0xf0]  ;;  %v10693_v12 = vadd.f32 %v5589_v46, %v10544_v62  ;;  %v5625_v53 = vor.u32 %v6822_v45, %v6821_v4  ;;  %v10695_v0 = vor.u32 %v6824_v48, %v6823_v57  ;;  %v10697_v58 = vor.u32 %v6826_v41, %v6825_v43  ;;  %v10713_v62 = vld [vmem:[#allocation2 + $0xb0] sm:$0xf8] }
 0x29f   : > { %v10699_v24 = vor.u32 %v6828_v63, %v6827_v9  ;;  %v10701_v42 = vor.u32 %v6830_v59, %v6829_v49  ;;  %v10703_v55 = vor.u32 %v6832_v39, %v6831_v44  ;;  %v10707_v3 = vrot.slane %v10627_v5, %v7019_v18  ;;  %11954 = vst [vmem:[#allocation20_spill] sm:$0xff] %v10713_v62  ;;  %v10723_v33 = vld [vmem:[#allocation2 + $0x120] sm:$0x7]  ;;  %v11957_v57 = vld [vmem:[#allocation6_spill] sm:$0xff]  ;;  %v11958_v43 = vld [vmem:[#allocation7_spill] sm:$0xff] }
 0x2a0   : > { %11948 = vst [vmem:[#allocation18_spill] sm:$0xff] %v10697_v58  ;;  %v10711_v36 = vrot.slane %v10627_v5, %v7021_v19  ;;  %v5630_v16 = vrot.slane %v5625_v53, %v7019_v18  ;;  %v5634_v60 = vrot.slane %v5625_v53, %v7021_v19  ;;  %v5638_v8 = vrot.slane %v5625_v53, %v7023_v20  ;;  %v11956_v4 = vld [vmem:[#allocation17_spill] sm:$0xff]  ;;  %v11959_v9 = vld [vmem:[#allocation16_spill] sm:$0xff]  ;;  %v11961_v39 = vld [vmem:[#allocation22_spill] sm:$0xff] }
 0x2a1   : > { %11949 = vst [vmem:[#allocation11_spill] sm:$0xff] %v10699_v24  ;;  %11950 = vst [vmem:[#allocation9_spill] sm:$0xff] %v10701_v42  ;;  %v5642_v47 = vrot.slane %v5625_v53, %v7033_v25  ;;  %v5646_v35 = vrot.slane %v5625_v53, %v7035_v26  ;;  %v5650_v2 = vrot.slane %v5625_v53, %v7037_v27  ;;  %v11960_v59 = vld [vmem:[#allocation8_spill] sm:$0xff] }
 0x2a2   : > { %11951 = vst [vmem:[#allocation14_spill] sm:$0xff] %v10703_v55  ;;  %11952 = vst [vmem:[#allocation12_spill] sm:$0xff] %v10707_v3  ;;  %v5654_v30 = vrot.slane %v5625_v53, %v7039_v28  ;;  %v5658_v61 = vrot.slane %v5625_v53, %v7055_v37  ;;  %v5667_v15 = vmul.f32 %v5630_v16, %v10546_v21  ;;  %v11963_v3 = vld [vmem:[#allocation15_spill] sm:$0xff] }
 0x2a3   : > { %11953 = vst [vmem:[#allocation3_spill] sm:$0xff] %v10711_v36  ;;  %11955 = vst [vmem:[#allocation10_spill] sm:$0xff] %v10723_v33  ;;  %v5668_v13 = vmul.f32 %v5634_v60, %v10548_v22  ;;  %v5669_v46 = vmul.f32 %v5638_v8, %v10514_v7  ;;  %v5670_v45 = vmul.f32 %v5642_v47, %v11956_v4  ;;  %v11962_v36 = vld [vmem:[#allocation5_spill] sm:$0xff] }
 0x2a4   : > { %v5671_v48 = vmul.f32 %v5646_v35, %v11957_v57  ;;  %v5672_v41 = vmul.f32 %v5650_v2, %v11958_v43  ;;  %v5673_v63 = vmul.f32 %v5654_v30, %v11959_v9  ;;  %v5674_v49 = vmul.f32 %v5658_v61, %v10713_v62 }
 0x2a5   : > { %v5675_v44 = vmul.f32 %v5630_v16, %v11960_v59  ;;  %v5676_v53 = vmul.f32 %v5634_v60, %v11961_v39  ;;  %v5677_v21 = vmul.f32 %v5638_v8, %v11962_v36  ;;  %v5678_v5 = vmul.f32 %v5642_v47, %v11963_v3 }
 0x2a6   : > { %v5679_v55 = vmul.f32 %v5646_v35, %v10576_v14  ;;  %v5680_v42 = vmul.f32 %v5650_v2, %v10578_v11  ;;  %v5681_v24 = vmul.f32 %v5654_v30, %v10580_v17  ;;  %v5682_v58 = vmul.f32 %v5658_v61, %v10723_v33 }
 0x2a7   : > { %v5699_v43 = vrot.slane %v5667_v15, 6  ;;  %v5700_v9 = vrot.slane %v5668_v13, 6  ;;  %v5701_v57 = vrot.slane %v5669_v46, 6  ;;  %v5702_v62 = vrot.slane %v5670_v45, 6 }
 0x2a8   : > { %v5703_v4 = vrot.slane %v5671_v48, 6  ;;  %v5704_v16 = vrot.slane %v5672_v41, 6  ;;  %v5705_v59 = vrot.slane %v5673_v63, 6  ;;  %v5706_v60 = vrot.slane %v5674_v49, 6  ;;  %v11967_v49 = vld [vmem:[#allocation6_spill] sm:$0xff] }
 0x2a9   : > { %v5707_v39 = vrot.slane %v5675_v44, 6  ;;  %v5709_v8 = vrot.slane %v5676_v53, 6  ;;  %v5711_v36 = vrot.slane %v5677_v21, 6  ;;  %v5713_v47 = vrot.slane %v5678_v5, 6  ;;  %v11969_v21 = vld [vmem:[#allocation16_spill] sm:$0xff] }
 0x2aa   : > { %v5715_v3 = vrot.slane %v5679_v55, 6  ;;  %v5717_v35 = vrot.slane %v5680_v42, 6  ;;  %v5719_v14 = vrot.slane %v5681_v24, 6  ;;  %v5721_v2 = vrot.slane %v5682_v58, 6 }
 0x2ab   : > { %v5708_v30 = vsel %vm5565_vm4, %v5699_v43, %v5707_v39  ;;  %v5710_v61 = vsel %vm5565_vm4, %v5700_v9, %v5709_v8  ;;  %v5712_v15 = vsel %vm5565_vm4, %v5701_v57, %v5711_v36  ;;  %v5714_v13 = vsel %vm5565_vm4, %v5702_v62, %v5713_v47  ;;  %v11968_v39 = vld [vmem:[#allocation7_spill] sm:$0xff]  ;;  %v11971_v47 = vld [vmem:[#allocation22_spill] sm:$0xff] }
 0x2ac   : > { %v5716_v46 = vsel %vm5565_vm4, %v5703_v4, %v5715_v3  ;;  %v5718_v45 = vsel %vm5565_vm4, %v5704_v16, %v5717_v35  ;;  %v5720_v48 = vsel %vm5565_vm4, %v5705_v59, %v5719_v14  ;;  %v5722_v5 = vsel %vm5565_vm4, %v5706_v60, %v5721_v2  ;;  %v11972_v35 = vld [vmem:[#allocation5_spill] sm:$0xff] }
 0x2ad   : > { %v10750_v42 = vadd.f32 %v5699_v43, %v10630_v31  ;;  %v10753_v58 = vadd.f32 %v5700_v9, %v10633_v6  ;;  %v10756_v24 = vadd.f32 %v5701_v57, %v10636_v34  ;;  %v10759_v55 = vadd.f32 %v5702_v62, %v10639_v40  ;;  %v10815_v57 = vld [vmem:[#allocation2 + $0x128] sm:$0x7]  ;;  %v11966_v9 = vld [vmem:[#allocation17_spill] sm:$0xff] }
 0x2ae   : > { %v10762_v3 = vadd.f32 %v5703_v4, %v10648_v50  ;;  %v10765_v36 = vadd.f32 %v5704_v16, %v10651_v56  ;;  %v10768_v14 = vadd.f32 %v5705_v59, %v10654_v54  ;;  %v10771_v31 = vadd.f32 %v5706_v60, %v10657_v10  ;;  %11965 = vst [vmem:[#allocation24_spill] sm:$0xff] %v10815_v57  ;;  %v11970_v59 = vld [vmem:[#allocation20_spill] sm:$0xff] }
 0x2af   : > { %v10774_v6 = vadd.f32 %v5708_v30, %v10666_v52  ;;  %v10777_v34 = vadd.f32 %v5710_v61, %v10669_v1  ;;  %v10780_v40 = vadd.f32 %v5712_v15, %v10672_v32  ;;  %v10783_v50 = vadd.f32 %v5714_v13, %v10675_v29  ;;  %v10797_v1 = vld [vmem:[#allocation2 + $0xb8] sm:$0xf8]  ;;  %v11973_v30 = vld [vmem:[#allocation15_spill] sm:$0xff] }
 0x2b0   : > { %v10786_v56 = vadd.f32 %v5716_v46, %v10684_v23  ;;  %v10789_v54 = vadd.f32 %v5718_v45, %v10687_v51  ;;  %v10792_v10 = vadd.f32 %v5720_v48, %v10690_v38  ;;  %v10795_v52 = vadd.f32 %v5722_v5, %v10693_v12  ;;  %11964 = vst [vmem:[#allocation8_spill] sm:$0xff] %v10797_v1  ;;  %v11974_v61 = vld [vmem:[#allocation23_spill] sm:$0xff] }
 0x2b1   : > { %v5763_v32 = vrot.slane %v10695_v0, %v7019_v18  ;;  %v5767_v29 = vrot.slane %v10695_v0, %v7021_v19  ;;  %v5771_v23 = vrot.slane %v10695_v0, %v7023_v20  ;;  %v5775_v51 = vrot.slane %v10695_v0, %v7033_v25 }
 0x2b2   : > { %v5779_v38 = vrot.slane %v10695_v0, %v7035_v26  ;;  %v5783_v12 = vrot.slane %v10695_v0, %v7037_v27  ;;  %v5787_v62 = vrot.slane %v10695_v0, %v7039_v28  ;;  %v5791_v4 = vrot.slane %v10695_v0, %v7055_v37 }
 0x2b3   : > { %v5800_v43 = vmul.f32 %v5763_v32, %v10548_v22  ;;  %v5801_v41 = vmul.f32 %v5767_v29, %v10514_v7  ;;  %v5802_v63 = vmul.f32 %v5771_v23, %v11966_v9  ;;  %v5803_v44 = vmul.f32 %v5775_v51, %v11967_v49 }
 0x2b4   : > { %v5804_v53 = vmul.f32 %v5779_v38, %v11968_v39  ;;  %v5805_v16 = vmul.f32 %v5783_v12, %v11969_v21  ;;  %v5806_v60 = vmul.f32 %v5787_v62, %v11970_v59  ;;  %v5807_v8 = vmul.f32 %v5791_v4, %v10797_v1 }
 0x2b5   : > { %v5808_v0 = vmul.f32 %v5763_v32, %v11971_v47  ;;  %v5809_v2 = vmul.f32 %v5767_v29, %v11972_v35  ;;  %v5810_v22 = vmul.f32 %v5771_v23, %v11973_v30  ;;  %v5811_v15 = vmul.f32 %v5775_v51, %v11974_v61 }
 0x2b6   : > { %v5812_v13 = vmul.f32 %v5779_v38, %v10578_v11  ;;  %v5813_v46 = vmul.f32 %v5783_v12, %v10580_v17  ;;  %v5814_v45 = vmul.f32 %v5787_v62, %v10723_v33  ;;  %v5815_v48 = vmul.f32 %v5791_v4, %v10815_v57 }
 0x2b7   : > { %v5832_v5 = vrot.slane %v5800_v43, 6  ;;  %v5833_v59 = vrot.slane %v5801_v41, 6  ;;  %v5834_v21 = vrot.slane %v5802_v63, 6  ;;  %v5835_v1 = vrot.slane %v5803_v44, 6 }
 0x2b8   : > { %v5836_v39 = vrot.slane %v5804_v53, 6  ;;  %v5837_v32 = vrot.slane %v5805_v16, 6  ;;  %v5838_v47 = vrot.slane %v5806_v60, 6  ;;  %v5839_v29 = vrot.slane %v5807_v8, 6 }
 0x2b9   : > { %v5840_v35 = vrot.slane %v5808_v0, 6  ;;  %v5842_v23 = vrot.slane %v5809_v2, 6  ;;  %v5844_v30 = vrot.slane %v5810_v22, 6  ;;  %v5846_v51 = vrot.slane %v5811_v15, 6 }
 0x2ba   : > { %v5848_v61 = vrot.slane %v5812_v13, 6  ;;  %v5850_v38 = vrot.slane %v5813_v46, 6  ;;  %v5852_v11 = vrot.slane %v5814_v45, 6  ;;  %v5854_v12 = vrot.slane %v5815_v48, 6  ;;  %v11977_v13 = vld [vmem:[#allocation7_spill] sm:$0xff]  ;;  %v11978_v45 = vld [vmem:[#allocation16_spill] sm:$0xff] }
 0x2bb   : > { %v5841_v62 = vsel %vm5565_vm4, %v5832_v5, %v5840_v35  ;;  %v5843_v4 = vsel %vm5565_vm4, %v5833_v59, %v5842_v23  ;;  %v5845_v43 = vsel %vm5565_vm4, %v5834_v21, %v5844_v30  ;;  %v5847_v41 = vsel %vm5565_vm4, %v5835_v1, %v5846_v51  ;;  %v11981_v51 = vld [vmem:[#allocation5_spill] sm:$0xff] }
 0x2bc   : > { %v5849_v63 = vsel %vm5565_vm4, %v5836_v39, %v5848_v61  ;;  %v5851_v44 = vsel %vm5565_vm4, %v5837_v32, %v5850_v38  ;;  %v5853_v53 = vsel %vm5565_vm4, %v5838_v47, %v5852_v11  ;;  %v5855_v16 = vsel %vm5565_vm4, %v5839_v29, %v5854_v12  ;;  %v11982_v12 = vld [vmem:[#allocation15_spill] sm:$0xff] }
 0x2bd   : > { %v10842_v60 = vadd.f32 %v5832_v5, %v10750_v42  ;;  %v10845_v8 = vadd.f32 %v5833_v59, %v10753_v58  ;;  %v10848_v0 = vadd.f32 %v5834_v21, %v10756_v24  ;;  %v10851_v35 = vadd.f32 %v5835_v1, %v10759_v55  ;;  %v10907_v59 = vld [vmem:[#allocation2 + $0x130] sm:$0x7]  ;;  %v11979_v5 = vld [vmem:[#allocation20_spill] sm:$0xff] }
 0x2be   : > { %v10854_v2 = vadd.f32 %v5836_v39, %v10762_v3  ;;  %v10857_v30 = vadd.f32 %v5837_v32, %v10765_v36  ;;  %v10860_v11 = vadd.f32 %v5838_v47, %v10768_v14  ;;  %v10863_v42 = vadd.f32 %v5839_v29, %v10771_v31  ;;  %v11980_v47 = vld [vmem:[#allocation8_spill] sm:$0xff] }
 0x2bf   : > { %v10866_v58 = vadd.f32 %v5841_v62, %v10774_v6  ;;  %v10869_v24 = vadd.f32 %v5843_v4, %v10777_v34  ;;  %v10872_v55 = vadd.f32 %v5845_v43, %v10780_v40  ;;  %v10875_v3 = vadd.f32 %v5847_v41, %v10783_v50  ;;  %v10889_v34 = vld [vmem:[#allocation2 + $0xc0] sm:$0xf8]  ;;  %v11976_v40 = vld [vmem:[#allocation18_spill] sm:$0xff]  ;;  %v11983_v4 = vld [vmem:[#allocation23_spill] sm:$0xff] }
 0x2c0   : > { %v10878_v36 = vadd.f32 %v5849_v63, %v10786_v56  ;;  %v10881_v14 = vadd.f32 %v5851_v44, %v10789_v54  ;;  %v10884_v31 = vadd.f32 %v5853_v53, %v10792_v10  ;;  %v10887_v6 = vadd.f32 %v5855_v16, %v10795_v52  ;;  %11975 = vst [vmem:[#allocation17_spill] sm:$0xff] %v10889_v34  ;;  %v11984_v43 = vld [vmem:[#allocation19_spill] sm:$0xff] }
 0x2c1   : > { %v5896_v1 = vrot.slane %v11976_v40, %v7019_v18  ;;  %v5900_v50 = vrot.slane %v11976_v40, %v7021_v19  ;;  %v5904_v56 = vrot.slane %v11976_v40, %v7023_v20  ;;  %v5908_v54 = vrot.slane %v11976_v40, %v7033_v25 }
 0x2c2   : > { %v5912_v10 = vrot.slane %v11976_v40, %v7035_v26  ;;  %v5916_v52 = vrot.slane %v11976_v40, %v7037_v27  ;;  %v5920_v39 = vrot.slane %v11976_v40, %v7039_v28  ;;  %v5924_v21 = vrot.slane %v11976_v40, %v7055_v37 }
 0x2c3   : > { %v5933_v22 = vmul.f32 %v5896_v1, %v10514_v7  ;;  %v5934_v61 = vmul.f32 %v5900_v50, %v11966_v9  ;;  %v5935_v15 = vmul.f32 %v5904_v56, %v11967_v49  ;;  %v5936_v46 = vmul.f32 %v5908_v54, %v11977_v13 }
 0x2c4   : > { %v5937_v48 = vmul.f32 %v5912_v10, %v11978_v45  ;;  %v5938_v32 = vmul.f32 %v5916_v52, %v11979_v5  ;;  %v5939_v29 = vmul.f32 %v5920_v39, %v11980_v47  ;;  %v5940_v23 = vmul.f32 %v5924_v21, %v10889_v34 }
 0x2c5   : > { %v5941_v38 = vmul.f32 %v5896_v1, %v11981_v51  ;;  %v5942_v62 = vmul.f32 %v5900_v50, %v11982_v12  ;;  %v5943_v7 = vmul.f32 %v5904_v56, %v11983_v4  ;;  %v5944_v41 = vmul.f32 %v5908_v54, %v11984_v43 }
 0x2c6   : > { %v5945_v63 = vmul.f32 %v5912_v10, %v10580_v17  ;;  %v5946_v44 = vmul.f32 %v5916_v52, %v10723_v33  ;;  %v5947_v53 = vmul.f32 %v5920_v39, %v10815_v57  ;;  %v5948_v16 = vmul.f32 %v5924_v21, %v10907_v59 }
 0x2c7   : > { %v5965_v40 = vrot.slane %v5933_v22, 6  ;;  %v5966_v47 = vrot.slane %v5934_v61, 6  ;;  %v5967_v5 = vrot.slane %v5935_v15, 6  ;;  %v5968_v34 = vrot.slane %v5936_v46, 6 }
 0x2c8   : > { %v5969_v45 = vrot.slane %v5937_v48, 6  ;;  %v5970_v1 = vrot.slane %v5938_v32, 6  ;;  %v5971_v51 = vrot.slane %v5939_v29, 6  ;;  %v5972_v50 = vrot.slane %v5940_v23, 6 }
 0x2c9   : > { %v5973_v12 = vrot.slane %v5941_v38, 6  ;;  %v5975_v56 = vrot.slane %v5942_v62, 6  ;;  %v5977_v4 = vrot.slane %v5943_v7, 6  ;;  %v5979_v54 = vrot.slane %v5944_v41, 6 }
 0x2ca   : > { %v5981_v43 = vrot.slane %v5945_v63, 6  ;;  %v5983_v10 = vrot.slane %v5946_v44, 6  ;;  %v5985_v17 = vrot.slane %v5947_v53, 6  ;;  %v5987_v52 = vrot.slane %v5948_v16, 6  ;;  %v11987_v63 = vld [vmem:[#allocation16_spill] sm:$0xff] }
 0x2cb   : > { %v5974_v39 = vsel %vm5565_vm4, %v5965_v40, %v5973_v12  ;;  %v5976_v21 = vsel %vm5565_vm4, %v5966_v47, %v5975_v56  ;;  %v5978_v22 = vsel %vm5565_vm4, %v5967_v5, %v5977_v4  ;;  %v5980_v61 = vsel %vm5565_vm4, %v5968_v34, %v5979_v54  ;;  %v11988_v53 = vld [vmem:[#allocation20_spill] sm:$0xff]  ;;  %v11991_v54 = vld [vmem:[#allocation15_spill] sm:$0xff] }
 0x2cc   : > { %v5982_v15 = vsel %vm5565_vm4, %v5969_v45, %v5981_v43  ;;  %v5984_v46 = vsel %vm5565_vm4, %v5970_v1, %v5983_v10  ;;  %v5986_v48 = vsel %vm5565_vm4, %v5971_v51, %v5985_v17  ;;  %v5988_v32 = vsel %vm5565_vm4, %v5972_v50, %v5987_v52  ;;  %v11992_v52 = vld [vmem:[#allocation23_spill] sm:$0xff] }
 0x2cd   : > { %v10934_v29 = vadd.f32 %v5965_v40, %v10842_v60  ;;  %v10937_v23 = vadd.f32 %v5966_v47, %v10845_v8  ;;  %v10940_v38 = vadd.f32 %v5967_v5, %v10848_v0  ;;  %v10943_v12 = vadd.f32 %v5968_v34, %v10851_v35  ;;  %v10999_v47 = vld [vmem:[#allocation2 + $0x138] sm:$0x7] }
 0x2ce   : > { %v10946_v62 = vadd.f32 %v5969_v45, %v10854_v2  ;;  %v10949_v4 = vadd.f32 %v5970_v1, %v10857_v30  ;;  %v10952_v17 = vadd.f32 %v5971_v51, %v10860_v11  ;;  %v10955_v60 = vadd.f32 %v5972_v50, %v10863_v42  ;;  %v11989_v40 = vld [vmem:[#allocation8_spill] sm:$0xff]  ;;  %v11990_v51 = vld [vmem:[#allocation17_spill] sm:$0xff] }
 0x2cf   : > { %v10958_v8 = vadd.f32 %v5974_v39, %v10866_v58  ;;  %v10961_v0 = vadd.f32 %v5976_v21, %v10869_v24  ;;  %v10964_v35 = vadd.f32 %v5978_v22, %v10872_v55  ;;  %v10967_v2 = vadd.f32 %v5980_v61, %v10875_v3  ;;  %v10981_v24 = vld [vmem:[#allocation2 + $0xc8] sm:$0xf8]  ;;  %v11986_v55 = vld [vmem:[#allocation11_spill] sm:$0xff]  ;;  %v11994_v22 = vld [vmem:[#allocation21_spill] sm:$0xff] }
 0x2d0   : > { %v10970_v30 = vadd.f32 %v5982_v15, %v10878_v36  ;;  %v10973_v11 = vadd.f32 %v5984_v46, %v10881_v14  ;;  %v10976_v42 = vadd.f32 %v5986_v48, %v10884_v31  ;;  %v10979_v58 = vadd.f32 %v5988_v32, %v10887_v6  ;;  %11985 = vst [vmem:[#allocation6_spill] sm:$0xff] %v10981_v24  ;;  %v11993_v21 = vld [vmem:[#allocation19_spill] sm:$0xff] }
 0x2d1   : > { %v6029_v34 = vrot.slane %v11986_v55, %v7019_v18  ;;  %v6033_v3 = vrot.slane %v11986_v55, %v7021_v19  ;;  %v6037_v36 = vrot.slane %v11986_v55, %v7023_v20  ;;  %v6041_v14 = vrot.slane %v11986_v55, %v7033_v25 }
 0x2d2   : > { %v6045_v31 = vrot.slane %v11986_v55, %v7035_v26  ;;  %v6049_v6 = vrot.slane %v11986_v55, %v7037_v27  ;;  %v6053_v45 = vrot.slane %v11986_v55, %v7039_v28  ;;  %v6057_v5 = vrot.slane %v11986_v55, %v7055_v37 }
 0x2d3   : > { %v6066_v7 = vmul.f32 %v6029_v34, %v11966_v9  ;;  %v6067_v43 = vmul.f32 %v6033_v3, %v11967_v49  ;;  %v6068_v41 = vmul.f32 %v6037_v36, %v11977_v13  ;;  %v6069_v44 = vmul.f32 %v6041_v14, %v11987_v63 }
 0x2d4   : > { %v6070_v16 = vmul.f32 %v6045_v31, %v11988_v53  ;;  %v6071_v1 = vmul.f32 %v6049_v6, %v11989_v40  ;;  %v6072_v50 = vmul.f32 %v6053_v45, %v11990_v51  ;;  %v6073_v56 = vmul.f32 %v6057_v5, %v10981_v24 }
 0x2d5   : > { %v6074_v10 = vmul.f32 %v6029_v34, %v11991_v54  ;;  %v6075_v39 = vmul.f32 %v6033_v3, %v11992_v52  ;;  %v6076_v9 = vmul.f32 %v6037_v36, %v11993_v21  ;;  %v6077_v61 = vmul.f32 %v6041_v14, %v11994_v22 }
 0x2d6   : > { %v6078_v15 = vmul.f32 %v6045_v31, %v10723_v33  ;;  %v6079_v46 = vmul.f32 %v6049_v6, %v10815_v57  ;;  %v6080_v48 = vmul.f32 %v6053_v45, %v10907_v59  ;;  %v6081_v32 = vmul.f32 %v6057_v5, %v10999_v47 }
 0x2d7   : > { %v6098_v55 = vrot.slane %v6066_v7, 6  ;;  %v6099_v51 = vrot.slane %v6067_v43, 6  ;;  %v6100_v40 = vrot.slane %v6068_v41, 6  ;;  %v6101_v24 = vrot.slane %v6069_v44, 6 }
 0x2d8   : > { %v6102_v53 = vrot.slane %v6070_v16, 6  ;;  %v6103_v34 = vrot.slane %v6071_v1, 6  ;;  %v6104_v54 = vrot.slane %v6072_v50, 6  ;;  %v6105_v3 = vrot.slane %v6073_v56, 6 }
 0x2d9   : > { %v6106_v52 = vrot.slane %v6074_v10, 6  ;;  %v6108_v36 = vrot.slane %v6075_v39, 6  ;;  %v6110_v21 = vrot.slane %v6076_v9, 6  ;;  %v6112_v14 = vrot.slane %v6077_v61, 6 }
 0x2da   : > { %v6114_v22 = vrot.slane %v6078_v15, 6  ;;  %v6116_v31 = vrot.slane %v6079_v46, 6  ;;  %v6118_v33 = vrot.slane %v6080_v48, 6  ;;  %v6120_v6 = vrot.slane %v6081_v32, 6  ;;  %v11997_v15 = vld [vmem:[#allocation20_spill] sm:$0xff] }
 0x2db   : > { %v6107_v45 = vsel %vm5565_vm4, %v6098_v55, %v6106_v52  ;;  %v6109_v5 = vsel %vm5565_vm4, %v6099_v51, %v6108_v36  ;;  %v6111_v7 = vsel %vm5565_vm4, %v6100_v40, %v6110_v21  ;;  %v6113_v43 = vsel %vm5565_vm4, %v6101_v24, %v6112_v14  ;;  %v11998_v48 = vld [vmem:[#allocation8_spill] sm:$0xff]  ;;  %v12001_v14 = vld [vmem:[#allocation23_spill] sm:$0xff] }
 0x2dc   : > { %v6115_v41 = vsel %vm5565_vm4, %v6102_v53, %v6114_v22  ;;  %v6117_v44 = vsel %vm5565_vm4, %v6103_v34, %v6116_v31  ;;  %v6119_v16 = vsel %vm5565_vm4, %v6104_v54, %v6118_v33  ;;  %v6121_v1 = vsel %vm5565_vm4, %v6105_v3, %v6120_v6  ;;  %v12002_v6 = vld [vmem:[#allocation19_spill] sm:$0xff] }
 0x2dd   : > { %v11026_v50 = vadd.f32 %v6098_v55, %v10934_v29  ;;  %v11029_v56 = vadd.f32 %v6099_v51, %v10937_v23  ;;  %v11032_v10 = vadd.f32 %v6100_v40, %v10940_v38  ;;  %v11035_v52 = vadd.f32 %v6101_v24, %v10943_v12  ;;  %v11091_v51 = vld [vmem:[#allocation2 + $0x140] sm:$0x7] }
 0x2de   : > { %v11038_v39 = vadd.f32 %v6102_v53, %v10946_v62  ;;  %v11041_v21 = vadd.f32 %v6103_v34, %v10949_v4  ;;  %v11044_v33 = vadd.f32 %v6104_v54, %v10952_v17  ;;  %v11047_v29 = vadd.f32 %v6105_v3, %v10955_v60  ;;  %v11999_v55 = vld [vmem:[#allocation17_spill] sm:$0xff]  ;;  %v12000_v54 = vld [vmem:[#allocation6_spill] sm:$0xff] }
 0x2df   : > { %v11050_v23 = vadd.f32 %v6107_v45, %v10958_v8  ;;  %v11053_v38 = vadd.f32 %v6109_v5, %v10961_v0  ;;  %v11056_v12 = vadd.f32 %v6111_v7, %v10964_v35  ;;  %v11059_v62 = vadd.f32 %v6113_v43, %v10967_v2  ;;  %v11073_v0 = vld [vmem:[#allocation2 + $0xd0] sm:$0xf8]  ;;  %v11996_v35 = vld [vmem:[#allocation9_spill] sm:$0xff]  ;;  %v12004_v7 = vld [vmem:[#allocation10_spill] sm:$0xff] }
 0x2e0   : > { %v11062_v4 = vadd.f32 %v6115_v41, %v10970_v30  ;;  %v11065_v17 = vadd.f32 %v6117_v44, %v10973_v11  ;;  %v11068_v60 = vadd.f32 %v6119_v16, %v10976_v42  ;;  %v11071_v8 = vadd.f32 %v6121_v1, %v10979_v58  ;;  %11995 = vst [vmem:[#allocation22_spill] sm:$0xff] %v11073_v0  ;;  %v12003_v5 = vld [vmem:[#allocation21_spill] sm:$0xff] }
 0x2e1   : > { %v6162_v24 = vrot.slane %v11996_v35, %v7019_v18  ;;  %v6166_v2 = vrot.slane %v11996_v35, %v7021_v19  ;;  %v6170_v30 = vrot.slane %v11996_v35, %v7023_v20  ;;  %v6174_v11 = vrot.slane %v11996_v35, %v7033_v25 }
 0x2e2   : > { %v6178_v42 = vrot.slane %v11996_v35, %v7035_v26  ;;  %v6182_v58 = vrot.slane %v11996_v35, %v7037_v27  ;;  %v6186_v53 = vrot.slane %v11996_v35, %v7039_v28  ;;  %v6190_v40 = vrot.slane %v11996_v35, %v7055_v37 }
 0x2e3   : > { %v6199_v9 = vmul.f32 %v6162_v24, %v11967_v49  ;;  %v6200_v22 = vmul.f32 %v6166_v2, %v11977_v13  ;;  %v6201_v61 = vmul.f32 %v6170_v30, %v11987_v63  ;;  %v6202_v46 = vmul.f32 %v6174_v11, %v11997_v15 }
 0x2e4   : > { %v6203_v32 = vmul.f32 %v6178_v42, %v11998_v48  ;;  %v6204_v34 = vmul.f32 %v6182_v58, %v11999_v55  ;;  %v6205_v3 = vmul.f32 %v6186_v53, %v12000_v54  ;;  %v6206_v36 = vmul.f32 %v6190_v40, %v11073_v0 }
 0x2e5   : > { %v6207_v31 = vmul.f32 %v6162_v24, %v12001_v14  ;;  %v6208_v45 = vmul.f32 %v6166_v2, %v12002_v6  ;;  %v6209_v49 = vmul.f32 %v6170_v30, %v12003_v5  ;;  %v6210_v43 = vmul.f32 %v6174_v11, %v12004_v7 }
 0x2e6   : > { %v6211_v41 = vmul.f32 %v6178_v42, %v10815_v57  ;;  %v6212_v44 = vmul.f32 %v6182_v58, %v10907_v59  ;;  %v6213_v16 = vmul.f32 %v6186_v53, %v10999_v47  ;;  %v6214_v1 = vmul.f32 %v6190_v40, %v11091_v51 }
 0x2e7   : > { %v6231_v35 = vrot.slane %v6199_v9, 6  ;;  %v6232_v54 = vrot.slane %v6200_v22, 6  ;;  %v6233_v55 = vrot.slane %v6201_v61, 6  ;;  %v6234_v0 = vrot.slane %v6202_v46, 6 }
 0x2e8   : > { %v6235_v48 = vrot.slane %v6203_v32, 6  ;;  %v6236_v24 = vrot.slane %v6204_v34, 6  ;;  %v6237_v14 = vrot.slane %v6205_v3, 6  ;;  %v6238_v2 = vrot.slane %v6206_v36, 6 }
 0x2e9   : > { %v6239_v6 = vrot.slane %v6207_v31, 6  ;;  %v6241_v30 = vrot.slane %v6208_v45, 6  ;;  %v6243_v5 = vrot.slane %v6209_v49, 6  ;;  %v6245_v11 = vrot.slane %v6210_v43, 6 }
 0x2ea   : > { %v6247_v7 = vrot.slane %v6211_v41, 6  ;;  %v6249_v42 = vrot.slane %v6212_v44, 6  ;;  %v6251_v57 = vrot.slane %v6213_v16, 6  ;;  %v6253_v58 = vrot.slane %v6214_v1, 6  ;;  %v12006_v41 = vld [vmem:[#allocation8_spill] sm:$0xff]  ;;  %v12007_v16 = vld [vmem:[#allocation17_spill] sm:$0xff] }
 0x2eb   : > { %v6240_v53 = vsel %vm5565_vm4, %v6231_v35, %v6239_v6  ;;  %v6242_v40 = vsel %vm5565_vm4, %v6232_v54, %v6241_v30  ;;  %v6244_v9 = vsel %vm5565_vm4, %v6233_v55, %v6243_v5  ;;  %v6246_v22 = vsel %vm5565_vm4, %v6234_v0, %v6245_v11  ;;  %v12010_v11 = vld [vmem:[#allocation19_spill] sm:$0xff] }
 0x2ec   : > { %v6248_v61 = vsel %vm5565_vm4, %v6235_v48, %v6247_v7  ;;  %v6250_v46 = vsel %vm5565_vm4, %v6236_v24, %v6249_v42  ;;  %v6252_v32 = vsel %vm5565_vm4, %v6237_v14, %v6251_v57  ;;  %v6254_v34 = vsel %vm5565_vm4, %v6238_v2, %v6253_v58  ;;  %v12011_v58 = vld [vmem:[#allocation21_spill] sm:$0xff] }
 0x2ed   : > { %v11118_v3 = vadd.f32 %v6231_v35, %v11026_v50  ;;  %v11121_v36 = vadd.f32 %v6232_v54, %v11029_v56  ;;  %v11124_v31 = vadd.f32 %v6233_v55, %v11032_v10  ;;  %v11127_v6 = vadd.f32 %v6234_v0, %v11035_v52  ;;  %v12005_v0 = vld [vmem:[#allocation14_spill] sm:$0xff] }
 0x2ee   : > { %v11130_v45 = vadd.f32 %v6235_v48, %v11038_v39  ;;  %v11133_v5 = vadd.f32 %v6236_v24, %v11041_v21  ;;  %v11136_v57 = vadd.f32 %v6237_v14, %v11044_v33  ;;  %v11139_v50 = vadd.f32 %v6238_v2, %v11047_v29  ;;  %v5487_v54 = vld [vmem:[#allocation2 + $0x148] sm:$0x7] }
 0x2ef   : > { %v11142_v56 = vadd.f32 %v6240_v53, %v11050_v23  ;;  %v11145_v10 = vadd.f32 %v6242_v40, %v11053_v38  ;;  %v11148_v52 = vadd.f32 %v6244_v9, %v11056_v12  ;;  %v11151_v39 = vadd.f32 %v6246_v22, %v11059_v62  ;;  %v5473_v38 = vld [vmem:[#allocation2 + $0xd8] sm:$0xf8]  ;;  %v12008_v35 = vld [vmem:[#allocation6_spill] sm:$0xff] }
 0x2f0   : > { %v11154_v21 = vadd.f32 %v6248_v61, %v11062_v4  ;;  %v11157_v33 = vadd.f32 %v6250_v46, %v11065_v17  ;;  %v11160_v29 = vadd.f32 %v6252_v32, %v11068_v60  ;;  %v11163_v23 = vadd.f32 %v6254_v34, %v11071_v8  ;;  %v12009_v14 = vld [vmem:[#allocation22_spill] sm:$0xff] }
 0x2f1   : > { %v6295_v12 = vrot.slane %v12005_v0, %v7019_v18  ;;  %v6299_v62 = vrot.slane %v12005_v0, %v7021_v19  ;;  %v6303_v4 = vrot.slane %v12005_v0, %v7023_v20  ;;  %v6307_v17 = vrot.slane %v12005_v0, %v7033_v25  ;;  %v12012_v40 = vld [vmem:[#allocation10_spill] sm:$0xff] }
 0x2f2   : > { %v6311_v60 = vrot.slane %v12005_v0, %v7035_v26  ;;  %v6315_v8 = vrot.slane %v12005_v0, %v7037_v27  ;;  %v6319_v48 = vrot.slane %v12005_v0, %v7039_v28  ;;  %v6323_v55 = vrot.slane %v12005_v0, %v7055_v37 }
 0x2f3   : > { %v6332_v49 = vmul.f32 %v6295_v12, %v11977_v13  ;;  %v6333_v7 = vmul.f32 %v6299_v62, %v11987_v63  ;;  %v6334_v43 = vmul.f32 %v6303_v4, %v11997_v15  ;;  %v6335_v44 = vmul.f32 %v6307_v17, %v12006_v41  ;;  %v12013_v13 = vld [vmem:[#allocation24_spill] sm:$0xff] }
 0x2f4   : > { %v6336_v1 = vmul.f32 %v6311_v60, %v12007_v16  ;;  %v6337_v24 = vmul.f32 %v6315_v8, %v12008_v35  ;;  %v6338_v2 = vmul.f32 %v6319_v48, %v12009_v14  ;;  %v6339_v30 = vmul.f32 %v6323_v55, %v5473_v38 }
 0x2f5   : > { %v6340_v42 = vmul.f32 %v6295_v12, %v12010_v11  ;;  %v6341_v53 = vmul.f32 %v6299_v62, %v12011_v58  ;;  %v6342_v9 = vmul.f32 %v6303_v4, %v12012_v40  ;;  %v6343_v22 = vmul.f32 %v6307_v17, %v12013_v13 }
 0x2f6   : > { %v6344_v63 = vmul.f32 %v6311_v60, %v10907_v59  ;;  %v6345_v15 = vmul.f32 %v6315_v8, %v10999_v47  ;;  %v6346_v61 = vmul.f32 %v6319_v48, %v11091_v51  ;;  %v6347_v46 = vmul.f32 %v6323_v55, %v5487_v54 }
 0x2f7   : > { %v6364_v32 = vrot.slane %v6332_v49, 6  ;;  %v6365_v34 = vrot.slane %v6333_v7, 6  ;;  %v6366_v0 = vrot.slane %v6334_v43, 6  ;;  %v6367_v41 = vrot.slane %v6335_v44, 6 }
 0x2f8   : > { %v6368_v38 = vrot.slane %v6336_v1, 6  ;;  %v6369_v16 = vrot.slane %v6337_v24, 6  ;;  %v6370_v12 = vrot.slane %v6338_v2, 6  ;;  %v6371_v35 = vrot.slane %v6339_v30, 6 }
 0x2f9   : > { %v6372_v62 = vrot.slane %v6340_v42, 6  ;;  %v6374_v14 = vrot.slane %v6341_v53, 6  ;;  %v6376_v4 = vrot.slane %v6342_v9, 6  ;;  %v6378_v11 = vrot.slane %v6343_v22, 6 }
 0x2fa   : > { %v6380_v17 = vrot.slane %v6344_v63, 6  ;;  %v6382_v58 = vrot.slane %v6345_v15, 6  ;;  %v6384_v59 = vrot.slane %v6346_v61, 6  ;;  %v6386_v60 = vrot.slane %v6347_v46, 6 }
 0x2fb   : > { %v6373_v47 = vsel %vm5565_vm4, %v6364_v32, %v6372_v62  ;;  %v6375_v51 = vsel %vm5565_vm4, %v6365_v34, %v6374_v14  ;;  %v6377_v8 = vsel %vm5565_vm4, %v6366_v0, %v6376_v4  ;;  %v6379_v48 = vsel %vm5565_vm4, %v6367_v41, %v6378_v11  ;;  %v12017_v14 = vld [vmem:[#allocation13_spill] sm:$0xff] }
 0x2fc   : > { %v6381_v55 = vsel %vm5565_vm4, %v6368_v38, %v6380_v17  ;;  %v6383_v54 = vsel %vm5565_vm4, %v6369_v16, %v6382_v58  ;;  %v6385_v49 = vsel %vm5565_vm4, %v6370_v12, %v6384_v59  ;;  %v6387_v7 = vsel %vm5565_vm4, %v6371_v35, %v6386_v60 }
 0x2fd   : > { %v6404_v43 = vadd.f32 %v6364_v32, %v11118_v3  ;;  %v6405_v44 = vadd.f32 %v6365_v34, %v11121_v36  ;;  %v6406_v1 = vadd.f32 %v6366_v0, %v11124_v31  ;;  %v6407_v24 = vadd.f32 %v6367_v41, %v11127_v6 }
 0x2fe   : > { %v6408_v2 = vadd.f32 %v6368_v38, %v11130_v45  ;;  %v6409_v30 = vadd.f32 %v6369_v16, %v11133_v5  ;;  %v6410_v42 = vadd.f32 %v6370_v12, %v11136_v57  ;;  %v6411_v53 = vadd.f32 %v6371_v35, %v11139_v50  ;;  %v12014_v57 = vld [vmem:[#allocation4_spill] sm:$0xff] }
 0x2ff   : > { %v6412_v40 = vadd.f32 %v6373_v47, %v11142_v56  ;;  %v6413_v9 = vadd.f32 %v6375_v51, %v11145_v10  ;;  %v6414_v3 = vadd.f32 %v6377_v8, %v11148_v52  ;;  %v6415_v36 = vadd.f32 %v6379_v48, %v11151_v39 }
 0x300   : > { %v6416_v31 = vadd.f32 %v6381_v55, %v11154_v21  ;;  %v6417_v6 = vadd.f32 %v6383_v54, %v11157_v33  ;;  %v6418_v45 = vadd.f32 %v6385_v49, %v11160_v29  ;;  %v6419_v5 = vadd.f32 %v6387_v7, %v11163_v23  ;;  %v12015_v21 = vld [vmem:[#allocation12_spill] sm:$0xff]  ;;  %v12016_v29 = vld [vmem:[#allocation3_spill] sm:$0xff] }
 0x301   : > { %v6432_v13 = vrot.slane %v12014_v57, %v7023_v20  ;;  %v6436_v50 = vrot.slane %v12014_v57, %v7033_v25  ;;  %v6440_v56 = vrot.slane %v12014_v57, %v7035_v26  ;;  %v6444_v10 = vrot.slane %v12014_v57, %v7037_v27 }
 0x302   : > { %v6448_v52 = vrot.slane %v12014_v57, %v7039_v28  ;;  %v6452_v39 = vrot.slane %v12014_v57, %v7055_v37  ;;  %v6461_v33 = vmul.f32 %v12015_v21, %v6404_v43  ;;  %v6462_v23 = vmul.f32 %v12016_v29, %v6405_v44 }
 0x303   : > { %v6463_v22 = vmul.f32 %v6432_v13, %v6406_v1  ;;  %v6464_v63 = vmul.f32 %v6436_v50, %v6407_v24  ;;  %v6465_v15 = vmul.f32 %v6440_v56, %v6408_v2  ;;  %v6466_v61 = vmul.f32 %v6444_v10, %v6409_v30 }
 0x304   : > { %v6467_v46 = vmul.f32 %v6448_v52, %v6410_v42  ;;  %v6468_v32 = vmul.f32 %v6452_v39, %v6411_v53  ;;  %v6469_v34 = vmul.f32 %v12015_v21, %v6412_v40  ;;  %v6470_v0 = vmul.f32 %v12016_v29, %v6413_v9 }
 0x305   : > { %v6471_v41 = vmul.f32 %v6432_v13, %v6414_v3  ;;  %v6472_v38 = vmul.f32 %v6436_v50, %v6415_v36  ;;  %v6473_v16 = vmul.f32 %v6440_v56, %v6416_v31  ;;  %v6474_v12 = vmul.f32 %v6444_v10, %v6417_v6 }
 0x306   : > { %v6475_v35 = vmul.f32 %v6448_v52, %v6418_v45  ;;  %v6476_v62 = vmul.f32 %v6452_v39, %v6419_v5  ;;  %v6481_v4 = vrot.slane %v12017_v14, %v7019_v18  ;;  %v6485_v11 = vrot.slane %v12017_v14, %v7021_v19 }
 0x307   : > { %v6489_v17 = vrot.slane %v12017_v14, %v7023_v20  ;;  %v6493_v58 = vrot.slane %v12017_v14, %v7033_v25  ;;  %v6497_v59 = vrot.slane %v12017_v14, %v7035_v26  ;;  %v6501_v60 = vrot.slane %v12017_v14, %v7037_v27 }
 0x308   : > { %v6505_v47 = vrot.slane %v12017_v14, %v7039_v28  ;;  %v6509_v18 = vrot.slane %v12017_v14, %v7055_v37  ;;  %v6518_v51 = vadd.f32 %v6481_v4, %v6461_v33  ;;  %v6519_v19 = vadd.f32 %v6485_v11, %v6462_v23 }
 0x309   : > { %v6520_v8 = vadd.f32 %v6489_v17, %v6463_v22  ;;  %v6521_v48 = vadd.f32 %v6493_v58, %v6464_v63  ;;  %v6522_v20 = vadd.f32 %v6497_v59, %v6465_v15  ;;  %v6523_v55 = vadd.f32 %v6501_v60, %v6466_v61 }
 0x30a   : > { %v6524_v54 = vadd.f32 %v6505_v47, %v6467_v46  ;;  %v6525_v25 = vadd.f32 %v6509_v18, %v6468_v32  ;;  %v6526_v49 = vadd.f32 %v6481_v4, %v6469_v34  ;;  %v6527_v7 = vadd.f32 %v6485_v11, %v6470_v0 }
 0x30b   : > { %v6528_v26 = vadd.f32 %v6489_v17, %v6471_v41  ;;  %v6529_v43 = vadd.f32 %v6493_v58, %v6472_v38  ;;  %v6530_v44 = vadd.f32 %v6497_v59, %v6473_v16  ;;  %v6531_v27 = vadd.f32 %v6501_v60, %v6474_v12 }
 0x30c   : > { %v6532_v1 = vadd.f32 %v6505_v47, %v6475_v35  ;;  %v6533_v28 = vadd.f32 %v6509_v18, %v6476_v62  ;;  %v6550_v24 = vrot.slane %v6518_v51, 5  ;;  %v6551_v2 = vrot.slane %v6526_v49, 5 }
 0x30d   : > { %v6553_v37 = vrot.slane %v6519_v19, 5  ;;  %v6554_v30 = vrot.slane %v6527_v7, 5  ;;  %v6556_v42 = vrot.slane %v6520_v8, 5  ;;  %v6557_v53 = vrot.slane %v6528_v26, 5 }
 0x30e   : > { %v6552_v40 = vsel %vm4605_vm3, %v6550_v24, %v6551_v2  ;;  %v6559_v9 = vrot.slane %v6521_v48, 5  ;;  %v6560_v3 = vrot.slane %v6529_v43, 5  ;;  %v6562_v36 = vrot.slane %v6522_v20, 5 }
 0x30f   : > { %v6555_v31 = vsel %vm4605_vm3, %v6553_v37, %v6554_v30  ;;  %v6558_v6 = vsel %vm4605_vm3, %v6556_v42, %v6557_v53  ;;  %v6563_v45 = vrot.slane %v6530_v44, 5  ;;  %v6565_v5 = vrot.slane %v6523_v55, 5  ;;  %6582 = vst [vmem:[%s6996_s16] sm:$0xff] %v6552_v40 }
 0x310   : > { %v6561_v57 = vsel %vm4605_vm3, %v6559_v9, %v6560_v3  ;;  %v6566_v13 = vrot.slane %v6531_v27, 5  ;;  %v6568_v50 = vrot.slane %v6524_v54, 5  ;;  %v6569_v56 = vrot.slane %v6532_v1, 5  ;;  %6583 = vst [vmem:[%s6996_s16 + $0x8] sm:$0xff] %v6555_v31  ;;  %6584 = vst [vmem:[%s6996_s16 + $0x10] sm:$0xff] %v6558_v6 }
 0x311   : > { %v6564_v10 = vsel %vm4605_vm3, %v6562_v36, %v6563_v45  ;;  %v6571_v52 = vrot.slane %v6525_v25, 5  ;;  %v6572_v39 = vrot.slane %v6533_v28, 5  ;;  %6585 = vst [vmem:[%s6996_s16 + $0x18] sm:$0xff] %v6561_v57 }
 0x312   : > { %v6567_v21 = vsel %vm4605_vm3, %v6565_v5, %v6566_v13  ;;  %v6570_v33 = vsel %vm4605_vm3, %v6568_v50, %v6569_v56  ;;  %6586 = vst [vmem:[%s6996_s16 + $0x20] sm:$0xff] %v6564_v10 }
 0x313   : > { %v6573_v29 = vsel %vm4605_vm3, %v6571_v52, %v6572_v39  ;;  %6587 = vst [vmem:[%s6996_s16 + $0x28] sm:$0xff] %v6567_v21  ;;  %6588 = vst [vmem:[%s6996_s16 + $0x30] sm:$0xff] %v6570_v33 }
 0x314   : > { %6589 = vst [vmem:[%s6996_s16 + $0x38] sm:$0xff] %v6573_v29 }
 0x315 PF: > { %s15_s22 = sadd.s32 1, %s6914_s22   ;;  %s12018_s18 = smov %s6906_s20 }
 0x316   : > { %p12_p8 = scmp.ge.s32.totalorder %s15_s22, 10   ;;  %s12019_s19 = smov %s6910_s21 }
 0x317   : > { %s12020_s20 = smov %s12023_s23  ;;  %s12021_s21 = smov %s12027_s24 }
 0x318   :  { %14 = sbr.rel (!%p12_p8) target bundleno = 3 (0x3), region = 128 }

</bundles_post_ra>
